<compile_context>
chip_gen: v7x
topology: tpu7x:2x2x1
jax: 0.10.0
libtpu: 0.0.40
codegen_flags: <defaults>
</compile_context>

<pallas_src>
import jax
import jax.numpy as jnp
from jax.experimental import pallas as pl
from jax.experimental.pallas import tpu as pltpu


# ------------------------- flat-layout geometry ------------------------------
# Stage A (28x28 maps): row-major flat layout with padded width WA=32
#   -> 896 flat rows; columns x>=28 are alignment junk (kept at 0).
# Stage B (14x14 maps): padded width WB=16 -> 224 flat rows; junk at x>=14.
WA, HA = 32, 28
MA = HA * WA                 # 896
WB, HB = 16, 14
MB = HB * WB                 # 224
KSLAB = 96                   # folded contraction per dx group: 3 (dy) * 32 (cin)

R0A = 40                     # dot-window start row in a stage-A slab (8-aligned, > WA+1)
S2R = 976                    # per-image stage-A slab rows (>= R0A + WA + MA = 968)
R0B = 24                     # dot-window start row in a stage-B slab (8-aligned, > WB+1)
S3R = 264                    # per-image stage-B slab rows (= R0B + WB + MB)
VP2 = HB * WA                # 448: vertically pooled stage-A rows
VP3 = 7 * WB                 # 112: vertically pooled stage-B rows


# ------------------------------ kernel helpers -------------------------------

def _affine_prelu_bn(y, p_ref):
    # p_ref rows: 0 = conv bias, 1 = PReLU alpha (shared), 2/3 = folded BN scale/shift
    y = y + p_ref[0:1, :]
    y = jnp.where(y >= 0.0, y, y * p_ref[1:2, :])
    return y * p_ref[2:3, :] + p_ref[3:4, :]


# ------------------------------ fused encoder --------------------------------

def _encoder_kernel(x1_ref, w1_ref, p1_ref, w2_ref, p2_ref, w3_ref, p3_ref,
                    ma_ref, mb_ref, o_ref, slab2, slab3, vp2, vp3):
    f32, bf16 = jnp.float32, jnp.bfloat16
    G = o_ref.shape[0]

    for g in range(G):                               # static unroll over images
        b2, b3 = g * S2R, g * S3R

        # Zero only the halo margin rows (interiors are fully overwritten each
        # step; doing this every step keeps "parallel" megacore sharding safe).
        slab2[b2:b2 + 72, :] = jnp.zeros((72, KSLAB), bf16)
        slab2[b2 + 896:b2 + S2R, :] = jnp.zeros((S2R - 896, KSLAB), bf16)
        slab3[b3:b3 + 40, :] = jnp.zeros((40, KSLAB), bf16)
        slab3[b3 + 232:b3 + S3R, :] = jnp.zeros((S3R - 232, KSLAB), bf16)

        # ---- conv1: single (896, 9) @ (9, 32) matmul + PReLU + BN(eval) ----
        y = jnp.dot(x1_ref[g], w1_ref[...], preferred_element_type=f32)
        y = _affine_prelu_bn(y, p1_ref)
        y = (y * ma_ref[...]).astype(bf16)           # zero junk columns x >= 28
        # scatter the three dy-shifted copies into conv2's K-folded slab
        for dy in range(3):
            s = b2 + R0A - (dy - 1) * WA             # 72 / 40 / 8 (all 8-aligned)
            slab2[s:s + MA, dy * 32:(dy + 1) * 32] = y

        # ---- conv2: 3 accumulated (896, 96) @ (96, 32) dots (dx = -1,0,+1) --
        acc = None
        for dx in range(3):
            w0 = b2 + R0A + dx - 1
            d = jnp.dot(slab2[w0:w0 + MA, :], w2_ref[dx],
                        preferred_element_type=f32)
            acc = d if acc is None else acc + d
        y = _affine_prelu_bn(acc, p2_ref)            # (896, 32) f32

        # ---- 2x2 maxpool 28x28 -> 14x14 (vertical on values, horizontal via
        #      stride-2 scratch reads).  Dropout(0.2) = identity in eval. ----
        v = y.reshape(HB, 2 * WA, 32)
        vp2[g * VP2:(g + 1) * VP2, :] = jnp.maximum(
            v[:, :WA, :], v[:, WA:, :]).reshape(VP2, 32)
        h = jnp.maximum(vp2[pl.ds(g * VP2, MB, stride=2), :],
                        vp2[pl.ds(g * VP2 + 1, MB, stride=2), :])
        h = (h * mb_ref[...]).astype(bf16)           # zero pooled junk cols x >= 14
        for dy in range(3):
            s = b3 + R0B - (dy - 1) * WB             # 40 / 24 / 8
            slab3[s:s + MB, dy * 32:(dy + 1) * 32] = h

        # ---- conv3: 3 accumulated (224, 96) @ (96, 64) dots ----
        acc = None
        for dx in range(3):
            w0 = b3 + R0B + dx - 1
            d = jnp.dot(slab3[w0:w0 + MB, :], w3_ref[dx],
                        preferred_element_type=f32)
            acc = d if acc is None else acc + d
        y = _affine_prelu_bn(acc, p3_ref)            # (224, 64) f32

        # ---- 2x2 maxpool 14x14 -> 7x7 ----
        v = y.reshape(7, 2 * WB, 64)
        vp3[g * VP3:(g + 1) * VP3, :] = jnp.maximum(
            v[:, :WB, :], v[:, WB:, :]).reshape(VP3, 64)
        f = jnp.maximum(vp3[pl.ds(g * VP3, 56, stride=2), :],
                        vp3[pl.ds(g * VP3 + 1, 56, stride=2), :])
        # junk column (w=7) stays non-zeroed; the folded head weight is 0 there.
        o_ref[g] = f.astype(o_ref.dtype)             # (56, 64) = (7, 8, 64)


def _pick_group(b):
    # images per grid step: keep B % G == 0 and grid length >= 2 (v7x has 2 TCs)
    for g in (8, 4, 2):
        if b % g == 0 and b // g >= 2:
            return g
    return 1


def encoder_forward(params, x_nchw):
    b = x_nchw.shape[0]
    G = _pick_group(b)
    img = x_nchw.reshape(b, 28, 28).astype(jnp.float32)

    # conv1-only wrapper-side im2col (Cin=1, ~16 KB/image): zero-pad the image
    # into the (30, 32) flat grid, build 9 shifted row-slices, stack on K.
    padded = jnp.zeros((b, 30, WA), jnp.float32).at[:, 1:29, 1:29].set(img)
    flat = jnp.pad(padded.reshape(b, 30 * WA), ((0, 0), (0, 8)))      # (b, 968)
    taps = [flat[:, dy * WA + dx: dy * WA + dx + MA]
            for dy in range(3) for dx in range(3)]
    x1 = jnp.stack(taps, axis=-1).astype(jnp.bfloat16)                # (b, 896, 9)

    feats = pl.pallas_call(
        _encoder_kernel,
        out_shape=jax.ShapeDtypeStruct((b, 56, 64), jnp.bfloat16),
        grid=(b // G,),
        in_specs=[
            pl.BlockSpec((G, MA, 9), lambda i: (i, 0, 0)),
            pl.BlockSpec((9, 32), lambda i: (0, 0)),
            pl.BlockSpec((4, 32), lambda i: (0, 0)),
            pl.BlockSpec((3, KSLAB, 32), lambda i: (0, 0, 0)),
            pl.BlockSpec((4, 32), lambda i: (0, 0)),
            pl.BlockSpec((3, KSLAB, 64), lambda i: (0, 0, 0)),
            pl.BlockSpec((4, 64), lambda i: (0, 0)),
            pl.BlockSpec((MA, 1), lambda i: (0, 0)),
            pl.BlockSpec((MB, 1), lambda i: (0, 0)),
        ],
        out_specs=pl.BlockSpec((G, 56, 64), lambda i: (i, 0, 0)),
        scratch_shapes=[
            pltpu.VMEM((G * S2R, KSLAB), jnp.bfloat16),   # conv2 K-folded slab
            pltpu.VMEM((G * S3R, KSLAB), jnp.bfloat16),   # conv3 K-folded slab
            pltpu.VMEM((G * VP2, 32), jnp.float32),       # vertically pooled conv2
            pltpu.VMEM((G * VP3, 64), jnp.float32),       # vertically pooled conv3
        ],
        compiler_params=pltpu.CompilerParams(
            dimension_semantics=("parallel",),
            vmem_limit_bytes=32 * 1024 * 1024),
    )(x1, params["c1_w"], params["c1_p"], params["c2_w"], params["c2_p"],
      params["c3_w"], params["c3_p"], params["mask_a"], params["mask_b"])
    return feats.reshape(b, 56 * 64)                      # free XLA reshape (B, 3584)


# ------------------------------- folded head ----------------------------------
# The reference model applies Classifier directly on the denselayer1 output
# (no nonlinearity), so fc2 is folded into fc1 offline -> one matmul.

def _head_kernel(x_ref, w_ref, b_ref, o_ref):
    o_ref[...] = jnp.dot(x_ref[...], w_ref[...],
                         preferred_element_type=jnp.float32) + b_ref[...]


def head_forward(params, feats):
    b = feats.shape[0]
    f, classes = params["head_w"].shape
    return pl.pallas_call(
        _head_kernel,
        out_shape=jax.ShapeDtypeStruct((b, classes), jnp.float32),
        grid=(1,),
        in_specs=[
            pl.BlockSpec((b, f), lambda i: (0, 0)),
            pl.BlockSpec((f, classes), lambda i: (0, 0)),
            pl.BlockSpec((1, classes), lambda i: (0, 0)),
        ],
        out_specs=pl.BlockSpec((b, classes), lambda i: (0, 0)),
    )(feats, params["head_w"], params["head_b"])


# ---------------------------- parameter creation -----------------------------

def _bn_eval(key, c):
    kg, kb, km, kv = jax.random.split(key, 4)
    gamma = 1.0 + 0.1 * jax.random.normal(kg, (c,), jnp.float32)
    beta = 0.1 * jax.random.normal(kb, (c,), jnp.float32)
    mean = 0.1 * jax.random.normal(km, (c,), jnp.float32)
    var = 0.5 + jax.random.uniform(kv, (c,), jnp.float32)
    scale = gamma / jnp.sqrt(var + 1e-5)
    shift = beta - mean * scale
    return scale, shift


def _conv_affine(bias, alpha, scale, shift):
    c = scale.shape[0]
    return jnp.stack(
        [bias, jnp.full((c,), alpha, jnp.float32), scale, shift]).astype(jnp.float32)


def init_params(key, code_length=32, classes=10):
    ks = jax.random.split(key, 12)
    p = {}

    # convlayer1: Conv2d(1, 32, 3, padding=1, bias=False) + PReLU + BatchNorm2d(32)
    w1 = 0.1 * jax.random.normal(ks[0], (32, 1, 3, 3), jnp.float32)
    p["c1_w"] = jnp.transpose(w1[:, 0], (1, 2, 0)).reshape(9, 32).astype(jnp.bfloat16)
    s1, t1 = _bn_eval(ks[1], 32)
    p["c1_p"] = _conv_affine(jnp.zeros((32,), jnp.float32), 0.25, s1, t1)

    # convlayer2: Conv2d(32, 32) + PReLU + BN + MaxPool + Dropout
    w2 = 0.1 * jax.random.normal(ks[2], (32, 32, 3, 3), jnp.float32)
    # K-folded per-dx weight: [dx, dy*32 + cin, cout]
    p["c2_w"] = jnp.transpose(w2, (3, 2, 1, 0)).reshape(3, KSLAB, 32).astype(jnp.bfloat16)
    b2 = 0.1 * jax.random.normal(ks[3], (32,), jnp.float32)
    s2, t2 = _bn_eval(ks[4], 32)
    p["c2_p"] = _conv_affine(b2, 0.25, s2, t2)

    # convlayer3: Conv2d(32, 64) + PReLU + BN + MaxPool + Dropout
    w3 = 0.1 * jax.random.normal(ks[5], (64, 32, 3, 3), jnp.float32)
    p["c3_w"] = jnp.transpose(w3, (3, 2, 1, 0)).reshape(3, KSLAB, 64).astype(jnp.bfloat16)
    b3 = 0.1 * jax.random.normal(ks[6], (64,), jnp.float32)
    s3, t3 = _bn_eval(ks[7], 64)
    p["c3_p"] = _conv_affine(b3, 0.25, s3, t3)

    # precomputed junk-column masks (multiplicative, per flat row)
    p["mask_a"] = (jnp.arange(MA) % WA < 28).astype(jnp.float32).reshape(MA, 1)
    p["mask_b"] = (jnp.arange(MB) % WB < 14).astype(jnp.float32).reshape(MB, 1)

    # denselayer1: Linear(64*7*7 -> code);  Classifier: Linear(code -> classes)
    fc1_w = 0.05 * jax.random.normal(ks[8], (code_length, 64 * 7 * 7), jnp.float32)
    fc1_b = 0.05 * jax.random.normal(ks[9], (code_length,), jnp.float32)
    fc2_w = 0.05 * jax.random.normal(ks[10], (classes, code_length), jnp.float32)
    fc2_b = 0.05 * jax.random.normal(ks[11], (classes,), jnp.float32)
    # PyTorch flatten order is (c, h, w); the kernel emits (h, w8, c) with a zero
    # junk column at w=7 -> permute + zero-pad fc1 to (7*8*64, code), then fold
    # fc2 into it (exact in f32: no activation between the two Linears).
    w1r = jnp.transpose(fc1_w.reshape(code_length, 64, 7, 7), (0, 2, 3, 1))
    w1r = jnp.pad(w1r, ((0, 0), (0, 0), (0, 1), (0, 0)))
    w1r = w1r.reshape(code_length, 7 * 8 * 64).T                     # (3584, code)
    p["head_w"] = (w1r @ fc2_w.T).astype(jnp.bfloat16)               # (3584, classes)
    p["head_b"] = (fc1_b @ fc2_w.T + fc2_b).reshape(1, classes)      # f32
    return p


# --------------------------------- forward -----------------------------------

def fmnist_cnn_forward(params, x_nchw):
    feats = encoder_forward(params, x_nchw)   # (B, 3584) bf16, conv/pool in 1 kernel
    return head_forward(params, feats)        # (B, classes) f32


# ----------------------------------- main -------------------------------------

if __name__ == "__main__":
    key = jax.random.PRNGKey(0)
    kp, kx = jax.random.split(key)
    params = init_params(kp, code_length=32, classes=10)

    # FMNIST input: batch=2, 1 channel, 28x28 (28 required by the 64*7*7 Linear)
    x = jax.random.normal(kx, (2, 1, 28, 28), jnp.float32)

    fwd = jax.jit(fmnist_cnn_forward)
    logits = jax.block_until_ready(fwd(params, x))
    assert logits.shape == (2, 10) and logits.dtype == jnp.float32
    assert bool(jnp.all(jnp.isfinite(logits)))
    print("KERNEL_OK")
</pallas_src>

<mosaic_0001>
module attributes {stable_mosaic.version = 11 : i64} {
  func.func @_encoder_kernel(%arg0: i32, %arg1: memref<1x896x9xbf16, #tpu.memory_space<vmem>>, %arg2: memref<9x32xbf16, #tpu.memory_space<vmem>>, %arg3: memref<4x32xf32, #tpu.memory_space<vmem>>, %arg4: memref<3x96x32xbf16, #tpu.memory_space<vmem>>, %arg5: memref<4x32xf32, #tpu.memory_space<vmem>>, %arg6: memref<3x96x64xbf16, #tpu.memory_space<vmem>>, %arg7: memref<4x64xf32, #tpu.memory_space<vmem>>, %arg8: memref<896x1xf32, #tpu.memory_space<vmem>>, %arg9: memref<224x1xf32, #tpu.memory_space<vmem>>, %arg10: memref<1x56x64xbf16, #tpu.memory_space<vmem>>, %arg11: memref<976x96xbf16, #tpu.memory_space<vmem>>, %arg12: memref<264x96xbf16, #tpu.memory_space<vmem>>, %arg13: memref<448x32xf32, #tpu.memory_space<vmem>>, %arg14: memref<112x64xf32, #tpu.memory_space<vmem>>) attributes {dimension_semantics = [#tpu.dimension_semantics<parallel>], iteration_bounds = array<i64: 2>, scalar_prefetch = 0 : i64, scratch_operands = 4 : i64, tpu.core_type = #tpu.core_type<tc>, window_params = [{transform_indices = @transform_0, window_bounds = array<i64: 1, 896, 9>}, {pipeline_mode = #tpu.pipeline_mode<synchronous>, transform_indices = @transform_1, window_bounds = array<i64: 9, 32>}, {pipeline_mode = #tpu.pipeline_mode<synchronous>, transform_indices = @transform_2, window_bounds = array<i64: 4, 32>}, {pipeline_mode = #tpu.pipeline_mode<synchronous>, transform_indices = @transform_3, window_bounds = array<i64: 3, 96, 32>}, {pipeline_mode = #tpu.pipeline_mode<synchronous>, transform_indices = @transform_4, window_bounds = array<i64: 4, 32>}, {pipeline_mode = #tpu.pipeline_mode<synchronous>, transform_indices = @transform_5, window_bounds = array<i64: 3, 96, 64>}, {pipeline_mode = #tpu.pipeline_mode<synchronous>, transform_indices = @transform_6, window_bounds = array<i64: 4, 64>}, {pipeline_mode = #tpu.pipeline_mode<synchronous>, transform_indices = @transform_7, window_bounds = array<i64: 896, 1>}, {pipeline_mode = #tpu.pipeline_mode<synchronous>, transform_indices = @transform_8, window_bounds = array<i64: 224, 1>}, {transform_indices = @transform_9, window_bounds = array<i64: 1, 56, 64>}]} {
    %cst = arith.constant 0.000000e+00 : bf16
    %0 = vector.broadcast %cst : bf16 to vector<72x96xbf16>
    %c0 = arith.constant 0 : index
    %c0_0 = arith.constant 0 : index
    %1 = vector.load %arg11[%c0, %c0_0] : memref<976x96xbf16, #tpu.memory_space<vmem>>, vector<72x96xbf16>
    tpu.vector_store %arg11[%c0, %c0_0], %0 {strides = array<i32>} : memref<976x96xbf16, #tpu.memory_space<vmem>>, vector<72x96xbf16>,
    %cst_1 = arith.constant 0.000000e+00 : bf16
    %2 = vector.broadcast %cst_1 : bf16 to vector<80x96xbf16>
    %c896 = arith.constant 896 : index
    %c0_2 = arith.constant 0 : index
    %3 = vector.load %arg11[%c896, %c0_2] : memref<976x96xbf16, #tpu.memory_space<vmem>>, vector<80x96xbf16>
    tpu.vector_store %arg11[%c896, %c0_2], %2 {strides = array<i32>} : memref<976x96xbf16, #tpu.memory_space<vmem>>, vector<80x96xbf16>,
    %cst_3 = arith.constant 0.000000e+00 : bf16
    %4 = vector.broadcast %cst_3 : bf16 to vector<40x96xbf16>
    %c0_4 = arith.constant 0 : index
    %c0_5 = arith.constant 0 : index
    %5 = vector.load %arg12[%c0_4, %c0_5] : memref<264x96xbf16, #tpu.memory_space<vmem>>, vector<40x96xbf16>
    tpu.vector_store %arg12[%c0_4, %c0_5], %4 {strides = array<i32>} : memref<264x96xbf16, #tpu.memory_space<vmem>>, vector<40x96xbf16>,
    %cst_6 = arith.constant 0.000000e+00 : bf16
    %6 = vector.broadcast %cst_6 : bf16 to vector<32x96xbf16>
    %c232 = arith.constant 232 : index
    %c0_7 = arith.constant 0 : index
    %7 = vector.load %arg12[%c232, %c0_7] : memref<264x96xbf16, #tpu.memory_space<vmem>>, vector<32x96xbf16>
    tpu.vector_store %arg12[%c232, %c0_7], %6 {strides = array<i32>} : memref<264x96xbf16, #tpu.memory_space<vmem>>, vector<32x96xbf16>,
    %c0_8 = arith.constant 0 : index
    %c0_9 = arith.constant 0 : index
    %c0_10 = arith.constant 0 : index
    %8 = vector.load %arg1[%c0_8, %c0_9, %c0_10] : memref<1x896x9xbf16, #tpu.memory_space<vmem>>, vector<1x896x9xbf16>
    %9 = vector.shape_cast %8 : vector<1x896x9xbf16> to vector<896x9xbf16>
    %c0_11 = arith.constant 0 : index
    %c0_12 = arith.constant 0 : index
    %10 = vector.load %arg2[%c0_11, %c0_12] : memref<9x32xbf16, #tpu.memory_space<vmem>>, vector<9x32xbf16>
    %cst_13 = arith.constant dense<0.000000e+00> : vector<896x32xf32>
    %11 = tpu.matmul %9, %10, %cst_13 {dimension_numbers = #tpu.dot_dimension_numbers<[1], [0], [0], [1], [0, 0, 1, 1], [], []>} : vector<896x9xbf16>, vector<9x32xbf16>, vector<896x32xf32> -> vector<896x32xf32>
    %c0_14 = arith.constant 0 : index
    %c0_15 = arith.constant 0 : index
    %12 = vector.load %arg3[%c0_14, %c0_15] : memref<4x32xf32, #tpu.memory_space<vmem>>, vector<1x32xf32>
    %13 = vector.broadcast %12 : vector<1x32xf32> to vector<896x32xf32>
    %14 = arith.addf %11, %13 : vector<896x32xf32>
    %cst_16 = arith.constant 0.000000e+00 : f32
    %15 = vector.broadcast %cst_16 : f32 to vector<896x32xf32>
    %16 = arith.cmpf oge, %14, %15 : vector<896x32xf32>
    %c1 = arith.constant 1 : index
    %c0_17 = arith.constant 0 : index
    %17 = vector.load %arg3[%c1, %c0_17] : memref<4x32xf32, #tpu.memory_space<vmem>>, vector<1x32xf32>
    %18 = vector.broadcast %17 : vector<1x32xf32> to vector<896x32xf32>
    %19 = arith.mulf %14, %18 : vector<896x32xf32>
    %20 = arith.select %16, %14, %19 : vector<896x32xi1>, vector<896x32xf32>
    %c2 = arith.constant 2 : index
    %c0_18 = arith.constant 0 : index
    %21 = vector.load %arg3[%c2, %c0_18] : memref<4x32xf32, #tpu.memory_space<vmem>>, vector<1x32xf32>
    %22 = vector.broadcast %21 : vector<1x32xf32> to vector<896x32xf32>
    %23 = arith.mulf %20, %22 : vector<896x32xf32>
    %c3 = arith.constant 3 : index
    %c0_19 = arith.constant 0 : index
    %24 = vector.load %arg3[%c3, %c0_19] : memref<4x32xf32, #tpu.memory_space<vmem>>, vector<1x32xf32>
    %25 = vector.broadcast %24 : vector<1x32xf32> to vector<896x32xf32>
    %26 = arith.addf %23, %25 : vector<896x32xf32>
    %c0_20 = arith.constant 0 : index
    %c0_21 = arith.constant 0 : index
    %27 = vector.load %arg8[%c0_20, %c0_21] : memref<896x1xf32, #tpu.memory_space<vmem>>, vector<896x1xf32>
    %28 = vector.broadcast %27 : vector<896x1xf32> to vector<896x32xf32>
    %29 = arith.mulf %26, %28 : vector<896x32xf32>
    %30 = arith.truncf %29 : vector<896x32xf32> to vector<896x32xbf16>
    %c72 = arith.constant 72 : index
    %c0_22 = arith.constant 0 : index
    %31 = vector.load %arg11[%c72, %c0_22] : memref<976x96xbf16, #tpu.memory_space<vmem>>, vector<896x32xbf16>
    tpu.vector_store %arg11[%c72, %c0_22], %30 {strides = array<i32>} : memref<976x96xbf16, #tpu.memory_space<vmem>>, vector<896x32xbf16>,
    %c40 = arith.constant 40 : index
    %c32 = arith.constant 32 : index
    %32 = vector.load %arg11[%c40, %c32] : memref<976x96xbf16, #tpu.memory_space<vmem>>, vector<896x32xbf16>
    tpu.vector_store %arg11[%c40, %c32], %30 {strides = array<i32>} : memref<976x96xbf16, #tpu.memory_space<vmem>>, vector<896x32xbf16>,
    %c8 = arith.constant 8 : index
    %c64 = arith.constant 64 : index
    %33 = vector.load %arg11[%c8, %c64] : memref<976x96xbf16, #tpu.memory_space<vmem>>, vector<896x32xbf16>
    tpu.vector_store %arg11[%c8, %c64], %30 {strides = array<i32>} : memref<976x96xbf16, #tpu.memory_space<vmem>>, vector<896x32xbf16>,
    %c39 = arith.constant 39 : index
    %c0_23 = arith.constant 0 : index
    %34 = vector.load %arg11[%c39, %c0_23] : memref<976x96xbf16, #tpu.memory_space<vmem>>, vector<896x96xbf16>
    %c0_24 = arith.constant 0 : index
    %c0_25 = arith.constant 0 : index
    %c0_26 = arith.constant 0 : index
    %35 = vector.load %arg4[%c0_24, %c0_25, %c0_26] : memref<3x96x32xbf16, #tpu.memory_space<vmem>>, vector<1x96x32xbf16>
    %36 = vector.shape_cast %35 : vector<1x96x32xbf16> to vector<96x32xbf16>
    %cst_27 = arith.constant dense<0.000000e+00> : vector<896x32xf32>
    %37 = tpu.matmul %34, %36, %cst_27 {dimension_numbers = #tpu.dot_dimension_numbers<[1], [0], [0], [1], [0, 0, 1, 1], [], []>} : vector<896x96xbf16>, vector<96x32xbf16>, vector<896x32xf32> -> vector<896x32xf32>
    %c40_28 = arith.constant 40 : index
    %c0_29 = arith.constant 0 : index
    %38 = vector.load %arg11[%c40_28, %c0_29] : memref<976x96xbf16, #tpu.memory_space<vmem>>, vector<896x96xbf16>
    %c1_30 = arith.constant 1 : index
    %c0_31 = arith.constant 0 : index
    %c0_32 = arith.constant 0 : index
    %39 = vector.load %arg4[%c1_30, %c0_31, %c0_32] : memref<3x96x32xbf16, #tpu.memory_space<vmem>>, vector<1x96x32xbf16>
    %40 = vector.shape_cast %39 : vector<1x96x32xbf16> to vector<96x32xbf16>
    %cst_33 = arith.constant dense<0.000000e+00> : vector<896x32xf32>
    %41 = tpu.matmul %38, %40, %cst_33 {dimension_numbers = #tpu.dot_dimension_numbers<[1], [0], [0], [1], [0, 0, 1, 1], [], []>} : vector<896x96xbf16>, vector<96x32xbf16>, vector<896x32xf32> -> vector<896x32xf32>
    %42 = arith.addf %37, %41 : vector<896x32xf32>
    %c41 = arith.constant 41 : index
    %c0_34 = arith.constant 0 : index
    %43 = vector.load %arg11[%c41, %c0_34] : memref<976x96xbf16, #tpu.memory_space<vmem>>, vector<896x96xbf16>
    %c2_35 = arith.constant 2 : index
    %c0_36 = arith.constant 0 : index
    %c0_37 = arith.constant 0 : index
    %44 = vector.load %arg4[%c2_35, %c0_36, %c0_37] : memref<3x96x32xbf16, #tpu.memory_space<vmem>>, vector<1x96x32xbf16>
    %45 = vector.shape_cast %44 : vector<1x96x32xbf16> to vector<96x32xbf16>
    %cst_38 = arith.constant dense<0.000000e+00> : vector<896x32xf32>
    %46 = tpu.matmul %43, %45, %cst_38 {dimension_numbers = #tpu.dot_dimension_numbers<[1], [0], [0], [1], [0, 0, 1, 1], [], []>} : vector<896x96xbf16>, vector<96x32xbf16>, vector<896x32xf32> -> vector<896x32xf32>
    %47 = arith.addf %42, %46 : vector<896x32xf32>
    %c0_39 = arith.constant 0 : index
    %c0_40 = arith.constant 0 : index
    %48 = vector.load %arg5[%c0_39, %c0_40] : memref<4x32xf32, #tpu.memory_space<vmem>>, vector<1x32xf32>
    %49 = vector.broadcast %48 : vector<1x32xf32> to vector<896x32xf32>
    %50 = arith.addf %47, %49 : vector<896x32xf32>
    %cst_41 = arith.constant 0.000000e+00 : f32
    %51 = vector.broadcast %cst_41 : f32 to vector<896x32xf32>
    %52 = arith.cmpf oge, %50, %51 : vector<896x32xf32>
    %c1_42 = arith.constant 1 : index
    %c0_43 = arith.constant 0 : index
    %53 = vector.load %arg5[%c1_42, %c0_43] : memref<4x32xf32, #tpu.memory_space<vmem>>, vector<1x32xf32>
    %54 = vector.broadcast %53 : vector<1x32xf32> to vector<896x32xf32>
    %55 = arith.mulf %50, %54 : vector<896x32xf32>
    %56 = arith.select %52, %50, %55 : vector<896x32xi1>, vector<896x32xf32>
    %c2_44 = arith.constant 2 : index
    %c0_45 = arith.constant 0 : index
    %57 = vector.load %arg5[%c2_44, %c0_45] : memref<4x32xf32, #tpu.memory_space<vmem>>, vector<1x32xf32>
    %58 = vector.broadcast %57 : vector<1x32xf32> to vector<896x32xf32>
    %59 = arith.mulf %56, %58 : vector<896x32xf32>
    %c3_46 = arith.constant 3 : index
    %c0_47 = arith.constant 0 : index
    %60 = vector.load %arg5[%c3_46, %c0_47] : memref<4x32xf32, #tpu.memory_space<vmem>>, vector<1x32xf32>
    %61 = vector.broadcast %60 : vector<1x32xf32> to vector<896x32xf32>
    %62 = arith.addf %59, %61 : vector<896x32xf32>
    %63 = vector.shape_cast %62 : vector<896x32xf32> to vector<14x64x32xf32>
    %64 = vector.extract_strided_slice %63 {offsets = [0, 0, 0], sizes = [14, 32, 32], strides = [1, 1, 1]} : vector<14x64x32xf32> to vector<14x32x32xf32>
    %65 = vector.extract_strided_slice %63 {offsets = [0, 32, 0], sizes = [14, 32, 32], strides = [1, 1, 1]} : vector<14x64x32xf32> to vector<14x32x32xf32>
    %66 = arith.maximumf %64, %65 : vector<14x32x32xf32>
    %67 = vector.shape_cast %66 : vector<14x32x32xf32> to vector<448x32xf32>
    %c0_48 = arith.constant 0 : index
    %c0_49 = arith.constant 0 : index
    %68 = vector.load %arg13[%c0_48, %c0_49] : memref<448x32xf32, #tpu.memory_space<vmem>>, vector<448x32xf32>
    tpu.vector_store %arg13[%c0_48, %c0_49], %67 {strides = array<i32>} : memref<448x32xf32, #tpu.memory_space<vmem>>, vector<448x32xf32>,
    %c0_50 = arith.constant 0 : index
    %c0_51 = arith.constant 0 : index
    %69 = tpu.strided_load %arg13[%c0_50, %c0_51] {strides = array<i32: 2, 1>} : memref<448x32xf32, #tpu.memory_space<vmem>>, vector<224x32xf32>
    %c1_52 = arith.constant 1 : index
    %c0_53 = arith.constant 0 : index
    %70 = tpu.strided_load %arg13[%c1_52, %c0_53] {strides = array<i32: 2, 1>} : memref<448x32xf32, #tpu.memory_space<vmem>>, vector<224x32xf32>
    %71 = arith.maximumf %69, %70 : vector<224x32xf32>
    %c0_54 = arith.constant 0 : index
    %c0_55 = arith.constant 0 : index
    %72 = vector.load %arg9[%c0_54, %c0_55] : memref<224x1xf32, #tpu.memory_space<vmem>>, vector<224x1xf32>
    %73 = vector.broadcast %72 : vector<224x1xf32> to vector<224x32xf32>
    %74 = arith.mulf %71, %73 : vector<224x32xf32>
    %75 = arith.truncf %74 : vector<224x32xf32> to vector<224x32xbf16>
    %c40_56 = arith.constant 40 : index
    %c0_57 = arith.constant 0 : index
    %76 = vector.load %arg12[%c40_56, %c0_57] : memref<264x96xbf16, #tpu.memory_space<vmem>>, vector<224x32xbf16>
    tpu.vector_store %arg12[%c40_56, %c0_57], %75 {strides = array<i32>} : memref<264x96xbf16, #tpu.memory_space<vmem>>, vector<224x32xbf16>,
    %c24 = arith.constant 24 : index
    %c32_58 = arith.constant 32 : index
    %77 = vector.load %arg12[%c24, %c32_58] : memref<264x96xbf16, #tpu.memory_space<vmem>>, vector<224x32xbf16>
    tpu.vector_store %arg12[%c24, %c32_58], %75 {strides = array<i32>} : memref<264x96xbf16, #tpu.memory_space<vmem>>, vector<224x32xbf16>,
    %c8_59 = arith.constant 8 : index
    %c64_60 = arith.constant 64 : index
    %78 = vector.load %arg12[%c8_59, %c64_60] : memref<264x96xbf16, #tpu.memory_space<vmem>>, vector<224x32xbf16>
    tpu.vector_store %arg12[%c8_59, %c64_60], %75 {strides = array<i32>} : memref<264x96xbf16, #tpu.memory_space<vmem>>, vector<224x32xbf16>,
    %c23 = arith.constant 23 : index
    %c0_61 = arith.constant 0 : index
    %79 = vector.load %arg12[%c23, %c0_61] : memref<264x96xbf16, #tpu.memory_space<vmem>>, vector<224x96xbf16>
    %c0_62 = arith.constant 0 : index
    %c0_63 = arith.constant 0 : index
    %c0_64 = arith.constant 0 : index
    %80 = vector.load %arg6[%c0_62, %c0_63, %c0_64] : memref<3x96x64xbf16, #tpu.memory_space<vmem>>, vector<1x96x64xbf16>
    %81 = vector.shape_cast %80 : vector<1x96x64xbf16> to vector<96x64xbf16>
    %cst_65 = arith.constant dense<0.000000e+00> : vector<224x64xf32>
    %82 = tpu.matmul %79, %81, %cst_65 {dimension_numbers = #tpu.dot_dimension_numbers<[1], [0], [0], [1], [0, 0, 1, 1], [], []>} : vector<224x96xbf16>, vector<96x64xbf16>, vector<224x64xf32> -> vector<224x64xf32>
    %c24_66 = arith.constant 24 : index
    %c0_67 = arith.constant 0 : index
    %83 = vector.load %arg12[%c24_66, %c0_67] : memref<264x96xbf16, #tpu.memory_space<vmem>>, vector<224x96xbf16>
    %c1_68 = arith.constant 1 : index
    %c0_69 = arith.constant 0 : index
    %c0_70 = arith.constant 0 : index
    %84 = vector.load %arg6[%c1_68, %c0_69, %c0_70] : memref<3x96x64xbf16, #tpu.memory_space<vmem>>, vector<1x96x64xbf16>
    %85 = vector.shape_cast %84 : vector<1x96x64xbf16> to vector<96x64xbf16>
    %cst_71 = arith.constant dense<0.000000e+00> : vector<224x64xf32>
    %86 = tpu.matmul %83, %85, %cst_71 {dimension_numbers = #tpu.dot_dimension_numbers<[1], [0], [0], [1], [0, 0, 1, 1], [], []>} : vector<224x96xbf16>, vector<96x64xbf16>, vector<224x64xf32> -> vector<224x64xf32>
    %87 = arith.addf %82, %86 : vector<224x64xf32>
    %c25 = arith.constant 25 : index
    %c0_72 = arith.constant 0 : index
    %88 = vector.load %arg12[%c25, %c0_72] : memref<264x96xbf16, #tpu.memory_space<vmem>>, vector<224x96xbf16>
    %c2_73 = arith.constant 2 : index
    %c0_74 = arith.constant 0 : index
    %c0_75 = arith.constant 0 : index
    %89 = vector.load %arg6[%c2_73, %c0_74, %c0_75] : memref<3x96x64xbf16, #tpu.memory_space<vmem>>, vector<1x96x64xbf16>
    %90 = vector.shape_cast %89 : vector<1x96x64xbf16> to vector<96x64xbf16>
    %cst_76 = arith.constant dense<0.000000e+00> : vector<224x64xf32>
    %91 = tpu.matmul %88, %90, %cst_76 {dimension_numbers = #tpu.dot_dimension_numbers<[1], [0], [0], [1], [0, 0, 1, 1], [], []>} : vector<224x96xbf16>, vector<96x64xbf16>, vector<224x64xf32> -> vector<224x64xf32>
    %92 = arith.addf %87, %91 : vector<224x64xf32>
    %c0_77 = arith.constant 0 : index
    %c0_78 = arith.constant 0 : index
    %93 = vector.load %arg7[%c0_77, %c0_78] : memref<4x64xf32, #tpu.memory_space<vmem>>, vector<1x64xf32>
    %94 = vector.broadcast %93 : vector<1x64xf32> to vector<224x64xf32>
    %95 = arith.addf %92, %94 : vector<224x64xf32>
    %cst_79 = arith.constant 0.000000e+00 : f32
    %96 = vector.broadcast %cst_79 : f32 to vector<224x64xf32>
    %97 = arith.cmpf oge, %95, %96 : vector<224x64xf32>
    %c1_80 = arith.constant 1 : index
    %c0_81 = arith.constant 0 : index
    %98 = vector.load %arg7[%c1_80, %c0_81] : memref<4x64xf32, #tpu.memory_space<vmem>>, vector<1x64xf32>
    %99 = vector.broadcast %98 : vector<1x64xf32> to vector<224x64xf32>
    %100 = arith.mulf %95, %99 : vector<224x64xf32>
    %101 = arith.select %97, %95, %100 : vector<224x64xi1>, vector<224x64xf32>
    %c2_82 = arith.constant 2 : index
    %c0_83 = arith.constant 0 : index
    %102 = vector.load %arg7[%c2_82, %c0_83] : memref<4x64xf32, #tpu.memory_space<vmem>>, vector<1x64xf32>
    %103 = vector.broadcast %102 : vector<1x64xf32> to vector<224x64xf32>
    %104 = arith.mulf %101, %103 : vector<224x64xf32>
    %c3_84 = arith.constant 3 : index
    %c0_85 = arith.constant 0 : index
    %105 = vector.load %arg7[%c3_84, %c0_85] : memref<4x64xf32, #tpu.memory_space<vmem>>, vector<1x64xf32>
    %106 = vector.broadcast %105 : vector<1x64xf32> to vector<224x64xf32>
    %107 = arith.addf %104, %106 : vector<224x64xf32>
    %108 = vector.shape_cast %107 : vector<224x64xf32> to vector<7x32x64xf32>
    %109 = vector.extract_strided_slice %108 {offsets = [0, 0, 0], sizes = [7, 16, 64], strides = [1, 1, 1]} : vector<7x32x64xf32> to vector<7x16x64xf32>
    %110 = vector.extract_strided_slice %108 {offsets = [0, 16, 0], sizes = [7, 16, 64], strides = [1, 1, 1]} : vector<7x32x64xf32> to vector<7x16x64xf32>
    %111 = arith.maximumf %109, %110 : vector<7x16x64xf32>
    %112 = vector.shape_cast %111 : vector<7x16x64xf32> to vector<112x64xf32>
    %c0_86 = arith.constant 0 : index
    %c0_87 = arith.constant 0 : index
    %113 = vector.load %arg14[%c0_86, %c0_87] : memref<112x64xf32, #tpu.memory_space<vmem>>, vector<112x64xf32>
    tpu.vector_store %arg14[%c0_86, %c0_87], %112 {strides = array<i32>} : memref<112x64xf32, #tpu.memory_space<vmem>>, vector<112x64xf32>,
    %c0_88 = arith.constant 0 : index
    %c0_89 = arith.constant 0 : index
    %114 = tpu.strided_load %arg14[%c0_88, %c0_89] {strides = array<i32: 2, 1>} : memref<112x64xf32, #tpu.memory_space<vmem>>, vector<56x64xf32>
    %c1_90 = arith.constant 1 : index
    %c0_91 = arith.constant 0 : index
    %115 = tpu.strided_load %arg14[%c1_90, %c0_91] {strides = array<i32: 2, 1>} : memref<112x64xf32, #tpu.memory_space<vmem>>, vector<56x64xf32>
    %116 = arith.maximumf %114, %115 : vector<56x64xf32>
    %117 = arith.truncf %116 : vector<56x64xf32> to vector<56x64xbf16>
    %c0_92 = arith.constant 0 : index
    %c0_93 = arith.constant 0 : index
    %c0_94 = arith.constant 0 : index
    %118 = vector.load %arg10[%c0_92, %c0_93, %c0_94] : memref<1x56x64xbf16, #tpu.memory_space<vmem>>, vector<1x56x64xbf16>
    %119 = vector.shape_cast %118 : vector<1x56x64xbf16> to vector<56x64xbf16>
    %120 = vector.shape_cast %117 : vector<56x64xbf16> to vector<1x56x64xbf16>
    tpu.vector_store %arg10[%c0_92, %c0_93, %c0_94], %120 {strides = array<i32>} : memref<1x56x64xbf16, #tpu.memory_space<vmem>>, vector<1x56x64xbf16>,
    return
  }
  func.func @transform_0(%arg0: i32) -> (i32, i32, i32) {
    %c0_i32 = arith.constant 0 : i32
    %c0_i32_0 = arith.constant 0 : i32
    %c0_i32_1 = arith.constant 0 : i32
    return %arg0, %c0_i32, %c0_i32_0 : i32, i32, i32
  }
  func.func @transform_1(%arg0: i32) -> (i32, i32) {
    %c0_i32 = arith.constant 0 : i32
    %c0_i32_0 = arith.constant 0 : i32
    %c0_i32_1 = arith.constant 0 : i32
    return %c0_i32, %c0_i32_0 : i32, i32
  }
  func.func @transform_2(%arg0: i32) -> (i32, i32) {
    %c0_i32 = arith.constant 0 : i32
    %c0_i32_0 = arith.constant 0 : i32
    %c0_i32_1 = arith.constant 0 : i32
    return %c0_i32, %c0_i32_0 : i32, i32
  }
  func.func @transform_3(%arg0: i32) -> (i32, i32, i32) {
    %c0_i32 = arith.constant 0 : i32
    %c0_i32_0 = arith.constant 0 : i32
    %c0_i32_1 = arith.constant 0 : i32
    %c0_i32_2 = arith.constant 0 : i32
    return %c0_i32, %c0_i32_0, %c0_i32_1 : i32, i32, i32
  }
  func.func @transform_4(%arg0: i32) -> (i32, i32) {
    %c0_i32 = arith.constant 0 : i32
    %c0_i32_0 = arith.constant 0 : i32
    %c0_i32_1 = arith.constant 0 : i32
    return %c0_i32, %c0_i32_0 : i32, i32
  }
  func.func @transform_5(%arg0: i32) -> (i32, i32, i32) {
    %c0_i32 = arith.constant 0 : i32
    %c0_i32_0 = arith.constant 0 : i32
    %c0_i32_1 = arith.constant 0 : i32
    %c0_i32_2 = arith.constant 0 : i32
    return %c0_i32, %c0_i32_0, %c0_i32_1 : i32, i32, i32
  }
  func.func @transform_6(%arg0: i32) -> (i32, i32) {
    %c0_i32 = arith.constant 0 : i32
    %c0_i32_0 = arith.constant 0 : i32
    %c0_i32_1 = arith.constant 0 : i32
    return %c0_i32, %c0_i32_0 : i32, i32
  }
  func.func @transform_7(%arg0: i32) -> (i32, i32) {
    %c0_i32 = arith.constant 0 : i32
    %c0_i32_0 = arith.constant 0 : i32
    %c0_i32_1 = arith.constant 0 : i32
    return %c0_i32, %c0_i32_0 : i32, i32
  }
  func.func @transform_8(%arg0: i32) -> (i32, i32) {
    %c0_i32 = arith.constant 0 : i32
    %c0_i32_0 = arith.constant 0 : i32
    %c0_i32_1 = arith.constant 0 : i32
    return %c0_i32, %c0_i32_0 : i32, i32
  }
  func.func @transform_9(%arg0: i32) -> (i32, i32, i32) {
    %c0_i32 = arith.constant 0 : i32
    %c0_i32_0 = arith.constant 0 : i32
    %c0_i32_1 = arith.constant 0 : i32
    return %arg0, %c0_i32, %c0_i32_0 : i32, i32, i32
  }
}

module attributes {stable_mosaic.version = 11 : i64} {
  func.func @_head_kernel(%arg0: i32, %arg1: memref<2x3584xbf16, #tpu.memory_space<vmem>>, %arg2: memref<3584x10xbf16, #tpu.memory_space<vmem>>, %arg3: memref<1x10xf32, #tpu.memory_space<vmem>>, %arg4: memref<2x10xf32, #tpu.memory_space<vmem>>) attributes {dimension_semantics = [#tpu.dimension_semantics<arbitrary>], iteration_bounds = array<i64: 1>, scalar_prefetch = 0 : i64, scratch_operands = 0 : i64, tpu.core_type = #tpu.core_type<tc>, window_params = [{pipeline_mode = #tpu.pipeline_mode<synchronous>, transform_indices = @transform_0, window_bounds = array<i64: 2, 3584>}, {pipeline_mode = #tpu.pipeline_mode<synchronous>, transform_indices = @transform_1, window_bounds = array<i64: 3584, 10>}, {pipeline_mode = #tpu.pipeline_mode<synchronous>, transform_indices = @transform_2, window_bounds = array<i64: 1, 10>}, {pipeline_mode = #tpu.pipeline_mode<synchronous>, transform_indices = @transform_3, window_bounds = array<i64: 2, 10>}]} {
    %c0 = arith.constant 0 : index
    %c0_0 = arith.constant 0 : index
    %0 = vector.load %arg1[%c0, %c0_0] : memref<2x3584xbf16, #tpu.memory_space<vmem>>, vector<2x3584xbf16>
    %c0_1 = arith.constant 0 : index
    %c0_2 = arith.constant 0 : index
    %1 = vector.load %arg2[%c0_1, %c0_2] : memref<3584x10xbf16, #tpu.memory_space<vmem>>, vector<3584x10xbf16>
    %cst = arith.constant dense<0.000000e+00> : vector<2x10xf32>
    %2 = tpu.matmul %0, %1, %cst {dimension_numbers = #tpu.dot_dimension_numbers<[1], [0], [0], [1], [0, 0, 1, 1], [], []>} : vector<2x3584xbf16>, vector<3584x10xbf16>, vector<2x10xf32> -> vector<2x10xf32>
    %c0_3 = arith.constant 0 : index
    %c0_4 = arith.constant 0 : index
    %3 = vector.load %arg3[%c0_3, %c0_4] : memref<1x10xf32, #tpu.memory_space<vmem>>, vector<1x10xf32>
    %4 = vector.broadcast %3 : vector<1x10xf32> to vector<2x10xf32>
    %5 = arith.addf %2, %4 : vector<2x10xf32>
    %c0_5 = arith.constant 0 : index
    %c0_6 = arith.constant 0 : index
    %6 = vector.load %arg4[%c0_5, %c0_6] : memref<2x10xf32, #tpu.memory_space<vmem>>, vector<2x10xf32>
    tpu.vector_store %arg4[%c0_5, %c0_6], %5 {strides = array<i32>} : memref<2x10xf32, #tpu.memory_space<vmem>>, vector<2x10xf32>,
    return
  }
  func.func @transform_0(%arg0: i32) -> (i32, i32) {
    %c0_i32 = arith.constant 0 : i32
    %c0_i32_0 = arith.constant 0 : i32
    %c0_i32_1 = arith.constant 0 : i32
    return %c0_i32, %c0_i32_0 : i32, i32
  }
  func.func @transform_1(%arg0: i32) -> (i32, i32) {
    %c0_i32 = arith.constant 0 : i32
    %c0_i32_0 = arith.constant 0 : i32
    %c0_i32_1 = arith.constant 0 : i32
    return %c0_i32, %c0_i32_0 : i32, i32
  }
  func.func @transform_2(%arg0: i32) -> (i32, i32) {
    %c0_i32 = arith.constant 0 : i32
    %c0_i32_0 = arith.constant 0 : i32
    %c0_i32_1 = arith.constant 0 : i32
    return %c0_i32, %c0_i32_0 : i32, i32
  }
  func.func @transform_3(%arg0: i32) -> (i32, i32) {
    %c0_i32 = arith.constant 0 : i32
    %c0_i32_0 = arith.constant 0 : i32
    %c0_i32_1 = arith.constant 0 : i32
    return %c0_i32, %c0_i32_0 : i32, i32
  }
}

</mosaic_0001>

<bundles_post_ra>
// kernel: fmnist_cnn_forward.3
= control target key start
LH: loop header
LB: loop body
LE: loop exit
PB: predicated region body
PF: predicated region fallthrough
CT: control target
= control target key end

     0   :  { %v483_v28 = vlaneseq  ;;  %v3385_v36 = vmov 1966171168   ;;  %s4143_s0 = inlined_call_operand.vmem [shape: bf16[2,3584], index: 0, kind: input, shape index: {}]   ;;  %s4144_s1 = inlined_call_operand.vmem [shape: bf16[3584,10], index: 1, kind: input, shape index: {}]   ;;  %s4145_s2 = inlined_call_operand.vmem [shape: f32[1,10], index: 2, kind: input, shape index: {}]   ;;  %s4146_s3 = inlined_call_operand.hbm [shape: f32[2,10], index: 3, kind: output, shape index: {}]  }
   0x1   :  { %v3134_v0 = vld [vmem:[%s4144_s1 + $0x40] sm:$0xff]   ;;  %v3138_v4 = vld [vmem:[%s4144_s1 + $0x48] sm:$0xff]   ;;  %v3142_v8 = vld [vmem:[%s4144_s1 + $0x50] sm:$0xff]   ;;  %v481_v37 = vunpack.c.l.s4 %v3385_v36 }
   0x2   :  { %v3135_v1 = vld [vmem:[%s4144_s1 + $0xc0] sm:$0xff]   ;;  %2824 = vmatprep.subr.bf16.mxu0 %v3134_v0  ;;  %v3139_v5 = vld [vmem:[%s4144_s1 + $0xc8] sm:$0xff]   ;;  %v3143_v9 = vld [vmem:[%s4144_s1 + $0xd0] sm:$0xff]   ;;  %v484_v33 = vshrl.u32 %v483_v28, 7 }
   0x3   :  { %v3136_v2 = vld [vmem:[%s4144_s1] sm:$0xff]   ;;  %2846 = vmatprep.subr.bf16.mxu1 %v3135_v1  ;;  %v3140_v6 = vld [vmem:[%s4144_s1 + $0x8] sm:$0xff]   ;;  %v3144_v10 = vld [vmem:[%s4144_s1 + $0x10] sm:$0xff]   ;;  %v482_v40 = vunpack.c.0.s8 %v481_v37 }
   0x4   :  { %v3137_v3 = vld [vmem:[%s4144_s1 + $0x80] sm:$0xff]   ;;  %2825 = vmatpush3.bf16.msra.mxu0 %v3136_v2  ;;  %v3141_v7 = vld [vmem:[%s4144_s1 + $0x88] sm:$0xff]   ;;  %v3145_v11 = vld [vmem:[%s4144_s1 + $0x90] sm:$0xff]  }
   0x5   :  { %2847 = vmatpush3.bf16.msra.mxu1 %v3137_v3  ;;  %2826 = vmatprep.subr.bf16.mxu0 %v3138_v4  ;;  %v3146_v12 = vld [vmem:[%s4144_s1 + $0x58] sm:$0xff]   ;;  %v3150_v16 = vld [vmem:[%s4144_s1 + $0x60] sm:$0xff]   ;;  %v3154_v20 = vld [vmem:[%s4144_s1 + $0x68] sm:$0xff]   ;;  %v3512_v41 = vsub.s32 %v482_v40, %v484_v33 }
   0x6   :  { %2848 = vmatprep.subr.bf16.mxu1 %v3139_v5  ;;  %v3147_v13 = vld [vmem:[%s4144_s1 + $0xd8] sm:$0xff]   ;;  %v3151_v17 = vld [vmem:[%s4144_s1 + $0xe0] sm:$0xff]   ;;  %v3155_v21 = vld [vmem:[%s4144_s1 + $0xe8] sm:$0xff]  }
   0x7   :  { %v3148_v14 = vld [vmem:[%s4144_s1 + $0x18] sm:$0xff]   ;;  %v3152_v18 = vld [vmem:[%s4144_s1 + $0x20] sm:$0xff]   ;;  %v3156_v22 = vld [vmem:[%s4144_s1 + $0x28] sm:$0xff]  }
   0x8   :  { %2827 = vmatpush3.bf16.msra.mxu0 %v3140_v6  ;;  %v3149_v15 = vld [vmem:[%s4144_s1 + $0x98] sm:$0xff]   ;;  %v3153_v19 = vld [vmem:[%s4144_s1 + $0xa0] sm:$0xff]   ;;  %v3157_v23 = vld [vmem:[%s4144_s1 + $0xa8] sm:$0xff]  }
   0x9   :  { %2849 = vmatpush3.bf16.msra.mxu1 %v3141_v7  ;;  %2828 = vmatprep.subr.bf16.mxu0 %v3142_v8  ;;  %v3158_v24 = vld [vmem:[%s4144_s1 + $0x70] sm:$0xff]   ;;  %v3162_v29 = vld [vmem:[%s4144_s1 + $0x78] sm:$0xff]   ;;  %v16_v34 = vld [vmem:[%s4143_s0] sm:$0xff] }
   0xa   :  { %2850 = vmatprep.subr.bf16.mxu1 %v3143_v9  ;;  %v3159_v25 = vld [vmem:[%s4144_s1 + $0xf0] sm:$0xff]   ;;  %v3163_v30 = vld [vmem:[%s4144_s1 + $0xf8] sm:$0xff]   ;;  %v3167_v35 = vld [vmem:[%s4144_s1 + $0x140] sm:$0xff]   ;;  %v479_v39 = vcombine.high %v16_v34, %v16_v34  ;;  %v486_v42 = vrot.slane %v16_v34, %v3512_v41 }
   0xb   :  { %v3160_v26 = vld [vmem:[%s4144_s1 + $0x30] sm:$0xff]   ;;  %v3164_v31 = vld [vmem:[%s4144_s1 + $0x38] sm:$0xff]   ;;  %v3168_v38 = vld [vmem:[%s4144_s1 + $0x1c0] sm:$0xff]  }
   0xc   :  { %2829 = vmatpush3.bf16.msra.mxu0 %v3144_v10  ;;  %v3161_v27 = vld [vmem:[%s4144_s1 + $0xb0] sm:$0xff]   ;;  %v3165_v32 = vld [vmem:[%s4144_s1 + $0xb8] sm:$0xff]   ;;  %v3516_v43 = vrot.slane %v479_v39, %v3512_v41  ;;  %v494_v44 = vcombine.high %v486_v42, %v486_v42  ;;  %v502_v45 = vrot.slane %v486_v42, %v3512_v41  ;;  %v3169_v48 = vld [vmem:[%s4144_s1 + $0x100] sm:$0xff]  }
   0xd   :  { %2851 = vmatpush3.bf16.msra.mxu1 %v3145_v11  ;;  %2830 = vmatprep.subr.bf16.mxu0 %v3146_v12  ;;  %v3171_v51 = vld [vmem:[%s4144_s1 + $0x148] sm:$0xff]   ;;  %v3170_v53 = vld [vmem:[%s4144_s1 + $0x180] sm:$0xff]   ;;  %v3175_v57 = vld [vmem:[%s4144_s1 + $0x150] sm:$0xff]  }
   0xe   :  { %2852 = vmatprep.subr.bf16.mxu1 %v3147_v13  ;;  %v495_v46 = vcombine.high %v3516_v43, %v3516_v43  ;;  %v516_v47 = vrot.slane %v494_v44, %v3512_v41  ;;  %v524_v50 = vcombine.high %v502_v45, %v502_v45  ;;  %v3172_v54 = vld [vmem:[%s4144_s1 + $0x1c8] sm:$0xff]   ;;  %v3176_v59 = vld [vmem:[%s4144_s1 + $0x1d0] sm:$0xff]   ;;  %v3179_v61 = vld [vmem:[%s4144_s1 + $0x158] sm:$0xff]  }
   0xf   :  { %v3173_v56 = vld [vmem:[%s4144_s1 + $0x108] sm:$0xff]   ;;  %v3177_v60 = vld [vmem:[%s4144_s1 + $0x110] sm:$0xff]   ;;  %v3180_v63 = vld [vmem:[%s4144_s1 + $0x1d8] sm:$0xff]  }
  0x10   :  { %2831 = vmatpush3.bf16.msra.mxu0 %v3148_v14  ;;  %v523_v49 = vrot.slane %v495_v46, %v3512_v41  ;;  %2054 = vmatprep.mubr.bf16.mxu0 %v516_v47  ;;  %v526_v52 = vcombine.high %v516_v47, %v516_v47  ;;  %v3174_v58 = vld [vmem:[%s4144_s1 + $0x188] sm:$0xff]   ;;  %v3178_v62 = vld [vmem:[%s4144_s1 + $0x190] sm:$0xff]   ;;  %v3181_v0 = vld [vmem:[%s4144_s1 + $0x118] sm:$0xff]  }
  0x11   :  { %2853 = vmatpush3.bf16.msra.mxu1 %v3149_v15  ;;  %2832 = vmatprep.subr.bf16.mxu0 %v3150_v16  ;;  %v3183_v1 = vld [vmem:[%s4144_s1 + $0x160] sm:$0xff]   ;;  %v3182_v2 = vld [vmem:[%s4144_s1 + $0x198] sm:$0xff]   ;;  %v3187_v5 = vld [vmem:[%s4144_s1 + $0x168] sm:$0xff]  }
  0x12   :  { %2854 = vmatprep.subr.bf16.mxu1 %v3151_v17  ;;  %v527_v55 = vcombine.high %v523_v49, %v523_v49  ;;  %2094 = vmatprep.mubr.bf16.mxu1 %v526_v52  ;;  %v3184_v3 = vld [vmem:[%s4144_s1 + $0x1e0] sm:$0xff]   ;;  %v3188_v7 = vld [vmem:[%s4144_s1 + $0x1e8] sm:$0xff]   ;;  %v3191_v9 = vld [vmem:[%s4144_s1 + $0x170] sm:$0xff]   ;;  %v509_v17 = vrot.slane %v3516_v43, %v3512_v41 }
  0x13   :  { %v3185_v4 = vld [vmem:[%s4144_s1 + $0x120] sm:$0xff]   ;;  %v3189_v8 = vld [vmem:[%s4144_s1 + $0x128] sm:$0xff]   ;;  %v3192_v11 = vld [vmem:[%s4144_s1 + $0x1f0] sm:$0xff]  }
  0x14   :  { %2833 = vmatpush3.bf16.msra.mxu0 %v3152_v18  ;;  %v3186_v6 = vld [vmem:[%s4144_s1 + $0x1a0] sm:$0xff]   ;;  %v3190_v10 = vld [vmem:[%s4144_s1 + $0x1a8] sm:$0xff]   ;;  %v3193_v12 = vld [vmem:[%s4144_s1 + $0x130] sm:$0xff]  }
  0x15   :  { %2855 = vmatpush3.bf16.msra.mxu1 %v3153_v19  ;;  %2834 = vmatprep.subr.bf16.mxu0 %v3154_v20  ;;  %v3195_v13 = vld [vmem:[%s4144_s1 + $0x178] sm:$0xff]   ;;  %v3194_v14 = vld [vmem:[%s4144_s1 + $0x1b0] sm:$0xff]   ;;  %v3199_v18 = vld [vmem:[%s4144_s1 + $0x240] sm:$0xff]  }
  0x16   :  { %2856 = vmatprep.subr.bf16.mxu1 %v3155_v21  ;;  %v3196_v15 = vld [vmem:[%s4144_s1 + $0x1f8] sm:$0xff]   ;;  %v3200_v20 = vld [vmem:[%s4144_s1 + $0x2c0] sm:$0xff]   ;;  %v3206_v28 = vld [vmem:[%s4144_s1 + $0x288] sm:$0xff]  }
  0x17   :  { %v3197_v16 = vld [vmem:[%s4144_s1 + $0x138] sm:$0xff]   ;;  %v3201_v21 = vld [vmem:[%s4144_s1 + $0x200] sm:$0xff]   ;;  %v3219_v39 = vld [vmem:[%s4144_s1 + $0x268] sm:$0xff]  }
  0x18   :  { %2835 = vmatpush3.bf16.msra.mxu0 %v3156_v22  ;;  %v3198_v19 = vld [vmem:[%s4144_s1 + $0x1b8] sm:$0xff]   ;;  %v525_v22 = vcombine.high %v509_v17, %v509_v17  ;;  %v3216_v37 = vld [vmem:[%s4144_s1 + $0x2e0] sm:$0xff]   ;;  %v3220_v42 = vld [vmem:[%s4144_s1 + $0x2e8] sm:$0xff]  }
  0x19   :  { %2857 = vmatpush3.bf16.msra.mxu1 %v3157_v23  ;;  %2836 = vmatprep.subr.bf16.mxu0 %v3158_v24  ;;  %v3203_v23 = vld [vmem:[%s4144_s1 + $0x248] sm:$0xff]   ;;  %v3202_v24 = vld [vmem:[%s4144_s1 + $0x280] sm:$0xff]   ;;  %v3212_v33 = vld [vmem:[%s4144_s1 + $0x2d8] sm:$0xff]  }
  0x1a   :  { %2858 = vmatprep.subr.bf16.mxu1 %v3159_v25  ;;  %v3204_v25 = vld [vmem:[%s4144_s1 + $0x2c8] sm:$0xff]   ;;  %v3213_v34 = vld [vmem:[%s4144_s1 + $0x218] sm:$0xff]   ;;  %v3218_v40 = vld [vmem:[%s4144_s1 + $0x2a0] sm:$0xff]  }
  0x1b   :  { %v3214_v36 = vld [vmem:[%s4144_s1 + $0x298] sm:$0xff]   ;;  %v3221_v43 = vld [vmem:[%s4144_s1 + $0x228] sm:$0xff]   ;;  %v3223_v44 = vld [vmem:[%s4144_s1 + $0x270] sm:$0xff]  }
  0x1c   :  { %2837 = vmatpush3.bf16.msra.mxu0 %v3160_v26  ;;  %v3205_v26 = vld [vmem:[%s4144_s1 + $0x208] sm:$0xff]  }
  0x1d   :  { %2859 = vmatpush3.bf16.msra.mxu1 %v3161_v27  ;;  %2838 = vmatprep.subr.bf16.mxu0 %v3162_v29  ;;  %v3207_v27 = vld [vmem:[%s4144_s1 + $0x250] sm:$0xff]   ;;  %v3222_v46 = vld [vmem:[%s4144_s1 + $0x2a8] sm:$0xff]  }
  0x1e   :  { %2860 = vmatprep.subr.bf16.mxu1 %v3163_v30  ;;  %v3208_v29 = vld [vmem:[%s4144_s1 + $0x2d0] sm:$0xff]  }
  0x1f   :  { %v3209_v30 = vld [vmem:[%s4144_s1 + $0x210] sm:$0xff]  }
  0x20   :  { %2839 = vmatpush3.bf16.msra.mxu0 %v3164_v31  ;;  %v3211_v31 = vld [vmem:[%s4144_s1 + $0x258] sm:$0xff]  }
  0x21   :  { %2861 = vmatpush3.bf16.msra.mxu1 %v3165_v32  ;;  %2868 = vmatprep.subr.bf16.mxu0 %v3167_v35  ;;  %v3210_v32 = vld [vmem:[%s4144_s1 + $0x290] sm:$0xff]   ;;  %v3215_v35 = vld [vmem:[%s4144_s1 + $0x260] sm:$0xff]  }
  0x22   :  { %2890 = vmatprep.subr.bf16.mxu1 %v3168_v38  ;;  %v3217_v38 = vld [vmem:[%s4144_s1 + $0x220] sm:$0xff]  }
  0x23   :  { %2055 = vmatmul.mubr.bf16.vlgmr.msra.gmra.mrb[0].mxu0 %v502_v45  ;;  %v17_v45 = vld [vmem:[%s4143_s0 + $0x8] sm:$0xff] }
  0x24   :  { %2869 = vmatpush3.bf16.msra.mxu0 %v3169_v48  ;;  %2095 = vmatmul.mubr.bf16.vlgmr.msra.gmra.mrb[0].mxu1 %v524_v50  ;;  %v535_v47 = vrot.slane %v17_v45, %v3512_v41  ;;  %v528_v48 = vcombine.high %v17_v45, %v17_v45  ;;  %v3225_v50 = vld [vmem:[%s4144_s1 + $0x230] sm:$0xff]  }
  0x25   :  { %2870 = vmatprep.subr.bf16.mxu0 %v3171_v51  ;;  %2891 = vmatpush3.bf16.msra.mxu1 %v3170_v53  ;;  %v3227_v53 = vld [vmem:[%s4144_s1 + $0x278] sm:$0xff]   ;;  %v3273_v45 = vld [vmem:[%s4144_s1 + $0x4d0] sm:$0xff]  }
  0x26   :  { %2134 = vmatprep.mubr.bf16.mxu0 %v523_v49  ;;  %2892 = vmatprep.subr.bf16.mxu1 %v3172_v54  ;;  %v3224_v49 = vld [vmem:[%s4144_s1 + $0x2f0] sm:$0xff]   ;;  %v543_v51 = vcombine.high %v535_v47, %v535_v47  ;;  %v3701_v52 = vrot.slane %v528_v48, %v3512_v41 }
  0x27   :  { %2174 = vmatprep.mubr.bf16.mxu1 %v527_v55  ;;  %v3226_v54 = vld [vmem:[%s4144_s1 + $0x2b0] sm:$0xff]  }
  0x28   :  { %2871 = vmatpush3.bf16.msra.mxu0 %v3173_v56  ;;  %v565_v55 = vrot.slane %v543_v51, %v3512_v41  ;;  %v544_v56 = vcombine.high %v3701_v52, %v3701_v52  ;;  %v3275_v48 = vld [vmem:[%s4144_s1 + $0x490] sm:$0xff]   ;;  %v3280_v51 = vld [vmem:[%s4144_s1 + $0x460] sm:$0xff]  }
  0x29   :  { %2872 = vmatprep.subr.bf16.mxu0 %v3175_v57  ;;  %2893 = vmatpush3.bf16.msra.mxu1 %v3174_v58  ;;  %v3228_v57 = vld [vmem:[%s4144_s1 + $0x2f8] sm:$0xff]  }
  0x2a   :  { %2894 = vmatprep.subr.bf16.mxu1 %v3176_v59  ;;  %v3229_v58 = vld [vmem:[%s4144_s1 + $0x238] sm:$0xff]   ;;  %v575_v59 = vcombine.high %v565_v55, %v565_v55 }
  0x2c   :  { %2873 = vmatpush3.bf16.msra.mxu0 %v3177_v60  ;;  %v551_v60 = vrot.slane %v535_v47, %v3512_v41  ;;  %v3276_v47 = vld [vmem:[%s4144_s1 + $0x458] sm:$0xff]  }
  0x2d   :  { %2874 = vmatprep.subr.bf16.mxu0 %v3179_v61  ;;  %2895 = vmatpush3.bf16.msra.mxu1 %v3178_v62  ;;  %v3231_v61 = vld [vmem:[%s4144_s1 + $0x340] sm:$0xff]   ;;  %v3230_v62 = vld [vmem:[%s4144_s1 + $0x2b8] sm:$0xff]  }
  0x2e   :  { %2896 = vmatprep.subr.bf16.mxu1 %v3180_v63  ;;  %v572_v63 = vrot.slane %v544_v56, %v3512_v41  ;;  %v3283_v56 = vld [vmem:[%s4144_s1 + $0x4a0] sm:$0xff]  }
  0x30   :  { %2875 = vmatpush3.bf16.msra.mxu0 %v3181_v0  ;;  %v3232_v0 = vld [vmem:[%s4144_s1 + $0x3c0] sm:$0xff]  }
  0x31   :  { %2876 = vmatprep.subr.bf16.mxu0 %v3183_v1  ;;  %2897 = vmatpush3.bf16.msra.mxu1 %v3182_v2  ;;  %v3233_v1 = vld [vmem:[%s4144_s1 + $0x300] sm:$0xff]   ;;  %v573_v2 = vcombine.high %v551_v60, %v551_v60 }
  0x32   :  { %2898 = vmatprep.subr.bf16.mxu1 %v3184_v3  ;;  %v3235_v3 = vld [vmem:[%s4144_s1 + $0x348] sm:$0xff]  }
  0x34   :  { %2877 = vmatpush3.bf16.msra.mxu0 %v3185_v4  ;;  %v3234_v4 = vld [vmem:[%s4144_s1 + $0x380] sm:$0xff]  }
  0x35   :  { %2878 = vmatprep.subr.bf16.mxu0 %v3187_v5  ;;  %2899 = vmatpush3.bf16.msra.mxu1 %v3186_v6  ;;  %v576_v5 = vcombine.high %v572_v63, %v572_v63  ;;  %v3236_v6 = vld [vmem:[%s4144_s1 + $0x3c8] sm:$0xff]  }
  0x36   :  { %2900 = vmatprep.subr.bf16.mxu1 %v3188_v7  ;;  %v3237_v7 = vld [vmem:[%s4144_s1 + $0x308] sm:$0xff]  }
  0x38   :  { %2879 = vmatpush3.bf16.msra.mxu0 %v3189_v8  ;;  %v3239_v8 = vld [vmem:[%s4144_s1 + $0x350] sm:$0xff]  }
  0x39   :  { %2880 = vmatprep.subr.bf16.mxu0 %v3191_v9  ;;  %2901 = vmatpush3.bf16.msra.mxu1 %v3190_v10  ;;  %v3238_v9 = vld [vmem:[%s4144_s1 + $0x388] sm:$0xff]   ;;  %v3240_v10 = vld [vmem:[%s4144_s1 + $0x3d0] sm:$0xff]  }
  0x3a   :  { %2902 = vmatprep.subr.bf16.mxu1 %v3192_v11  ;;  %v3241_v11 = vld [vmem:[%s4144_s1 + $0x310] sm:$0xff]  }
  0x3c   :  { %2881 = vmatpush3.bf16.msra.mxu0 %v3193_v12  ;;  %v3243_v12 = vld [vmem:[%s4144_s1 + $0x358] sm:$0xff]  }
  0x3d   :  { %2882 = vmatprep.subr.bf16.mxu0 %v3195_v13  ;;  %2903 = vmatpush3.bf16.msra.mxu1 %v3194_v14  ;;  %v3242_v13 = vld [vmem:[%s4144_s1 + $0x390] sm:$0xff]   ;;  %v3244_v14 = vld [vmem:[%s4144_s1 + $0x3d8] sm:$0xff]  }
  0x3e   :  { %2904 = vmatprep.subr.bf16.mxu1 %v3196_v15  ;;  %v3245_v15 = vld [vmem:[%s4144_s1 + $0x318] sm:$0xff]  }
  0x40   :  { %2883 = vmatpush3.bf16.msra.mxu0 %v3197_v16  ;;  %v3247_v16 = vld [vmem:[%s4144_s1 + $0x360] sm:$0xff]  }
  0x41   :  { %2912 = vmatprep.subr.bf16.mxu0 %v3199_v18  ;;  %2905 = vmatpush3.bf16.msra.mxu1 %v3198_v19  ;;  %v3248_v18 = vld [vmem:[%s4144_s1 + $0x3e0] sm:$0xff]  }
  0x42   :  { %2934 = vmatprep.subr.bf16.mxu1 %v3200_v20  ;;  %v3249_v19 = vld [vmem:[%s4144_s1 + $0x320] sm:$0xff]   ;;  %v3251_v20 = vld [vmem:[%s4144_s1 + $0x368] sm:$0xff]  }
  0x43   :  { %2135 = vmatmul.mubr.bf16.vlgmr.msra.gmra.mrb[4].mxu0 %v509_v17  ;;  %v3246_v17 = vld [vmem:[%s4144_s1 + $0x398] sm:$0xff]  }
  0x44   :  { %2913 = vmatpush3.bf16.msra.mxu0 %v3201_v21  ;;  %2175 = vmatmul.mubr.bf16.vlgmr.msra.gmra.mrb[4].mxu1 %v525_v22  ;;  %v3250_v21 = vld [vmem:[%s4144_s1 + $0x3a0] sm:$0xff]   ;;  %v3252_v22 = vld [vmem:[%s4144_s1 + $0x3e8] sm:$0xff]  }
  0x45   :  { %2914 = vmatprep.subr.bf16.mxu0 %v3203_v23  ;;  %2935 = vmatpush3.bf16.msra.mxu1 %v3202_v24  ;;  %v3253_v23 = vld [vmem:[%s4144_s1 + $0x328] sm:$0xff]   ;;  %v3255_v24 = vld [vmem:[%s4144_s1 + $0x370] sm:$0xff]  }
  0x46   :  { %2936 = vmatprep.subr.bf16.mxu1 %v3204_v25  ;;  %2214 = vmatprep.mubr.bf16.mxu0 %v565_v55  ;;  %v3254_v25 = vld [vmem:[%s4144_s1 + $0x3a8] sm:$0xff]  }
  0x47   :  { %2254 = vmatprep.mubr.bf16.mxu1 %v575_v59  ;;  %v3284_v55 = vld [vmem:[%s4144_s1 + $0x468] sm:$0xff]   ;;  %v3288_v59 = vld [vmem:[%s4144_s1 + $0x470] sm:$0xff]  }
  0x48   :  { %2915 = vmatpush3.bf16.msra.mxu0 %v3205_v26  ;;  %v3256_v26 = vld [vmem:[%s4144_s1 + $0x3f0] sm:$0xff]  }
  0x49   :  { %2916 = vmatprep.subr.bf16.mxu0 %v3207_v27  ;;  %2937 = vmatpush3.bf16.msra.mxu1 %v3206_v28  ;;  %v3257_v27 = vld [vmem:[%s4144_s1 + $0x330] sm:$0xff]   ;;  %v3259_v28 = vld [vmem:[%s4144_s1 + $0x378] sm:$0xff]  }
  0x4a   :  { %2938 = vmatprep.subr.bf16.mxu1 %v3208_v29  ;;  %v3258_v29 = vld [vmem:[%s4144_s1 + $0x3b0] sm:$0xff]  }
  0x4c   :  { %2917 = vmatpush3.bf16.msra.mxu0 %v3209_v30  ;;  %v3260_v30 = vld [vmem:[%s4144_s1 + $0x3f8] sm:$0xff]  }
  0x4d   :  { %2918 = vmatprep.subr.bf16.mxu0 %v3211_v31  ;;  %2939 = vmatpush3.bf16.msra.mxu1 %v3210_v32  ;;  %v3261_v31 = vld [vmem:[%s4144_s1 + $0x338] sm:$0xff]   ;;  %v558_v32 = vrot.slane %v3701_v52, %v3512_v41 }
  0x4e   :  { %2940 = vmatprep.subr.bf16.mxu1 %v3212_v33  ;;  %v3264_v33 = vld [vmem:[%s4144_s1 + $0x440] sm:$0xff]   ;;  %v3279_v52 = vld [vmem:[%s4144_s1 + $0x498] sm:$0xff]  }
  0x50   :  { %2919 = vmatpush3.bf16.msra.mxu0 %v3213_v34  ;;  %v3262_v34 = vld [vmem:[%s4144_s1 + $0x3b8] sm:$0xff]  }
  0x51   :  { %2920 = vmatprep.subr.bf16.mxu0 %v3215_v35  ;;  %2941 = vmatpush3.bf16.msra.mxu1 %v3214_v36  ;;  %v3265_v35 = vld [vmem:[%s4144_s1 + $0x4c0] sm:$0xff]  }
  0x52   :  { %2942 = vmatprep.subr.bf16.mxu1 %v3216_v37  ;;  %v3266_v36 = vld [vmem:[%s4144_s1 + $0x400] sm:$0xff]   ;;  %v574_v37 = vcombine.high %v558_v32, %v558_v32 }
  0x54   :  { %2921 = vmatpush3.bf16.msra.mxu0 %v3217_v38  ;;  %v3268_v38 = vld [vmem:[%s4144_s1 + $0x448] sm:$0xff]  }
  0x55   :  { %2922 = vmatprep.subr.bf16.mxu0 %v3219_v39  ;;  %2943 = vmatpush3.bf16.msra.mxu1 %v3218_v40  ;;  %v3267_v39 = vld [vmem:[%s4144_s1 + $0x480] sm:$0xff]   ;;  %v3269_v40 = vld [vmem:[%s4144_s1 + $0x4c8] sm:$0xff]  }
  0x56   :  { %2944 = vmatprep.subr.bf16.mxu1 %v3220_v42  ;;  %v3270_v42 = vld [vmem:[%s4144_s1 + $0x408] sm:$0xff]  }
  0x58   :  { %2923 = vmatpush3.bf16.msra.mxu0 %v3221_v43  ;;  %v3272_v43 = vld [vmem:[%s4144_s1 + $0x450] sm:$0xff]  }
  0x59   :  { %2924 = vmatprep.subr.bf16.mxu0 %v3223_v44  ;;  %2945 = vmatpush3.bf16.msra.mxu1 %v3222_v46  ;;  %v3271_v44 = vld [vmem:[%s4144_s1 + $0x488] sm:$0xff]   ;;  %v3274_v46 = vld [vmem:[%s4144_s1 + $0x410] sm:$0xff]  }
  0x5a   :  { %2946 = vmatprep.subr.bf16.mxu1 %v3224_v49  ;;  %v3277_v49 = vld [vmem:[%s4144_s1 + $0x4d8] sm:$0xff]  }
  0x5c   :  { %2925 = vmatpush3.bf16.msra.mxu0 %v3225_v50  ;;  %v3278_v50 = vld [vmem:[%s4144_s1 + $0x418] sm:$0xff]  }
  0x5d   :  { %2926 = vmatprep.subr.bf16.mxu0 %v3227_v53  ;;  %2947 = vmatpush3.bf16.msra.mxu1 %v3226_v54  ;;  %v3281_v53 = vld [vmem:[%s4144_s1 + $0x4e0] sm:$0xff]  }
  0x5e   :  { %2948 = vmatprep.subr.bf16.mxu1 %v3228_v57  ;;  %v3282_v54 = vld [vmem:[%s4144_s1 + $0x420] sm:$0xff]   ;;  %v3285_v57 = vld [vmem:[%s4144_s1 + $0x4e8] sm:$0xff]  }
  0x60   :  { %2927 = vmatpush3.bf16.msra.mxu0 %v3229_v58  ;;  %v3286_v58 = vld [vmem:[%s4144_s1 + $0x428] sm:$0xff]  }
  0x61   :  { %2956 = vmatprep.subr.bf16.mxu0 %v3231_v61  ;;  %2949 = vmatpush3.bf16.msra.mxu1 %v3230_v62  ;;  %v3287_v61 = vld [vmem:[%s4144_s1 + $0x4a8] sm:$0xff]  }
  0x62   :  { %2978 = vmatprep.subr.bf16.mxu1 %v3232_v0  ;;  %v3289_v0 = vld [vmem:[%s4144_s1 + $0x4f0] sm:$0xff]  }
  0x63   :  { %2215 = vmatmul.mubr.bf16.vlgmr.msra.gmra.mrb[8].mxu0 %v551_v60  ;;  %v18_v60 = vld [vmem:[%s4143_s0 + $0x10] sm:$0xff] }
  0x64   :  { %2957 = vmatpush3.bf16.msra.mxu0 %v3233_v1  ;;  %2294 = vmatprep.mubr.bf16.mxu0 %v572_v63  ;;  %v584_v62 = vrot.slane %v18_v60, %v3512_v41  ;;  %v577_v63 = vcombine.high %v18_v60, %v18_v60  ;;  %v3290_v1 = vld [vmem:[%s4144_s1 + $0x430] sm:$0xff]  }
  0x65   :  { %2255 = vmatmul.mubr.bf16.vlgmr.msra.gmra.mrb[8].mxu1 %v573_v2  ;;  %2958 = vmatprep.subr.bf16.mxu0 %v3235_v3  ;;  %v3338_v60 = vld [vmem:[%s4144_s1 + $0x6d0] sm:$0xff]  }
  0x66   :  { %2979 = vmatpush3.bf16.msra.mxu1 %v3234_v4  ;;  %2334 = vmatprep.mubr.bf16.mxu1 %v576_v5  ;;  %v592_v2 = vcombine.high %v584_v62, %v584_v62  ;;  %v3907_v3 = vrot.slane %v577_v63, %v3512_v41  ;;  %v3292_v4 = vld [vmem:[%s4144_s1 + $0x478] sm:$0xff]   ;;  %v3291_v5 = vld [vmem:[%s4144_s1 + $0x4b0] sm:$0xff]  }
  0x67   :  { %2980 = vmatprep.subr.bf16.mxu1 %v3236_v6  ;;  %v3340_v63 = vld [vmem:[%s4144_s1 + $0x690] sm:$0xff]  }
  0x68   :  { %2959 = vmatpush3.bf16.msra.mxu0 %v3237_v7  ;;  %v614_v6 = vrot.slane %v592_v2, %v3512_v41  ;;  %v593_v7 = vcombine.high %v3907_v3, %v3907_v3  ;;  %v3345_v2 = vld [vmem:[%s4144_s1 + $0x660] sm:$0xff]  }
  0x69   :  { %2960 = vmatprep.subr.bf16.mxu0 %v3239_v8  ;;  %v3293_v8 = vld [vmem:[%s4144_s1 + $0x4f8] sm:$0xff]  }
  0x6a   :  { %2981 = vmatpush3.bf16.msra.mxu1 %v3238_v9  ;;  %v3294_v9 = vld [vmem:[%s4144_s1 + $0x438] sm:$0xff]  }
  0x6b   :  { %2982 = vmatprep.subr.bf16.mxu1 %v3240_v10  ;;  %v624_v10 = vcombine.high %v614_v6, %v614_v6 }
  0x6c   :  { %2961 = vmatpush3.bf16.msra.mxu0 %v3241_v11  ;;  %v600_v11 = vrot.slane %v584_v62, %v3512_v41  ;;  %v3341_v62 = vld [vmem:[%s4144_s1 + $0x658] sm:$0xff]  }
  0x6d   :  { %2962 = vmatprep.subr.bf16.mxu0 %v3243_v12  ;;  %v3296_v12 = vld [vmem:[%s4144_s1 + $0x540] sm:$0xff]  }
  0x6e   :  { %2983 = vmatpush3.bf16.msra.mxu1 %v3242_v13  ;;  %v3295_v13 = vld [vmem:[%s4144_s1 + $0x4b8] sm:$0xff]  }
  0x6f   :  { %2984 = vmatprep.subr.bf16.mxu1 %v3244_v14  ;;  %v621_v14 = vrot.slane %v593_v7, %v3512_v41  ;;  %v3348_v7 = vld [vmem:[%s4144_s1 + $0x6a0] sm:$0xff]  }
  0x70   :  { %2963 = vmatpush3.bf16.msra.mxu0 %v3245_v15  ;;  %v3297_v15 = vld [vmem:[%s4144_s1 + $0x5c0] sm:$0xff]  }
  0x71   :  { %2964 = vmatprep.subr.bf16.mxu0 %v3247_v16  ;;  %v3298_v16 = vld [vmem:[%s4144_s1 + $0x500] sm:$0xff]  }
  0x72   :  { %2985 = vmatpush3.bf16.msra.mxu1 %v3246_v17  ;;  %v622_v17 = vcombine.high %v600_v11, %v600_v11 }
  0x73   :  { %2986 = vmatprep.subr.bf16.mxu1 %v3248_v18  ;;  %v3300_v18 = vld [vmem:[%s4144_s1 + $0x548] sm:$0xff]  }
  0x74   :  { %2965 = vmatpush3.bf16.msra.mxu0 %v3249_v19  ;;  %v3299_v19 = vld [vmem:[%s4144_s1 + $0x580] sm:$0xff]  }
  0x75   :  { %2966 = vmatprep.subr.bf16.mxu0 %v3251_v20  ;;  %v625_v20 = vcombine.high %v621_v14, %v621_v14 }
  0x76   :  { %2987 = vmatpush3.bf16.msra.mxu1 %v3250_v21  ;;  %v3301_v21 = vld [vmem:[%s4144_s1 + $0x5c8] sm:$0xff]  }
  0x77   :  { %2988 = vmatprep.subr.bf16.mxu1 %v3252_v22  ;;  %v3302_v22 = vld [vmem:[%s4144_s1 + $0x508] sm:$0xff]  }
  0x78   :  { %2967 = vmatpush3.bf16.msra.mxu0 %v3253_v23  ;;  %v3304_v23 = vld [vmem:[%s4144_s1 + $0x550] sm:$0xff]  }
  0x79   :  { %2968 = vmatprep.subr.bf16.mxu0 %v3255_v24  ;;  %v3303_v24 = vld [vmem:[%s4144_s1 + $0x588] sm:$0xff]  }
  0x7a   :  { %2989 = vmatpush3.bf16.msra.mxu1 %v3254_v25  ;;  %v3305_v25 = vld [vmem:[%s4144_s1 + $0x5d0] sm:$0xff]  }
  0x7b   :  { %2990 = vmatprep.subr.bf16.mxu1 %v3256_v26  ;;  %v3306_v26 = vld [vmem:[%s4144_s1 + $0x510] sm:$0xff]  }
  0x7c   :  { %2969 = vmatpush3.bf16.msra.mxu0 %v3257_v27  ;;  %v3308_v27 = vld [vmem:[%s4144_s1 + $0x558] sm:$0xff]  }
  0x7d   :  { %2970 = vmatprep.subr.bf16.mxu0 %v3259_v28  ;;  %v3307_v28 = vld [vmem:[%s4144_s1 + $0x590] sm:$0xff]  }
  0x7e   :  { %2991 = vmatpush3.bf16.msra.mxu1 %v3258_v29  ;;  %v3309_v29 = vld [vmem:[%s4144_s1 + $0x5d8] sm:$0xff]  }
  0x7f   :  { %2992 = vmatprep.subr.bf16.mxu1 %v3260_v30  ;;  %v3310_v30 = vld [vmem:[%s4144_s1 + $0x518] sm:$0xff]  }
  0x80   :  { %2971 = vmatpush3.bf16.msra.mxu0 %v3261_v31  ;;  %v3312_v31 = vld [vmem:[%s4144_s1 + $0x560] sm:$0xff]  }
  0x81   :  { %3000 = vmatprep.subr.bf16.mxu0 %v3264_v33  ;;  %v3313_v33 = vld [vmem:[%s4144_s1 + $0x5e0] sm:$0xff]  }
  0x82   :  { %2993 = vmatpush3.bf16.msra.mxu1 %v3262_v34  ;;  %v3314_v34 = vld [vmem:[%s4144_s1 + $0x520] sm:$0xff]  }
  0x83   :  { %2295 = vmatmul.mubr.bf16.vlgmr.msra.gmra.mrb[12].mxu0 %v558_v32  ;;  %3022 = vmatprep.subr.bf16.mxu1 %v3265_v35  ;;  %v3311_v32 = vld [vmem:[%s4144_s1 + $0x598] sm:$0xff]   ;;  %v3316_v35 = vld [vmem:[%s4144_s1 + $0x568] sm:$0xff]  }
  0x84   :  { %3001 = vmatpush3.bf16.msra.mxu0 %v3266_v36  ;;  %2374 = vmatprep.mubr.bf16.mxu0 %v614_v6  ;;  %v3315_v36 = vld [vmem:[%s4144_s1 + $0x5a0] sm:$0xff]   ;;  %v3349_v6 = vld [vmem:[%s4144_s1 + $0x668] sm:$0xff]  }
  0x85   :  { %2335 = vmatmul.mubr.bf16.vlgmr.msra.gmra.mrb[12].mxu1 %v574_v37  ;;  %3002 = vmatprep.subr.bf16.mxu0 %v3268_v38  ;;  %v3317_v37 = vld [vmem:[%s4144_s1 + $0x5e8] sm:$0xff]  }
  0x86   :  { %3023 = vmatpush3.bf16.msra.mxu1 %v3267_v39  ;;  %2414 = vmatprep.mubr.bf16.mxu1 %v624_v10  ;;  %v3318_v38 = vld [vmem:[%s4144_s1 + $0x528] sm:$0xff]   ;;  %v3320_v39 = vld [vmem:[%s4144_s1 + $0x570] sm:$0xff]  }
  0x87   :  { %3024 = vmatprep.subr.bf16.mxu1 %v3269_v40  ;;  %v3319_v40 = vld [vmem:[%s4144_s1 + $0x5a8] sm:$0xff]   ;;  %v3353_v10 = vld [vmem:[%s4144_s1 + $0x670] sm:$0xff]  }
  0x88   :  { %3003 = vmatpush3.bf16.msra.mxu0 %v3270_v42  ;;  %v3321_v42 = vld [vmem:[%s4144_s1 + $0x5f0] sm:$0xff]  }
  0x89   :  { %3004 = vmatprep.subr.bf16.mxu0 %v3272_v43  ;;  %v3322_v43 = vld [vmem:[%s4144_s1 + $0x530] sm:$0xff]  }
  0x8a   :  { %3025 = vmatpush3.bf16.msra.mxu1 %v3271_v44  ;;  %v3324_v44 = vld [vmem:[%s4144_s1 + $0x578] sm:$0xff]  }
  0x8b   :  { %3026 = vmatprep.subr.bf16.mxu1 %v3273_v45  ;;  %v3323_v45 = vld [vmem:[%s4144_s1 + $0x5b0] sm:$0xff]  }
  0x8c   :  { %3005 = vmatpush3.bf16.msra.mxu0 %v3274_v46  ;;  %v3325_v46 = vld [vmem:[%s4144_s1 + $0x5f8] sm:$0xff]  }
  0x8d   :  { %3006 = vmatprep.subr.bf16.mxu0 %v3276_v47  ;;  %v3326_v47 = vld [vmem:[%s4144_s1 + $0x538] sm:$0xff]  }
  0x8e   :  { %3027 = vmatpush3.bf16.msra.mxu1 %v3275_v48  ;;  %v607_v48 = vrot.slane %v3907_v3, %v3512_v41  ;;  %v3344_v3 = vld [vmem:[%s4144_s1 + $0x698] sm:$0xff]  }
  0x8f   :  { %3028 = vmatprep.subr.bf16.mxu1 %v3277_v49  ;;  %v3329_v49 = vld [vmem:[%s4144_s1 + $0x640] sm:$0xff]  }
  0x90   :  { %3007 = vmatpush3.bf16.msra.mxu0 %v3278_v50  ;;  %v3327_v50 = vld [vmem:[%s4144_s1 + $0x5b8] sm:$0xff]  }
  0x91   :  { %3008 = vmatprep.subr.bf16.mxu0 %v3280_v51  ;;  %v3330_v51 = vld [vmem:[%s4144_s1 + $0x6c0] sm:$0xff]  }
  0x92   :  { %3029 = vmatpush3.bf16.msra.mxu1 %v3279_v52  ;;  %v3331_v52 = vld [vmem:[%s4144_s1 + $0x600] sm:$0xff]  }
  0x93   :  { %3030 = vmatprep.subr.bf16.mxu1 %v3281_v53  ;;  %v623_v53 = vcombine.high %v607_v48, %v607_v48 }
  0x94   :  { %3009 = vmatpush3.bf16.msra.mxu0 %v3282_v54  ;;  %v3333_v54 = vld [vmem:[%s4144_s1 + $0x648] sm:$0xff]  }
  0x95   :  { %3010 = vmatprep.subr.bf16.mxu0 %v3284_v55  ;;  %v3332_v55 = vld [vmem:[%s4144_s1 + $0x680] sm:$0xff]  }
  0x96   :  { %3031 = vmatpush3.bf16.msra.mxu1 %v3283_v56  ;;  %v3334_v56 = vld [vmem:[%s4144_s1 + $0x6c8] sm:$0xff]  }
  0x97   :  { %3032 = vmatprep.subr.bf16.mxu1 %v3285_v57  ;;  %v3335_v57 = vld [vmem:[%s4144_s1 + $0x608] sm:$0xff]  }
  0x98   :  { %3011 = vmatpush3.bf16.msra.mxu0 %v3286_v58  ;;  %v3337_v58 = vld [vmem:[%s4144_s1 + $0x650] sm:$0xff]  }
  0x99   :  { %3012 = vmatprep.subr.bf16.mxu0 %v3288_v59  ;;  %v3336_v59 = vld [vmem:[%s4144_s1 + $0x688] sm:$0xff]  }
  0x9a   :  { %3033 = vmatpush3.bf16.msra.mxu1 %v3287_v61  ;;  %v3339_v61 = vld [vmem:[%s4144_s1 + $0x610] sm:$0xff]  }
  0x9b   :  { %3034 = vmatprep.subr.bf16.mxu1 %v3289_v0  ;;  %v3342_v0 = vld [vmem:[%s4144_s1 + $0x6d8] sm:$0xff]  }
  0x9c   :  { %3013 = vmatpush3.bf16.msra.mxu0 %v3290_v1  ;;  %v3343_v1 = vld [vmem:[%s4144_s1 + $0x618] sm:$0xff]  }
  0x9d   :  { %3014 = vmatprep.subr.bf16.mxu0 %v3292_v4  ;;  %v3346_v4 = vld [vmem:[%s4144_s1 + $0x6e0] sm:$0xff]  }
  0x9e   :  { %3035 = vmatpush3.bf16.msra.mxu1 %v3291_v5  ;;  %v3347_v5 = vld [vmem:[%s4144_s1 + $0x620] sm:$0xff]  }
  0x9f   :  { %3036 = vmatprep.subr.bf16.mxu1 %v3293_v8  ;;  %v3350_v8 = vld [vmem:[%s4144_s1 + $0x6e8] sm:$0xff]  }
  0xa0   :  { %3015 = vmatpush3.bf16.msra.mxu0 %v3294_v9  ;;  %v3351_v9 = vld [vmem:[%s4144_s1 + $0x628] sm:$0xff]  }
  0xa1   :  { %3044 = vmatprep.subr.bf16.mxu0 %v3296_v12  ;;  %v2599_v12 = vld.sshfl [vmem:[%s4143_s0 + $0x18] sm:$0x33 pattern:$0x75316420] }
  0xa2   :  { %3037 = vmatpush3.bf16.msra.mxu1 %v3295_v13  ;;  %v3354_v13 = vld [vmem:[%s4144_s1 + $0x6f0] sm:$0xff]  }
  0xa3   :  { %2375 = vmatmul.mubr.bf16.vlgmr.msra.gmra.mrb[16].mxu0 %v600_v11  ;;  %3066 = vmatprep.subr.bf16.mxu1 %v3297_v15  ;;  %v3352_v11 = vld [vmem:[%s4144_s1 + $0x6a8] sm:$0xff]  }
  0xa4   :  { %3045 = vmatpush3.bf16.msra.mxu0 %v3298_v16  ;;  %2454 = vmatprep.mubr.bf16.mxu0 %v621_v14  ;;  %v633_v14 = vcombine.high %v2599_v12, %v2599_v12 }
  0xa5   :  { %2415 = vmatmul.mubr.bf16.vlgmr.msra.gmra.mrb[16].mxu1 %v622_v17  ;;  %3046 = vmatprep.subr.bf16.mxu0 %v3300_v18 }
  0xa6   :  { %3067 = vmatpush3.bf16.msra.mxu1 %v3299_v19  ;;  %2494 = vmatprep.mubr.bf16.mxu1 %v625_v20 }
  0xa7   :  { %3068 = vmatprep.subr.bf16.mxu1 %v3301_v21 }
  0xa8   :  { %3047 = vmatpush3.bf16.msra.mxu0 %v3302_v22 }
  0xa9   :  { %3048 = vmatprep.subr.bf16.mxu0 %v3304_v23 }
  0xaa   :  { %3069 = vmatpush3.bf16.msra.mxu1 %v3303_v24 }
  0xab   :  { %3070 = vmatprep.subr.bf16.mxu1 %v3305_v25 }
  0xac   :  { %3049 = vmatpush3.bf16.msra.mxu0 %v3306_v26 }
  0xad   :  { %3050 = vmatprep.subr.bf16.mxu0 %v3308_v27 }
  0xae   :  { %3071 = vmatpush3.bf16.msra.mxu1 %v3307_v28 }
  0xaf   :  { %3072 = vmatprep.subr.bf16.mxu1 %v3309_v29 }
  0xb0   :  { %3051 = vmatpush3.bf16.msra.mxu0 %v3310_v30 }
  0xb1   :  { %3052 = vmatprep.subr.bf16.mxu0 %v3312_v31 }
  0xb2   :  { %3073 = vmatpush3.bf16.msra.mxu1 %v3311_v32 }
  0xb3   :  { %3074 = vmatprep.subr.bf16.mxu1 %v3313_v33 }
  0xb4   :  { %3053 = vmatpush3.bf16.msra.mxu0 %v3314_v34 }
  0xb5   :  { %3054 = vmatprep.subr.bf16.mxu0 %v3316_v35 }
  0xb6   :  { %3075 = vmatpush3.bf16.msra.mxu1 %v3315_v36 }
  0xb7   :  { %3076 = vmatprep.subr.bf16.mxu1 %v3317_v37 }
  0xb8   :  { %3055 = vmatpush3.bf16.msra.mxu0 %v3318_v38 }
  0xb9   :  { %3056 = vmatprep.subr.bf16.mxu0 %v3320_v39 }
  0xba   :  { %3077 = vmatpush3.bf16.msra.mxu1 %v3319_v40 }
  0xbb   :  { %3078 = vmatprep.subr.bf16.mxu1 %v3321_v42 }
  0xbc   :  { %3057 = vmatpush3.bf16.msra.mxu0 %v3322_v43 }
  0xbd   :  { %3058 = vmatprep.subr.bf16.mxu0 %v3324_v44 }
  0xbe   :  { %3079 = vmatpush3.bf16.msra.mxu1 %v3323_v45 }
  0xbf   :  { %3080 = vmatprep.subr.bf16.mxu1 %v3325_v46 }
  0xc0   :  { %3059 = vmatpush3.bf16.msra.mxu0 %v3326_v47 }
  0xc1   :  { %3088 = vmatprep.subr.bf16.mxu0 %v3329_v49 }
  0xc2   :  { %3081 = vmatpush3.bf16.msra.mxu1 %v3327_v50 }
  0xc3   :  { %2455 = vmatmul.mubr.bf16.vlgmr.msra.gmra.mrb[20].mxu0 %v607_v48  ;;  %3110 = vmatprep.subr.bf16.mxu1 %v3330_v51 }
  0xc4   :  { %3089 = vmatpush3.bf16.msra.mxu0 %v3331_v52 }
  0xc5   :  { %2495 = vmatmul.mubr.bf16.vlgmr.msra.gmra.mrb[20].mxu1 %v623_v53  ;;  %3090 = vmatprep.subr.bf16.mxu0 %v3333_v54 }
  0xc6   :  { %3111 = vmatpush3.bf16.msra.mxu1 %v3332_v55 }
  0xc7   :  { %3112 = vmatprep.subr.bf16.mxu1 %v3334_v56 }
  0xc8   :  { %3091 = vmatpush3.bf16.msra.mxu0 %v3335_v57 }
  0xc9   :  { %3092 = vmatprep.subr.bf16.mxu0 %v3337_v58 }
  0xca   :  { %3113 = vmatpush3.bf16.msra.mxu1 %v3336_v59 }
  0xcb   :  { %3114 = vmatprep.subr.bf16.mxu1 %v3338_v60 }
  0xcc   :  { %3093 = vmatpush3.bf16.msra.mxu0 %v3339_v61 }
  0xcd   :  { %3094 = vmatprep.subr.bf16.mxu0 %v3341_v62 }
  0xce   :  { %3115 = vmatpush3.bf16.msra.mxu1 %v3340_v63 }
  0xcf   :  { %3116 = vmatprep.subr.bf16.mxu1 %v3342_v0 }
  0xd0   :  { %3095 = vmatpush3.bf16.msra.mxu0 %v3343_v1 }
  0xd1   :  { %3096 = vmatprep.subr.bf16.mxu0 %v3345_v2 }
  0xd2   :  { %3117 = vmatpush3.bf16.msra.mxu1 %v3344_v3 }
  0xd3   :  { %3118 = vmatprep.subr.bf16.mxu1 %v3346_v4 }
  0xd4   :  { %3097 = vmatpush3.bf16.msra.mxu0 %v3347_v5 }
  0xd5   :  { %3098 = vmatprep.subr.bf16.mxu0 %v3349_v6 }
  0xd6   :  { %3119 = vmatpush3.bf16.msra.mxu1 %v3348_v7 }
  0xd7   :  { %3120 = vmatprep.subr.bf16.mxu1 %v3350_v8 }
  0xd8   :  { %8 = vsyncpa [#allocation3], 0  ;;  %3099 = vmatpush3.bf16.msra.mxu0 %v3351_v9  ;;  %v3355_v15 = vld [vmem:[%s4144_s1 + $0x630] sm:$0xff]   ;;  %v3357_v16 = vld [vmem:[%s4144_s1 + $0x678] sm:$0xff]   ;;  %v647_v17 = vrot.slane %v633_v14, %v3512_v41  ;;  %v640_v22 = vrot.slane %v2599_v12, %v3512_v41  ;;  %vm2582_vm0 = vcmask 74752  }
  0xd9   :  { %3100 = vmatprep.subr.bf16.mxu0 %v3353_v10  ;;  %v3356_v18 = vld [vmem:[%s4144_s1 + $0x6b0] sm:$0xff]   ;;  %v3358_v19 = vld [vmem:[%s4144_s1 + $0x6f8] sm:$0xff]   ;;  %v2598_v26 = vld [vmem:[%s4145_s2] ss:$0 sm:$0xff] }
  0xda   :  { %3121 = vmatpush3.bf16.msra.mxu1 %v3352_v11  ;;  %2534 = vmatprep.mubr.bf16.mxu0 %v647_v17  ;;  %v649_v20 = vcombine.high %v647_v17, %v647_v17  ;;  %v3359_v21 = vld [vmem:[%s4144_s1 + $0x638] sm:$0xff]   ;;  %v648_v24 = vcombine.high %v640_v22, %v640_v22 }
  0xdb   :  { %3122 = vmatprep.subr.bf16.mxu1 %v3354_v13  ;;  %v3360_v23 = vld [vmem:[%s4144_s1 + $0x6b8] sm:$0xff]   ;;  %s3386_s1 = smov [#allocation2]  }
  0xdc   :  { %3101 = vmatpush3.bf16.msra.mxu0 %v3355_v15  ;;  %2574 = vmatprep.mubr.bf16.mxu1 %v649_v20  ;;  %s2590_s2 = sshll.u32 %s3386_s1, 4  ;;  %s2591_s2 = int_to_ptr.vmem [resolvable:$true] %s2590_s2 }
  0xdd   :  { %3102 = vmatprep.subr.bf16.mxu0 %v3357_v16  ;;  %s3361_s10 = scalar_lea.vmem %s2591_s2, 32  ;;  %p3366_p1 = scmp.lt.s32.totalorder %s2591_s2, %s2591_s2 }
  0xde   :  { %3123 = vmatpush3.bf16.msra.mxu1 %v3356_v18  ;;  %p3362_p0 = scmp.ne.s32.totalorder %s2591_s2, %s3361_s10  ;;  %p3367_p2 = scmp.lt.s32.totalorder %s3361_s10, %s3361_s10 }
  0xdf   :  { %3124 = vmatprep.subr.bf16.mxu1 %v3358_v19 }
  0xe0   :  { %3103 = vmatpush3.bf16.msra.mxu0 %v3359_v21  ;;  %p3368_p3 = por %p3367_p2, %p3366_p1 }
  0xe2   :  { %3125 = vmatpush3.bf16.msra.mxu1 %v3360_v23  ;;  %p3369_p4 = pnand %p3368_p3, %p3362_p0 }
  0xe3   :  { %2535 = vmatmul.mubr.bf16.vlgmr.msra.gmra.mrb[24].mxu0 %v640_v22 }
  0xe5   :  { %2575 = vmatmul.mubr.bf16.vlgmr.msra.gmra.mrb[24].mxu1 %v648_v24 }
  0xf6   :  { %v2840_v25 = vpop.f32.mrb[0].mxu0 }
  0xf7   :  { %v2841_v27 = vpop.f32.mrb[1].mxu0  ;;  %v2862_v28 = vpop.f32.mrb[0].mxu1 }
  0xf8   :  { %v2842_v29 = vadd.f32 %v2841_v27, %v2840_v25  ;;  %v2843_v41 = vpop.f32.mrb[2].mxu0  ;;  %v2863_v30 = vpop.f32.mrb[1].mxu1 }
  0xf9   :  { %v2844_v31 = vpop.f32.mrb[3].mxu0  ;;  %v2864_v33 = vadd.f32 %v2863_v30, %v2862_v28  ;;  %v2865_v34 = vpop.f32.mrb[2].mxu1 }
  0xfa   :  { %v2057_v32 = vadd.f32 %v2842_v29, %v2598_v26  ;;  %v2866_v35 = vpop.f32.mrb[3].mxu1 }
  0xfc   :  { %v2097_v36 = vadd.f32 %v2864_v33, %v2057_v32 }
 0x116   :  { %v2884_v37 = vpop.f32.mrb[4].mxu0 }
 0x117   :  { %v2885_v38 = vpop.f32.mrb[5].mxu0  ;;  %v2906_v39 = vpop.f32.mrb[4].mxu1 }
 0x118   :  { %v2886_v40 = vadd.f32 %v2885_v38, %v2884_v37  ;;  %v2887_v42 = vpop.f32.mrb[6].mxu0  ;;  %v2907_v43 = vpop.f32.mrb[5].mxu1 }
 0x119   :  { %v2888_v44 = vpop.f32.mrb[7].mxu0  ;;  %v2908_v46 = vadd.f32 %v2907_v43, %v2906_v39  ;;  %v2909_v47 = vpop.f32.mrb[6].mxu1 }
 0x11a   :  { %v2137_v45 = vadd.f32 %v2886_v40, %v2097_v36  ;;  %v2910_v48 = vpop.f32.mrb[7].mxu1 }
 0x11c   :  { %v2177_v49 = vadd.f32 %v2908_v46, %v2137_v45 }
 0x136   :  { %v2928_v50 = vpop.f32.mrb[8].mxu0 }
 0x137   :  { %v2929_v51 = vpop.f32.mrb[9].mxu0 }
 0x138   :  { %v2950_v52 = vpop.f32.mrb[8].mxu1  ;;  %v2930_v53 = vadd.f32 %v2929_v51, %v2928_v50  ;;  %v2931_v54 = vpop.f32.mrb[10].mxu0 }
 0x139   :  { %v2951_v55 = vpop.f32.mrb[9].mxu1  ;;  %v2932_v56 = vpop.f32.mrb[11].mxu0 }
 0x13a   :  { %v2217_v57 = vadd.f32 %v2930_v53, %v2177_v49  ;;  %v2952_v58 = vadd.f32 %v2951_v55, %v2950_v52  ;;  %v2953_v59 = vpop.f32.mrb[10].mxu1 }
 0x13b   :  { %v2954_v60 = vpop.f32.mrb[11].mxu1 }
 0x13c   :  { %v2257_v61 = vadd.f32 %v2952_v58, %v2217_v57 }
 0x156   :  { %v2972_v62 = vpop.f32.mrb[12].mxu0 }
 0x157   :  { %v2973_v63 = vpop.f32.mrb[13].mxu0 }
 0x158   :  { %v2994_v0 = vpop.f32.mrb[12].mxu1  ;;  %v2974_v1 = vadd.f32 %v2973_v63, %v2972_v62  ;;  %v2975_v2 = vpop.f32.mrb[14].mxu0 }
 0x159   :  { %v2995_v3 = vpop.f32.mrb[13].mxu1  ;;  %v2976_v4 = vpop.f32.mrb[15].mxu0 }
 0x15a   :  { %v2297_v5 = vadd.f32 %v2974_v1, %v2257_v61  ;;  %v2996_v6 = vadd.f32 %v2995_v3, %v2994_v0  ;;  %v2997_v7 = vpop.f32.mrb[14].mxu1 }
 0x15b   :  { %v2998_v8 = vpop.f32.mrb[15].mxu1 }
 0x15c   :  { %v2337_v9 = vadd.f32 %v2996_v6, %v2297_v5 }
 0x176   :  { %v3016_v10 = vpop.f32.mrb[16].mxu0 }
 0x177   :  { %v3017_v11 = vpop.f32.mrb[17].mxu0 }
 0x178   :  { %v3038_v12 = vpop.f32.mrb[16].mxu1  ;;  %v3018_v13 = vadd.f32 %v3017_v11, %v3016_v10  ;;  %v3019_v14 = vpop.f32.mrb[18].mxu0 }
 0x179   :  { %v3039_v15 = vpop.f32.mrb[17].mxu1  ;;  %v3020_v16 = vpop.f32.mrb[19].mxu0 }
 0x17a   :  { %v2377_v17 = vadd.f32 %v3018_v13, %v2337_v9  ;;  %v3040_v18 = vadd.f32 %v3039_v15, %v3038_v12  ;;  %v3041_v19 = vpop.f32.mrb[18].mxu1 }
 0x17b   :  { %v3042_v20 = vpop.f32.mrb[19].mxu1 }
 0x17c   :  { %v2417_v21 = vadd.f32 %v3040_v18, %v2377_v17 }
 0x196   :  { %v3060_v22 = vpop.f32.mrb[20].mxu0 }
 0x197   :  { %v3061_v23 = vpop.f32.mrb[21].mxu0 }
 0x198   :  { %v3082_v24 = vpop.f32.mrb[20].mxu1  ;;  %v3062_v25 = vadd.f32 %v3061_v23, %v3060_v22  ;;  %v3063_v26 = vpop.f32.mrb[22].mxu0 }
 0x199   :  { %v3083_v27 = vpop.f32.mrb[21].mxu1  ;;  %v3064_v28 = vpop.f32.mrb[23].mxu0 }
 0x19a   :  { %v2457_v29 = vadd.f32 %v3062_v25, %v2417_v21  ;;  %v3084_v41 = vadd.f32 %v3083_v27, %v3082_v24  ;;  %v3085_v30 = vpop.f32.mrb[22].mxu1 }
 0x19b   :  { %v3086_v31 = vpop.f32.mrb[23].mxu1 }
 0x19c   :  { %v2497_v32 = vadd.f32 %v3084_v41, %v2457_v29 }
 0x1b6   :  { %v3104_v33 = vpop.f32.mrb[24].mxu0 }
 0x1b7   :  { %v3105_v34 = vpop.f32.mrb[25].mxu0 }
 0x1b8   :  { %v3126_v35 = vpop.f32.mrb[24].mxu1  ;;  %v3106_v36 = vadd.f32 %v3105_v34, %v3104_v33  ;;  %v3107_v37 = vpop.f32.mrb[26].mxu0 }
 0x1b9   :  { %v3127_v38 = vpop.f32.mrb[25].mxu1  ;;  %v3108_v39 = vpop.f32.mrb[27].mxu0 }
 0x1ba   :  { %v2537_v40 = vadd.f32 %v3106_v36, %v2497_v32  ;;  %v3128_v42 = vadd.f32 %v3127_v38, %v3126_v35  ;;  %v3129_v43 = vpop.f32.mrb[26].mxu1 }
 0x1bb   :  { %v3130_v44 = vpop.f32.mrb[27].mxu1 }
 0x1bc   :  { %v2577_v45 = vadd.f32 %v3128_v42, %v2537_v40 }
 0x1be   :  { %2583 = vst.msk [vmem:[#allocation2] sm:$0x3] %vm2582_vm0, %v2577_v45 }
 0x1bf   :  { %3372 = shalt.err (!%p3369_p4)
}
 0x1c0   :  { %s3373_s13 = scalar_lea.hbm %s4146_s3, 32 }
 0x1c1   :  { %p3374_p5 = scmp.ne.s32.totalorder %s4146_s3, %s3373_s13  ;;  %p3377_p6 = scmp.lt.u32.totalorder %s3373_s13, %s4146_s3 }
 0x1c3   :  { %p3379_p7 = pnand %p3377_p6, %p3374_p5 }
 0x1c5   :  { %3382 = shalt.err (!%p3379_p7)
}
 0x1c6   :  { %2593 = dma.vmem_to_hbm [thread:$0]  %s2591_s2, 32, %s4146_s3, [#allocation3]  }
 0x1c7   :  { %3383 = dma.done.wait [#allocation3], 32  }
 0x1c8   :  { %3384 = vsyncadd [#allocation3], 4294967264 }
 0x1c9   :  { %2597 = vsyncpa [#allocation3], 1 }

// kernel: fmnist_cnn_forward.2
= control target key start
LH: loop header
LB: loop body
LE: loop exit
PB: predicated region body
PF: predicated region fallthrough
CT: control target
= control target key end

     0   :  { %s11779_s30 = smov 0   ;;  %s16327_s0 = inlined_call_operand.vmem [shape: bf16[2,896,9], index: 0, kind: input, shape index: {}]   ;;  %s16328_s1 = inlined_call_operand.vmem [shape: bf16[9,32], index: 1, kind: input, shape index: {}]   ;;  %s16329_s2 = inlined_call_operand.vmem [shape: f32[4,32], index: 2, kind: input, shape index: {}]   ;;  %s16330_s3 = inlined_call_operand.vmem [shape: bf16[3,96,32], index: 3, kind: input, shape index: {}]   ;;  %s16331_s4 = inlined_call_operand.vmem [shape: f32[4,32], index: 4, kind: input, shape index: {}]   ;;  %s16332_s5 = inlined_call_operand.vmem [shape: bf16[3,96,64], index: 5, kind: input, shape index: {}]   ;;  %s16333_s6 = inlined_call_operand.vmem [shape: f32[4,64], index: 6, kind: input, shape index: {}]   ;;  %s16334_s7 = inlined_call_operand.vmem [shape: f32[896,1], index: 7, kind: input, shape index: {}]   ;;  %s16335_s8 = inlined_call_operand.vmem [shape: f32[224,1], index: 8, kind: input, shape index: {}]   ;;  %s16336_s9 = inlined_call_operand.vmem [shape: bf16[2,56,64], index: 9, kind: output, shape index: {}]  }
   0x1 LB: > { %s9813_s10 = sadd.s32 4294967295, %s11723_s30   ;;  %p9817_p0 = scmp.ge.s32.totalorder %s11723_s30, 1  ;;  %s11723_s30 = sphi %s11779_s30, %s19_s30  }
   0x2   : > { %p287_p1 = scmp.lt.s32.totalorder %s11723_s30, 3 }
   0x4   : > { %p288_p2 = pnand %p9817_p0, %p287_p1 }
   0x6   : > { %291 = sbr.rel (%p288_p2) target bundleno = 1876 (0x754), region = 56 }
   0xd   : > { %v2063_v0 = vld [vmem:[%s16334_s7 + $0x240] sm:$0xff]  ;;  %v2061_v1 = vld [vmem:[%s16334_s7 + $0x230] sm:$0xff]  ;;  %vm928_vm0 = vcmask 1043456   ;;  %vm929_vm1 = vcmask 1044480   ;;  %v16337_v2 = vmov 0   ;;  %v11726_v4 = vmov 65535  }
   0xe   : > { %11571 = vset.pattern.permute.xlu1 %v16337_v2  ;;  %11570 = vset.pattern.permute.xlu0 %v16337_v2  ;;  %v11572_v3 = vld [vmem:[%s16328_s1] sm:$0x1f]   ;;  %v930_v5 = vsel %vm928_vm0, 4294967295, %v11726_v4  ;;  %p323_p3 = scmp.lt.s32.totalorder %s9813_s10, 1  ;;  %v2064_v6 = vld [vmem:[%s16334_s7 + $0x248] sm:$0xff]  ;;  %v2062_v7 = vld [vmem:[%s16334_s7 + $0x238] sm:$0xff] }
   0xf   : > { %2465 = vperm.xlu1 %11571, %v2063_v0   ;;  %2455 = vperm.xlu0 %11570, %v2061_v1   ;;  %v931_v8 = vsel %vm929_vm1, %v930_v5, 0  ;;  %v2066_v10 = vld [vmem:[%s16334_s7 + $0x258] sm:$0xff]  ;;  %v2065_v11 = vld [vmem:[%s16334_s7 + $0x250] sm:$0xff]  ;;  %vm759_vm2 = vcmask 72704   ;;  %v2068_v13 = vld [vmem:[%s16334_s7 + $0x268] sm:$0xff]  ;;  %vm334_vm11 = vcmask 785408  }
  0x10   : > { %v933_v9 = vand.u32 %v11572_v3, %v931_v8  ;;  %s16699_s10 = smov (!%p323_p3, %s9813_s10), 1  ;;  %v2067_v14 = vld [vmem:[%s16334_s7 + $0x260] sm:$0xff]  ;;  %v2070_v17 = vld [vmem:[%s16334_s7 + $0x278] sm:$0xff]  ;;  %v2069_v18 = vld [vmem:[%s16334_s7 + $0x270] sm:$0xff]  ;;  %vm3056_vm12 = vcmask 261124   ;;  %s11727_s25 = smov 32  }
  0x11   : > { %s11556_s21 = smul.u32 448, %s16699_s10  ;;  %v2072_v21 = vld [vmem:[%s16334_s7 + $0x288] sm:$0xff]  ;;  %v2071_v22 = vld [vmem:[%s16334_s7 + $0x280] sm:$0xff]  ;;  %v2074_v23 = vld [vmem:[%s16334_s7 + $0x298] sm:$0xff]  ;;  %s11728_s12 = smov 64  }
  0x12   : > { %10658 = vmatprep.subr.bf16.mxu0 %v933_v9  ;;  %v2073_v24 = vld [vmem:[%s16334_s7 + $0x290] sm:$0xff]  ;;  %v2076_v27 = vld [vmem:[%s16334_s7 + $0x2a8] sm:$0xff]  ;;  %v2075_v28 = vld [vmem:[%s16334_s7 + $0x2a0] sm:$0xff]  ;;  %s11557_s27 = smul.u32 28, %s16699_s10 }
  0x13   : > { %2470 = vperm.xlu1 %11571, %v2064_v6   ;;  %2460 = vperm.xlu0 %11570, %v2062_v7   ;;  %s11817_s28 = scalar_lea.vmem %s16327_s0, %s11556_s21  ;;  %v2078_v29 = vld [vmem:[%s16334_s7 + $0x2b8] sm:$0xff]  ;;  %v2077_v30 = vld [vmem:[%s16334_s7 + $0x2b0] sm:$0xff]  ;;  %v2080_v33 = vld [vmem:[%s16334_s7 + $0x2c8] sm:$0xff] }
  0x14   : > { %10659 = vmatpush3.bf16.msra.mxu0 %v933_v9  ;;  %v11573_v12 = vld [vmem:[%s11817_s28] sm:$0xff]   ;;  %v11574_v15 = vld [vmem:[%s11817_s28 + $0x8] sm:$0xff]   ;;  %v11575_v16 = vld [vmem:[%s11817_s28 + $0x10] sm:$0xff]   ;;  %s16226_s29 = scalar_lea.vmem %s16336_s9, %s11557_s27 }
  0x15   : > { %10660 = vmatprep.mubr.msk.bf16.mxu0 %vm759_vm2, %v11573_v12  ;;  %v11576_v19 = vld [vmem:[%s11817_s28 + $0x18] sm:$0xff]   ;;  %v11577_v20 = vld [vmem:[%s11817_s28 + $0x20] sm:$0xff]   ;;  %v11578_v25 = vld [vmem:[%s11817_s28 + $0x28] sm:$0xff]  }
  0x16   : > { %v11579_v26 = vld [vmem:[%s11817_s28 + $0x30] sm:$0xff]   ;;  %v11580_v31 = vld [vmem:[%s11817_s28 + $0x38] sm:$0xff]   ;;  %v11581_v32 = vld [vmem:[%s11817_s28 + $0x40] sm:$0xff]  }
  0x17   : > { %2480 = vperm.xlu1 %11571, %v2066_v10   ;;  %2475 = vperm.xlu0 %11570, %v2065_v11   ;;  %v2079_v34 = vld [vmem:[%s16334_s7 + $0x2c0] sm:$0xff]  ;;  %v2082_v35 = vld [vmem:[%s16334_s7 + $0x2d8] sm:$0xff]  ;;  %v2081_v36 = vld [vmem:[%s16334_s7 + $0x2d0] sm:$0xff] }
  0x18   : > { %10661 = vmatmul.mubr.msk.bf16.vlgmr.msra.gmra.mrb[0].mxu0 %vm759_vm2, %v11574_v15  ;;  %v11582_v37 = vld [vmem:[%s11817_s28 + $0x48] sm:$0xff]   ;;  %v11583_v38 = vld [vmem:[%s11817_s28 + $0x50] sm:$0xff]   ;;  %v2083_v40 = vld [vmem:[%s16334_s7 + $0x2e0] sm:$0xff] }
  0x19   : > { %10664 = vmatprep.mubr.msk.bf16.mxu0 %vm759_vm2, %v11575_v16  ;;  %v2084_v39 = vld [vmem:[%s16334_s7 + $0x2e8] sm:$0xff]  ;;  %v2086_v41 = vld [vmem:[%s16334_s7 + $0x2f8] sm:$0xff]  ;;  %v2085_v42 = vld [vmem:[%s16334_s7 + $0x2f0] sm:$0xff] }
  0x1a   : > { %v11584_v43 = vld [vmem:[%s11817_s28 + $0x58] sm:$0xff]   ;;  %v11585_v44 = vld [vmem:[%s11817_s28 + $0x60] sm:$0xff]   ;;  %v2088_v45 = vld [vmem:[%s16334_s7 + $0x308] sm:$0xff] }
  0x1b   : > { %2490 = vperm.xlu1 %11571, %v2068_v13   ;;  %2485 = vperm.xlu0 %11570, %v2067_v14   ;;  %v2087_v46 = vld [vmem:[%s16334_s7 + $0x300] sm:$0xff]  ;;  %v2090_v47 = vld [vmem:[%s16334_s7 + $0x318] sm:$0xff]  ;;  %v2089_v48 = vld [vmem:[%s16334_s7 + $0x310] sm:$0xff] }
  0x1c   : > { %v11586_v49 = vld [vmem:[%s11817_s28 + $0x68] sm:$0xff]   ;;  %v11587_v50 = vld [vmem:[%s11817_s28 + $0x70] sm:$0xff]   ;;  %v2091_v52 = vld [vmem:[%s16334_s7 + $0x320] sm:$0xff] }
  0x1d   : > { %v2092_v51 = vld [vmem:[%s16334_s7 + $0x328] sm:$0xff]  ;;  %v2094_v53 = vld [vmem:[%s16334_s7 + $0x338] sm:$0xff]  ;;  %v2093_v54 = vld [vmem:[%s16334_s7 + $0x330] sm:$0xff] }
  0x1e   : > { %v11588_v55 = vld [vmem:[%s11817_s28 + $0x78] sm:$0xff]   ;;  %v11589_v56 = vld [vmem:[%s11817_s28 + $0x80] sm:$0xff]   ;;  %v2096_v57 = vld [vmem:[%s16334_s7 + $0x348] sm:$0xff] }
  0x1f   : > { %2500 = vperm.xlu1 %11571, %v2070_v17   ;;  %2495 = vperm.xlu0 %11570, %v2069_v18   ;;  %v2095_v58 = vld [vmem:[%s16334_s7 + $0x340] sm:$0xff]  ;;  %v2058_v59 = vld [vmem:[%s16334_s7 + $0x218] sm:$0xff]  ;;  %v2057_v60 = vld [vmem:[%s16334_s7 + $0x210] sm:$0xff] }
  0x20   : > { %10665 = vmatmul.mubr.msk.bf16.gmra.mrb[4].mxu0 %vm759_vm2, %v11576_v19  ;;  %v11590_v61 = vld [vmem:[%s11817_s28 + $0x88] sm:$0xff]   ;;  %v11591_v62 = vld [vmem:[%s11817_s28 + $0x90] sm:$0xff]   ;;  %v2059_v0 = vld [vmem:[%s16334_s7 + $0x220] sm:$0xff] }
  0x21   : > { %10668 = vmatprep.mubr.msk.bf16.mxu0 %vm759_vm2, %v11577_v20  ;;  %v2060_v63 = vld [vmem:[%s16334_s7 + $0x228] sm:$0xff]  ;;  %v2098_v1 = vld [vmem:[%s16334_s7 + $0x358] sm:$0xff]  ;;  %v2097_v3 = vld [vmem:[%s16334_s7 + $0x350] sm:$0xff] }
  0x22   : > { %v11592_v4 = vld [vmem:[%s11817_s28 + $0x98] sm:$0xff]   ;;  %v11593_v5 = vld [vmem:[%s11817_s28 + $0xa0] sm:$0xff]   ;;  %v2100_v6 = vld [vmem:[%s16334_s7 + $0x368] sm:$0xff] }
  0x23   : > { %2510 = vperm.xlu1 %11571, %v2072_v21   ;;  %2505 = vperm.xlu0 %11570, %v2071_v22   ;;  %v2099_v7 = vld [vmem:[%s16334_s7 + $0x360] sm:$0xff]  ;;  %v2102_v8 = vld [vmem:[%s16334_s7 + $0x378] sm:$0xff]  ;;  %v2101_v9 = vld [vmem:[%s16334_s7 + $0x370] sm:$0xff] }
  0x24   : > { %v11594_v10 = vld [vmem:[%s11817_s28 + $0xa8] sm:$0xff]   ;;  %v1991_v12 = vld [vmem:[%s16334_s7] sm:$0xff]  ;;  %v11595_v13 = vld [vmem:[%s11817_s28 + $0xb0] sm:$0xff]  }
  0x25   : > { %v1992_v11 = vld [vmem:[%s16334_s7 + $0x8] sm:$0xff]  ;;  %v1994_v14 = vld [vmem:[%s16334_s7 + $0x18] sm:$0xff]  ;;  %v1993_v15 = vld [vmem:[%s16334_s7 + $0x10] sm:$0xff] }
  0x26   : > { %v11596_v16 = vld [vmem:[%s11817_s28 + $0xb8] sm:$0xff]   ;;  %v1996_v17 = vld [vmem:[%s16334_s7 + $0x28] sm:$0xff]  ;;  %v11597_v18 = vld [vmem:[%s11817_s28 + $0xc0] sm:$0xff]  }
  0x27   : > { %2520 = vperm.xlu1 %11571, %v2074_v23   ;;  %2515 = vperm.xlu0 %11570, %v2073_v24   ;;  %v1995_v19 = vld [vmem:[%s16334_s7 + $0x20] sm:$0xff]  ;;  %v1998_v20 = vld [vmem:[%s16334_s7 + $0x38] sm:$0xff]  ;;  %v1997_v21 = vld [vmem:[%s16334_s7 + $0x30] sm:$0xff] }
  0x28   : > { %10669 = vmatmul.mubr.msk.bf16.gmra.mrb[8].mxu0 %vm759_vm2, %v11578_v25  ;;  %v11598_v22 = vld [vmem:[%s11817_s28 + $0xc8] sm:$0xff]   ;;  %v11599_v23 = vld [vmem:[%s11817_s28 + $0xd0] sm:$0xff]   ;;  %v1999_v25 = vld [vmem:[%s16334_s7 + $0x40] sm:$0xff] }
  0x29   : > { %10672 = vmatprep.mubr.msk.bf16.mxu0 %vm759_vm2, %v11579_v26  ;;  %v2000_v24 = vld [vmem:[%s16334_s7 + $0x48] sm:$0xff]  ;;  %v2002_v26 = vld [vmem:[%s16334_s7 + $0x58] sm:$0xff]  ;;  %v12324_v2 = vld [vmem:[%s16329_s2 + $0x3] ss:$0 sm:$0xff] }
  0x2b   : > { %2530 = vperm.xlu1 %11571, %v2076_v27   ;;  %2525 = vperm.xlu0 %11570, %v2075_v28   ;;  %v2001_v27 = vld [vmem:[%s16334_s7 + $0x50] sm:$0xff]  ;;  %v11600_v28 = vld [vmem:[%s11817_s28 + $0xd8] sm:$0xff]  }
  0x2f   : > { %2540 = vperm.xlu1 %11571, %v2078_v29   ;;  %2535 = vperm.xlu0 %11570, %v2077_v30   ;;  %v11601_v29 = vld [vmem:[%s11817_s28 + $0xe0] sm:$0xff]   ;;  %v2004_v30 = vld [vmem:[%s16334_s7 + $0x68] sm:$0xff] }
  0x30   : > { %10673 = vmatmul.mubr.msk.bf16.gmra.mrb[12].mxu0 %vm759_vm2, %v11580_v31  ;;  %v2003_v31 = vld [vmem:[%s16334_s7 + $0x60] sm:$0xff] }
  0x31   : > { %10676 = vmatprep.mubr.msk.bf16.mxu0 %vm759_vm2, %v11581_v32  ;;  %v2006_v32 = vld [vmem:[%s16334_s7 + $0x78] sm:$0xff] }
  0x33   : > { %2550 = vperm.xlu1 %11571, %v2080_v33   ;;  %2545 = vperm.xlu0 %11570, %v2079_v34   ;;  %v2005_v33 = vld [vmem:[%s16334_s7 + $0x70] sm:$0xff]  ;;  %v11602_v34 = vld [vmem:[%s11817_s28 + $0xe8] sm:$0xff]  }
  0x37   : > { %2560 = vperm.xlu1 %11571, %v2082_v35   ;;  %2555 = vperm.xlu0 %11570, %v2081_v36   ;;  %v11603_v35 = vld [vmem:[%s11817_s28 + $0xf0] sm:$0xff]   ;;  %v2008_v36 = vld [vmem:[%s16334_s7 + $0x88] sm:$0xff] }
  0x38   : > { %10677 = vmatmul.mubr.msk.bf16.gmra.mrb[16].mxu0 %vm759_vm2, %v11582_v37  ;;  %v2007_v37 = vld [vmem:[%s16334_s7 + $0x80] sm:$0xff] }
  0x39   : > { %10680 = vmatprep.mubr.msk.bf16.mxu0 %vm759_vm2, %v11583_v38  ;;  %v2010_v38 = vld [vmem:[%s16334_s7 + $0x98] sm:$0xff] }
  0x3b   : > { %2570 = vperm.xlu1 %11571, %v2084_v39   ;;  %2565 = vperm.xlu0 %11570, %v2083_v40   ;;  %v2009_v39 = vld [vmem:[%s16334_s7 + $0x90] sm:$0xff]  ;;  %v11604_v40 = vld [vmem:[%s11817_s28 + $0xf8] sm:$0xff]  }
  0x3f   : > { %2580 = vperm.xlu1 %11571, %v2086_v41   ;;  %2575 = vperm.xlu0 %11570, %v2085_v42  }
  0x40   : > { %10681 = vmatmul.mubr.msk.bf16.gmra.mrb[20].mxu0 %vm759_vm2, %v11584_v43  ;;  %v11605_v43 = vld [vmem:[%s11817_s28 + $0x100] sm:$0xff]  }
  0x41   : > { %10684 = vmatprep.mubr.msk.bf16.mxu0 %vm759_vm2, %v11585_v44  ;;  %v2012_v44 = vld [vmem:[%s16334_s7 + $0xa8] sm:$0xff] }
  0x43   : > { %2590 = vperm.xlu1 %11571, %v2088_v45   ;;  %2585 = vperm.xlu0 %11570, %v2087_v46   ;;  %v2011_v45 = vld [vmem:[%s16334_s7 + $0xa0] sm:$0xff] }
  0x47   : > { %2600 = vperm.xlu1 %11571, %v2090_v47   ;;  %2595 = vperm.xlu0 %11570, %v2089_v48   ;;  %v2014_v48 = vld [vmem:[%s16334_s7 + $0xb8] sm:$0xff] }
  0x48   : > { %10685 = vmatmul.mubr.msk.bf16.gmra.mrb[24].mxu0 %vm759_vm2, %v11586_v49  ;;  %v2013_v49 = vld [vmem:[%s16334_s7 + $0xb0] sm:$0xff] }
  0x49   : > { %10688 = vmatprep.mubr.msk.bf16.mxu0 %vm759_vm2, %v11587_v50  ;;  %v11606_v50 = vld [vmem:[%s11817_s28 + $0x108] sm:$0xff]  }
  0x4b   : > { %2610 = vperm.xlu1 %11571, %v2092_v51   ;;  %2605 = vperm.xlu0 %11570, %v2091_v52  }
  0x4f   : > { %2620 = vperm.xlu1 %11571, %v2094_v53   ;;  %2615 = vperm.xlu0 %11570, %v2093_v54   ;;  %v11607_v53 = vld [vmem:[%s11817_s28 + $0x110] sm:$0xff]   ;;  %v2016_v54 = vld [vmem:[%s16334_s7 + $0xc8] sm:$0xff] }
  0x50   : > { %10689 = vmatmul.mubr.msk.bf16.gmra.mrb[28].mxu0 %vm759_vm2, %v11588_v55  ;;  %v2015_v55 = vld [vmem:[%s16334_s7 + $0xc0] sm:$0xff] }
  0x51   : > { %10692 = vmatprep.mubr.msk.bf16.mxu0 %vm759_vm2, %v11589_v56 }
  0x53   : > { %2630 = vperm.xlu1 %11571, %v2096_v57   ;;  %2625 = vperm.xlu0 %11570, %v2095_v58   ;;  %v2018_v58 = vld [vmem:[%s16334_s7 + $0xd8] sm:$0xff] }
  0x57   : > { %2440 = vperm.xlu1 %11571, %v2058_v59   ;;  %2435 = vperm.xlu0 %11570, %v2057_v60   ;;  %v2017_v59 = vld [vmem:[%s16334_s7 + $0xd0] sm:$0xff]  ;;  %v11608_v60 = vld [vmem:[%s11817_s28 + $0x118] sm:$0xff]  }
  0x58   : > { %10693 = vmatmul.mubr.msk.bf16.gmra.mrb[32].mxu0 %vm759_vm2, %v11590_v61 }
  0x59   : > { %10696 = vmatprep.mubr.msk.bf16.mxu0 %vm759_vm2, %v11591_v62 }
  0x5b   : > { %2450 = vperm.xlu1 %11571, %v2060_v63   ;;  %2445 = vperm.xlu0 %11570, %v2059_v0   ;;  %v11609_v63 = vld [vmem:[%s11817_s28 + $0x120] sm:$0xff]   ;;  %v2020_v0 = vld [vmem:[%s16334_s7 + $0xe8] sm:$0xff] }
  0x5f   : > { %2640 = vperm.xlu1 %11571, %v2098_v1   ;;  %2635 = vperm.xlu0 %11570, %v2097_v3   ;;  %v2019_v1 = vld [vmem:[%s16334_s7 + $0xe0] sm:$0xff] }
  0x60   : > { %10697 = vmatmul.mubr.msk.bf16.gmra.mrb[36].mxu0 %vm759_vm2, %v11592_v4 }
  0x61   : > { %10700 = vmatprep.mubr.msk.bf16.mxu0 %vm759_vm2, %v11593_v5  ;;  %v2022_v5 = vld [vmem:[%s16334_s7 + $0xf8] sm:$0xff] }
  0x63   : > { %2650 = vperm.xlu1 %11571, %v2100_v6   ;;  %2645 = vperm.xlu0 %11570, %v2099_v7   ;;  %v2021_v6 = vld [vmem:[%s16334_s7 + $0xf0] sm:$0xff]  ;;  %v11610_v7 = vld [vmem:[%s11817_s28 + $0x128] sm:$0xff]  }
  0x67   : > { %2660 = vperm.xlu1 %11571, %v2102_v8   ;;  %2655 = vperm.xlu0 %11570, %v2101_v9  }
  0x68   : > { %10701 = vmatmul.mubr.msk.bf16.gmra.mrb[40].mxu0 %vm759_vm2, %v11594_v10  ;;  %v11611_v10 = vld [vmem:[%s11817_s28 + $0x130] sm:$0xff]  }
  0x69   : > { %10704 = vmatprep.mubr.msk.bf16.mxu0 %vm759_vm2, %v11595_v13 }
  0x6b   : > { %2110 = vperm.xlu1 %11571, %v1992_v11   ;;  %2105 = vperm.xlu0 %11570, %v1991_v12   ;;  %v2024_v11 = vld [vmem:[%s16334_s7 + $0x108] sm:$0xff]  ;;  %v2023_v12 = vld [vmem:[%s16334_s7 + $0x100] sm:$0xff] }
  0x6f   : > { %2120 = vperm.xlu1 %11571, %v1994_v14   ;;  %2115 = vperm.xlu0 %11570, %v1993_v15   ;;  %v2026_v15 = vld [vmem:[%s16334_s7 + $0x118] sm:$0xff] }
  0x70   : > { %10705 = vmatmul.mubr.msk.bf16.gmra.mrb[44].mxu0 %vm759_vm2, %v11596_v16  ;;  %v2025_v16 = vld [vmem:[%s16334_s7 + $0x110] sm:$0xff] }
  0x71   : > { %10708 = vmatprep.mubr.msk.bf16.mxu0 %vm759_vm2, %v11597_v18 }
  0x73   : > { %2130 = vperm.xlu1 %11571, %v1996_v17   ;;  %2125 = vperm.xlu0 %11570, %v1995_v19   ;;  %v11612_v17 = vld [vmem:[%s11817_s28 + $0x138] sm:$0xff]  }
  0x77   : > { %2140 = vperm.xlu1 %11571, %v1998_v20   ;;  %2135 = vperm.xlu0 %11570, %v1997_v21   ;;  %v11613_v20 = vld [vmem:[%s11817_s28 + $0x140] sm:$0xff]   ;;  %v2028_v21 = vld [vmem:[%s16334_s7 + $0x128] sm:$0xff] }
  0x78   : > { %10709 = vmatmul.mubr.msk.bf16.gmra.mrb[48].mxu0 %vm759_vm2, %v11598_v22  ;;  %v2027_v22 = vld [vmem:[%s16334_s7 + $0x120] sm:$0xff] }
  0x79   : > { %10712 = vmatprep.mubr.msk.bf16.mxu0 %vm759_vm2, %v11599_v23 }
  0x7b   : > { %2150 = vperm.xlu1 %11571, %v2000_v24   ;;  %2145 = vperm.xlu0 %11570, %v1999_v25   ;;  %v2030_v25 = vld [vmem:[%s16334_s7 + $0x138] sm:$0xff] }
  0x7f   : > { %2160 = vperm.xlu1 %11571, %v2002_v26   ;;  %2155 = vperm.xlu0 %11570, %v2001_v27   ;;  %v2029_v26 = vld [vmem:[%s16334_s7 + $0x130] sm:$0xff]  ;;  %v11614_v27 = vld [vmem:[%s11817_s28 + $0x148] sm:$0xff]  }
  0x80   : > { %10713 = vmatmul.mubr.msk.bf16.gmra.mrb[52].mxu0 %vm759_vm2, %v11600_v28 }
  0x81   : > { %10716 = vmatprep.mubr.msk.bf16.mxu0 %vm759_vm2, %v11601_v29 }
  0x83   : > { %2170 = vperm.xlu1 %11571, %v2004_v30   ;;  %2165 = vperm.xlu0 %11570, %v2003_v31   ;;  %v11615_v30 = vld [vmem:[%s11817_s28 + $0x150] sm:$0xff]   ;;  %v2032_v31 = vld [vmem:[%s16334_s7 + $0x148] sm:$0xff] }
  0x87   : > { %2180 = vperm.xlu1 %11571, %v2006_v32   ;;  %2175 = vperm.xlu0 %11570, %v2005_v33   ;;  %v2031_v32 = vld [vmem:[%s16334_s7 + $0x140] sm:$0xff] }
  0x88   : > { %10717 = vmatmul.mubr.msk.bf16.gmra.mrb[56].mxu0 %vm759_vm2, %v11602_v34 }
  0x89   : > { %10720 = vmatprep.mubr.msk.bf16.mxu0 %vm759_vm2, %v11603_v35  ;;  %v2034_v35 = vld [vmem:[%s16334_s7 + $0x158] sm:$0xff] }
  0x8b   : > { %2190 = vperm.xlu1 %11571, %v2008_v36   ;;  %2185 = vperm.xlu0 %11570, %v2007_v37   ;;  %v2033_v36 = vld [vmem:[%s16334_s7 + $0x150] sm:$0xff]  ;;  %v11616_v37 = vld [vmem:[%s11817_s28 + $0x158] sm:$0xff]  }
  0x8e   : > { %v12062_v41 = vpop.permute.xlu1 %2465  ;;  %v12064_v42 = vpop.permute.xlu0 %2455 }
  0x8f   : > { %16365 = vst [vmem:[#allocation6_spill] sm:$0xff] %v12062_v41  ;;  %2200 = vperm.xlu1 %11571, %v2010_v38   ;;  %2195 = vperm.xlu0 %11570, %v2009_v39  }
  0x90   : > { %10721 = vmatmul.mubr.msk.bf16.gmra.mrb[60].mxu0 %vm759_vm2, %v11604_v40  ;;  %v11617_v40 = vld [vmem:[%s11817_s28 + $0x160] sm:$0xff]  }
  0x91   : > { %10724 = vmatprep.mubr.msk.bf16.mxu0 %vm759_vm2, %v11605_v43  ;;  %v2035_v43 = vld [vmem:[%s16334_s7 + $0x160] sm:$0xff] }
  0x92   : > { %v12074_v46 = vpop.permute.xlu1 %2470  ;;  %v12076_v47 = vpop.permute.xlu0 %2460 }
  0x93   : > { %16366 = vst [vmem:[#allocation7_spill] sm:$0xff] %v12074_v46  ;;  %2210 = vperm.xlu1 %11571, %v2012_v44   ;;  %2205 = vperm.xlu0 %11570, %v2011_v45   ;;  %v2036_v44 = vld [vmem:[%s16334_s7 + $0x168] sm:$0xff] }
  0x96   : > { %v12086_v51 = vpop.permute.xlu1 %2480  ;;  %v12088_v52 = vpop.permute.xlu0 %2475 }
  0x97   : > { %16367 = vst [vmem:[#allocation8_spill] sm:$0xff] %v12086_v51  ;;  %2220 = vperm.xlu1 %11571, %v2014_v48   ;;  %2215 = vperm.xlu0 %11570, %v2013_v49   ;;  %v2037_v49 = vld [vmem:[%s16334_s7 + $0x170] sm:$0xff] }
  0x98   : > { %10725 = vmatmul.mubr.msk.bf16.gmra.mrb[64].mxu0 %vm759_vm2, %v11606_v50  ;;  %v2038_v50 = vld [vmem:[%s16334_s7 + $0x178] sm:$0xff] }
  0x99   : > { %10728 = vmatprep.mubr.msk.bf16.mxu0 %vm759_vm2, %v11607_v53  ;;  %v11618_v53 = vld [vmem:[%s11817_s28 + $0x168] sm:$0xff]  }
  0x9a   : > { %v12098_v56 = vpop.permute.xlu1 %2490  ;;  %v12100_v57 = vpop.permute.xlu0 %2485 }
  0x9b   : > { %16368 = vst [vmem:[#allocation9_spill] sm:$0xff] %v12098_v56  ;;  %16369 = vst [vmem:[#allocation10_spill] sm:$0xff] %v12100_v57  ;;  %2230 = vperm.xlu1 %11571, %v2016_v54   ;;  %2225 = vperm.xlu0 %11570, %v2015_v55  }
  0x9e   : > { %v12110_v61 = vpop.permute.xlu1 %2500  ;;  %v12112_v62 = vpop.permute.xlu0 %2495 }
  0x9f   : > { %16370 = vst [vmem:[#allocation11_spill] sm:$0xff] %v12110_v61  ;;  %16371 = vst [vmem:[#allocation12_spill] sm:$0xff] %v12112_v62  ;;  %2240 = vperm.xlu1 %11571, %v2018_v58   ;;  %2235 = vperm.xlu0 %11570, %v2017_v59   ;;  %v11619_v58 = vld [vmem:[%s11817_s28 + $0x170] sm:$0xff]   ;;  %v2039_v59 = vld [vmem:[%s16334_s7 + $0x180] sm:$0xff] }
  0xa0   : > { %10729 = vmatmul.mubr.msk.bf16.gmra.mrb[68].mxu0 %vm759_vm2, %v11608_v60  ;;  %v2040_v60 = vld [vmem:[%s16334_s7 + $0x188] sm:$0xff] }
  0xa1   : > { %10732 = vmatprep.mubr.msk.bf16.mxu0 %vm759_vm2, %v11609_v63 }
  0xa2   : > { %v12122_v3 = vpop.permute.xlu1 %2510  ;;  %v12124_v4 = vpop.permute.xlu0 %2505 }
  0xa3   : > { %16372 = vst [vmem:[#allocation13_spill] sm:$0xff] %v12122_v3  ;;  %16373 = vst [vmem:[#allocation14_spill] sm:$0xff] %v12124_v4  ;;  %2250 = vperm.xlu1 %11571, %v2020_v0   ;;  %2245 = vperm.xlu0 %11570, %v2019_v1   ;;  %v2041_v1 = vld [vmem:[%s16334_s7 + $0x190] sm:$0xff] }
  0xa6   : > { %v12134_v8 = vpop.permute.xlu1 %2520  ;;  %v12136_v9 = vpop.permute.xlu0 %2515 }
  0xa7   : > { %16374 = vst [vmem:[#allocation15_spill] sm:$0xff] %v12134_v8  ;;  %16375 = vst [vmem:[#allocation16_spill] sm:$0xff] %v12136_v9  ;;  %2260 = vperm.xlu1 %11571, %v2022_v5   ;;  %2255 = vperm.xlu0 %11570, %v2021_v6   ;;  %v2042_v5 = vld [vmem:[%s16334_s7 + $0x198] sm:$0xff] }
  0xa8   : > { %10733 = vmatmul.mubr.msk.bf16.gmra.mrb[72].mxu0 %vm759_vm2, %v11610_v7  ;;  %v11620_v6 = vld [vmem:[%s11817_s28 + $0x178] sm:$0xff]  }
  0xa9   : > { %10736 = vmatprep.mubr.msk.bf16.mxu0 %vm759_vm2, %v11611_v10 }
  0xaa   : > { %v12146_v13 = vpop.permute.xlu1 %2530  ;;  %v12148_v14 = vpop.permute.xlu0 %2525 }
  0xab   : > { %16376 = vst [vmem:[#allocation17_spill] sm:$0xff] %v12146_v13  ;;  %16377 = vst [vmem:[#allocation18_spill] sm:$0xff] %v12148_v14  ;;  %2270 = vperm.xlu1 %11571, %v2024_v11   ;;  %2265 = vperm.xlu0 %11570, %v2023_v12   ;;  %v11621_v11 = vld [vmem:[%s11817_s28 + $0x180] sm:$0xff]  }
  0xae   : > { %v12158_v18 = vpop.permute.xlu1 %2540  ;;  %v12160_v19 = vpop.permute.xlu0 %2535 }
  0xaf   : > { %16378 = vst [vmem:[#allocation19_spill] sm:$0xff] %v12158_v18  ;;  %16379 = vst [vmem:[#allocation20_spill] sm:$0xff] %v12160_v19  ;;  %2280 = vperm.xlu1 %11571, %v2026_v15   ;;  %2275 = vperm.xlu0 %11570, %v2025_v16   ;;  %v11622_v16 = vld [vmem:[%s11817_s28 + $0x188] sm:$0xff]  }
  0xb0   : > { %10737 = vmatmul.mubr.msk.bf16.gmra.mrb[76].mxu0 %vm759_vm2, %v11612_v17 }
  0xb1   : > { %10740 = vmatprep.mubr.msk.bf16.mxu0 %vm759_vm2, %v11613_v20 }
  0xb2   : > { %v12170_v23 = vpop.permute.xlu1 %2550  ;;  %v12172_v24 = vpop.permute.xlu0 %2545 }
  0xb3   : > { %16380 = vst [vmem:[#allocation21_spill] sm:$0xff] %v12170_v23  ;;  %16381 = vst [vmem:[#allocation22_spill] sm:$0xff] %v12172_v24  ;;  %2290 = vperm.xlu1 %11571, %v2028_v21   ;;  %2285 = vperm.xlu0 %11570, %v2027_v22   ;;  %v11623_v21 = vld [vmem:[%s11817_s28 + $0x190] sm:$0xff]  }
  0xb6   : > { %v12182_v28 = vpop.permute.xlu1 %2560  ;;  %v12184_v29 = vpop.permute.xlu0 %2555 }
  0xb7   : > { %16382 = vst [vmem:[#allocation23_spill] sm:$0xff] %v12182_v28  ;;  %16383 = vst [vmem:[#allocation24_spill] sm:$0xff] %v12184_v29  ;;  %2300 = vperm.xlu1 %11571, %v2030_v25   ;;  %2295 = vperm.xlu0 %11570, %v2029_v26   ;;  %v11624_v26 = vld [vmem:[%s11817_s28 + $0x198] sm:$0xff]  }
  0xb8   : > { %10741 = vmatmul.mubr.msk.bf16.gmra.mrb[80].mxu0 %vm759_vm2, %v11614_v27 }
  0xb9   : > { %10744 = vmatprep.mubr.msk.bf16.mxu0 %vm759_vm2, %v11615_v30 }
  0xba   : > { %v12194_v33 = vpop.permute.xlu1 %2570  ;;  %v12196_v34 = vpop.permute.xlu0 %2565 }
  0xbb   : > { %16384 = vst [vmem:[#allocation25_spill] sm:$0xff] %v12194_v33  ;;  %16385 = vst [vmem:[#allocation26_spill] sm:$0xff] %v12196_v34  ;;  %2310 = vperm.xlu1 %11571, %v2032_v31   ;;  %2305 = vperm.xlu0 %11570, %v2031_v32   ;;  %v11625_v31 = vld [vmem:[%s11817_s28 + $0x1a0] sm:$0xff]  }
  0xbe   : > { %v12206_v38 = vpop.permute.xlu1 %2580  ;;  %v12208_v39 = vpop.permute.xlu0 %2575 }
  0xbf   : > { %16386 = vst [vmem:[#allocation27_spill] sm:$0xff] %v12206_v38  ;;  %16387 = vst [vmem:[#allocation28_spill] sm:$0xff] %v12208_v39  ;;  %2320 = vperm.xlu1 %11571, %v2034_v35   ;;  %2315 = vperm.xlu0 %11570, %v2033_v36   ;;  %v11626_v36 = vld [vmem:[%s11817_s28 + $0x1a8] sm:$0xff]  }
  0xc0   : > { %10745 = vmatmul.mubr.msk.bf16.gmra.mrb[84].mxu0 %vm759_vm2, %v11616_v37 }
  0xc1   : > { %10748 = vmatprep.mubr.msk.bf16.mxu0 %vm759_vm2, %v11617_v40 }
  0xc2   : > { %v12218_v45 = vpop.permute.xlu1 %2590  ;;  %v12220_v48 = vpop.permute.xlu0 %2585 }
  0xc3   : > { %16388 = vst [vmem:[#allocation29_spill] sm:$0xff] %v12218_v45  ;;  %16389 = vst [vmem:[#allocation30_spill] sm:$0xff] %v12220_v48  ;;  %2325 = vperm.xlu1 %11571, %v2035_v43   ;;  %2330 = vperm.xlu0 %11570, %v2036_v44   ;;  %v11627_v43 = vld [vmem:[%s11817_s28 + $0x1b0] sm:$0xff]  }
  0xc6   : > { %v12230_v54 = vpop.permute.xlu1 %2600  ;;  %v12232_v55 = vpop.permute.xlu0 %2595 }
  0xc7   : > { %16390 = vst [vmem:[#allocation31_spill] sm:$0xff] %v12230_v54  ;;  %16391 = vst [vmem:[#allocation32_spill] sm:$0xff] %v12232_v55  ;;  %2335 = vperm.xlu1 %11571, %v2037_v49   ;;  %2340 = vperm.xlu0 %11570, %v2038_v50   ;;  %v12301_v50 = vld [vmem:[%s16329_s2] ss:$0 sm:$0xff] }
  0xc8   : > { %10749 = vmatmul.mubr.msk.bf16.gmra.mrb[88].mxu0 %vm759_vm2, %v11618_v53 }
  0xc9   : > { %10752 = vmatprep.mubr.msk.bf16.mxu0 %vm759_vm2, %v11619_v58  ;;  %v12307_v58 = vld [vmem:[%s16329_s2 + $0x1] ss:$0 sm:$0xff] }
  0xca   : > { %v12242_v63 = vpop.permute.xlu1 %2610  ;;  %v12244_v0 = vpop.permute.xlu0 %2605 }
  0xcb   : > { %16392 = vst [vmem:[#allocation33_spill] sm:$0xff] %v12242_v63  ;;  %16393 = vst [vmem:[#allocation34_spill] sm:$0xff] %v12244_v0  ;;  %2345 = vperm.xlu1 %11571, %v2039_v59   ;;  %2350 = vperm.xlu0 %11570, %v2040_v60  }
  0xce   : > { %v12254_v7 = vpop.permute.xlu1 %2620  ;;  %v12256_v10 = vpop.permute.xlu0 %2615 }
  0xcf   : > { %16394 = vst [vmem:[#allocation35_spill] sm:$0xff] %v12254_v7  ;;  %16395 = vst [vmem:[#allocation36_spill] sm:$0xff] %v12256_v10  ;;  %2355 = vperm.xlu1 %11571, %v2041_v1   ;;  %2360 = vperm.xlu0 %11570, %v2042_v5   ;;  %v11628_v1 = vld [vmem:[%s11817_s28 + $0x1b8] sm:$0xff]  }
  0xd0   : > { %10753 = vmatmul.mubr.msk.bf16.gmra.mrb[92].mxu0 %vm759_vm2, %v11620_v6 }
  0xd1   : > { %10756 = vmatprep.mubr.msk.bf16.mxu0 %vm759_vm2, %v11621_v11 }
  0xd2   : > { %v12260_v12 = vpop.permute.xlu1 %2630  ;;  %v12262_v15 = vpop.permute.xlu0 %2625 }
  0xd3   : > { %16396 = vst [vmem:[#allocation37_spill] sm:$0xff] %v12260_v12  ;;  %16397 = vst [vmem:[#allocation38_spill] sm:$0xff] %v12262_v15 }
  0xd6   : > { %v12266_v17 = vpop.permute.xlu1 %2440  ;;  %v12268_v20 = vpop.permute.xlu0 %2435 }
  0xd8   : > { %10757 = vmatmul.mubr.msk.bf16.gmra.mrb[96].mxu0 %vm759_vm2, %v11622_v16 }
  0xd9   : > { %10760 = vmatprep.mubr.msk.bf16.mxu0 %vm759_vm2, %v11623_v21  ;;  %v12316_v21 = vld [vmem:[%s16329_s2 + $0x2] ss:$0 sm:$0xff] }
  0xda   : > { %v12272_v22 = vpop.permute.xlu1 %2450  ;;  %v12274_v25 = vpop.permute.xlu0 %2445 }
  0xde   : > { %v12278_v27 = vpop.permute.xlu1 %2640  ;;  %v12280_v30 = vpop.permute.xlu0 %2635 }
  0xdf   : > { %16398 = vst [vmem:[#allocation39_spill] sm:$0xff] %v12278_v27  ;;  %16399 = vst [vmem:[#allocation40_spill] sm:$0xff] %v12280_v30 }
  0xe0   : > { %10761 = vmatmul.mubr.msk.bf16.gmra.mrb[100].mxu0 %vm759_vm2, %v11624_v26 }
  0xe1   : > { %10764 = vmatprep.mubr.msk.bf16.mxu0 %vm759_vm2, %v11625_v31 }
  0xe2   : > { %v12284_v32 = vpop.permute.xlu1 %2650  ;;  %v12286_v35 = vpop.permute.xlu0 %2645 }
  0xe3   : > { %16400 = vst [vmem:[#allocation41_spill] sm:$0xff] %v12284_v32  ;;  %16401 = vst [vmem:[#allocation42_spill] sm:$0xff] %v12286_v35 }
  0xe6   : > { %v12290_v37 = vpop.permute.xlu1 %2660  ;;  %v12292_v40 = vpop.permute.xlu0 %2655 }
  0xe7   : > { %16402 = vst [vmem:[#allocation43_spill] sm:$0xff] %v12290_v37  ;;  %16403 = vst [vmem:[#allocation44_spill] sm:$0xff] %v12292_v40 }
  0xe8   : > { %10765 = vmatmul.mubr.msk.bf16.gmra.mrb[104].mxu0 %vm759_vm2, %v11626_v36 }
  0xe9   : > { %10768 = vmatprep.mubr.msk.bf16.mxu0 %vm759_vm2, %v11627_v43 }
  0xea   : > { %v12296_v44 = vpop.permute.xlu1 %2110  ;;  %v2106_v49 = vpop.permute.xlu0 %2105 }
  0xeb   : > { %v10662_v53 = vpop.f32.mrb[0].mxu0 }
  0xec   : > { %v978_v59 = vadd.f32 %v10662_v53, %v12301_v50  ;;  %v969_v60 = vpop.f32.mrb[1].mxu0 }
  0xed   : > { %v970_v5 = vadd.f32 %v12301_v50, %v969_v60  ;;  %v10663_v6 = vpop.f32.mrb[2].mxu0 }
  0xee   : > { %v2121_v11 = vpop.permute.xlu1 %2120  ;;  %vm1418_vm3 = vcmp.ge.f32.partialorder %v978_v59, 0.0  ;;  %v1535_v16 = vmul.f32 %v12307_v58, %v978_v59  ;;  %v981_v26 = vadd.f32 %v10663_v6, %v12301_v50  ;;  %v2116_v31 = vpop.permute.xlu0 %2115 }
  0xef   : > { %v972_v36 = vpop.f32.mrb[3].mxu0  ;;  %vm1416_vm4 = vcmp.ge.f32.partialorder %v970_v5, 0.0  ;;  %v1533_v43 = vmul.f32 %v12307_v58, %v970_v5 }
  0xf0   : > { %v973_v53 = vadd.f32 %v12301_v50, %v972_v36  ;;  %v1647_v60 = vsel %vm1418_vm3, %v978_v59, %v1535_v16  ;;  %vm1419_vm5 = vcmp.ge.f32.partialorder %v981_v26, 0.0  ;;  %v1536_v32 = vmul.f32 %v12307_v58, %v981_v26  ;;  %10769 = vmatmul.mubr.msk.bf16.gmra.mrb[108].mxu0 %vm759_vm2, %v11628_v1 }
  0xf1   : > { %v1645_v35 = vsel %vm1416_vm4, %v970_v5, %v1533_v43  ;;  %v1764_v6 = vmul.f32 %v12316_v21, %v1647_v60  ;;  %vm3058_vm2 = vcmask 261120  }
  0xf2   : > { %vm1417_vm6 = vcmp.ge.f32.partialorder %v973_v53, 0.0  ;;  %v1534_v37 = vmul.f32 %v12307_v58, %v973_v53  ;;  %v12330_v40 = vpop.permute.xlu1 %2130  ;;  %v1762_v59 = vmul.f32 %v12316_v21, %v1645_v35  ;;  %v1648_v16 = vsel %vm1419_vm5, %v981_v26, %v1536_v32  ;;  %v12333_v36 = vpop.permute.xlu0 %2125 }
  0xf3   : > { %v1765_v12 = vmul.f32 %v12316_v21, %v1648_v16  ;;  %v1881_v15 = vadd.f32 %v12324_v2, %v1764_v6  ;;  %v10666_v30 = vpop.f32.mrb[4].mxu0 }
  0xf4   : > { %v1646_v27 = vsel %vm1417_vm6, %v973_v53, %v1534_v37  ;;  %v1879_v1 = vadd.f32 %v12324_v2, %v1762_v59  ;;  %v994_v43 = vadd.f32 %v10666_v30, %v12301_v50  ;;  %v985_v60 = vpop.f32.mrb[5].mxu0 }
  0xf5   : > { %v1763_v5 = vmul.f32 %v12316_v21, %v1646_v27  ;;  %v1882_v63 = vadd.f32 %v12324_v2, %v1765_v12  ;;  %v2665_v7 = vmul.f32 %v2116_v31, %v1881_v15  ;;  %v986_v32 = vadd.f32 %v12301_v50, %v985_v60  ;;  %v10667_v35 = vpop.f32.mrb[6].mxu0 }
  0xf6   : > { %v2141_v26 = vpop.permute.xlu1 %2140  ;;  %vm1422_vm7 = vcmp.ge.f32.partialorder %v994_v43, 0.0  ;;  %v1539_v37 = vmul.f32 %v12307_v58, %v994_v43  ;;  %v997_v53 = vadd.f32 %v10667_v35, %v12301_v50  ;;  %v2136_v6 = vpop.permute.xlu0 %2135  ;;  %v12348_v60 = vmul.f32 %v2106_v49, %v1879_v1 }
  0xf7   : > { %v1880_v16 = vadd.f32 %v12324_v2, %v1763_v5  ;;  %v988_v59 = vpop.f32.mrb[7].mxu0  ;;  %v2666_v27 = vmul.f32 %v2121_v11, %v1882_v63  ;;  %vm1420_vm8 = vcmp.ge.f32.partialorder %v986_v32, 0.0  ;;  %v1537_v30 = vmul.f32 %v12307_v58, %v986_v32 }
  0xf8   : > { %v989_v12 = vadd.f32 %v12301_v50, %v988_v59  ;;  %v1651_v15 = vsel %vm1422_vm7, %v994_v43, %v1539_v37  ;;  %vm1423_vm9 = vcmp.ge.f32.partialorder %v997_v53, 0.0  ;;  %v1540_v31 = vmul.f32 %v12307_v58, %v997_v53 }
  0xf9   : > { %v2776_v5 = vpack.c.bf16 %v2666_v27, %v2665_v7  ;;  %v1649_v0 = vsel %vm1420_vm8, %v986_v32, %v1537_v30  ;;  %v1768_v10 = vmul.f32 %v12316_v21, %v1651_v15  ;;  %v2664_v43 = vmul.f32 %v12296_v44, %v1880_v16  ;;  %v11629_v15 = vld [vmem:[%s16330_s3 + $0x30] sm:$0xff]  }
  0xfa   : > { %vm1421_vm10 = vcmp.ge.f32.partialorder %v989_v12, 0.0  ;;  %v12351_v35 = vpop.permute.xlu1 %2150  ;;  %v1766_v63 = vmul.f32 %v12316_v21, %v1649_v0  ;;  %v1652_v11 = vsel %vm1423_vm9, %v997_v53, %v1540_v31  ;;  %v1538_v45 = vmul.f32 %v12307_v58, %v989_v12  ;;  %v12355_v54 = vpop.permute.xlu0 %2145  ;;  %10772 = vmatprep.subr.bf16.mxu0 %v11629_v15  ;;  %11264 = vmatprep.subr.bf16.mxu1 %v11629_v15 }
  0xfb   : > { %v1769_v37 = vmul.f32 %v12316_v21, %v1652_v11  ;;  %v1885_v49 = vadd.f32 %v12324_v2, %v1768_v10  ;;  %v10670_v7 = vpop.f32.mrb[8].mxu0  ;;  %v12360_v1 = vrot.slane %v2776_v5, 4  ;;  %v2775_v53 = vpack.c.bf16 %v2664_v43, %v12348_v60  ;;  %10773 = vmatpush3.bf16.msra.mxu0 %v11629_v15  ;;  %11270 = vmatpush3.bf16.msra.mxu1 %v11629_v15 }
  0xfc   : > { %v1650_v32 = vsel %vm1421_vm10, %v989_v12, %v1538_v45  ;;  %v1010_v59 = vadd.f32 %v10670_v7, %v12301_v50  ;;  %v1001_v0 = vpop.f32.mrb[9].mxu0  ;;  %v16404_v27 = vmov 0   ;;  %v1883_v45 = vadd.f32 %v12324_v2, %v1766_v63 }
  0xfd   : > { %337 = vst.msk [vmem:[#allocation2 + $0x10] sm:$0xff] %vm334_vm11, %v16404_v27  ;;  %338 = vst.msk [vmem:[#allocation2 + $0x18] sm:$0xff] %vm334_vm11, %v16404_v27  ;;  %v1886_v10 = vadd.f32 %v12324_v2, %v1769_v37  ;;  %v1767_v44 = vmul.f32 %v12316_v21, %v1650_v32  ;;  %v1002_v16 = vadd.f32 %v12301_v50, %v1001_v0  ;;  %v10671_v30 = vpop.f32.mrb[10].mxu0 }
  0xfe   : > { %341 = vst.msk [vmem:[#allocation2 + $0x1c0] sm:$0xff] %vm334_vm11, %v16404_v27  ;;  %342 = vst.msk [vmem:[#allocation2 + $0x1c8] sm:$0xff] %vm334_vm11, %v16404_v27  ;;  %v2161_v12 = vpop.permute.xlu1 %2160  ;;  %v2669_v31 = vmul.f32 %v2136_v6, %v1885_v49  ;;  %vm1426_vm13 = vcmp.ge.f32.partialorder %v1010_v59, 0.0  ;;  %v1543_v60 = vmul.f32 %v12307_v58, %v1010_v59  ;;  %v1013_v5 = vadd.f32 %v10671_v30, %v12301_v50  ;;  %v2156_v11 = vpop.permute.xlu0 %2155  ;;  %v11630_v49 = vld [vmem:[%s16330_s3 + $0x38] sm:$0xff]  }
  0xff   : > { %343 = vst.msk [vmem:[#allocation2 + $0x1d0] sm:$0xff] %vm334_vm11, %v16404_v27  ;;  %v1004_v63 = vpop.f32.mrb[11].mxu0  ;;  %v2670_v43 = vmul.f32 %v2141_v26, %v1886_v10  ;;  %v1884_v37 = vadd.f32 %v12324_v2, %v1767_v44  ;;  %vm1424_vm14 = vcmp.ge.f32.partialorder %v1002_v16, 0.0  ;;  %v1541_v7 = vmul.f32 %v12307_v58, %v1002_v16  ;;  %10774 = vmatprep.subr.bf16.mxu0 %v11630_v49 }
 0x100   : > { %v1655_v32 = vsel %vm1426_vm13, %v1010_v59, %v1543_v60  ;;  %vm1427_vm15 = vcmp.ge.f32.partialorder %v1013_v5, 0.0  ;;  %v1544_v0 = vmul.f32 %v12307_v58, %v1013_v5  ;;  %v1005_v6 = vadd.f32 %v12301_v50, %v1004_v63  ;;  %11265 = vmatprep.subr.bf16.mxu1 %v11630_v49  ;;  %10775 = vmatpush3.bf16.msra.mxu0 %v11630_v49 }
 0x101   : > { %v2667_v26 = vmul.f32 %v12333_v36, %v1883_v45  ;;  %v2778_v10 = vpack.c.bf16 %v2670_v43, %v2669_v31  ;;  %v2668_v44 = vmul.f32 %v12330_v40, %v1884_v37  ;;  %v1772_v30 = vmul.f32 %v12316_v21, %v1655_v32  ;;  %11271 = vmatpush3.bf16.msra.mxu1 %v11630_v49 }
 0x102   : > { %v12393_v48 = vpop.permute.xlu1 %2170  ;;  %v1653_v59 = vsel %vm1424_vm14, %v1002_v16, %v1541_v7  ;;  %v1656_v60 = vsel %vm1427_vm15, %v1013_v5, %v1544_v0  ;;  %vm1425_vm1 = vcmp.ge.f32.partialorder %v1005_v6, 0.0  ;;  %v1542_v63 = vmul.f32 %v12307_v58, %v1005_v6  ;;  %v12397_v55 = vpop.permute.xlu0 %2165 }
 0x103   : > { %v1773_v15 = vmul.f32 %v12316_v21, %v1656_v60  ;;  %v1889_v36 = vadd.f32 %v12324_v2, %v1772_v30  ;;  %v12401_v45 = vrot.slane %v2775_v53, 4  ;;  %v10674_v40 = vpop.f32.mrb[12].mxu0  ;;  %v2777_v5 = vpack.c.bf16 %v2668_v44, %v2667_v26  ;;  %v11631_v26 = vld [vmem:[%s16330_s3 + $0x40] sm:$0xff]  }
 0x104   : > { %v1654_v31 = vsel %vm1425_vm1, %v1005_v6, %v1542_v63  ;;  %v1026_v43 = vadd.f32 %v10674_v40, %v12301_v50  ;;  %v1017_v16 = vpop.f32.mrb[13].mxu0  ;;  %v12404_v37 = vrot.slane %v2778_v10, 4  ;;  %v1770_v7 = vmul.f32 %v12316_v21, %v1653_v59  ;;  %10776 = vmatprep.subr.bf16.mxu0 %v11631_v26  ;;  %11266 = vmatprep.subr.bf16.mxu1 %v11631_v26 }
 0x105   : > { %16405 = vst [vmem:[#allocation45_spill] sm:$0xff] %v12401_v45  ;;  %v1890_v32 = vadd.f32 %v12324_v2, %v1773_v15  ;;  %3116 = vrot.lane.b32.xlu0 %v12401_v45, %s11727_s25  ;;  %v12413_v53 = vsel %vm928_vm0, %v12401_v45, %v12360_v1  ;;  %v10675_v0 = vpop.f32.mrb[14].mxu0  ;;  %3057 = vst.msk [vmem:[#allocation2 + $0x20] sm:$0xf0] %vm3056_vm12, %v12401_v45  ;;  %v1771_v10 = vmul.f32 %v12316_v21, %v1654_v31 }
 0x106   : > { %16406 = vst [vmem:[#allocation46_spill] sm:$0xff] %v12413_v53  ;;  %v12415_v6 = vpop.permute.xlu1 %2180  ;;  %3118 = vrot.lane.b32.xlu1 %v12413_v53, %s11727_s25  ;;  %vm1430_vm3 = vcmp.ge.f32.partialorder %v1026_v43, 0.0  ;;  %v1547_v44 = vmul.f32 %v12307_v58, %v1026_v43  ;;  %v1018_v30 = vadd.f32 %v12301_v50, %v1017_v16  ;;  %v2176_v59 = vpop.permute.xlu0 %2175  ;;  %3059 = vst.msk [vmem:[#allocation2 + $0x28] sm:$0xff] %vm3058_vm2, %v12413_v53  ;;  %v2891_v16 = vrot.slane %v2777_v5, 4 }
 0x107   : > { %v1020_v60 = vpop.f32.mrb[15].mxu0  ;;  %v12429_v63 = vmul.f32 %v2161_v12, %v1890_v32  ;;  %v12431_v15 = vmul.f32 %v2156_v11, %v1889_v36  ;;  %v1029_v40 = vadd.f32 %v10675_v0, %v12301_v50  ;;  %10777 = vmatpush3.bf16.msra.mxu0 %v11631_v26  ;;  %v1887_v38 = vadd.f32 %v12324_v2, %v1770_v7  ;;  %v11632_v36 = vld [vmem:[%s16330_s3 + $0x48] sm:$0xff]  }
 0x108   : > { %v1021_v31 = vadd.f32 %v12301_v50, %v1020_v60  ;;  %v1659_v45 = vsel %vm1430_vm3, %v1026_v43, %v1547_v44  ;;  %vm1428_vm4 = vcmp.ge.f32.partialorder %v1018_v30, 0.0  ;;  %v1545_v33 = vmul.f32 %v12307_v58, %v1018_v30  ;;  %11272 = vmatpush3.bf16.msra.mxu1 %v11631_v26  ;;  %10778 = vmatprep.subr.bf16.mxu0 %v11632_v36 }
 0x109   : > { %v2780_v12 = vpack.c.bf16 %v12429_v63, %v12431_v15  ;;  %vm1431_vm5 = vcmp.ge.f32.partialorder %v1029_v40, 0.0  ;;  %v1548_v11 = vmul.f32 %v12307_v58, %v1029_v40  ;;  %v1888_v43 = vadd.f32 %v12324_v2, %v1771_v10  ;;  %11267 = vmatprep.subr.bf16.mxu1 %v11632_v36 }
 0x10a   : > { %v12440_v49 = vpop.permute.xlu1 %2190  ;;  %v1776_v5 = vmul.f32 %v12316_v21, %v1659_v45  ;;  %vm1429_vm6 = vcmp.ge.f32.partialorder %v1021_v31, 0.0  ;;  %v1546_v32 = vmul.f32 %v12307_v58, %v1021_v31  ;;  %v12448_v7 = vpop.permute.xlu0 %2185  ;;  %v1657_v0 = vsel %vm1428_vm4, %v1018_v30, %v1545_v33 }
 0x10b   : > { %v1660_v44 = vsel %vm1431_vm5, %v1029_v40, %v1548_v11  ;;  %v2892_v60 = vsel %vm928_vm0, %v12360_v1, %v2891_v16  ;;  %v10678_v63 = vpop.f32.mrb[16].mxu0  ;;  %v2894_v30 = vsel %vm928_vm0, %v2891_v16, %v12404_v37  ;;  %10779 = vmatpush3.bf16.msra.mxu0 %v11632_v36  ;;  %v1774_v16 = vmul.f32 %v12316_v21, %v1657_v0  ;;  %v11634_v0 = vld [vmem:[%s16330_s3 + $0x58] sm:$0xff]  }
 0x10c   : > { %v1777_v15 = vmul.f32 %v12316_v21, %v1660_v44  ;;  %v1893_v10 = vadd.f32 %v12324_v2, %v1776_v5  ;;  %v1658_v45 = vsel %vm1429_vm6, %v1021_v31, %v1546_v32  ;;  %3120 = vrot.lane.b32.xlu0 %v2892_v60, %s11727_s25  ;;  %3351 = vrot.lane.b32.xlu1 %v2892_v60, %s11728_s12  ;;  %v12457_v26 = vpop.f32.mrb[17].mxu0  ;;  %v11633_v31 = vld [vmem:[%s16330_s3 + $0x50] sm:$0xff]   ;;  %vm339_vm5 = vcmask 781312  }
 0x10d   : > { %3060 = vst.msk [vmem:[#allocation2 + $0x30] sm:$0xff] %vm3058_vm2, %v2892_v60  ;;  %v1775_v33 = vmul.f32 %v12316_v21, %v1658_v45  ;;  %v1042_v1 = vadd.f32 %v10678_v63, %v12301_v50  ;;  %v10679_v40 = vpop.f32.mrb[18].mxu0  ;;  %v2672_v5 = vmul.f32 %v12351_v35, %v1888_v43  ;;  %3061 = vst.msk [vmem:[#allocation2 + $0x38] sm:$0xff] %vm3058_vm2, %v2894_v30  ;;  %11273 = vmatpush3.bf16.msra.mxu1 %v11632_v36 }
 0x10e   : > { %v2201_v11 = vpop.permute.xlu1 %2200  ;;  %v1894_v32 = vadd.f32 %v12324_v2, %v1777_v15  ;;  %v1045_v44 = vadd.f32 %v10679_v40, %v12301_v50  ;;  %v2196_v60 = vpop.permute.xlu0 %2195  ;;  %10780 = vmatprep.subr.bf16.mxu0 %v11633_v31  ;;  %11268 = vmatprep.subr.bf16.mxu1 %v11633_v31  ;;  %v2671_v53 = vmul.f32 %v12355_v54, %v1887_v38 }
 0x10f   : > { %v12470_v45 = vpop.f32.mrb[19].mxu0  ;;  %vm1434_vm7 = vcmp.ge.f32.partialorder %v1042_v1, 0.0  ;;  %v1551_v63 = vmul.f32 %v12307_v58, %v1042_v1  ;;  %v2677_v43 = vmul.f32 %v2176_v59, %v1893_v10  ;;  %v1892_v15 = vadd.f32 %v12324_v2, %v1775_v33  ;;  %10781 = vmatpush3.bf16.msra.mxu0 %v11633_v31  ;;  %340 = vst.msk [vmem:[#allocation2 + $0x20] sm:$0xf] %vm339_vm5, %v16404_v27 }
 0x110   : > { %v2678_v35 = vmul.f32 %v12415_v6, %v1894_v32  ;;  %3353 = vrot.lane.b32.xlu0 %v2894_v30, %s11728_s12  ;;  %vm1435_vm8 = vcmp.ge.f32.partialorder %v1045_v44, 0.0  ;;  %v1552_v36 = vmul.f32 %v12307_v58, %v1045_v44  ;;  %v2779_v54 = vpack.c.bf16 %v2672_v5, %v2671_v53  ;;  %10782 = vmatprep.subr.bf16.mxu0 %v11634_v0 }
 0x111   : > { %v1663_v40 = vsel %vm1434_vm7, %v1042_v1, %v1551_v63  ;;  %11274 = vmatpush3.bf16.msra.mxu1 %v11633_v31  ;;  %v2897_v59 = vrot.slane %v2780_v12, 4  ;;  %v1891_v10 = vadd.f32 %v12324_v2, %v1774_v16  ;;  %v2676_v53 = vmul.f32 %v12393_v48, %v1892_v15  ;;  %348 = vst.msk [vmem:[#allocation3 + $0x8] sm:$0xf] %vm339_vm5, %v16404_v27 }
 0x112   : > { %v12480_v34 = vpop.permute.xlu1 %2210  ;;  %v2782_v39 = vpack.c.bf16 %v2678_v35, %v2677_v43  ;;  %v1780_v38 = vmul.f32 %v12316_v21, %v1663_v40  ;;  %v12486_v6 = vpop.permute.xlu0 %2205  ;;  %v1664_v33 = vsel %vm1435_vm8, %v1045_v44, %v1552_v36  ;;  %11269 = vmatprep.subr.bf16.mxu1 %v11634_v0  ;;  %v2895_v35 = vrot.slane %v2779_v54, 4  ;;  %349 = vst.msk [vmem:[#allocation3 + $0xc] sm:$0xf] %vm339_vm5, %v16404_v27 }
 0x113   : > { %v10682_v1 = vpop.f32.mrb[20].mxu0  ;;  %v1781_v32 = vmul.f32 %v12316_v21, %v1664_v33  ;;  %10783 = vmatpush3.bf16.msra.mxu0 %v11634_v0  ;;  %350 = vst.msk [vmem:[#allocation3 + $0x10] sm:$0xf] %vm339_vm5, %v16404_v27  ;;  %351 = vst.msk [vmem:[#allocation3 + $0x74] sm:$0xf] %vm339_vm5, %v16404_v27 }
 0x114   : > { %v1897_v63 = vadd.f32 %v12324_v2, %v1780_v38  ;;  %3122 = vrot.lane.b32.xlu0 %v2894_v30, %s11727_s25  ;;  %v1049_v43 = vpop.f32.mrb[21].mxu0  ;;  %v1058_v5 = vadd.f32 %v10682_v1, %v12301_v50  ;;  %v2896_v16 = vsel %vm928_vm0, %v12404_v37, %v2895_v35  ;;  %v2675_v38 = vmul.f32 %v12397_v55, %v1891_v10 }
 0x115   : > { %v10683_v31 = vpop.f32.mrb[22].mxu0  ;;  %v1898_v44 = vadd.f32 %v12324_v2, %v1781_v32  ;;  %11275 = vmatpush3.bf16.msra.mxu1 %v11634_v0  ;;  %3355 = vrot.lane.b32.xlu1 %v2896_v16, %s11728_s12  ;;  %v2898_v30 = vsel %vm928_vm0, %v2895_v35, %v2897_v59  ;;  %3062 = vst.msk [vmem:[#allocation2 + $0x40] sm:$0xff] %vm3058_vm2, %v2896_v16 }
 0x116   : > { %v2221_v12 = vpop.permute.xlu1 %2220  ;;  %v2216_v40 = vpop.permute.xlu0 %2215  ;;  %vm1438_vm9 = vcmp.ge.f32.partialorder %v1058_v5, 0.0  ;;  %v1555_v48 = vmul.f32 %v12307_v58, %v1058_v5  ;;  %v12504_v54 = vmul.f32 %v2196_v60, %v1897_v63  ;;  %3063 = vst.msk [vmem:[#allocation2 + $0x48] sm:$0xff] %vm3058_vm2, %v2898_v30  ;;  %v1034_v55 = vadd.f32 %v12301_v50, %v12457_v26 }
 0x117   : > { %v1052_v36 = vpop.f32.mrb[23].mxu0  ;;  %v12502_v15 = vmul.f32 %v2201_v11, %v1898_v44  ;;  %v1061_v0 = vadd.f32 %v10683_v31, %v12301_v50  ;;  %v2781_v10 = vpack.c.bf16 %v2676_v53, %v2675_v38  ;;  %v12520_v26 = vrot.slane %v2782_v39, 4  ;;  %352 = vst.msk [vmem:[#allocation3 + $0x78] sm:$0xf] %vm339_vm5, %v16404_v27  ;;  %353 = vst.msk [vmem:[#allocation3 + $0x7c] sm:$0xf] %vm339_vm5, %v16404_v27 }
 0x118   : > { %3357 = vrot.lane.b32.xlu0 %v2898_v30, %s11728_s12  ;;  %v1667_v37 = vsel %vm1438_vm9, %v1058_v5, %v1555_v48  ;;  %v1549_v5 = vmul.f32 %v12307_v58, %v1034_v55  ;;  %v1037_v31 = vadd.f32 %v12301_v50, %v12470_v45  ;;  %vm1432_vm12 = vcmp.ge.f32.partialorder %v1034_v55, 0.0 }
 0x119   : > { %v1784_v11 = vmul.f32 %v12316_v21, %v1667_v37  ;;  %3124 = vrot.lane.b32.xlu1 %v2896_v16, %s11727_s25  ;;  %vm1439_vm10 = vcmp.ge.f32.partialorder %v1061_v0, 0.0  ;;  %v1556_v32 = vmul.f32 %v12307_v58, %v1061_v0  ;;  %v2899_v35 = vrot.slane %v2781_v10, 4 }
 0x11a   : > { %v12511_v33 = vpop.permute.xlu1 %2230  ;;  %v12516_v60 = vpop.permute.xlu0 %2225  ;;  %vm1433_vm14 = vcmp.ge.f32.partialorder %v1037_v31, 0.0 }
 0x11b   : > { %v10686_v63 = vpop.f32.mrb[24].mxu0  ;;  %v1668_v44 = vsel %vm1439_vm10, %v1061_v0, %v1556_v32  ;;  %v1901_v39 = vadd.f32 %v12324_v2, %v1784_v11  ;;  %v2900_v1 = vsel %vm928_vm0, %v2897_v59, %v2899_v35  ;;  %v12538_v32 = vsel %vm928_vm0, %v2899_v35, %v12520_v26 }
 0x11c   : > { %3126 = vrot.lane.b32.xlu0 %v2898_v30, %s11727_s25  ;;  %v1065_v53 = vpop.f32.mrb[25].mxu0  ;;  %v1074_v38 = vadd.f32 %v10686_v63, %v12301_v50  ;;  %v1785_v37 = vmul.f32 %v12316_v21, %v1668_v44  ;;  %3064 = vst.msk [vmem:[#allocation2 + $0x50] sm:$0xff] %vm3058_vm2, %v2900_v1  ;;  %16407 = vst [vmem:[#allocation47_spill] sm:$0xff] %v12538_v32  ;;  %v1661_v63 = vsel %vm1432_vm12, %v1034_v55, %v1549_v5 }
 0x11d   : > { %v10687_v48 = vpop.f32.mrb[26].mxu0  ;;  %3359 = vrot.lane.b32.xlu1 %v2900_v1, %s11728_s12  ;;  %v1550_v11 = vmul.f32 %v12307_v58, %v1037_v31  ;;  %3065 = vst.msk [vmem:[#allocation2 + $0x58] sm:$0xff] %vm3058_vm2, %v12538_v32  ;;  %v12551_v35 = vmul.f32 %v2216_v40, %v1901_v39  ;;  %v1778_v40 = vmul.f32 %v12316_v21, %v1661_v63 }
 0x11e   : > { %v2241_v16 = vpop.permute.xlu1 %2240  ;;  %v2236_v30 = vpop.permute.xlu0 %2235  ;;  %vm1442_vm13 = vcmp.ge.f32.partialorder %v1074_v38, 0.0  ;;  %v1559_v45 = vmul.f32 %v12307_v58, %v1074_v38  ;;  %v1902_v0 = vadd.f32 %v12324_v2, %v1785_v37  ;;  %v1077_v44 = vadd.f32 %v10687_v48, %v12301_v50 }
 0x11f   : > { %v12530_v10 = vpop.f32.mrb[27].mxu0  ;;  %v1050_v37 = vadd.f32 %v12301_v50, %v1049_v43  ;;  %v1662_v24 = vsel %vm1433_vm14, %v1037_v31, %v1550_v11  ;;  %v1066_v43 = vadd.f32 %v12301_v50, %v1065_v53  ;;  %v1895_v11 = vadd.f32 %v12324_v2, %v1778_v40 }
 0x120   : > { %v1671_v59 = vsel %vm1442_vm13, %v1074_v38, %v1559_v45  ;;  %3361 = vrot.lane.b32.xlu0 %v12538_v32, %s11728_s12  ;;  %v12549_v28 = vmul.f32 %v2221_v12, %v1902_v0  ;;  %v1053_v38 = vadd.f32 %v12301_v50, %v1052_v36  ;;  %vm1443_vm15 = vcmp.ge.f32.partialorder %v1077_v44, 0.0 }
 0x121   : > { %v1788_v55 = vmul.f32 %v12316_v21, %v1671_v59  ;;  %3128 = vrot.lane.b32.xlu1 %v2900_v1, %s11727_s25  ;;  %v1560_v48 = vmul.f32 %v12307_v58, %v1077_v44  ;;  %v1553_v36 = vmul.f32 %v12307_v58, %v1050_v37  ;;  %vm1436_vm3 = vcmp.ge.f32.partialorder %v1050_v37, 0.0 }
 0x122   : > { %v12544_v23 = vpop.permute.xlu1 %2250  ;;  %v12554_v5 = vpop.permute.xlu0 %2245  ;;  %v1554_v14 = vmul.f32 %v12307_v58, %v1053_v38  ;;  %vm1437_vm4 = vcmp.ge.f32.partialorder %v1053_v38, 0.0  ;;  %vm1440_vm7 = vcmp.ge.f32.partialorder %v1066_v43, 0.0 }
 0x123   : > { %v10690_v45 = vpop.f32.mrb[28].mxu0  ;;  %v1672_v39 = vsel %vm1443_vm15, %v1077_v44, %v1560_v48  ;;  %v1905_v29 = vadd.f32 %v12324_v2, %v1788_v55  ;;  %v1779_v48 = vmul.f32 %v12316_v21, %v1662_v24  ;;  %v1665_v24 = vsel %vm1436_vm3, %v1050_v37, %v1553_v36 }
 0x124   : > { %v1081_v12 = vpop.f32.mrb[29].mxu0  ;;  %v1090_v0 = vadd.f32 %v10690_v45, %v12301_v50  ;;  %v1789_v1 = vmul.f32 %v12316_v21, %v1672_v39 }
 0x125   : > { %v10691_v59 = vpop.f32.mrb[30].mxu0  ;;  %v12577_v53 = vmul.f32 %v2236_v30, %v1905_v29  ;;  %v1666_v29 = vsel %vm1437_vm4, %v1053_v38, %v1554_v14 }
 0x126   : > { %v2261_v32 = vpop.permute.xlu1 %2260  ;;  %v2256_v13 = vpop.permute.xlu0 %2255  ;;  %vm1446_vm1 = vcmp.ge.f32.partialorder %v1090_v0, 0.0  ;;  %v1563_v63 = vmul.f32 %v12307_v58, %v1090_v0  ;;  %v1906_v44 = vadd.f32 %v12324_v2, %v1789_v1  ;;  %v1093_v31 = vadd.f32 %v10691_v59, %v12301_v50 }
 0x127   : > { %v1084_v18 = vpop.f32.mrb[31].mxu0  ;;  %v1069_v59 = vadd.f32 %v12301_v50, %v12530_v10 }
 0x128   : > { %v1675_v55 = vsel %vm1446_vm1, %v1090_v0, %v1563_v63  ;;  %v12575_v39 = vmul.f32 %v2241_v16, %v1906_v44  ;;  %vm1447_vm6 = vcmp.ge.f32.partialorder %v1093_v31, 0.0  ;;  %v1564_v19 = vmul.f32 %v12307_v58, %v1093_v31 }
 0x129   : > { %v1557_v16 = vmul.f32 %v12307_v58, %v1066_v43  ;;  %v1792_v30 = vmul.f32 %v12316_v21, %v1675_v55  ;;  %v12602_v44 = vmul.f32 %v12448_v7, %v1895_v11  ;;  %v1082_v55 = vadd.f32 %v12301_v50, %v1081_v12 }
 0x12a   : > { %v12573_v45 = vpop.permute.xlu1 %2270  ;;  %v12580_v3 = vpop.permute.xlu0 %2265  ;;  %v1676_v1 = vsel %vm1447_vm6, %v1093_v31, %v1564_v19  ;;  %v1896_v31 = vadd.f32 %v12324_v2, %v1779_v48  ;;  %vm1441_vm9 = vcmp.ge.f32.partialorder %v1069_v59, 0.0  ;;  %v1558_v12 = vmul.f32 %v12307_v58, %v1069_v59 }
 0x12b   : > { %v10694_v40 = vpop.f32.mrb[32].mxu0  ;;  %v1793_v37 = vmul.f32 %v12316_v21, %v1676_v1  ;;  %v1909_v14 = vadd.f32 %v12324_v2, %v1792_v30  ;;  %v1783_v1 = vmul.f32 %v12316_v21, %v1666_v29  ;;  %v1669_v8 = vsel %vm1440_vm7, %v1066_v43, %v1557_v16 }
 0x12c   : > { %v1106_v63 = vadd.f32 %v10694_v40, %v12301_v50  ;;  %v1097_v27 = vpop.f32.mrb[33].mxu0  ;;  %v1782_v40 = vmul.f32 %v12316_v21, %v1665_v24  ;;  %v1561_v24 = vmul.f32 %v12307_v58, %v1082_v55  ;;  %v1085_v29 = vadd.f32 %v12301_v50, %v1084_v18 }
 0x12d   : > { %v10695_v38 = vpop.f32.mrb[34].mxu0  ;;  %v1910_v30 = vadd.f32 %v12324_v2, %v1793_v37  ;;  %v12614_v9 = vmul.f32 %v2256_v13, %v1909_v14  ;;  %v12630_v13 = vmul.f32 %v12440_v49, %v1896_v31  ;;  %vm1444_vm12 = vcmp.ge.f32.partialorder %v1082_v55, 0.0 }
 0x12e   : > { %v2281_v36 = vpop.permute.xlu1 %2280  ;;  %vm1450_vm8 = vcmp.ge.f32.partialorder %v1106_v63, 0.0  ;;  %v1567_v10 = vmul.f32 %v12307_v58, %v1106_v63  ;;  %v2276_v0 = vpop.permute.xlu0 %2275  ;;  %v1109_v7 = vadd.f32 %v10695_v38, %v12301_v50  ;;  %v1899_v18 = vadd.f32 %v12324_v2, %v1782_v40 }
 0x12f   : > { %v1100_v19 = vpop.f32.mrb[35].mxu0  ;;  %v12612_v11 = vmul.f32 %v2261_v32, %v1910_v30  ;;  %v1786_v14 = vmul.f32 %v12316_v21, %v1669_v8  ;;  %v1562_v57 = vmul.f32 %v12307_v58, %v1085_v29  ;;  %vm1445_vm14 = vcmp.ge.f32.partialorder %v1085_v29, 0.0 }
 0x130   : > { %v1679_v4 = vsel %vm1450_vm8, %v1106_v63, %v1567_v10  ;;  %vm1451_vm10 = vcmp.ge.f32.partialorder %v1109_v7, 0.0  ;;  %v1568_v43 = vmul.f32 %v12307_v58, %v1109_v7  ;;  %v16408_v63 = vpack.c.bf16 %v12502_v15, %v12504_v54 }
 0x131   : > { %v1796_v56 = vmul.f32 %v12316_v21, %v1679_v4  ;;  %v1900_v15 = vadd.f32 %v12324_v2, %v1783_v1  ;;  %v1670_v54 = vsel %vm1441_vm9, %v1069_v59, %v1558_v12  ;;  %v1673_v4 = vsel %vm1444_vm12, %v1082_v55, %v1561_v24 }
 0x132   : > { %v12617_v48 = vpop.permute.xlu1 %2290  ;;  %v12622_v16 = vpop.permute.xlu0 %2285  ;;  %v12627_v32 = vrot.slane %v16408_v63, 4  ;;  %v1680_v38 = vsel %vm1451_vm10, %v1109_v7, %v1568_v43  ;;  %v1098_v43 = vadd.f32 %v12301_v50, %v1097_v27  ;;  %v12647_v12 = vmul.f32 %v12486_v6, %v1899_v18 }
 0x133   : > { %v10698_v37 = vpop.f32.mrb[36].mxu0  ;;  %v1797_v49 = vmul.f32 %v12316_v21, %v1680_v38  ;;  %v1913_v31 = vadd.f32 %v12324_v2, %v1796_v56  ;;  %v1903_v56 = vadd.f32 %v12324_v2, %v1786_v14  ;;  %v1787_v55 = vmul.f32 %v12316_v21, %v1670_v54 }
 0x134   : > { %v1122_v10 = vadd.f32 %v10698_v37, %v12301_v50  ;;  %v1113_v30 = vpop.f32.mrb[37].mxu0  ;;  %v12657_v27 = vmul.f32 %v12480_v34, %v1900_v15  ;;  %v1565_v14 = vmul.f32 %v12307_v58, %v1098_v43  ;;  %vm1448_vm1 = vcmp.ge.f32.partialorder %v1098_v43, 0.0 }
 0x135   : > { %v10699_v63 = vpop.f32.mrb[38].mxu0  ;;  %v1914_v1 = vadd.f32 %v12324_v2, %v1797_v49  ;;  %v12653_v38 = vmul.f32 %v2276_v0, %v1913_v31  ;;  %v1790_v49 = vmul.f32 %v12316_v21, %v1673_v4  ;;  %v1101_v0 = vadd.f32 %v12301_v50, %v1100_v19 }
 0x136   : > { %v2301_v61 = vpop.permute.xlu1 %2300  ;;  %vm1454_vm13 = vcmp.ge.f32.partialorder %v1122_v10, 0.0  ;;  %v1571_v8 = vmul.f32 %v12307_v58, %v1122_v10  ;;  %v2296_v40 = vpop.permute.xlu0 %2295  ;;  %v1125_v59 = vadd.f32 %v10699_v63, %v12301_v50  ;;  %v1674_v63 = vsel %vm1445_vm14, %v1085_v29, %v1562_v57 }
 0x137   : > { %v1116_v7 = vpop.f32.mrb[39].mxu0  ;;  %v12651_v37 = vmul.f32 %v2281_v36, %v1914_v1  ;;  %v16409_v15 = vpack.c.bf16 %v12549_v28, %v12551_v35  ;;  %v12678_v1 = vmul.f32 %v12516_v60, %v1903_v56  ;;  %v1791_v19 = vmul.f32 %v12316_v21, %v1674_v63 }
 0x138   : > { %v1683_v24 = vsel %vm1454_vm13, %v1122_v10, %v1571_v8  ;;  %vm1455_vm15 = vcmp.ge.f32.partialorder %v1125_v59, 0.0  ;;  %v1572_v62 = vmul.f32 %v12307_v58, %v1125_v59  ;;  %v1677_v36 = vsel %vm1448_vm1, %v1098_v43, %v1565_v14 }
 0x139   : > { %v1800_v6 = vmul.f32 %v12316_v21, %v1683_v24  ;;  %v12675_v8 = vrot.slane %v16409_v15, 4  ;;  %v1907_v24 = vadd.f32 %v12324_v2, %v1790_v49  ;;  %vm1449_vm4 = vcmp.ge.f32.partialorder %v1101_v0, 0.0 }
 0x13a   : > { %v12661_v18 = vpop.permute.xlu1 %2310  ;;  %v1684_v10 = vsel %vm1455_vm15, %v1125_v59, %v1572_v62  ;;  %v12667_v54 = vpop.permute.xlu0 %2305  ;;  %v1904_v62 = vadd.f32 %v12324_v2, %v1787_v55  ;;  %v1566_v28 = vmul.f32 %v12307_v58, %v1101_v0  ;;  %v1114_v60 = vadd.f32 %v12301_v50, %v1113_v30 }
 0x13b   : > { %v10702_v31 = vpop.f32.mrb[40].mxu0  ;;  %v1801_v34 = vmul.f32 %v12316_v21, %v1684_v10  ;;  %v1917_v57 = vadd.f32 %v12324_v2, %v1800_v6  ;;  %v1908_v15 = vadd.f32 %v12324_v2, %v1791_v19  ;;  %v2783_v14 = vpack.c.bf16 %v12630_v13, %v12602_v44 }
 0x13c   : > { %v1138_v29 = vadd.f32 %v10702_v31, %v12301_v50  ;;  %v1129_v4 = vpop.f32.mrb[41].mxu0  ;;  %v1117_v30 = vadd.f32 %v12301_v50, %v1116_v7  ;;  %v1678_v44 = vsel %vm1449_vm4, %v1101_v0, %v1566_v28  ;;  %v1569_v19 = vmul.f32 %v12307_v58, %v1114_v60 }
 0x13d   : > { %v10703_v59 = vpop.f32.mrb[42].mxu0  ;;  %v1918_v6 = vadd.f32 %v12324_v2, %v1801_v34  ;;  %v12689_v56 = vmul.f32 %v2296_v40, %v1917_v57  ;;  %v12693_v34 = vmul.f32 %v12511_v33, %v1904_v62  ;;  %v16410_v33 = vpack.c.bf16 %v12575_v39, %v12577_v53 }
 0x13e   : > { %vm1458_vm3 = vcmp.ge.f32.partialorder %v1138_v29, 0.0  ;;  %v1575_v10 = vmul.f32 %v12307_v58, %v1138_v29  ;;  %v1132_v31 = vpop.f32.mrb[43].mxu0  ;;  %v1141_v63 = vadd.f32 %v10703_v59, %v12301_v50  ;;  %v2321_v49 = vpop.permute.xlu1 %2320  ;;  %v1794_v62 = vmul.f32 %v12316_v21, %v1677_v36 }
 0x13f   : > { %v12687_v35 = vmul.f32 %v2301_v61, %v1918_v6  ;;  %v2316_v46 = vpop.permute.xlu0 %2315  ;;  %v12706_v57 = vrot.slane %v16410_v33, 4  ;;  %vm1452_vm6 = vcmp.ge.f32.partialorder %v1114_v60, 0.0  ;;  %v1795_v36 = vmul.f32 %v12316_v21, %v1678_v44 }
 0x140   : > { %v1687_v55 = vsel %vm1458_vm3, %v1138_v29, %v1575_v10  ;;  %vm1459_vm5 = vcmp.ge.f32.partialorder %v1141_v63, 0.0  ;;  %v1576_v40 = vmul.f32 %v12307_v58, %v1141_v63  ;;  %v12709_v29 = vmul.f32 %v12554_v5, %v1907_v24 }
 0x141   : > { %v1804_v43 = vmul.f32 %v12316_v21, %v1687_v55  ;;  %v2903_v10 = vrot.slane %v2783_v14, 4  ;;  %v12716_v55 = vmul.f32 %v12544_v23, %v1908_v15  ;;  %v1570_v0 = vmul.f32 %v12307_v58, %v1117_v30 }
 0x142   : > { %v1688_v59 = vsel %vm1459_vm5, %v1141_v63, %v1576_v40  ;;  %v12722_v24 = vpop.permute.xlu1 %2325  ;;  %v12726_v14 = vadd.f32 %v12324_v2, %v1794_v62  ;;  %vm1453_vm8 = vcmp.ge.f32.partialorder %v1117_v30, 0.0  ;;  %v1681_v40 = vsel %vm1452_vm6, %v1114_v60, %v1569_v19 }
 0x143   : > { %v10706_v13 = vpop.f32.mrb[44].mxu0  ;;  %v1805_v39 = vmul.f32 %v12316_v21, %v1688_v59  ;;  %v1921_v5 = vadd.f32 %v12324_v2, %v1804_v43  ;;  %v12729_v15 = vpop.permute.xlu0 %2330  ;;  %v12733_v33 = vadd.f32 %v12301_v50, %v1129_v4  ;;  %v12747_v60 = vadd.f32 %v12324_v2, %v1795_v36 }
 0x144   : > { %v1154_v7 = vadd.f32 %v10706_v13, %v12301_v50  ;;  %v1145_v6 = vpop.f32.mrb[45].mxu0  ;;  %v12737_v13 = vsel %vm928_vm0, %v12520_v26, %v2903_v10  ;;  %v1682_v4 = vsel %vm1453_vm8, %v1117_v30, %v1570_v0  ;;  %v1133_v19 = vadd.f32 %v12301_v50, %v1132_v31  ;;  %v12766_v0 = vld [vmem:[%s16329_s2] ss:$0 sm:$0xff] }
 0x145   : > { %v10707_v53 = vpop.f32.mrb[46].mxu0  ;;  %v1922_v23 = vadd.f32 %v12324_v2, %v1805_v39  ;;  %16411 = vst [vmem:[#allocation48_spill] sm:$0xff] %v12737_v13  ;;  %v12741_v62 = vmul.f32 %v2316_v46, %v1921_v5  ;;  %3066 = vst.msk [vmem:[#allocation2 + $0x60] sm:$0xff] %vm3058_vm2, %v12737_v13  ;;  %v12754_v46 = vadd.f32 %v12301_v50, %v1145_v6  ;;  %vm1456_vm10 = vcmp.ge.f32.partialorder %v12733_v33, 0.0 }
 0x146   : > { %vm1462_vm7 = vcmp.ge.f32.partialorder %v1154_v7, 0.0  ;;  %v1579_v28 = vmul.f32 %v12307_v58, %v1154_v7  ;;  %v1148_v63 = vpop.f32.mrb[47].mxu0  ;;  %v1157_v43 = vadd.f32 %v10707_v53, %v12301_v50  ;;  %v1798_v53 = vmul.f32 %v12316_v21, %v1681_v40  ;;  %v2336_v36 = vpop.permute.xlu1 %2335 }
 0x147   : > { %v12739_v59 = vmul.f32 %v2321_v49, %v1922_v23  ;;  %v1149_v23 = vadd.f32 %v12766_v0, %v1148_v63  ;;  %v2785_v40 = vpack.c.bf16 %v12657_v27, %v12647_v12  ;;  %vm1457_vm12 = vcmp.ge.f32.partialorder %v1133_v19, 0.0 }
 0x148   : > { %v1691_v44 = vsel %vm1462_vm7, %v1154_v7, %v1579_v28  ;;  %vm1463_vm9 = vcmp.ge.f32.partialorder %v1157_v43, 0.0  ;;  %v1580_v39 = vmul.f32 %v12307_v58, %v1157_v43  ;;  %v12758_v58 = vsel %vm928_vm0, %v2903_v10, %v12627_v32  ;;  %v2341_v28 = vpop.permute.xlu0 %2340 }
 0x149   : > { %v1808_v7 = vmul.f32 %v12316_v21, %v1691_v44  ;;  %16412 = vst [vmem:[#allocation49_spill] sm:$0xff] %v12758_v58  ;;  %3067 = vst.msk [vmem:[#allocation2 + $0x68] sm:$0xff] %vm3058_vm2, %v12758_v58  ;;  %v1799_v10 = vmul.f32 %v12316_v21, %v1682_v4  ;;  %v12779_v44 = vld [vmem:[%s16329_s2 + $0x1] ss:$0 sm:$0xff]  ;;  %v2787_v58 = vpack.c.bf16 %v12693_v34, %v12678_v1  ;;  %vm1461_vm14 = vcmp.ge.f32.partialorder %v1149_v23, 0.0 }
 0x14a   : > { %v1692_v49 = vsel %vm1463_vm9, %v1157_v43, %v1580_v39  ;;  %v1573_v39 = vmul.f32 %v12779_v44, %v12733_v33  ;;  %v1574_v63 = vmul.f32 %v12779_v44, %v1133_v19  ;;  %v12800_v51 = vpop.permute.xlu1 %2345  ;;  %vm1460_vm3 = vcmp.ge.f32.partialorder %v12754_v46, 0.0 }
 0x14b   : > { %v10710_v5 = vpop.f32.mrb[48].mxu0  ;;  %v1925_v30 = vadd.f32 %v12324_v2, %v1808_v7  ;;  %v1809_v31 = vmul.f32 %v12316_v21, %v1692_v49  ;;  %v1577_v49 = vmul.f32 %v12779_v44, %v12754_v46  ;;  %vm3287_vm7 = vcmask 523524  }
 0x14c   : > { %v1170_v50 = vadd.f32 %v12766_v0, %v10710_v5  ;;  %v1161_v6 = vpop.f32.mrb[49].mxu0  ;;  %vm3289_vm8 = vcmask 523520  }
 0x14d   : > { %v10711_v43 = vpop.f32.mrb[50].mxu0  ;;  %v1926_v21 = vadd.f32 %v12324_v2, %v1809_v31  ;;  %v1162_v4 = vadd.f32 %v12766_v0, %v1161_v6  ;;  %v12789_v27 = vmul.f32 %v2336_v36, %v1925_v30  ;;  %v1578_v2 = vmul.f32 %v12779_v44, %v1149_v23  ;;  %v12803_v30 = vpop.permute.xlu0 %2350 }
 0x14e   : > { %v1164_v7 = vpop.f32.mrb[51].mxu0  ;;  %vm1466_vm13 = vcmp.ge.f32.partialorder %v1170_v50, 0.0  ;;  %v1583_v12 = vmul.f32 %v12779_v44, %v1170_v50  ;;  %v1173_v26 = vadd.f32 %v12766_v0, %v10711_v43  ;;  %v2907_v6 = vrot.slane %v2785_v40, 4 }
 0x14f   : > { %v12791_v5 = vmul.f32 %v2341_v28, %v1926_v21  ;;  %v1165_v61 = vadd.f32 %v12766_v0, %v1164_v7  ;;  %v1581_v36 = vmul.f32 %v12779_v44, %v1162_v4  ;;  %v1686_v40 = vsel %vm1457_vm12, %v1133_v19, %v1574_v63 }
 0x150   : > { %v1695_v31 = vsel %vm1466_vm13, %v1170_v50, %v1583_v12  ;;  %vm1467_vm15 = vcmp.ge.f32.partialorder %v1173_v26, 0.0  ;;  %v1584_v28 = vmul.f32 %v12779_v44, %v1173_v26  ;;  %v12809_v50 = vld [vmem:[%s16329_s2 + $0x2] ss:$0 sm:$0xff]  ;;  %vm1464_vm4 = vcmp.ge.f32.partialorder %v1162_v4, 0.0  ;;  %v12826_v12 = vld [vmem:[%s16329_s2 + $0x3] ss:$0 sm:$0xff] }
 0x151   : > { %v1812_v1 = vmul.f32 %v12809_v50, %v1695_v31  ;;  %vm1465_vm1 = vcmp.ge.f32.partialorder %v1165_v61, 0.0  ;;  %v1582_v34 = vmul.f32 %v12779_v44, %v1165_v61  ;;  %v12821_v7 = vsel %vm928_vm0, %v12627_v32, %v2907_v6 }
 0x152   : > { %v1916_v31 = vadd.f32 %v12826_v12, %v1799_v10  ;;  %v1690_v13 = vsel %vm1461_vm14, %v1149_v23, %v1578_v2  ;;  %v1696_v19 = vsel %vm1467_vm15, %v1173_v26, %v1584_v28  ;;  %3068 = vst.msk [vmem:[#allocation2 + $0x70] sm:$0xff] %vm3058_vm2, %v12821_v7  ;;  %v2695_v32 = vmul.f32 %v12580_v3, %v12726_v14 }
 0x153   : > { %v12813_v43 = vpop.f32.mrb[52].mxu0  ;;  %v1694_v63 = vsel %vm1465_vm1, %v1165_v61, %v1582_v34  ;;  %v1929_v41 = vadd.f32 %v12826_v12, %v1812_v1  ;;  %v1813_v10 = vmul.f32 %v12809_v50, %v1696_v19  ;;  %v1915_v61 = vadd.f32 %v12826_v12, %v1798_v53  ;;  %v2356_v34 = vpop.permute.xlu1 %2355 }
 0x154   : > { %16413 = vst [vmem:[#allocation50_spill] sm:$0xff] %v12813_v43  ;;  %v12817_v21 = vpop.f32.mrb[53].mxu0  ;;  %v1803_v26 = vmul.f32 %v12809_v50, %v1686_v40  ;;  %v1689_v2 = vsel %vm1460_vm3, %v12754_v46, %v1577_v49  ;;  %v1693_v3 = vsel %vm1464_vm4, %v1162_v4, %v1581_v36  ;;  %v2696_v14 = vmul.f32 %v12573_v45, %v12747_v60  ;;  %v2361_v40 = vpop.permute.xlu0 %2360 }
 0x155   : > { %16414 = vst [vmem:[#allocation51_spill] sm:$0xff] %v12817_v21  ;;  %v12831_v43 = vpop.f32.mrb[54].mxu0  ;;  %v1685_v21 = vsel %vm1456_vm10, %v12733_v33, %v1573_v39  ;;  %v1807_v33 = vmul.f32 %v12809_v50, %v1690_v13  ;;  %v1930_v39 = vadd.f32 %v12826_v12, %v1813_v10  ;;  %v1811_v28 = vmul.f32 %v12809_v50, %v1694_v63 }
 0x156   : > { %v12842_v23 = vpop.f32.mrb[55].mxu0  ;;  %v2700_v1 = vmul.f32 %v12617_v48, %v1916_v31  ;;  %v1802_v53 = vmul.f32 %v12809_v50, %v1685_v21  ;;  %v12859_v46 = vsel %vm928_vm0, %v2907_v6, %v12675_v8  ;;  %v2911_v4 = vrot.slane %v2787_v58, 4 }
 0x157   : > { %v1806_v49 = vmul.f32 %v12809_v50, %v1689_v2  ;;  %v1810_v45 = vmul.f32 %v12809_v50, %v1693_v3  ;;  %v2713_v13 = vmul.f32 %v2356_v34, %v1929_v41  ;;  %v2714_v60 = vmul.f32 %v2361_v40, %v1930_v39  ;;  %3069 = vst.msk [vmem:[#allocation2 + $0x78] sm:$0xff] %vm3058_vm2, %v12859_v46 }
 0x158   : > { %v2699_v48 = vmul.f32 %v12622_v16, %v1915_v61  ;;  %v1920_v36 = vadd.f32 %v12826_v12, %v1803_v26  ;;  %v12871_v6 = vsel %vm928_vm0, %v12675_v8, %v2911_v4  ;;  %v12875_v58 = vsel %vm928_vm0, %v2911_v4, %v12706_v57 }
 0x159   : > { %v1924_v41 = vadd.f32 %v12826_v12, %v1807_v33  ;;  %v2800_v31 = vpack.c.bf16 %v2714_v60, %v2713_v13  ;;  %v1928_v19 = vadd.f32 %v12826_v12, %v1811_v28  ;;  %3070 = vst.msk [vmem:[#allocation2 + $0x80] sm:$0xff] %vm3058_vm2, %v12871_v6  ;;  %3071 = vst.msk [vmem:[#allocation2 + $0x88] sm:$0xff] %vm3058_vm2, %v12875_v58  ;;  %vm3520_vm14 = vcmask 785920  }
 0x15a   : > { %v2789_v16 = vpack.c.bf16 %v12716_v55, %v12709_v29  ;;  %v16415_v8 = vpack.c.bf16 %v12612_v11, %v12614_v9  ;;  %v1919_v61 = vadd.f32 %v12826_v12, %v1802_v53  ;;  %v2791_v2 = vpack.c.bf16 %v2696_v14, %v2695_v32 }
 0x15b   : > { %v12867_v21 = vpop.f32.mrb[56].mxu0  ;;  %v2793_v3 = vpack.c.bf16 %v2700_v1, %v2699_v48  ;;  %v16417_v33 = vpack.c.bf16 %v12651_v37, %v12653_v38  ;;  %v1923_v28 = vadd.f32 %v12826_v12, %v1806_v49  ;;  %v1927_v34 = vadd.f32 %v12826_v12, %v1810_v45 }
 0x15c   : > { %v12879_v63 = vpop.f32.mrb[57].mxu0  ;;  %v2917_v10 = vrot.slane %v16415_v8, 4  ;;  %v2704_v29 = vmul.f32 %v12661_v18, %v1920_v36  ;;  %v2915_v9 = vrot.slane %v2789_v16, 4  ;;  %v2708_v11 = vmul.f32 %v12729_v15, %v1924_v41 }
 0x15d   : > { %v12891_v26 = vpop.f32.mrb[58].mxu0  ;;  %v2921_v39 = vrot.slane %v16417_v33, 4  ;;  %v2712_v55 = vmul.f32 %v12803_v30, %v1928_v19  ;;  %v2919_v53 = vrot.slane %v2791_v2, 4  ;;  %v16419_v32 = vpack.c.bf16 %v12687_v35, %v12689_v56 }
 0x15e   : > { %16416 = vst [vmem:[#allocation52_spill] sm:$0xff] %v12891_v26  ;;  %v12898_v40 = vpop.f32.mrb[59].mxu0  ;;  %v2703_v37 = vmul.f32 %v12667_v54, %v1919_v61  ;;  %v12908_v38 = vsel %vm928_vm0, %v2915_v9, %v2917_v10  ;;  %v2707_v1 = vmul.f32 %v12722_v24, %v1923_v28  ;;  %v2711_v4 = vmul.f32 %v12800_v51, %v1927_v34 }
 0x15f   : > { %16418 = vst [vmem:[#allocation53_spill] sm:$0xff] %v12898_v40  ;;  %v2925_v14 = vrot.slane %v16419_v32, 4  ;;  %3073 = vst.msk [vmem:[#allocation2 + $0x98] sm:$0xff] %vm3058_vm2, %v12908_v38  ;;  %v12916_v18 = vsel %vm928_vm0, %v12706_v57, %v2915_v9  ;;  %v12919_v15 = vsel %vm928_vm0, %v2919_v53, %v2921_v39  ;;  %v16420_v54 = vpack.c.bf16 %v12739_v59, %v12741_v62  ;;  %v16443_v40 = vld [vmem:[#allocation20_spill] sm:$0xff] }
 0x160   : > { %3072 = vst.msk [vmem:[#allocation2 + $0x90] sm:$0xff] %vm3058_vm2, %v12916_v18  ;;  %3075 = vst.msk [vmem:[#allocation2 + $0xa8] sm:$0xff] %vm3058_vm2, %v12919_v15  ;;  %v12931_v51 = vsel %vm928_vm0, %v2917_v10, %v2919_v53  ;;  %v2923_v57 = vrot.slane %v2793_v3, 4  ;;  %v2795_v24 = vpack.c.bf16 %v2704_v29, %v2703_v37  ;;  %v2797_v59 = vpack.c.bf16 %v2708_v11, %v2707_v1 }
 0x161   : > { %v2929_v35 = vrot.slane %v16420_v54, 4  ;;  %3074 = vst.msk [vmem:[#allocation2 + $0xa0] sm:$0xff] %vm3058_vm2, %v12931_v51  ;;  %v2799_v62 = vpack.c.bf16 %v2712_v55, %v2711_v4  ;;  %v16423_v49 = vpack.c.bf16 %v12791_v5, %v12789_v27  ;;  %v12957_v5 = vrot.slane %v2800_v31, 4 }
 0x162   : > { %v12943_v60 = vsel %vm928_vm0, %v2923_v57, %v2925_v14  ;;  %v12946_v48 = vsel %vm928_vm0, %v2921_v39, %v2923_v57  ;;  %v2927_v36 = vrot.slane %v2795_v24, 4  ;;  %v2931_v19 = vrot.slane %v2797_v59, 4 }
 0x163   : > { %v12924_v56 = vpop.f32.mrb[60].mxu0  ;;  %v2933_v45 = vrot.slane %v16423_v49, 4  ;;  %3077 = vst.msk [vmem:[#allocation2 + $0xb8] sm:$0xff] %vm3058_vm2, %v12943_v60  ;;  %3076 = vst.msk [vmem:[#allocation2 + $0xb0] sm:$0xff] %vm3058_vm2, %v12946_v48  ;;  %v2935_v31 = vrot.slane %v2799_v62, 4 }
 0x164   : > { %16421 = vst [vmem:[#allocation54_spill] sm:$0xff] %v12924_v56  ;;  %v12933_v30 = vpop.f32.mrb[61].mxu0  ;;  %v12955_v27 = vsel %vm928_vm0, %v2927_v36, %v2929_v35  ;;  %16426 = vst [vmem:[#allocation58_spill] sm:$0xff] %v12957_v5  ;;  %v12962_v16 = vsel %vm928_vm0, %v2925_v14, %v2927_v36  ;;  %v12972_v10 = vsel %vm928_vm0, %v2929_v35, %v2931_v19 }
 0x165   : > { %16422 = vst [vmem:[#allocation55_spill] sm:$0xff] %v12933_v30  ;;  %v12940_v13 = vpop.f32.mrb[62].mxu0  ;;  %3079 = vst.msk [vmem:[#allocation2 + $0xc8] sm:$0xff] %vm3058_vm2, %v12955_v27  ;;  %v12967_v8 = vsel %vm928_vm0, %v2931_v19, %v2933_v45  ;;  %v12981_v33 = vsel %vm928_vm0, %v2935_v31, %v12957_v5  ;;  %v12984_v39 = vsel %vm928_vm0, %v2933_v45, %v2935_v31 }
 0x166   : > { %16424 = vst [vmem:[#allocation56_spill] sm:$0xff] %v12940_v13  ;;  %v12948_v41 = vpop.f32.mrb[63].mxu0  ;;  %3078 = vst.msk [vmem:[#allocation2 + $0xc0] sm:$0xff] %vm3058_vm2, %v12962_v16 }
 0x167   : > { %16425 = vst [vmem:[#allocation57_spill] sm:$0xff] %v12948_v41  ;;  %3081 = vst.msk [vmem:[#allocation2 + $0xd8] sm:$0xff] %vm3058_vm2, %v12967_v8 }
 0x168   : > { %3080 = vst.msk [vmem:[#allocation2 + $0xd0] sm:$0xff] %vm3058_vm2, %v12972_v10  ;;  %3083 = vst.msk [vmem:[#allocation2 + $0xe8] sm:$0xff] %vm3058_vm2, %v12981_v33 }
 0x169   : > { %3082 = vst.msk [vmem:[#allocation2 + $0xe0] sm:$0xff] %vm3058_vm2, %v12984_v39 }
 0x16b   : > { %v10726_v61 = vpop.f32.mrb[64].mxu0 }
 0x16c   : > { %v1234_v2 = vadd.f32 %v12766_v0, %v10726_v61  ;;  %v12977_v3 = vpop.f32.mrb[65].mxu0 }
 0x16d   : > { %16427 = vst [vmem:[#allocation59_spill] sm:$0xff] %v12977_v3  ;;  %v10727_v28 = vpop.f32.mrb[66].mxu0 }
 0x16e   : > { %vm1482_vm5 = vcmp.ge.f32.partialorder %v1234_v2, 0.0  ;;  %v1599_v34 = vmul.f32 %v12779_v44, %v1234_v2  ;;  %v1237_v29 = vadd.f32 %v12766_v0, %v10727_v28  ;;  %v12992_v9 = vpop.f32.mrb[67].mxu0 }
 0x16f   : > { %16428 = vst [vmem:[#allocation60_spill] sm:$0xff] %v12992_v9 }
 0x170   : > { %v1711_v11 = vsel %vm1482_vm5, %v1234_v2, %v1599_v34  ;;  %vm1483_vm6 = vcmp.ge.f32.partialorder %v1237_v29, 0.0  ;;  %v1600_v55 = vmul.f32 %v12779_v44, %v1237_v29 }
 0x171   : > { %v1828_v53 = vmul.f32 %v12809_v50, %v1711_v11 }
 0x172   : > { %v1712_v32 = vsel %vm1483_vm6, %v1237_v29, %v1600_v55 }
 0x173   : > { %v1829_v14 = vmul.f32 %v12809_v50, %v1712_v32  ;;  %v10730_v37 = vpop.f32.mrb[68].mxu0  ;;  %v1945_v1 = vadd.f32 %v12826_v12, %v1828_v53 }
 0x174   : > { %v1250_v4 = vadd.f32 %v12766_v0, %v10730_v37  ;;  %v1241_v54 = vpop.f32.mrb[69].mxu0 }
 0x175   : > { %v1946_v35 = vadd.f32 %v12826_v12, %v1829_v14  ;;  %v1242_v57 = vadd.f32 %v12766_v0, %v1241_v54  ;;  %v10731_v24 = vpop.f32.mrb[70].mxu0  ;;  %v13009_v61 = vmul.f32 %v12268_v20, %v1945_v1 }
 0x176   : > { %vm1486_vm9 = vcmp.ge.f32.partialorder %v1250_v4, 0.0  ;;  %v1603_v59 = vmul.f32 %v12779_v44, %v1250_v4  ;;  %v1253_v62 = vadd.f32 %v12766_v0, %v10731_v24  ;;  %v1244_v49 = vpop.f32.mrb[71].mxu0 }
 0x177   : > { %v13004_v45 = vmul.f32 %v12266_v17, %v1946_v35  ;;  %v3117_v36 = vpop.permute.xlu0 %3116  ;;  %vm1484_vm10 = vcmp.ge.f32.partialorder %v1242_v57, 0.0  ;;  %v1601_v19 = vmul.f32 %v12779_v44, %v1242_v57  ;;  %v1245_v31 = vadd.f32 %v12766_v0, %v1244_v49 }
 0x178   : > { %3288 = vst.msk [vmem:[#allocation2 + $0x10] sm:$0xf0] %vm3287_vm7, %v3117_v36  ;;  %v3119_v2 = vpop.permute.xlu1 %3118  ;;  %v1715_v28 = vsel %vm1486_vm9, %v1250_v4, %v1603_v59  ;;  %vm1487_vm12 = vcmp.ge.f32.partialorder %v1253_v62, 0.0  ;;  %v1604_v34 = vmul.f32 %v12779_v44, %v1253_v62 }
 0x179   : > { %3290 = vst.msk [vmem:[#allocation2 + $0x18] sm:$0xff] %vm3289_vm8, %v3119_v2  ;;  %v1832_v17 = vmul.f32 %v12809_v50, %v1715_v28  ;;  %v1713_v29 = vsel %vm1484_vm10, %v1242_v57, %v1601_v19  ;;  %vm1485_vm13 = vcmp.ge.f32.partialorder %v1245_v31, 0.0  ;;  %v1602_v11 = vmul.f32 %v12779_v44, %v1245_v31 }
 0x17a   : > { %v1830_v55 = vmul.f32 %v12809_v50, %v1713_v29  ;;  %v1716_v53 = vsel %vm1487_vm12, %v1253_v62, %v1604_v34 }
 0x17b   : > { %v1949_v32 = vadd.f32 %v12826_v12, %v1832_v17  ;;  %v1833_v14 = vmul.f32 %v12809_v50, %v1716_v53  ;;  %v1714_v37 = vsel %vm1485_vm13, %v1245_v31, %v1602_v11  ;;  %v10734_v1 = vpop.f32.mrb[72].mxu0 }
 0x17c   : > { %v1947_v4 = vadd.f32 %v12826_v12, %v1830_v55  ;;  %v1831_v54 = vmul.f32 %v12809_v50, %v1714_v37  ;;  %v1266_v35 = vadd.f32 %v12766_v0, %v10734_v1  ;;  %v1257_v57 = vpop.f32.mrb[73].mxu0 }
 0x17d   : > { %v1950_v24 = vadd.f32 %v12826_v12, %v1833_v14  ;;  %v1258_v59 = vadd.f32 %v12766_v0, %v1257_v57  ;;  %v10735_v62 = vpop.f32.mrb[74].mxu0  ;;  %v13026_v49 = vmul.f32 %v12064_v42, %v1949_v32 }
 0x17e   : > { %v1948_v36 = vadd.f32 %v12826_v12, %v1831_v54  ;;  %v3121_v19 = vpop.permute.xlu0 %3120  ;;  %v3352_v31 = vpop.permute.xlu1 %3351  ;;  %vm1490_vm15 = vcmp.ge.f32.partialorder %v1266_v35, 0.0  ;;  %v1607_v2 = vmul.f32 %v12779_v44, %v1266_v35  ;;  %v1269_v42 = vadd.f32 %v12766_v0, %v10735_v62 }
 0x17f   : > { %v13031_v28 = vmul.f32 %v12076_v47, %v1950_v24  ;;  %3291 = vst.msk [vmem:[#allocation2 + $0x20] sm:$0xff] %vm3289_vm8, %v3121_v19  ;;  %vm1488_vm1 = vcmp.ge.f32.partialorder %v1258_v59, 0.0  ;;  %v1605_v34 = vmul.f32 %v12779_v44, %v1258_v59  ;;  %v1260_v17 = vpop.f32.mrb[75].mxu0  ;;  %v13038_v29 = vmul.f32 %v12274_v25, %v1947_v4 }
 0x180   : > { %3522 = vst.msk [vmem:[#allocation2 + $0x10] sm:$0xff] %vm3520_vm14, %v3352_v31  ;;  %v13041_v11 = vmul.f32 %v12272_v22, %v1948_v36  ;;  %v1719_v55 = vsel %vm1490_vm15, %v1266_v35, %v1607_v2  ;;  %v1261_v47 = vadd.f32 %v12766_v0, %v1260_v17  ;;  %vm1491_vm3 = vcmp.ge.f32.partialorder %v1269_v42, 0.0 }
 0x181   : > { %v1836_v53 = vmul.f32 %v12809_v50, %v1719_v55  ;;  %v1717_v32 = vsel %vm1488_vm1, %v1258_v59, %v1605_v34  ;;  %v1608_v14 = vmul.f32 %v12779_v44, %v1269_v42  ;;  %v2810_v25 = vpack.c.bf16 %v13031_v28, %v13026_v49  ;;  %v16429_v34 = vld [vmem:[#allocation6_spill] sm:$0xff] }
 0x182   : > { %v1834_v37 = vmul.f32 %v12809_v50, %v1717_v32  ;;  %v3354_v1 = vpop.permute.xlu0 %3353  ;;  %vm1489_vm4 = vcmp.ge.f32.partialorder %v1261_v47, 0.0  ;;  %v1606_v54 = vmul.f32 %v12779_v44, %v1261_v47 }
 0x183   : > { %v1953_v22 = vadd.f32 %v12826_v12, %v1836_v53  ;;  %v1720_v4 = vsel %vm1491_vm3, %v1269_v42, %v1608_v14  ;;  %3523 = vst.msk [vmem:[#allocation2 + $0x18] sm:$0xff] %vm3520_vm14, %v3354_v1  ;;  %v10738_v35 = vpop.f32.mrb[76].mxu0  ;;  %v16430_v1 = vld [vmem:[#allocation8_spill] sm:$0xff]  ;;  %v13091_v9 = vrot.slane %v2810_v25, 4 }
 0x184   : > { %v1951_v24 = vadd.f32 %v12826_v12, %v1834_v37  ;;  %v1837_v59 = vmul.f32 %v12809_v50, %v1720_v4  ;;  %v1718_v62 = vsel %vm1489_vm4, %v1261_v47, %v1606_v54  ;;  %v1282_v36 = vadd.f32 %v12766_v0, %v10738_v35  ;;  %v1273_v19 = vpop.f32.mrb[77].mxu0 }
 0x185   : > { %v13058_v31 = vmul.f32 %v12088_v52, %v1953_v22  ;;  %v1835_v49 = vmul.f32 %v12809_v50, %v1718_v62  ;;  %v1274_v2 = vadd.f32 %v12766_v0, %v1273_v19  ;;  %v10739_v28 = vpop.f32.mrb[78].mxu0 }
 0x186   : > { %v2735_v42 = vmul.f32 %v16429_v34, %v1951_v24  ;;  %v1954_v17 = vadd.f32 %v12826_v12, %v1837_v59  ;;  %v3123_v55 = vpop.permute.xlu0 %3122  ;;  %vm1494_vm5 = vcmp.ge.f32.partialorder %v1282_v36, 0.0  ;;  %v1611_v53 = vmul.f32 %v12779_v44, %v1282_v36  ;;  %v1276_v47 = vpop.f32.mrb[79].mxu0  ;;  %v16431_v24 = vld [vmem:[#allocation7_spill] sm:$0xff] }
 0x187   : > { %v3647_v32 = vld [vmem:[#allocation2 + $0x10] sm:$0xf0]  ;;  %v1952_v14 = vadd.f32 %v12826_v12, %v1835_v49  ;;  %3292 = vst.msk [vmem:[#allocation2 + $0x28] sm:$0xff] %vm3289_vm8, %v3123_v55  ;;  %vm1492_vm6 = vcmp.ge.f32.partialorder %v1274_v2, 0.0  ;;  %v1609_v52 = vmul.f32 %v12779_v44, %v1274_v2  ;;  %v1285_v37 = vadd.f32 %v12766_v0, %v10739_v28  ;;  %v3356_v62 = vpop.permute.xlu1 %3355 }
 0x188   : > { %v13070_v54 = vmul.f32 %v16430_v1, %v1954_v17  ;;  %v1723_v22 = vsel %vm1494_vm5, %v1282_v36, %v1611_v53  ;;  %v1277_v4 = vadd.f32 %v12766_v0, %v1276_v47  ;;  %v3718_v35 = vrot.slane %v3647_v32, 4  ;;  %3524 = vst.msk [vmem:[#allocation2 + $0x20] sm:$0xff] %vm3520_vm14, %v3356_v62 }
 0x189   : > { %v2736_v59 = vmul.f32 %v16431_v24, %v1952_v14  ;;  %v1840_v19 = vmul.f32 %v12809_v50, %v1723_v22  ;;  %v1721_v49 = vsel %vm1492_vm6, %v1274_v2, %v1609_v52  ;;  %vm1495_vm7 = vcmp.ge.f32.partialorder %v1285_v37, 0.0 }
 0x18a   : > { %v1838_v34 = vmul.f32 %v12809_v50, %v1721_v49  ;;  %v1612_v28 = vmul.f32 %v12779_v44, %v1285_v37  ;;  %v3358_v55 = vpop.permute.xlu0 %3357  ;;  %vm1493_vm9 = vcmp.ge.f32.partialorder %v1277_v4, 0.0  ;;  %v1610_v36 = vmul.f32 %v12779_v44, %v1277_v4  ;;  %v13079_v17 = vld [vmem:[#allocation2 + $0x18] sm:$0xff] }
 0x18b   : > { %v1957_v53 = vadd.f32 %v12826_v12, %v1840_v19  ;;  %3525 = vst.msk [vmem:[#allocation2 + $0x28] sm:$0xff] %vm3520_vm14, %v3358_v55  ;;  %v3719_v47 = vrot.slane %v13079_v17, 4  ;;  %v10742_v2 = vpop.f32.mrb[80].mxu0  ;;  %v2811_v32 = vpack.c.bf16 %v2736_v59, %v2735_v42  ;;  %v2812_v14 = vpack.c.bf16 %v13070_v54, %v13058_v31  ;;  %v3125_v57 = vpop.permute.xlu1 %3124  ;;  %v16432_v42 = vld [vmem:[#allocation12_spill] sm:$0xff] }
 0x18c   : > { %v1955_v52 = vadd.f32 %v12826_v12, %v1838_v34  ;;  %v1724_v1 = vsel %vm1495_vm7, %v1285_v37, %v1612_v28  ;;  %v1722_v22 = vsel %vm1493_vm9, %v1277_v4, %v1610_v36  ;;  %v1298_v24 = vadd.f32 %v12766_v0, %v10742_v2  ;;  %v1289_v62 = vpop.f32.mrb[81].mxu0  ;;  %3293 = vst.msk [vmem:[#allocation2 + $0x30] sm:$0xff] %vm3289_vm8, %v3125_v57  ;;  %v16433_v34 = vld [vmem:[#allocation10_spill] sm:$0xff] }
 0x18d   : > { %v1841_v49 = vmul.f32 %v12809_v50, %v1724_v1  ;;  %v1839_v19 = vmul.f32 %v12809_v50, %v1722_v22  ;;  %v3720_v55 = vsel %vm928_vm0, %v3718_v35, %v3719_v47  ;;  %v10743_v20 = vpop.f32.mrb[82].mxu0  ;;  %v13094_v59 = vmul.f32 %v16432_v42, %v1957_v53  ;;  %v16434_v1 = vld [vmem:[#allocation11_spill] sm:$0xff] }
 0x18e   : > { %v3127_v31 = vpop.permute.xlu0 %3126  ;;  %10784 = vmatprep.mubr.msk.bf16.mxu0 %vm334_vm11, %v3720_v55  ;;  %vm1498_vm10 = vcmp.ge.f32.partialorder %v1298_v24, 0.0  ;;  %v1615_v37 = vmul.f32 %v12779_v44, %v1298_v24  ;;  %v1290_v54 = vadd.f32 %v12766_v0, %v1289_v62  ;;  %v1292_v4 = vpop.f32.mrb[83].mxu0  ;;  %v13101_v28 = vmul.f32 %v16433_v34, %v1955_v52 }
 0x18f   : > { %v1958_v25 = vadd.f32 %v12826_v12, %v1841_v49  ;;  %3294 = vst.msk [vmem:[#allocation2 + $0x38] sm:$0xff] %vm3289_vm8, %v3127_v31  ;;  %v1301_v35 = vadd.f32 %v12766_v0, %v10743_v20  ;;  %v1293_v57 = vadd.f32 %v12766_v0, %v1292_v4  ;;  %v2959_v2 = vrot.slane %v2811_v32, 4  ;;  %v3360_v52 = vpop.permute.xlu1 %3359  ;;  %v13113_v49 = vld [vmem:[#allocation2 + $0x20] sm:$0xff] }
 0x190   : > { %v1727_v36 = vsel %vm1498_vm10, %v1298_v24, %v1615_v37  ;;  %vm1496_vm12 = vcmp.ge.f32.partialorder %v1290_v54, 0.0  ;;  %v1613_v53 = vmul.f32 %v12779_v44, %v1290_v54  ;;  %v1956_v62 = vadd.f32 %v12826_v12, %v1839_v19  ;;  %3526 = vst.msk [vmem:[#allocation2 + $0x30] sm:$0xff] %vm3520_vm14, %v3360_v52 }
 0x191   : > { %v13109_v22 = vmul.f32 %v16434_v1, %v1958_v25  ;;  %v1844_v55 = vmul.f32 %v12809_v50, %v1727_v36  ;;  %vm1499_vm13 = vcmp.ge.f32.partialorder %v1301_v35, 0.0  ;;  %v1616_v24 = vmul.f32 %v12779_v44, %v1301_v35 }
 0x192   : > { %v1725_v20 = vsel %vm1496_vm12, %v1290_v54, %v1613_v53  ;;  %v3721_v42 = vrot.slane %v13113_v49, 4  ;;  %vm1497_vm15 = vcmp.ge.f32.partialorder %v1293_v57, 0.0  ;;  %v13118_v32 = vld [vmem:[#allocation2 + $0x28] sm:$0xff]  ;;  %v3362_v37 = vpop.permute.xlu0 %3361  ;;  %v1614_v4 = vmul.f32 %v12779_v44, %v1293_v57 }
 0x193   : > { %v1961_v31 = vadd.f32 %v12826_v12, %v1844_v55  ;;  %v1842_v19 = vmul.f32 %v12809_v50, %v1725_v20  ;;  %v13125_v34 = vsel %vm928_vm0, %v13091_v9, %v2959_v2  ;;  %v10746_v25 = vpop.f32.mrb[84].mxu0  ;;  %v1728_v54 = vsel %vm1499_vm13, %v1301_v35, %v1616_v24  ;;  %3527 = vst.msk [vmem:[#allocation2 + $0x38] sm:$0xff] %vm3520_vm14, %v3362_v37  ;;  %v16436_v55 = vld [vmem:[#allocation9_spill] sm:$0xff] }
 0x194   : > { %16435 = vst [vmem:[#allocation6_spill] sm:$0xff] %v13125_v34  ;;  %v3722_v36 = vsel %vm928_vm0, %v3719_v47, %v3721_v42  ;;  %3188 = vrot.lane.b32.xlu0 %v13125_v34, %s11727_s25  ;;  %3094 = vst.msk [vmem:[#allocation2 + $0x140] sm:$0xff] %vm3058_vm2, %v13125_v34  ;;  %v13133_v53 = vrot.slane %v2812_v14, 4  ;;  %v3723_v1 = vrot.slane %v13118_v32, 4  ;;  %v1305_v52 = vpop.f32.mrb[85].mxu0  ;;  %v2740_v20 = vmul.f32 %v16436_v55, %v1956_v62  ;;  %v3129_v47 = vpop.permute.xlu1 %3128 }
 0x195   : > { %v1959_v3 = vadd.f32 %v12826_v12, %v1842_v19  ;;  %v1845_v35 = vmul.f32 %v12809_v50, %v1728_v54  ;;  %10785 = vmatmul.mubr.msk.bf16.vlgmr.msra.gmra.mrb[112].mxu0 %vm334_vm11, %v3722_v36  ;;  %v1726_v24 = vsel %vm1497_vm15, %v1293_v57, %v1614_v4  ;;  %v10747_v37 = vpop.f32.mrb[86].mxu0  ;;  %3295 = vst.msk [vmem:[#allocation2 + $0x40] sm:$0xff] %vm3289_vm8, %v3129_v47  ;;  %v16438_v54 = vld [vmem:[#allocation16_spill] sm:$0xff]  ;;  %v16440_v4 = vld [vmem:[#allocation14_spill] sm:$0xff] }
 0x196   : > { %v1843_v14 = vmul.f32 %v12809_v50, %v1726_v24  ;;  %v13145_v34 = vsel %vm928_vm0, %v2959_v2, %v13133_v53  ;;  %v3724_v62 = vsel %vm928_vm0, %v3721_v42, %v3723_v1  ;;  %v1314_v19 = vadd.f32 %v12766_v0, %v10746_v25  ;;  %v1308_v55 = vpop.f32.mrb[87].mxu0 }
 0x197   : > { %16437 = vst [vmem:[#allocation8_spill] sm:$0xff] %v13145_v34  ;;  %v13150_v5 = vmul.f32 %v16438_v54, %v1961_v31  ;;  %v1962_v36 = vadd.f32 %v12826_v12, %v1845_v35  ;;  %3190 = vrot.lane.b32.xlu1 %v13145_v34, %s11727_s25  ;;  %3095 = vst.msk [vmem:[#allocation2 + $0x148] sm:$0xff] %vm3058_vm2, %v13145_v34  ;;  %10788 = vmatprep.mubr.msk.bf16.mxu0 %vm334_vm11, %v3724_v62  ;;  %v13171_v62 = vld [vmem:[#allocation2 + $0x30] sm:$0xff] }
 0x198   : > { %v1306_v57 = vadd.f32 %v12766_v0, %v1305_v52  ;;  %v16439_v2 = vpack.c.bf16 %v13004_v45, %v13009_v61  ;;  %v13165_v31 = vmul.f32 %v16440_v4, %v1959_v3  ;;  %vm1502_vm1 = vcmp.ge.f32.partialorder %v1314_v19, 0.0  ;;  %v16441_v45 = vld [vmem:[#allocation15_spill] sm:$0xff] }
 0x199   : > { %v1619_v25 = vmul.f32 %v12779_v44, %v1314_v19  ;;  %v1317_v35 = vadd.f32 %v12766_v0, %v10747_v37  ;;  %v1960_v47 = vadd.f32 %v12826_v12, %v1843_v14  ;;  %v1309_v52 = vadd.f32 %v12766_v0, %v1308_v55 }
 0x19a   : > { %v13162_v42 = vrot.slane %v16439_v2, 4  ;;  %vm1500_vm3 = vcmp.ge.f32.partialorder %v1306_v57, 0.0  ;;  %v1617_v24 = vmul.f32 %v12779_v44, %v1306_v57  ;;  %v13175_v61 = vmul.f32 %v16441_v45, %v1962_v36  ;;  %v13180_v14 = vld [vmem:[#allocation2 + $0x38] sm:$0xff] }
 0x19b   : > { %v1731_v54 = vsel %vm1502_vm1, %v1314_v19, %v1619_v25  ;;  %vm1503_vm4 = vcmp.ge.f32.partialorder %v1317_v35, 0.0  ;;  %v1620_v3 = vmul.f32 %v12779_v44, %v1317_v35  ;;  %v3725_v37 = vrot.slane %v13171_v62, 4  ;;  %v10750_v34 = vpop.f32.mrb[88].mxu0 }
 0x19c   : > { %v1848_v2 = vmul.f32 %v12809_v50, %v1731_v54  ;;  %v1729_v4 = vsel %vm1500_vm3, %v1306_v57, %v1617_v24  ;;  %vm1501_vm5 = vcmp.ge.f32.partialorder %v1309_v52, 0.0  ;;  %v1618_v55 = vmul.f32 %v12779_v44, %v1309_v52  ;;  %v1321_v19 = vpop.f32.mrb[89].mxu0 }
 0x19d   : > { %v1846_v13 = vmul.f32 %v12809_v50, %v1729_v4  ;;  %v1732_v41 = vsel %vm1503_vm4, %v1317_v35, %v1620_v3  ;;  %v2813_v36 = vpack.c.bf16 %v2740_v20, %v13101_v28  ;;  %v3726_v57 = vsel %vm928_vm0, %v3723_v1, %v3725_v37  ;;  %v10751_v54 = vpop.f32.mrb[90].mxu0  ;;  %v16442_v28 = vld [vmem:[#allocation13_spill] sm:$0xff] }
 0x19e   : > { %v1965_v25 = vadd.f32 %v12826_v12, %v1848_v2  ;;  %v1849_v45 = vmul.f32 %v12809_v50, %v1732_v41  ;;  %v16354_v24 = vrot.slane %v13180_v14, 4  ;;  %10789 = vmatmul.mubr.msk.bf16.gmra.mrb[116].mxu0 %vm334_vm11, %v3726_v57  ;;  %v1730_v4 = vsel %vm1501_vm5, %v1309_v52, %v1618_v55  ;;  %v1324_v56 = vpop.f32.mrb[91].mxu0  ;;  %v16446_v57 = vld [vmem:[#allocation19_spill] sm:$0xff] }
 0x19f   : > { %v1963_v30 = vadd.f32 %v12826_v12, %v1846_v13  ;;  %v2963_v35 = vrot.slane %v2813_v36, 4  ;;  %v1330_v3 = vadd.f32 %v12766_v0, %v10750_v34  ;;  %v2744_v20 = vmul.f32 %v16442_v28, %v1960_v47  ;;  %v16444_v47 = vld [vmem:[#allocation18_spill] sm:$0xff] }
 0x1a0   : > { %v1966_v2 = vadd.f32 %v12826_v12, %v1849_v45  ;;  %v1847_v41 = vmul.f32 %v12809_v50, %v1730_v4  ;;  %v3728_v1 = vsel %vm928_vm0, %v3725_v37, %v16354_v24  ;;  %v13199_v26 = vmul.f32 %v16443_v40, %v1965_v25 }
 0x1a1   : > { %v2964_v13 = vsel %vm928_vm0, %v13133_v53, %v2963_v35  ;;  %10792 = vmatprep.mubr.msk.bf16.mxu0 %vm334_vm11, %v3728_v1  ;;  %vm1506_vm6 = vcmp.ge.f32.partialorder %v1330_v3, 0.0  ;;  %v1623_v34 = vmul.f32 %v12779_v44, %v1330_v3  ;;  %v13206_v52 = vmul.f32 %v16444_v47, %v1963_v30 }
 0x1a2   : > { %v1964_v55 = vadd.f32 %v12826_v12, %v1847_v41  ;;  %3192 = vrot.lane.b32.xlu0 %v2964_v13, %s11727_s25  ;;  %3096 = vst.msk [vmem:[#allocation2 + $0x150] sm:$0xff] %vm3058_vm2, %v2964_v13  ;;  %3423 = vrot.lane.b32.xlu1 %v2964_v13, %s11728_s12  ;;  %v2814_v40 = vpack.c.bf16 %v13109_v22, %v13094_v59 }
 0x1a3   : > { %v16445_v53 = vpack.c.bf16 %v13041_v11, %v13038_v29  ;;  %v1735_v36 = vsel %vm1506_vm6, %v1330_v3, %v1623_v34  ;;  %v1322_v30 = vadd.f32 %v12766_v0, %v1321_v19  ;;  %v1333_v25 = vadd.f32 %v12766_v0, %v10751_v54  ;;  %v10754_v22 = vpop.f32.mrb[92].mxu0  ;;  %v16447_v3 = vld [vmem:[#allocation17_spill] sm:$0xff] }
 0x1a4   : > { %v1325_v45 = vadd.f32 %v12766_v0, %v1324_v56  ;;  %v13223_v4 = vmul.f32 %v16446_v57, %v1966_v2  ;;  %v1852_v28 = vmul.f32 %v12809_v50, %v1735_v36  ;;  %v2965_v41 = vrot.slane %v2814_v40, 4  ;;  %v1337_v19 = vpop.f32.mrb[93].mxu0 }
 0x1a5   : > { %v13217_v37 = vrot.slane %v16445_v53, 4  ;;  %v2815_v59 = vpack.c.bf16 %v2744_v20, %v13165_v31  ;;  %vm1504_vm7 = vcmp.ge.f32.partialorder %v1322_v30, 0.0  ;;  %v1621_v29 = vmul.f32 %v12779_v44, %v1322_v30  ;;  %v10755_v1 = vpop.f32.mrb[94].mxu0 }
 0x1a6   : > { %vm1507_vm9 = vcmp.ge.f32.partialorder %v1333_v25, 0.0  ;;  %v1624_v11 = vmul.f32 %v12779_v44, %v1333_v25  ;;  %v2748_v54 = vmul.f32 %v16447_v3, %v1964_v55  ;;  %v2966_v56 = vsel %vm928_vm0, %v2963_v35, %v2965_v41  ;;  %v1340_v47 = vpop.f32.mrb[95].mxu0 }
 0x1a7   : > { %vm1505_vm10 = vcmp.ge.f32.partialorder %v1325_v45, 0.0  ;;  %v1622_v2 = vmul.f32 %v12779_v44, %v1325_v45  ;;  %3425 = vrot.lane.b32.xlu0 %v2966_v56, %s11728_s12  ;;  %3097 = vst.msk [vmem:[#allocation2 + $0x158] sm:$0xff] %vm3058_vm2, %v2966_v56  ;;  %v1733_v31 = vsel %vm1504_vm7, %v1322_v30, %v1621_v29  ;;  %v2967_v13 = vrot.slane %v2815_v59, 4 }
 0x1a8   : > { %v1736_v20 = vsel %vm1507_vm9, %v1333_v25, %v1624_v11  ;;  %v1346_v34 = vadd.f32 %v12766_v0, %v10754_v22  ;;  %v1969_v40 = vadd.f32 %v12826_v12, %v1852_v28  ;;  %v1850_v55 = vmul.f32 %v12809_v50, %v1733_v31  ;;  %v16448_v11 = vld [vmem:[#allocation24_spill] sm:$0xff]  ;;  %v16449_v31 = vld [vmem:[#allocation22_spill] sm:$0xff] }
 0x1a9   : > { %v1853_v35 = vmul.f32 %v12809_v50, %v1736_v20  ;;  %v1734_v53 = vsel %vm1505_vm10, %v1325_v45, %v1622_v2  ;;  %v2968_v57 = vsel %vm928_vm0, %v2965_v41, %v2967_v13  ;;  %v2816_v28 = vpack.c.bf16 %v13175_v61, %v13150_v5 }
 0x1aa   : > { %v1851_v36 = vmul.f32 %v12809_v50, %v1734_v53  ;;  %vm1510_vm12 = vcmp.ge.f32.partialorder %v1346_v34, 0.0  ;;  %v1627_v3 = vmul.f32 %v12779_v44, %v1346_v34  ;;  %v1967_v30 = vadd.f32 %v12826_v12, %v1850_v55  ;;  %3427 = vrot.lane.b32.xlu1 %v2968_v57, %s11728_s12  ;;  %3098 = vst.msk [vmem:[#allocation2 + $0x160] sm:$0xff] %vm3058_vm2, %v2968_v57 }
 0x1ab   : > { %v1970_v25 = vadd.f32 %v12826_v12, %v1853_v35  ;;  %v1338_v45 = vadd.f32 %v12766_v0, %v1337_v19  ;;  %3194 = vrot.lane.b32.xlu0 %v2966_v56, %s11727_s25  ;;  %v1349_v22 = vadd.f32 %v12766_v0, %v10755_v1  ;;  %v1341_v29 = vadd.f32 %v12766_v0, %v1340_v47  ;;  %v10758_v61 = vpop.f32.mrb[96].mxu0  ;;  %v16450_v19 = vld [vmem:[#allocation23_spill] sm:$0xff] }
 0x1ac   : > { %v1968_v59 = vadd.f32 %v12826_v12, %v1851_v36  ;;  %v1739_v41 = vsel %vm1510_vm12, %v1346_v34, %v1627_v3  ;;  %v13253_v2 = vmul.f32 %v16448_v11, %v1969_v40  ;;  %v13256_v20 = vmul.f32 %v16449_v31, %v1967_v30  ;;  %v1353_v1 = vpop.f32.mrb[97].mxu0  ;;  %v16451_v34 = vld [vmem:[#allocation21_spill] sm:$0xff] }
 0x1ad   : > { %v1856_v55 = vmul.f32 %v12809_v50, %v1739_v41  ;;  %v2969_v5 = vrot.slane %v2816_v28, 4  ;;  %v13260_v35 = vmul.f32 %v16450_v19, %v1970_v25  ;;  %vm1508_vm13 = vcmp.ge.f32.partialorder %v1338_v45, 0.0  ;;  %v10759_v36 = vpop.f32.mrb[98].mxu0 }
 0x1ae   : > { %v1625_v56 = vmul.f32 %v12779_v44, %v1338_v45  ;;  %vm1511_vm15 = vcmp.ge.f32.partialorder %v1349_v22, 0.0  ;;  %v2752_v47 = vmul.f32 %v16451_v34, %v1968_v59  ;;  %3196 = vrot.lane.b32.xlu1 %v2968_v57, %s11727_s25  ;;  %v1628_v53 = vmul.f32 %v12779_v44, %v1349_v22  ;;  %v1356_v59 = vpop.f32.mrb[99].mxu0 }
 0x1af   : > { %v2970_v40 = vsel %vm928_vm0, %v2967_v13, %v2969_v5  ;;  %vm1509_vm1 = vcmp.ge.f32.partialorder %v1341_v29, 0.0  ;;  %v1626_v30 = vmul.f32 %v12779_v44, %v1341_v29  ;;  %v2817_v25 = vpack.c.bf16 %v2748_v54, %v13206_v52 }
 0x1b0   : > { %3429 = vrot.lane.b32.xlu0 %v2970_v40, %s11728_s12  ;;  %3099 = vst.msk [vmem:[#allocation2 + $0x168] sm:$0xff] %vm3058_vm2, %v2970_v40  ;;  %v1737_v3 = vsel %vm1508_vm13, %v1338_v45, %v1625_v56  ;;  %v1362_v28 = vadd.f32 %v12766_v0, %v10758_v61  ;;  %v1973_v13 = vadd.f32 %v12826_v12, %v1856_v55 }
 0x1b1   : > { %v1854_v57 = vmul.f32 %v12809_v50, %v1737_v3  ;;  %v1740_v41 = vsel %vm1511_vm15, %v1349_v22, %v1628_v53  ;;  %v2818_v11 = vpack.c.bf16 %v13223_v4, %v13199_v26  ;;  %v1738_v19 = vsel %vm1509_vm1, %v1341_v29, %v1626_v30  ;;  %v16452_v29 = vld [vmem:[#allocation28_spill] sm:$0xff]  ;;  %v16453_v53 = vld [vmem:[#allocation26_spill] sm:$0xff] }
 0x1b2   : > { %v1857_v31 = vmul.f32 %v12809_v50, %v1740_v41  ;;  %v2971_v45 = vrot.slane %v2817_v25, 4  ;;  %vm1514_vm3 = vcmp.ge.f32.partialorder %v1362_v28, 0.0  ;;  %v1855_v52 = vmul.f32 %v12809_v50, %v1738_v19 }
 0x1b3   : > { %v1971_v56 = vadd.f32 %v12826_v12, %v1854_v57  ;;  %v1631_v54 = vmul.f32 %v12779_v44, %v1362_v28  ;;  %v2973_v61 = vrot.slane %v2818_v11, 4  ;;  %v1354_v26 = vadd.f32 %v12766_v0, %v1353_v1  ;;  %v16454_v57 = vld [vmem:[#allocation27_spill] sm:$0xff] }
 0x1b4   : > { %v1974_v55 = vadd.f32 %v12826_v12, %v1857_v31  ;;  %3198 = vrot.lane.b32.xlu0 %v2970_v40, %s11727_s25  ;;  %v2972_v22 = vsel %vm928_vm0, %v2969_v5, %v2971_v45  ;;  %v1365_v4 = vadd.f32 %v12766_v0, %v10759_v36  ;;  %v13287_v34 = vmul.f32 %v16452_v29, %v1973_v13  ;;  %v10762_v40 = vpop.f32.mrb[100].mxu0 }
 0x1b5   : > { %v13290_v3 = vmul.f32 %v16453_v53, %v1971_v56  ;;  %3431 = vrot.lane.b32.xlu1 %v2972_v22, %s11728_s12  ;;  %3100 = vst.msk [vmem:[#allocation2 + $0x170] sm:$0xff] %vm3058_vm2, %v2972_v22  ;;  %v1743_v30 = vsel %vm1514_vm3, %v1362_v28, %v1631_v54  ;;  %v2974_v25 = vsel %vm928_vm0, %v2971_v45, %v2973_v61  ;;  %vm1512_vm4 = vcmp.ge.f32.partialorder %v1354_v26, 0.0  ;;  %v1369_v13 = vpop.f32.mrb[101].mxu0 }
 0x1b6   : > { %v1972_v5 = vadd.f32 %v12826_v12, %v1855_v52  ;;  %v1860_v1 = vmul.f32 %v12809_v50, %v1743_v30  ;;  %3101 = vst.msk [vmem:[#allocation2 + $0x178] sm:$0xff] %vm3058_vm2, %v2974_v25  ;;  %v1629_v36 = vmul.f32 %v12779_v44, %v1354_v26  ;;  %v13300_v41 = vmul.f32 %v16454_v57, %v1974_v55  ;;  %v10763_v31 = vpop.f32.mrb[102].mxu0 }
 0x1b7   : > { %vm1515_vm5 = vcmp.ge.f32.partialorder %v1365_v4, 0.0  ;;  %v1632_v11 = vmul.f32 %v12779_v44, %v1365_v4  ;;  %v1357_v28 = vadd.f32 %v12766_v0, %v1356_v59  ;;  %v2819_v56 = vpack.c.bf16 %v2752_v47, %v13256_v20  ;;  %v1372_v54 = vpop.f32.mrb[103].mxu0  ;;  %v16455_v59 = vld [vmem:[#allocation25_spill] sm:$0xff] }
 0x1b8   : > { %v1977_v19 = vadd.f32 %v12826_v12, %v1860_v1  ;;  %3433 = vrot.lane.b32.xlu0 %v2974_v25, %s11728_s12  ;;  %v1741_v45 = vsel %vm1512_vm4, %v1354_v26, %v1629_v36  ;;  %v1378_v52 = vadd.f32 %v12766_v0, %v10762_v40  ;;  %v2756_v30 = vmul.f32 %v16455_v59, %v1972_v5  ;;  %v13324_v5 = vld [vmem:[%s16329_s2] ss:$0 sm:$0xff]  ;;  %v16458_v59 = vld [vmem:[#allocation31_spill] sm:$0xff] }
 0x1b9   : > { %3200 = vrot.lane.b32.xlu1 %v2972_v22, %s11727_s25  ;;  %v1858_v55 = vmul.f32 %v12809_v50, %v1741_v45  ;;  %v1744_v29 = vsel %vm1515_vm5, %v1365_v4, %v1632_v11  ;;  %vm1513_vm6 = vcmp.ge.f32.partialorder %v1357_v28, 0.0  ;;  %v1630_v53 = vmul.f32 %v12779_v44, %v1357_v28  ;;  %v16456_v11 = vld [vmem:[#allocation32_spill] sm:$0xff] }
 0x1ba   : > { %v1861_v1 = vmul.f32 %v12809_v50, %v1744_v29  ;;  %v2975_v57 = vrot.slane %v2819_v56, 4  ;;  %vm1518_vm7 = vcmp.ge.f32.partialorder %v1378_v52, 0.0  ;;  %v1635_v0 = vmul.f32 %v12779_v44, %v1378_v52  ;;  %v13342_v29 = vld [vmem:[%s16329_s2 + $0x1] ss:$0 sm:$0xff] }
 0x1bb   : > { %v1975_v26 = vadd.f32 %v12826_v12, %v1858_v55  ;;  %v1742_v20 = vsel %vm1513_vm6, %v1357_v28, %v1630_v53  ;;  %v2820_v47 = vpack.c.bf16 %v13260_v35, %v13253_v2  ;;  %v1370_v36 = vadd.f32 %v13324_v5, %v1369_v13  ;;  %v10766_v28 = vpop.f32.mrb[104].mxu0 }
 0x1bc   : > { %v1978_v22 = vadd.f32 %v12826_v12, %v1861_v1  ;;  %v1859_v4 = vmul.f32 %v12809_v50, %v1742_v20  ;;  %3202 = vrot.lane.b32.xlu0 %v2974_v25, %s11727_s25  ;;  %v2976_v40 = vsel %vm928_vm0, %v2973_v61, %v2975_v57  ;;  %v13328_v44 = vmul.f32 %v16456_v11, %v1977_v19  ;;  %v16457_v61 = vld [vmem:[#allocation30_spill] sm:$0xff]  ;;  %v1385_v13 = vpop.f32.mrb[105].mxu0 }
 0x1bd   : > { %3435 = vrot.lane.b32.xlu1 %v2976_v40, %s11728_s12  ;;  %3102 = vst.msk [vmem:[#allocation2 + $0x180] sm:$0xff] %vm3058_vm2, %v2976_v40  ;;  %v1747_v2 = vsel %vm1518_vm7, %v1378_v52, %v1635_v0  ;;  %v2977_v35 = vrot.slane %v2820_v47, 4  ;;  %v1381_v25 = vadd.f32 %v13324_v5, %v10763_v31  ;;  %v13334_v45 = vmul.f32 %v16457_v61, %v1975_v26  ;;  %v10767_v53 = vpop.f32.mrb[106].mxu0  ;;  %v16459_v26 = vld [vmem:[#allocation29_spill] sm:$0xff]  ;;  %v13363_v61 = vld [vmem:[%s16329_s2 + $0x2] ss:$0 sm:$0xff] }
 0x1be   : > { %v1976_v56 = vadd.f32 %v12826_v12, %v1859_v4  ;;  %v1864_v55 = vmul.f32 %v12809_v50, %v1747_v2  ;;  %vm1516_vm9 = vcmp.ge.f32.partialorder %v1370_v36, 0.0  ;;  %v1633_v52 = vmul.f32 %v13342_v29, %v1370_v36  ;;  %v1388_v0 = vpop.f32.mrb[107].mxu0 }
 0x1bf   : > { %v2978_v19 = vsel %vm928_vm0, %v2975_v57, %v2977_v35  ;;  %vm1519_vm10 = vcmp.ge.f32.partialorder %v1381_v25, 0.0  ;;  %v1636_v31 = vmul.f32 %v13342_v29, %v1381_v25  ;;  %v13347_v1 = vmul.f32 %v16458_v59, %v1978_v22 }
 0x1c0   : > { %v2760_v50 = vmul.f32 %v16459_v26, %v1976_v56  ;;  %3437 = vrot.lane.b32.xlu0 %v2978_v19, %s11728_s12  ;;  %3103 = vst.msk [vmem:[#allocation2 + $0x188] sm:$0xff] %vm3058_vm2, %v2978_v19  ;;  %v1373_v57 = vadd.f32 %v13324_v5, %v1372_v54  ;;  %v2821_v20 = vpack.c.bf16 %v2756_v30, %v13290_v3  ;;  %v16460_v26 = vld [vmem:[#allocation36_spill] sm:$0xff] }
 0x1c1   : > { %3204 = vrot.lane.b32.xlu1 %v2976_v40, %s11727_s25  ;;  %v1745_v47 = vsel %vm1516_vm9, %v1370_v36, %v1633_v52  ;;  %v1748_v4 = vsel %vm1519_vm10, %v1381_v25, %v1636_v31  ;;  %v1394_v11 = vadd.f32 %v13324_v5, %v10766_v28  ;;  %v2822_v22 = vpack.c.bf16 %v13300_v41, %v13287_v34 }
 0x1c2   : > { %v1981_v2 = vadd.f32 %v12826_v12, %v1864_v55  ;;  %v1862_v3 = vmul.f32 %v13363_v61, %v1745_v47  ;;  %v1865_v54 = vmul.f32 %v13363_v61, %v1748_v4  ;;  %vm1517_vm12 = vcmp.ge.f32.partialorder %v1373_v57, 0.0  ;;  %v13372_v12 = vld [vmem:[%s16329_s2 + $0x3] ss:$0 sm:$0xff] }
 0x1c3   : > { %v1634_v30 = vmul.f32 %v13342_v29, %v1373_v57  ;;  %v2979_v40 = vrot.slane %v2821_v20, 4  ;;  %vm1522_vm13 = vcmp.ge.f32.partialorder %v1394_v11, 0.0  ;;  %v1639_v36 = vmul.f32 %v13342_v29, %v1394_v11  ;;  %v10770_v59 = vpop.f32.mrb[108].mxu0  ;;  %v16461_v47 = vld [vmem:[#allocation34_spill] sm:$0xff] }
 0x1c4   : > { %v1979_v34 = vadd.f32 %v13372_v12, %v1862_v3  ;;  %v1982_v41 = vadd.f32 %v13372_v12, %v1865_v54  ;;  %3206 = vrot.lane.b32.xlu0 %v2978_v19, %s11727_s25  ;;  %v2981_v25 = vrot.slane %v2822_v22, 4  ;;  %v1386_v28 = vadd.f32 %v13324_v5, %v1385_v13  ;;  %v1401_v19 = vpop.f32.mrb[109].mxu0 }
 0x1c5   : > { %v1746_v56 = vsel %vm1517_vm12, %v1373_v57, %v1634_v30  ;;  %v2980_v55 = vsel %vm928_vm0, %v2977_v35, %v2979_v40  ;;  %v1751_v52 = vsel %vm1522_vm13, %v1394_v11, %v1639_v36  ;;  %v1397_v31 = vadd.f32 %v13324_v5, %v10767_v53  ;;  %v10771_v57 = vpop.f32.mrb[110].mxu0  ;;  %v16462_v11 = vld [vmem:[#allocation35_spill] sm:$0xff] }
 0x1c6   : > { %v13381_v20 = vmul.f32 %v16460_v26, %v1981_v2  ;;  %v13384_v4 = vmul.f32 %v16461_v47, %v1979_v34  ;;  %v1863_v3 = vmul.f32 %v13363_v61, %v1746_v56  ;;  %3439 = vrot.lane.b32.xlu1 %v2980_v55, %s11728_s12  ;;  %3104 = vst.msk [vmem:[#allocation2 + $0x190] sm:$0xff] %vm3058_vm2, %v2980_v55  ;;  %vm1520_vm15 = vcmp.ge.f32.partialorder %v1386_v28, 0.0  ;;  %v1404_v36 = vpop.f32.mrb[111].mxu0 }
 0x1c7   : > { %v1868_v13 = vmul.f32 %v13363_v61, %v1751_v52  ;;  %v2982_v35 = vsel %vm928_vm0, %v2979_v40, %v2981_v25  ;;  %v1637_v53 = vmul.f32 %v13342_v29, %v1386_v28  ;;  %vm1523_vm1 = vcmp.ge.f32.partialorder %v1397_v31, 0.0 }
 0x1c8   : > { %v2766_v22 = vmul.f32 %v16462_v11, %v1982_v41  ;;  %v1980_v2 = vadd.f32 %v13372_v12, %v1863_v3  ;;  %3441 = vrot.lane.b32.xlu0 %v2982_v35, %s11728_s12  ;;  %3105 = vst.msk [vmem:[#allocation2 + $0x198] sm:$0xff] %vm3058_vm2, %v2982_v35  ;;  %v1640_v54 = vmul.f32 %v13342_v29, %v1397_v31  ;;  %v16463_v41 = vld [vmem:[#allocation33_spill] sm:$0xff]  ;;  %vm5728_vm10 = vsmask.f32 3328 }
 0x1c9   : > { %v1389_v30 = vadd.f32 %v13324_v5, %v1388_v0  ;;  %v1749_v34 = vsel %vm1520_vm15, %v1386_v28, %v1637_v53  ;;  %v2823_v40 = vpack.c.bf16 %v2760_v50, %v13334_v45  ;;  %v1410_v56 = vadd.f32 %v13324_v5, %v10770_v59  ;;  %v16464_v53 = vld [vmem:[#allocation40_spill] sm:$0xff] }
 0x1ca   : > { %v2824_v52 = vpack.c.bf16 %v13347_v1, %v13328_v44  ;;  %v2764_v26 = vmul.f32 %v16463_v41, %v1980_v2  ;;  %v1985_v47 = vadd.f32 %v13372_v12, %v1868_v13  ;;  %3208 = vrot.lane.b32.xlu1 %v2980_v55, %s11727_s25  ;;  %v1866_v3 = vmul.f32 %v13363_v61, %v1749_v34 }
 0x1cb   : > { %v1752_v11 = vsel %vm1523_vm1, %v1397_v31, %v1640_v54  ;;  %vm1521_vm3 = vcmp.ge.f32.partialorder %v1389_v30, 0.0  ;;  %v1638_v45 = vmul.f32 %v13342_v29, %v1389_v30  ;;  %v2983_v50 = vrot.slane %v2823_v40, 4  ;;  %v16465_v40 = vld [vmem:[#allocation39_spill] sm:$0xff] }
 0x1cc   : > { %v1869_v0 = vmul.f32 %v13363_v61, %v1752_v11  ;;  %v1983_v28 = vadd.f32 %v13372_v12, %v1866_v3  ;;  %3210 = vrot.lane.b32.xlu0 %v2982_v35, %s11727_s25  ;;  %vm1526_vm4 = vcmp.ge.f32.partialorder %v1410_v56, 0.0  ;;  %v1643_v44 = vmul.f32 %v13342_v29, %v1410_v56  ;;  %v16466_v3 = vld [vmem:[#allocation38_spill] sm:$0xff] }
 0x1cd   : > { %v2985_v1 = vrot.slane %v2824_v52, 4  ;;  %v1750_v59 = vsel %vm1521_vm3, %v1389_v30, %v1638_v45  ;;  %v2984_v13 = vsel %vm928_vm0, %v2981_v25, %v2983_v50  ;;  %v1402_v31 = vadd.f32 %v13324_v5, %v1401_v19 }
 0x1ce   : > { %v1986_v55 = vadd.f32 %v13372_v12, %v1869_v0  ;;  %v2769_v2 = vmul.f32 %v16464_v53, %v1985_v47  ;;  %v1867_v54 = vmul.f32 %v13363_v61, %v1750_v59  ;;  %3443 = vrot.lane.b32.xlu1 %v2984_v13, %s11728_s12  ;;  %3106 = vst.msk [vmem:[#allocation2 + $0x1a0] sm:$0xff] %vm3058_vm2, %v2984_v13  ;;  %vm4516_vm12 = vsmask.f32 4352 }
 0x1cf   : > { %v1755_v35 = vsel %vm1526_vm4, %v1410_v56, %v1643_v44  ;;  %v2986_v34 = vsel %vm928_vm0, %v2983_v50, %v2985_v1  ;;  %vm1524_vm5 = vcmp.ge.f32.partialorder %v1402_v31, 0.0  ;;  %v1641_v25 = vmul.f32 %v13342_v29, %v1402_v31  ;;  %v16467_v44 = vld [vmem:[#allocation37_spill] sm:$0xff] }
 0x1d0   : > { %v2770_v52 = vmul.f32 %v16465_v40, %v1986_v55  ;;  %v1872_v41 = vmul.f32 %v13363_v61, %v1755_v35  ;;  %3107 = vst.msk [vmem:[#allocation2 + $0x1a8] sm:$0xff] %vm3058_vm2, %v2986_v34  ;;  %v1984_v19 = vadd.f32 %v13372_v12, %v1867_v54  ;;  %3445 = vrot.lane.b32.xlu0 %v2986_v34, %s11728_s12  ;;  %vm16361_vm13 = vcmask 519424  }
 0x1d1   : > { %v1413_v30 = vadd.f32 %v13324_v5, %v10771_v57  ;;  %v1405_v47 = vadd.f32 %v13324_v5, %v1404_v36  ;;  %v2825_v56 = vpack.c.bf16 %v2764_v26, %v13384_v4  ;;  %v2767_v11 = vmul.f32 %v16466_v3, %v1983_v28 }
 0x1d2   : > { %v1753_v0 = vsel %vm1524_vm5, %v1402_v31, %v1641_v25  ;;  %v2826_v45 = vpack.c.bf16 %v2766_v22, %v13381_v20  ;;  %v2828_v50 = vpack.c.bf16 %v2770_v52, %v2769_v2  ;;  %v2768_v55 = vmul.f32 %v16467_v44, %v1984_v19  ;;  %3212 = vrot.lane.b32.xlu1 %v2984_v13, %s11727_s25  ;;  %v16469_v25 = vld [vmem:[#allocation43_spill] sm:$0xff]  ;;  %v16470_v19 = vld [vmem:[#allocation42_spill] sm:$0xff] }
 0x1d3   : > { %v1870_v59 = vmul.f32 %v13363_v61, %v1753_v0  ;;  %vm1527_vm6 = vcmp.ge.f32.partialorder %v1413_v30, 0.0  ;;  %v1644_v53 = vmul.f32 %v13342_v29, %v1413_v30  ;;  %vm1525_vm7 = vcmp.ge.f32.partialorder %v1405_v47, 0.0 }
 0x1d4   : > { %v1642_v5 = vmul.f32 %v13342_v29, %v1405_v47  ;;  %v2987_v57 = vrot.slane %v2825_v56, 4  ;;  %v2989_v4 = vrot.slane %v2826_v45, 4  ;;  %v1989_v36 = vadd.f32 %v13372_v12, %v1872_v41  ;;  %3214 = vrot.lane.b32.xlu0 %v2986_v34, %s11727_s25 }
 0x1d5   : > { %v1756_v26 = vsel %vm1527_vm6, %v1413_v30, %v1644_v53  ;;  %v2827_v20 = vpack.c.bf16 %v2768_v55, %v2767_v11  ;;  %v2993_v22 = vrot.slane %v2828_v50, 4  ;;  %v1987_v54 = vadd.f32 %v13372_v12, %v1870_v59 }
 0x1d6   : > { %v1873_v28 = vmul.f32 %v13363_v61, %v1756_v26  ;;  %v1754_v13 = vsel %vm1525_vm7, %v1405_v47, %v1642_v5  ;;  %v2988_v31 = vsel %vm928_vm0, %v2985_v1, %v2987_v57  ;;  %v2990_v2 = vsel %vm928_vm0, %v2987_v57, %v2989_v4  ;;  %v16471_v47 = vld [vmem:[#allocation41_spill] sm:$0xff] }
 0x1d7   : > { %v1871_v29 = vmul.f32 %v13363_v61, %v1754_v13  ;;  %3447 = vrot.lane.b32.xlu1 %v2988_v31, %s11728_s12  ;;  %3108 = vst.msk [vmem:[#allocation2 + $0x1b0] sm:$0xff] %vm3058_vm2, %v2988_v31  ;;  %3109 = vst.msk [vmem:[#allocation2 + $0x1b8] sm:$0xff] %vm3058_vm2, %v2990_v2  ;;  %v2991_v35 = vrot.slane %v2827_v20, 4  ;;  %v13450_v40 = vsel %vm928_vm0, %v13162_v42, %v13217_v37  ;;  %v16360_v50 = vshrl.u32 %v13079_v17, 16 }
 0x1d8   : > { %v1990_v34 = vadd.f32 %v13372_v12, %v1873_v28  ;;  %v13455_v1 = vsel %vm928_vm0, %v13217_v37, %v13091_v9  ;;  %3449 = vrot.lane.b32.xlu0 %v2990_v2, %s11728_s12  ;;  %3092 = vst.msk [vmem:[#allocation2 + $0x130] sm:$0xff] %vm3058_vm2, %v13450_v40  ;;  %v16468_v9 = vld [vmem:[#allocation44_spill] sm:$0xff]  ;;  %v2771_v30 = vmul.f32 %v16470_v19, %v1987_v54  ;;  %v16359_v59 = vshll.u32 %v13079_v17, 16 }
 0x1d9   : > { %v1988_v61 = vadd.f32 %v13372_v12, %v1871_v29  ;;  %v2992_v52 = vsel %vm928_vm0, %v2989_v4, %v2991_v35  ;;  %v2994_v41 = vsel %vm928_vm0, %v2991_v35, %v2993_v22  ;;  %3093 = vst.msk [vmem:[#allocation2 + $0x138] sm:$0xff] %vm3058_vm2, %v13455_v1  ;;  %v2773_v37 = vmul.f32 %v16468_v9, %v1989_v36 }
 0x1da   : > { %3110 = vst.msk [vmem:[#allocation2 + $0x1c0] sm:$0xff] %vm3058_vm2, %v2992_v52  ;;  %3111 = vst.msk [vmem:[#allocation2 + $0x1c8] sm:$0xff] %vm3058_vm2, %v2994_v41  ;;  %v2774_v12 = vmul.f32 %v16469_v25, %v1990_v34  ;;  %v16358_v53 = vshrl.u32 %v13113_v49, 16  ;;  %v16357_v5 = vshll.u32 %v13113_v49, 16  ;;  %v16356_v57 = vshrl.u32 %v13118_v32, 16 }
 0x1db   : > { %v2772_v56 = vmul.f32 %v16471_v47, %v1988_v61  ;;  %3216 = vrot.lane.b32.xlu1 %v2988_v31, %s11727_s25  ;;  %v16355_v4 = vshll.u32 %v13118_v32, 16  ;;  %v16353_v36 = vshrl.u32 %v13171_v62, 16  ;;  %v16352_v26 = vshll.u32 %v13171_v62, 16  ;;  %v2044_v31 = vld [vmem:[%s16334_s7 + $0x1a8] sm:$0xff] }
 0x1dc   : > { %v2830_v3 = vpack.c.bf16 %v2774_v12, %v2773_v37  ;;  %3218 = vrot.lane.b32.xlu0 %v2990_v2, %s11727_s25  ;;  %v5737_v20 = vrot.slane %v16360_v50, 4  ;;  %v16350_v28 = vshll.u32 %v13180_v14, 16  ;;  %v5738_v13 = vrot.slane %v16359_v59, 5 }
 0x1dd   : > { %v2829_v11 = vpack.c.bf16 %v2772_v56, %v2771_v30  ;;  %v5741_v2 = vrot.slane %v16358_v53, 4  ;;  %v5742_v54 = vrot.slane %v16357_v5, 5  ;;  %v5745_v35 = vrot.slane %v16356_v57, 4 }
 0x1de   : > { %v2997_v0 = vrot.slane %v2830_v3, 4  ;;  %v13502_v29 = vor.u32 %v5738_v13, %v5737_v20  ;;  %v5746_v34 = vrot.slane %v16355_v4, 5  ;;  %v5754_v25 = vrot.slane %v16350_v28, 5  ;;  %v13533_v3 = vld [vmem:[%s16330_s3] sm:$0xff]   ;;  %v2046_v20 = vld [vmem:[%s16334_s7 + $0x1b8] sm:$0xff]  ;;  %v16478_v13 = vld [vmem:[#allocation48_spill] sm:$0xff] }
 0x1df   : > { %3451 = vrot.lane.b32.xlu1 %v2992_v52, %s11728_s12  ;;  %v2995_v45 = vrot.slane %v2829_v11, 4  ;;  %v5743_v61 = vor.u32 %v5742_v54, %v5741_v2  ;;  %10896 = vmatprep.subr.bf16.mxu1 %v13533_v3  ;;  %v2047_v2 = vld [vmem:[%s16334_s7 + $0x1c0] sm:$0xff]  ;;  %v2050_v54 = vld [vmem:[%s16334_s7 + $0x1d8] sm:$0xff]  ;;  %vm3576_vm3 = vcmask 781824  }
 0x1e0   : > { %3453 = vrot.lane.b32.xlu0 %v2994_v41, %s11728_s12  ;;  %16472 = vst [vmem:[#allocation7_spill] sm:$0xff] %v13502_v29  ;;  %v5747_v9 = vor.u32 %v5746_v34, %v5745_v35  ;;  %v2049_v34 = vld [vmem:[%s16334_s7 + $0x1d0] sm:$0xff] }
 0x1e1   : > { %v2998_v44 = vsel %vm928_vm0, %v2995_v45, %v2997_v0  ;;  %v2996_v55 = vsel %vm928_vm0, %v2993_v22, %v2995_v45  ;;  %v16351_v22 = vshrl.u32 %v13180_v14, 16  ;;  %v13518_v12 = vsel %vm5728_vm10, %v13502_v29, %v5743_v61  ;;  %v2043_v45 = vld [vmem:[%s16334_s7 + $0x1a0] sm:$0xff] }
 0x1e2   : > { %3112 = vst.msk [vmem:[#allocation2 + $0x1d0] sm:$0xff] %vm3058_vm2, %v2996_v55  ;;  %16473 = vst [vmem:[#allocation12_spill] sm:$0xff] %v13518_v12  ;;  %v13522_v30 = vsel %vm5728_vm10, %v5743_v61, %v5747_v9  ;;  %v16514_v12 = vld [vmem:[#allocation55_spill] sm:$0xff] }
 0x1e3   : > { %3220 = vrot.lane.b32.xlu1 %v2992_v52, %s11727_s25  ;;  %v5749_v52 = vrot.slane %v16353_v36, 4  ;;  %v5753_v37 = vrot.slane %v16351_v22, 4  ;;  %16474 = vst [vmem:[#allocation10_spill] sm:$0xff] %v13522_v30 }
 0x1e4   : > { %3222 = vrot.lane.b32.xlu0 %v2994_v41, %s11727_s25  ;;  %v5750_v41 = vrot.slane %v16352_v26, 5 }
 0x1e5   : > { %v13524_v47 = vor.u32 %v5754_v25, %v5753_v37  ;;  %v2054_v25 = vld [vmem:[%s16334_s7 + $0x1f8] sm:$0xff] }
 0x1e6   : > { %v5751_v19 = vor.u32 %v5750_v41, %v5749_v52  ;;  %v2052_v52 = vld [vmem:[%s16334_s7 + $0x1e8] sm:$0xff]  ;;  %v2051_v41 = vld [vmem:[%s16334_s7 + $0x1e0] sm:$0xff] }
 0x1e7   : > { %3459 = vrot.lane.b32.xlu1 %v2997_v0, %s11728_s12 }
 0x1e8   : > { %2370 = vperm.xlu0 %11570, %v2044_v31   ;;  %v13527_v56 = vsel %vm5728_vm10, %v5747_v9, %v5751_v19  ;;  %v13537_v11 = vsel %vm5728_vm10, %v5751_v19, %v13524_v47  ;;  %v2045_v31 = vld [vmem:[%s16334_s7 + $0x1b0] sm:$0xff] }
 0x1e9   : > { %16475 = vst [vmem:[#allocation11_spill] sm:$0xff] %v13527_v56  ;;  %16476 = vst [vmem:[#allocation9_spill] sm:$0xff] %v13537_v11 }
 0x1eb   : > { %3228 = vrot.lane.b32.xlu1 %v2997_v0, %s11727_s25  ;;  %v16477_v0 = vld [vmem:[#allocation47_spill] sm:$0xff] }
 0x1ec   : > { %3457 = vrot.lane.b32.xlu0 %v2998_v44, %s11728_s12 }
 0x1ef   : > { %3455 = vrot.lane.b32.xlu1 %v2996_v55, %s11728_s12 }
 0x1f0   : > { %3130 = vrot.lane.b32.xlu0 %v16477_v0, %s11727_s25  ;;  %v2056_v0 = vld [vmem:[%s16334_s7 + $0x208] sm:$0xff] }
 0x1f3   : > { %3224 = vrot.lane.b32.xlu1 %v2996_v55, %s11727_s25  ;;  %v16479_v55 = vld [vmem:[#allocation49_spill] sm:$0xff] }
 0x1f4   : > { %3226 = vrot.lane.b32.xlu0 %v2998_v44, %s11727_s25  ;;  %v2048_v44 = vld [vmem:[%s16334_s7 + $0x1c8] sm:$0xff] }
 0x1f7   : > { %2365 = vperm.xlu1 %11571, %v2043_v45  }
 0x1f8   : > { %2380 = vperm.xlu0 %11570, %v2046_v20  }
 0x1fb   : > { %3363 = vrot.lane.b32.xlu1 %v16478_v13, %s11728_s12 }
 0x1fc   : > { %3365 = vrot.lane.b32.xlu0 %v16479_v55, %s11728_s12 }
 0x1ff   : > { %2375 = vperm.xlu1 %11571, %v2045_v31  }
 0x200   : > { %2390 = vperm.xlu0 %11570, %v2048_v44  }
 0x203   : > { %3132 = vrot.lane.b32.xlu1 %v16478_v13, %s11727_s25 }
 0x204   : > { %3134 = vrot.lane.b32.xlu0 %v16479_v55, %s11727_s25 }
 0x206   : > { %v3189_v35 = vpop.permute.xlu0 %3188 }
 0x207   : > { %2385 = vperm.xlu1 %11571, %v2047_v2   ;;  %3325 = vst.msk [vmem:[#allocation2 + $0x130] sm:$0xff] %vm3289_vm8, %v3189_v35 }
 0x208   : > { %2400 = vperm.xlu0 %11570, %v2050_v54  }
 0x209   : > { %v3191_v61 = vpop.permute.xlu1 %3190 }
 0x20a   : > { %3326 = vst.msk [vmem:[#allocation2 + $0x138] sm:$0xff] %vm3289_vm8, %v3191_v61 }
 0x20b   : > { %3367 = vrot.lane.b32.xlu1 %v12821_v7, %s11728_s12 }
 0x20c   : > { %3369 = vrot.lane.b32.xlu0 %v12859_v46, %s11728_s12 }
 0x20f   : > { %2395 = vperm.xlu1 %11571, %v2049_v34  }
 0x210   : > { %2410 = vperm.xlu0 %11570, %v2052_v52  }
 0x213   : > { %3136 = vrot.lane.b32.xlu1 %v12821_v7, %s11727_s25 }
 0x214   : > { %3138 = vrot.lane.b32.xlu0 %v12859_v46, %s11727_s25  ;;  %v3193_v9 = vpop.permute.xlu0 %3192  ;;  %v3424_v37 = vpop.permute.xlu1 %3423  ;;  %v2053_v46 = vld [vmem:[%s16334_s7 + $0x1f0] sm:$0xff] }
 0x215   : > { %3327 = vst.msk [vmem:[#allocation2 + $0x140] sm:$0xff] %vm3289_vm8, %v3193_v9 }
 0x216   : > { %3558 = vst.msk [vmem:[#allocation2 + $0x130] sm:$0xff] %vm3520_vm14, %v3424_v37 }
 0x217   : > { %2405 = vperm.xlu1 %11571, %v2051_v41   ;;  %v2055_v41 = vld [vmem:[%s16334_s7 + $0x200] sm:$0xff] }
 0x218   : > { %2420 = vperm.xlu0 %11570, %v2054_v25  }
 0x219   : > { %v3426_v7 = vpop.permute.xlu0 %3425 }
 0x21a   : > { %3559 = vst.msk [vmem:[#allocation2 + $0x138] sm:$0xff] %vm3520_vm14, %v3426_v7 }
 0x21b   : > { %3371 = vrot.lane.b32.xlu1 %v12871_v6, %s11728_s12 }
 0x21c   : > { %3373 = vrot.lane.b32.xlu0 %v12875_v58, %s11728_s12  ;;  %v3428_v19 = vpop.permute.xlu1 %3427 }
 0x21d   : > { %v13606_v45 = vld [vmem:[#allocation2 + $0x130] sm:$0xff]  ;;  %v3195_v20 = vpop.permute.xlu0 %3194  ;;  %3560 = vst.msk [vmem:[#allocation2 + $0x140] sm:$0xff] %vm3520_vm14, %v3428_v19 }
 0x21e   : > { %v4841_v13 = vshrl.u32 %v13606_v45, 16  ;;  %v4844_v31 = vshll.u32 %v13606_v45, 16  ;;  %3328 = vst.msk [vmem:[#allocation2 + $0x148] sm:$0xff] %vm3289_vm8, %v3195_v20  ;;  %v16349_v34 = vrot.slane %v13606_v45, 4 }
 0x21f   : > { %2415 = vperm.xlu1 %11571, %v2053_v46  }
 0x220   : > { %2430 = vperm.xlu0 %11570, %v2056_v0   ;;  %v5877_v55 = vrot.slane %v4841_v13, 4  ;;  %v5878_v44 = vrot.slane %v4844_v31, 5  ;;  %v3197_v2 = vpop.permute.xlu1 %3196  ;;  %v4843_v61 = vrot.slane %v4841_v13, 3  ;;  %v4846_v7 = vrot.slane %v4844_v31, 4 }
 0x221   : > { %3329 = vst.msk [vmem:[#allocation2 + $0x150] sm:$0xff] %vm3289_vm8, %v3197_v2  ;;  %v3615_v35 = vld [vmem:[#allocation2 + $0x138] sm:$0xff] }
 0x222   : > { %v3430_v54 = vpop.permute.xlu0 %3429  ;;  %v13616_v52 = vor.u32 %v5878_v44, %v5877_v55  ;;  %v3791_v9 = vrot.slane %v3615_v35, 4  ;;  %v4850_v37 = vshrl.u32 %v3615_v35, 16  ;;  %v4853_v25 = vshll.u32 %v3615_v35, 16 }
 0x223   : > { %3140 = vrot.lane.b32.xlu1 %v12871_v6, %s11727_s25  ;;  %3561 = vst.msk [vmem:[#allocation2 + $0x148] sm:$0xff] %vm3520_vm14, %v3430_v54  ;;  %v13632_v35 = vor.u32 %v4846_v7, %v4843_v61 }
 0x224   : > { %3142 = vrot.lane.b32.xlu0 %v12875_v58, %s11727_s25  ;;  %v3792_v6 = vsel %vm928_vm0, %v16349_v34, %v3791_v9  ;;  %v3616_v46 = vld [vmem:[#allocation2 + $0x140] sm:$0xff]  ;;  %v4852_v19 = vrot.slane %v4850_v37, 3  ;;  %v4855_v0 = vrot.slane %v4853_v25, 4  ;;  %v5881_v20 = vrot.slane %v4850_v37, 4  ;;  %v11636_v58 = vld [vmem:[%s16330_s3 + $0x8] sm:$0xff]  }
 0x225   : > { %10856 = vmatprep.mubr.msk.bf16.mxu1 %vm334_vm11, %v3792_v6  ;;  %v3793_v55 = vrot.slane %v3616_v46, 4  ;;  %v4859_v44 = vshrl.u32 %v3616_v46, 16  ;;  %v4862_v2 = vshll.u32 %v3616_v46, 16  ;;  %v5882_v54 = vrot.slane %v4853_v25, 5 }
 0x226   : > { %v3199_v13 = vpop.permute.xlu0 %3198  ;;  %v4856_v34 = vor.u32 %v4855_v0, %v4852_v19 }
 0x227   : > { %2425 = vperm.xlu1 %11571, %v2055_v41   ;;  %3330 = vst.msk [vmem:[#allocation2 + $0x158] sm:$0xff] %vm3289_vm8, %v3199_v13  ;;  %v3432_v31 = vpop.permute.xlu1 %3431  ;;  %v3794_v41 = vsel %vm928_vm0, %v3791_v9, %v3793_v55  ;;  %v4861_v37 = vrot.slane %v4859_v44, 3  ;;  %v4864_v25 = vrot.slane %v4862_v2, 4  ;;  %v5883_v6 = vor.u32 %v5882_v54, %v5881_v20 }
 0x228   : > { %3562 = vst.msk [vmem:[#allocation2 + $0x150] sm:$0xff] %vm3520_vm14, %v3432_v31  ;;  %3377 = vrot.lane.b32.xlu0 %v12908_v38, %s11728_s12  ;;  %10857 = vmatmul.mubr.msk.bf16.vlgmr.msra.gmra.mrb[0].mxu1 %vm334_vm11, %v3794_v41  ;;  %v13641_v46 = vsel %vm4516_vm12, %v13632_v35, %v4856_v34  ;;  %v5885_v13 = vrot.slane %v4859_v44, 4  ;;  %v5886_v61 = vrot.slane %v4862_v2, 5 }
 0x229   : > { %10897 = vmatpush3.bf16.msra.mxu1 %v13533_v3  ;;  %v4865_v0 = vor.u32 %v4864_v25, %v4861_v37  ;;  %v13648_v9 = vsel %vm5728_vm10, %v13616_v52, %v5883_v6  ;;  %v11637_v3 = vld [vmem:[%s16330_s3 + $0x10] sm:$0xff]  }
 0x22a   : > { %v3434_v7 = vpop.permute.xlu0 %3433  ;;  %v3617_v19 = vld [vmem:[#allocation2 + $0x148] sm:$0xff]  ;;  %16480 = vst [vmem:[#allocation16_spill] sm:$0xff] %v13648_v9  ;;  %10898 = vmatprep.subr.bf16.mxu1 %v11636_v58  ;;  %v5887_v2 = vor.u32 %v5886_v61, %v5885_v13 }
 0x22b   : > { %3375 = vrot.lane.b32.xlu1 %v12916_v18, %s11728_s12  ;;  %3563 = vst.msk [vmem:[#allocation2 + $0x158] sm:$0xff] %vm3520_vm14, %v3434_v7  ;;  %v3201_v20 = vpop.permute.xlu1 %3200  ;;  %v3795_v54 = vrot.slane %v3617_v19, 4  ;;  %v4868_v31 = vshrl.u32 %v3617_v19, 16  ;;  %v4871_v44 = vshll.u32 %v3617_v19, 16  ;;  %v13658_v41 = vsel %vm4516_vm12, %v4856_v34, %v4865_v0 }
 0x22c   : > { %3331 = vst.msk [vmem:[#allocation2 + $0x160] sm:$0xff] %vm3289_vm8, %v3201_v20  ;;  %3146 = vrot.lane.b32.xlu0 %v12908_v38, %s11727_s25  ;;  %16481 = vst [vmem:[#allocation14_spill] sm:$0xff] %v13658_v41  ;;  %v13662_v28 = vsel %vm5728_vm10, %v5883_v6, %v5887_v2 }
 0x22d   : > { %v3796_v37 = vsel %vm928_vm0, %v3793_v55, %v3795_v54  ;;  %v4870_v25 = vrot.slane %v4868_v31, 3  ;;  %v4873_v7 = vrot.slane %v4871_v44, 4  ;;  %16482 = vst [vmem:[#allocation15_spill] sm:$0xff] %v13662_v28  ;;  %v5889_v38 = vrot.slane %v4868_v31, 4  ;;  %10899 = vmatpush3.bf16.msra.mxu1 %v11636_v58  ;;  %v11638_v31 = vld [vmem:[%s16330_s3 + $0x18] sm:$0xff]  }
 0x22e   : > { %v3203_v13 = vpop.permute.xlu0 %3202  ;;  %10860 = vmatprep.mubr.msk.bf16.mxu1 %vm334_vm11, %v3796_v37  ;;  %v5890_v61 = vrot.slane %v4871_v44, 5  ;;  %10900 = vmatprep.subr.bf16.mxu1 %v11637_v3 }
 0x22f   : > { %3144 = vrot.lane.b32.xlu1 %v12916_v18, %s11727_s25  ;;  %3332 = vst.msk [vmem:[#allocation2 + $0x168] sm:$0xff] %vm3289_vm8, %v3203_v13  ;;  %v3436_v19 = vpop.permute.xlu1 %3435  ;;  %v3618_v34 = vld [vmem:[#allocation2 + $0x150] sm:$0xff]  ;;  %v4874_v20 = vor.u32 %v4873_v7, %v4870_v25 }
 0x230   : > { %3564 = vst.msk [vmem:[#allocation2 + $0x160] sm:$0xff] %vm3520_vm14, %v3436_v19  ;;  %3381 = vrot.lane.b32.xlu0 %v12919_v15, %s11728_s12  ;;  %v3797_v55 = vrot.slane %v3618_v34, 4  ;;  %v4877_v6 = vshrl.u32 %v3618_v34, 16  ;;  %v4880_v18 = vshll.u32 %v3618_v34, 16  ;;  %v5891_v22 = vor.u32 %v5890_v61, %v5889_v38 }
 0x231   : > { %v13675_v44 = vsel %vm4516_vm12, %v4865_v0, %v4874_v20  ;;  %10901 = vmatpush3.bf16.msra.mxu1 %v11637_v3 }
 0x232   : > { %16483 = vst [vmem:[#allocation13_spill] sm:$0xff] %v13675_v44  ;;  %v3438_v58 = vpop.permute.xlu0 %3437  ;;  %v3798_v37 = vsel %vm928_vm0, %v3795_v54, %v3797_v55  ;;  %v3619_v25 = vld [vmem:[#allocation2 + $0x158] sm:$0xff]  ;;  %v4879_v7 = vrot.slane %v4877_v6, 3  ;;  %v4882_v13 = vrot.slane %v4880_v18, 4  ;;  %v13681_v19 = vsel %vm5728_vm10, %v5887_v2, %v5891_v22  ;;  %10902 = vmatprep.subr.bf16.mxu1 %v11638_v31 }
 0x233   : > { %3379 = vrot.lane.b32.xlu1 %v12931_v51, %s11728_s12  ;;  %16484 = vst [vmem:[#allocation20_spill] sm:$0xff] %v13681_v19  ;;  %3565 = vst.msk [vmem:[#allocation2 + $0x168] sm:$0xff] %vm3520_vm14, %v3438_v58  ;;  %10861 = vmatmul.mubr.msk.bf16.gmra.mrb[4].mxu1 %vm334_vm11, %v3798_v37  ;;  %v3205_v38 = vpop.permute.xlu1 %3204  ;;  %v3799_v61 = vrot.slane %v3619_v25, 4  ;;  %v4886_v0 = vshrl.u32 %v3619_v25, 16  ;;  %v4889_v34 = vshll.u32 %v3619_v25, 16  ;;  %v5893_v26 = vrot.slane %v4877_v6, 4 }
 0x234   : > { %3333 = vst.msk [vmem:[#allocation2 + $0x170] sm:$0xff] %vm3289_vm8, %v3205_v38  ;;  %3150 = vrot.lane.b32.xlu0 %v12919_v15, %s11727_s25  ;;  %v4883_v54 = vor.u32 %v4882_v13, %v4879_v7  ;;  %v5894_v36 = vrot.slane %v4880_v18, 5  ;;  %v11639_v58 = vld [vmem:[%s16330_s3 + $0x20] sm:$0xff]  }
 0x235   : > { %v3800_v2 = vsel %vm928_vm0, %v3797_v55, %v3799_v61  ;;  %v4888_v37 = vrot.slane %v4886_v0, 3  ;;  %v4891_v24 = vrot.slane %v4889_v34, 4  ;;  %v5897_v4 = vrot.slane %v4886_v0, 4  ;;  %10903 = vmatpush3.bf16.msra.mxu1 %v11638_v31 }
 0x236   : > { %v3207_v6 = vpop.permute.xlu0 %3206  ;;  %10864 = vmatprep.mubr.msk.bf16.mxu1 %vm334_vm11, %v3800_v2  ;;  %v13696_v15 = vsel %vm4516_vm12, %v4874_v20, %v4883_v54  ;;  %v5895_v3 = vor.u32 %v5894_v36, %v5893_v26  ;;  %v5898_v18 = vrot.slane %v4889_v34, 5  ;;  %10904 = vmatprep.subr.bf16.mxu1 %v11639_v58  ;;  %v11640_v36 = vld [vmem:[%s16330_s3 + $0x28] sm:$0xff]  }
 0x237   : > { %3148 = vrot.lane.b32.xlu1 %v12931_v51, %s11727_s25  ;;  %16485 = vst [vmem:[#allocation18_spill] sm:$0xff] %v13696_v15  ;;  %3334 = vst.msk [vmem:[#allocation2 + $0x178] sm:$0xff] %vm3289_vm8, %v3207_v6  ;;  %v3620_v55 = vld [vmem:[#allocation2 + $0x160] sm:$0xff]  ;;  %v4892_v25 = vor.u32 %v4891_v24, %v4888_v37 }
 0x238   : > { %v3440_v7 = vpop.permute.xlu1 %3439  ;;  %3385 = vrot.lane.b32.xlu0 %v12943_v60, %s11728_s12  ;;  %v3801_v13 = vrot.slane %v3620_v55, 4  ;;  %v4895_v38 = vshrl.u32 %v3620_v55, 16  ;;  %v4898_v51 = vshll.u32 %v3620_v55, 16  ;;  %v13702_v0 = vsel %vm5728_vm10, %v5891_v22, %v5895_v3 }
 0x239   : > { %16486 = vst [vmem:[#allocation19_spill] sm:$0xff] %v13702_v0  ;;  %3566 = vst.msk [vmem:[#allocation2 + $0x170] sm:$0xff] %vm3520_vm14, %v3440_v7  ;;  %v13709_v24 = vsel %vm4516_vm12, %v4883_v54, %v4892_v25  ;;  %v5899_v26 = vor.u32 %v5898_v18, %v5897_v4  ;;  %10905 = vmatpush3.bf16.msra.mxu1 %v11639_v58 }
 0x23a   : > { %16487 = vst [vmem:[#allocation17_spill] sm:$0xff] %v13709_v24  ;;  %v3442_v20 = vpop.permute.xlu0 %3441  ;;  %v3802_v31 = vsel %vm928_vm0, %v3799_v61, %v3801_v13  ;;  %v3621_v34 = vld [vmem:[#allocation2 + $0x168] sm:$0xff]  ;;  %v4897_v22 = vrot.slane %v4895_v38, 3  ;;  %v4900_v2 = vrot.slane %v4898_v51, 4  ;;  %v5901_v37 = vrot.slane %v4895_v38, 4  ;;  %10906 = vmatprep.subr.bf16.mxu1 %v11640_v36 }
 0x23b   : > { %3383 = vrot.lane.b32.xlu1 %v12946_v48, %s11728_s12  ;;  %3567 = vst.msk [vmem:[#allocation2 + $0x178] sm:$0xff] %vm3520_vm14, %v3442_v20  ;;  %10865 = vmatmul.mubr.msk.bf16.gmra.mrb[8].mxu1 %vm334_vm11, %v3802_v31  ;;  %v3803_v6 = vrot.slane %v3621_v34, 4  ;;  %v4904_v55 = vshrl.u32 %v3621_v34, 16  ;;  %v4907_v7 = vshll.u32 %v3621_v34, 16  ;;  %v13717_v54 = vsel %vm5728_vm10, %v5895_v3, %v5899_v26 }
 0x23c   : > { %16488 = vst [vmem:[#allocation24_spill] sm:$0xff] %v13717_v54  ;;  %v3209_v4 = vpop.permute.xlu1 %3208  ;;  %3154 = vrot.lane.b32.xlu0 %v12943_v60, %s11727_s25  ;;  %v4901_v61 = vor.u32 %v4900_v2, %v4897_v22  ;;  %v5902_v18 = vrot.slane %v4898_v51, 5 }
 0x23d   : > { %3335 = vst.msk [vmem:[#allocation2 + $0x180] sm:$0xff] %vm3289_vm8, %v3209_v4  ;;  %v3804_v38 = vsel %vm928_vm0, %v3801_v13, %v3803_v6  ;;  %v4906_v20 = vrot.slane %v4904_v55, 3  ;;  %v4909_v31 = vrot.slane %v4907_v7, 4  ;;  %v5905_v57 = vrot.slane %v4904_v55, 4  ;;  %v13733_v13 = vld [vmem:[%s16330_s3 + $0x60] sm:$0xff]   ;;  %10907 = vmatpush3.bf16.msra.mxu1 %v11640_v36 }
 0x23e   : > { %v3211_v3 = vpop.permute.xlu0 %3210  ;;  %10868 = vmatprep.mubr.msk.bf16.mxu1 %vm334_vm11, %v3804_v38  ;;  %v13727_v34 = vsel %vm4516_vm12, %v4892_v25, %v4901_v61  ;;  %v5903_v60 = vor.u32 %v5902_v18, %v5901_v37  ;;  %v5906_v58 = vrot.slane %v4907_v7, 5  ;;  %11020 = vmatprep.subr.bf16.mxu1 %v13733_v13 }
 0x23f   : > { %3152 = vrot.lane.b32.xlu1 %v12946_v48, %s11727_s25  ;;  %16489 = vst [vmem:[#allocation22_spill] sm:$0xff] %v13727_v34  ;;  %3336 = vst.msk [vmem:[#allocation2 + $0x188] sm:$0xff] %vm3289_vm8, %v3211_v3  ;;  %v4910_v51 = vor.u32 %v4909_v31, %v4906_v20 }
 0x240   : > { %v3444_v22 = vpop.permute.xlu1 %3443  ;;  %3389 = vrot.lane.b32.xlu0 %v12955_v27, %s11728_s12  ;;  %v3622_v48 = vld [vmem:[#allocation2 + $0x170] sm:$0xff]  ;;  %v13738_v2 = vsel %vm5728_vm10, %v5899_v26, %v5903_v60  ;;  %v5907_v25 = vor.u32 %v5906_v58, %v5905_v57 }
 0x241   : > { %16490 = vst [vmem:[#allocation23_spill] sm:$0xff] %v13738_v2  ;;  %3568 = vst.msk [vmem:[#allocation2 + $0x180] sm:$0xff] %vm3520_vm14, %v3444_v22  ;;  %v3805_v37 = vrot.slane %v3622_v48, 4  ;;  %v13743_v55 = vsel %vm4516_vm12, %v4901_v61, %v4910_v51  ;;  %v4913_v7 = vshrl.u32 %v3622_v48, 16  ;;  %v4916_v4 = vshll.u32 %v3622_v48, 16  ;;  %v16506_v2 = vld [vmem:[#allocation51_spill] sm:$0xff] }
 0x242   : > { %16491 = vst [vmem:[#allocation21_spill] sm:$0xff] %v13743_v55  ;;  %v3446_v18 = vpop.permute.xlu0 %3445  ;;  %v3623_v38 = vld [vmem:[#allocation2 + $0x178] sm:$0xff]  ;;  %v13748_v36 = vsel %vm5728_vm10, %v5903_v60, %v5907_v25  ;;  %v16528_v55 = vshll.u32 %v13079_v17, 16 }
 0x243   : > { %3387 = vrot.lane.b32.xlu1 %v12962_v16, %s11728_s12  ;;  %16492 = vst [vmem:[#allocation28_spill] sm:$0xff] %v13748_v36  ;;  %3569 = vst.msk [vmem:[#allocation2 + $0x188] sm:$0xff] %vm3520_vm14, %v3446_v18  ;;  %v3806_v57 = vsel %vm928_vm0, %v3803_v6, %v3805_v37  ;;  %v3807_v26 = vrot.slane %v3623_v38, 4  ;;  %v4915_v20 = vrot.slane %v4913_v7, 3  ;;  %v4918_v31 = vrot.slane %v4916_v4, 4 }
 0x244   : > { %10869 = vmatmul.mubr.msk.bf16.gmra.mrb[12].mxu1 %vm334_vm11, %v3806_v57  ;;  %v3213_v61 = vpop.permute.xlu1 %3212  ;;  %3158 = vrot.lane.b32.xlu0 %v12955_v27, %s11727_s25  ;;  %v4922_v3 = vshrl.u32 %v3623_v38, 16  ;;  %v4925_v58 = vshll.u32 %v3623_v38, 16  ;;  %v5909_v22 = vrot.slane %v4913_v7, 4  ;;  %v5910_v48 = vrot.slane %v4916_v4, 5 }
 0x245   : > { %3337 = vst.msk [vmem:[#allocation2 + $0x190] sm:$0xff] %vm3289_vm8, %v3213_v61  ;;  %v3808_v60 = vsel %vm928_vm0, %v3805_v37, %v3807_v26  ;;  %v4919_v18 = vor.u32 %v4918_v31, %v4915_v20 }
 0x246   : > { %v3215_v6 = vpop.permute.xlu0 %3214  ;;  %10872 = vmatprep.mubr.msk.bf16.mxu1 %vm334_vm11, %v3808_v60  ;;  %v4924_v57 = vrot.slane %v4922_v3, 3  ;;  %v4927_v5 = vrot.slane %v4925_v58, 4  ;;  %v5911_v53 = vor.u32 %v5910_v48, %v5909_v22  ;;  %v5913_v59 = vrot.slane %v4922_v3, 4 }
 0x247   : > { %3156 = vrot.lane.b32.xlu1 %v12962_v16, %s11727_s25  ;;  %3338 = vst.msk [vmem:[#allocation2 + $0x198] sm:$0xff] %vm3289_vm8, %v3215_v6  ;;  %v13762_v27 = vsel %vm4516_vm12, %v4910_v51, %v4919_v18  ;;  %v5914_v7 = vrot.slane %v4925_v58, 5 }
 0x248   : > { %16493 = vst [vmem:[#allocation26_spill] sm:$0xff] %v13762_v27  ;;  %3393 = vrot.lane.b32.xlu0 %v12967_v8, %s11728_s12  ;;  %v3624_v37 = vld [vmem:[#allocation2 + $0x180] sm:$0xff]  ;;  %v4928_v38 = vor.u32 %v4927_v5, %v4924_v57  ;;  %v13767_v16 = vsel %vm5728_vm10, %v5907_v25, %v5911_v53 }
 0x249   : > { %v3448_v4 = vpop.permute.xlu1 %3447  ;;  %16494 = vst [vmem:[#allocation27_spill] sm:$0xff] %v13767_v16  ;;  %v3809_v20 = vrot.slane %v3624_v37, 4  ;;  %v4931_v31 = vshrl.u32 %v3624_v37, 16  ;;  %v4934_v61 = vshll.u32 %v3624_v37, 16  ;;  %v5915_v3 = vor.u32 %v5914_v7, %v5913_v59 }
 0x24a   : > { %3570 = vst.msk [vmem:[#allocation2 + $0x190] sm:$0xff] %vm3520_vm14, %v3448_v4  ;;  %v3450_v51 = vpop.permute.xlu0 %3449  ;;  %v3625_v58 = vld [vmem:[#allocation2 + $0x188] sm:$0xff]  ;;  %v13773_v22 = vsel %vm4516_vm12, %v4919_v18, %v4928_v38 }
 0x24b   : > { %3391 = vrot.lane.b32.xlu1 %v12972_v10, %s11728_s12  ;;  %16495 = vst [vmem:[#allocation25_spill] sm:$0xff] %v13773_v22  ;;  %3571 = vst.msk [vmem:[#allocation2 + $0x198] sm:$0xff] %vm3520_vm14, %v3450_v51  ;;  %v3810_v5 = vsel %vm928_vm0, %v3807_v26, %v3809_v20  ;;  %v3811_v25 = vrot.slane %v3625_v58, 4  ;;  %v4933_v48 = vrot.slane %v4931_v31, 3  ;;  %v4936_v60 = vrot.slane %v4934_v61, 4 }
 0x24c   : > { %10873 = vmatmul.mubr.msk.bf16.gmra.mrb[16].mxu1 %vm334_vm11, %v3810_v5  ;;  %3162 = vrot.lane.b32.xlu0 %v12967_v8, %s11727_s25  ;;  %v4940_v59 = vshrl.u32 %v3625_v58, 16  ;;  %v4943_v57 = vshll.u32 %v3625_v58, 16  ;;  %v13781_v7 = vsel %vm5728_vm10, %v5911_v53, %v5915_v3  ;;  %v5917_v18 = vrot.slane %v4931_v31, 4 }
 0x24d   : > { %v3217_v6 = vpop.permute.xlu1 %3216  ;;  %16496 = vst [vmem:[#allocation32_spill] sm:$0xff] %v13781_v7  ;;  %v3812_v4 = vsel %vm928_vm0, %v3809_v20, %v3811_v25  ;;  %v4937_v26 = vor.u32 %v4936_v60, %v4933_v48  ;;  %v5918_v37 = vrot.slane %v4934_v61, 5 }
 0x24e   : > { %3339 = vst.msk [vmem:[#allocation2 + $0x1a0] sm:$0xff] %vm3289_vm8, %v3217_v6  ;;  %v3219_v51 = vpop.permute.xlu0 %3218  ;;  %10876 = vmatprep.mubr.msk.bf16.mxu1 %vm334_vm11, %v3812_v4  ;;  %v4942_v5 = vrot.slane %v4940_v59, 3  ;;  %v4945_v8 = vrot.slane %v4943_v57, 4  ;;  %v5921_v50 = vrot.slane %v4940_v59, 4  ;;  %v5922_v58 = vrot.slane %v4943_v57, 5 }
 0x24f   : > { %3160 = vrot.lane.b32.xlu1 %v12972_v10, %s11727_s25  ;;  %3340 = vst.msk [vmem:[#allocation2 + $0x1a8] sm:$0xff] %vm3289_vm8, %v3219_v51  ;;  %v13790_v53 = vsel %vm4516_vm12, %v4928_v38, %v4937_v26  ;;  %v5919_v31 = vor.u32 %v5918_v37, %v5917_v18 }
 0x250   : > { %16497 = vst [vmem:[#allocation30_spill] sm:$0xff] %v13790_v53  ;;  %3397 = vrot.lane.b32.xlu0 %v12981_v33, %s11728_s12  ;;  %v4946_v61 = vor.u32 %v4945_v8, %v4942_v5  ;;  %v5923_v10 = vor.u32 %v5922_v58, %v5921_v50 }
 0x251   : > { %v3452_v6 = vpop.permute.xlu1 %3451  ;;  %v3626_v20 = vld [vmem:[#allocation2 + $0x190] sm:$0xff]  ;;  %v13796_v59 = vsel %vm5728_vm10, %v5915_v3, %v5919_v31 }
 0x252   : > { %3572 = vst.msk [vmem:[#allocation2 + $0x1a0] sm:$0xff] %vm3520_vm14, %v3452_v6  ;;  %v3813_v48 = vrot.slane %v3626_v20, 4  ;;  %v4949_v60 = vshrl.u32 %v3626_v20, 16  ;;  %v4952_v4 = vshll.u32 %v3626_v20, 16  ;;  %16498 = vst [vmem:[#allocation31_spill] sm:$0xff] %v13796_v59  ;;  %v3454_v38 = vpop.permute.xlu0 %3453  ;;  %v3627_v57 = vld [vmem:[#allocation2 + $0x198] sm:$0xff]  ;;  %v13801_v18 = vsel %vm4516_vm12, %v4937_v26, %v4946_v61 }
 0x253   : > { %3395 = vrot.lane.b32.xlu1 %v12984_v39, %s11728_s12  ;;  %16499 = vst [vmem:[#allocation29_spill] sm:$0xff] %v13801_v18  ;;  %v13804_v37 = vsel %vm5728_vm10, %v5919_v31, %v5923_v10  ;;  %3573 = vst.msk [vmem:[#allocation2 + $0x1a8] sm:$0xff] %vm3520_vm14, %v3454_v38  ;;  %v3815_v51 = vrot.slane %v3627_v57, 4  ;;  %v4958_v58 = vshrl.u32 %v3627_v57, 16  ;;  %v4961_v6 = vshll.u32 %v3627_v57, 16 }
 0x254   : > { %16500 = vst [vmem:[#allocation36_spill] sm:$0xff] %v13804_v37  ;;  %v3814_v50 = vsel %vm928_vm0, %v3811_v25, %v3813_v48  ;;  %v4951_v5 = vrot.slane %v4949_v60, 3  ;;  %v4954_v8 = vrot.slane %v4952_v4, 4  ;;  %3166 = vrot.lane.b32.xlu0 %v12981_v33, %s11727_s25  ;;  %v5925_v26 = vrot.slane %v4949_v60, 4 }
 0x255   : > { %10877 = vmatmul.mubr.msk.bf16.gmra.mrb[20].mxu1 %vm334_vm11, %v3814_v50  ;;  %v3221_v3 = vpop.permute.xlu1 %3220  ;;  %v5926_v20 = vrot.slane %v4952_v4, 5  ;;  %v3816_v31 = vsel %vm928_vm0, %v3813_v48, %v3815_v51  ;;  %v4960_v50 = vrot.slane %v4958_v58, 3  ;;  %v4963_v37 = vrot.slane %v4961_v6, 4 }
 0x256   : > { %3341 = vst.msk [vmem:[#allocation2 + $0x1b0] sm:$0xff] %vm3289_vm8, %v3221_v3  ;;  %v4955_v38 = vor.u32 %v4954_v8, %v4951_v5  ;;  %v3223_v25 = vpop.permute.xlu0 %3222  ;;  %10880 = vmatprep.mubr.msk.bf16.mxu1 %vm334_vm11, %v3816_v31  ;;  %v5929_v7 = vrot.slane %v4958_v58, 4  ;;  %v5930_v60 = vrot.slane %v4961_v6, 5 }
 0x257   : > { %3164 = vrot.lane.b32.xlu1 %v12984_v39, %s11727_s25  ;;  %v5927_v59 = vor.u32 %v5926_v20, %v5925_v26  ;;  %3342 = vst.msk [vmem:[#allocation2 + $0x1b8] sm:$0xff] %vm3289_vm8, %v3223_v25  ;;  %v4964_v57 = vor.u32 %v4963_v37, %v4960_v50 }
 0x258   : > { %v13818_v33 = vsel %vm4516_vm12, %v4946_v61, %v4955_v38  ;;  %v5931_v31 = vor.u32 %v5930_v60, %v5929_v7 }
 0x259   : > { %16501 = vst [vmem:[#allocation34_spill] sm:$0xff] %v13818_v33  ;;  %v13820_v4 = vpop.permute.xlu1 %3459  ;;  %v3628_v48 = vld [vmem:[#allocation2 + $0x1a0] sm:$0xff]  ;;  %v13823_v5 = vsel %vm5728_vm10, %v5923_v10, %v5927_v59  ;;  %v13828_v58 = vsel %vm4516_vm12, %v4955_v38, %v4964_v57 }
 0x25a   : > { %16502 = vst [vmem:[#allocation35_spill] sm:$0xff] %v13823_v5  ;;  %v3817_v39 = vrot.slane %v3628_v48, 4  ;;  %v4967_v8 = vshrl.u32 %v3628_v48, 16  ;;  %v4970_v3 = vshll.u32 %v3628_v48, 16  ;;  %v13825_v26 = vld [vmem:[#allocation2 + $0x1a8] sm:$0xff]  ;;  %16503 = vst [vmem:[#allocation33_spill] sm:$0xff] %v13828_v58  ;;  %v13836_v7 = vsel %vm5728_vm10, %v5927_v59, %v5931_v31 }
 0x25b   : > { %v16362_v6 = vrot.slane %v13825_v26, 4  ;;  %v4976_v37 = vshrl.u32 %v13825_v26, 16  ;;  %v4979_v50 = vshll.u32 %v13825_v26, 16  ;;  %16504 = vst [vmem:[#allocation40_spill] sm:$0xff] %v13836_v7  ;;  %v13841_v38 = vld [vmem:[%s16329_s2] ss:$0 sm:$0xff] }
 0x25c   : > { %v3818_v61 = vsel %vm928_vm0, %v3815_v51, %v3817_v39  ;;  %v4969_v20 = vrot.slane %v4967_v8, 3  ;;  %v4972_v25 = vrot.slane %v4970_v3, 4  ;;  %v5933_v60 = vrot.slane %v4967_v8, 4  ;;  %v16505_v51 = vld [vmem:[#allocation50_spill] sm:$0xff] }
 0x25d   : > { %10881 = vmatmul.mubr.msk.bf16.gmra.mrb[24].mxu1 %vm334_vm11, %v3818_v61  ;;  %v3229_v10 = vpop.permute.xlu1 %3228  ;;  %v1186_v48 = vadd.f32 %v13841_v38, %v16505_v51  ;;  %v3820_v61 = vsel %vm928_vm0, %v3817_v39, %v16362_v6  ;;  %v5934_v16 = vrot.slane %v4970_v3, 5  ;;  %v4978_v59 = vrot.slane %v4976_v37, 3 }
 0x25e   : > { %3346 = vst.msk [vmem:[#allocation2 + $0x1d0] sm:$0xf] %vm16361_vm13, %v3229_v10  ;;  %v4973_v5 = vor.u32 %v4972_v25, %v4969_v20  ;;  %10884 = vmatprep.mubr.msk.bf16.mxu1 %vm334_vm11, %v3820_v61  ;;  %v4981_v8 = vrot.slane %v4979_v50, 4  ;;  %v5937_v7 = vrot.slane %v4976_v37, 4  ;;  %v5938_v36 = vrot.slane %v4979_v50, 5 }
 0x25f   : > { %v1178_v54 = vadd.f32 %v13841_v38, %v16506_v2  ;;  %v1189_v51 = vadd.f32 %v13841_v38, %v12831_v43  ;;  %v5935_v0 = vor.u32 %v5934_v16, %v5933_v60  ;;  %v1181_v39 = vadd.f32 %v13841_v38, %v12842_v23  ;;  %v16509_v16 = vld [vmem:[#allocation52_spill] sm:$0xff]  ;;  %v16510_v23 = vld [vmem:[#allocation53_spill] sm:$0xff] }
 0x260   : > { %v13855_v10 = vsel %vm4516_vm12, %v4964_v57, %v4973_v5  ;;  %v1202_v3 = vadd.f32 %v13841_v38, %v12867_v21  ;;  %v13861_v25 = vor.u32 %v4981_v8, %v4978_v59  ;;  %v13863_v37 = vor.u32 %v5938_v36, %v5937_v7 }
 0x261   : > { %16507 = vst [vmem:[#allocation39_spill] sm:$0xff] %v13855_v10  ;;  %v3456_v20 = vpop.permute.xlu1 %3455  ;;  %v1194_v2 = vadd.f32 %v13841_v38, %v12879_v63  ;;  %v13869_v43 = vsel %vm5728_vm10, %v5931_v31, %v5935_v0  ;;  %v1205_v57 = vadd.f32 %v13841_v38, %v16509_v16  ;;  %v1197_v50 = vadd.f32 %v13841_v38, %v16510_v23  ;;  %v13886_v63 = vld [vmem:[%s16329_s2 + $0x1] ss:$0 sm:$0xff] }
 0x262   : > { %3574 = vst.msk [vmem:[#allocation2 + $0x1b0] sm:$0xff] %vm3520_vm14, %v3456_v20  ;;  %16508 = vst [vmem:[#allocation38_spill] sm:$0xff] %v13869_v43  ;;  %v13877_v21 = vsel %vm4516_vm12, %v4973_v5, %v13861_v25  ;;  %v13881_v36 = vsel %vm5728_vm10, %v5935_v0, %v13863_v37  ;;  %vm1470_vm15 = vcmp.ge.f32.partialorder %v1186_v48, 0.0  ;;  %v1587_v31 = vmul.f32 %v13886_v63, %v1186_v48 }
 0x263   : > { %16511 = vst [vmem:[#allocation37_spill] sm:$0xff] %v13877_v21  ;;  %16512 = vst [vmem:[#allocation44_spill] sm:$0xff] %v13881_v36  ;;  %vm1468_vm1 = vcmp.ge.f32.partialorder %v1178_v54, 0.0  ;;  %v1585_v7 = vmul.f32 %v13886_v63, %v1178_v54  ;;  %v1588_v60 = vmul.f32 %v13886_v63, %v1189_v51  ;;  %v1586_v5 = vmul.f32 %v13886_v63, %v1181_v39 }
 0x264   : > { %v1591_v61 = vmul.f32 %v13886_v63, %v1202_v3  ;;  %vm1471_vm4 = vcmp.ge.f32.partialorder %v1189_v51, 0.0  ;;  %vm1469_vm5 = vcmp.ge.f32.partialorder %v1181_v39, 0.0  ;;  %vm1474_vm6 = vcmp.ge.f32.partialorder %v1202_v3, 0.0 }
 0x265   : > { %v3225_v0 = vpop.permute.xlu1 %3224  ;;  %v1589_v59 = vmul.f32 %v13886_v63, %v1194_v2  ;;  %vm1472_vm7 = vcmp.ge.f32.partialorder %v1194_v2, 0.0  ;;  %v1592_v8 = vmul.f32 %v13886_v63, %v1205_v57  ;;  %v1590_v20 = vmul.f32 %v13886_v63, %v1197_v50 }
 0x266   : > { %3343 = vst.msk [vmem:[#allocation2 + $0x1c0] sm:$0xff] %vm3289_vm8, %v3225_v0  ;;  %v1699_v16 = vsel %vm1470_vm15, %v1186_v48, %v1587_v31  ;;  %vm1475_vm13 = vcmp.ge.f32.partialorder %v1205_v57, 0.0  ;;  %vm1473_vm9 = vcmp.ge.f32.partialorder %v1197_v50, 0.0  ;;  %v1697_v6 = vsel %vm1468_vm1, %v1178_v54, %v1585_v7  ;;  %v16513_v31 = vld [vmem:[#allocation54_spill] sm:$0xff] }
 0x267   : > { %3577 = vst.msk [vmem:[#allocation2 + $0x1c0] sm:$0xf] %vm3576_vm3, %v13820_v4  ;;  %v13900_v23 = vpop.permute.xlu0 %2370  ;;  %v1700_v36 = vsel %vm1471_vm4, %v1189_v51, %v1588_v60  ;;  %v1698_v43 = vsel %vm1469_vm5, %v1181_v39, %v1586_v5  ;;  %v1703_v19 = vsel %vm1474_vm6, %v1202_v3, %v1591_v61  ;;  %v1701_v28 = vsel %vm1472_vm7, %v1194_v2, %v1589_v59  ;;  %v16518_v5 = vld [vmem:[#allocation57_spill] sm:$0xff] }
 0x268   : > { %v1704_v56 = vsel %vm1475_vm13, %v1205_v57, %v1592_v8  ;;  %v1702_v48 = vsel %vm1473_vm9, %v1197_v50, %v1590_v20  ;;  %v13910_v30 = vadd.f32 %v13841_v38, %v16513_v31  ;;  %v13914_v54 = vadd.f32 %v13841_v38, %v16514_v12  ;;  %v13916_v51 = vpop.f32.mrb[112].mxu0  ;;  %v13932_v12 = vld [vmem:[%s16329_s2 + $0x2] ss:$0 sm:$0xff] }
 0x269   : > { %v13903_v0 = vld [vmem:[#allocation2 + $0x1b0] sm:$0xff]  ;;  %16515 = vst [vmem:[#allocation43_spill] sm:$0xff] %v13916_v51  ;;  %v16516_v39 = vrot.slane %v13825_v26, 4  ;;  %v13923_v7 = vpop.f32.mrb[113].mxu0  ;;  %v13927_v61 = vadd.f32 %v13841_v38, %v16518_v5  ;;  %v1815_v59 = vmul.f32 %v13932_v12, %v1698_v43  ;;  %v1814_v8 = vmul.f32 %v13932_v12, %v1697_v6 }
 0x26a   : > { %v16363_v9 = vrot.slane %v13903_v0, 4  ;;  %v4985_v11 = vshrl.u32 %v13903_v0, 16  ;;  %v4988_v4 = vshll.u32 %v13903_v0, 16  ;;  %16517 = vst [vmem:[#allocation42_spill] sm:$0xff] %v13923_v7  ;;  %v13937_v26 = vpop.f32.mrb[114].mxu0  ;;  %v1817_v31 = vmul.f32 %v13932_v12, %v1700_v36 }
 0x26b   : > { %v3458_v2 = vpop.permute.xlu0 %3457  ;;  %16519 = vst [vmem:[#allocation41_spill] sm:$0xff] %v13937_v26  ;;  %v13940_v20 = vpop.f32.mrb[115].mxu0  ;;  %v1816_v5 = vmul.f32 %v13932_v12, %v1699_v16  ;;  %v13960_v36 = vmul.f32 %v13886_v63, %v13914_v54  ;;  %v16521_v16 = vld [vmem:[#allocation56_spill] sm:$0xff]  ;;  %v14001_v21 = vmul.f32 %v13932_v12, %v1704_v56  ;;  %v16525_v58 = vshrl.u32 %v13079_v17, 16 }
 0x26c   : > { %v3822_v3 = vsel %vm928_vm0, %v16516_v39, %v16363_v9  ;;  %v4987_v57 = vrot.slane %v4985_v11, 3  ;;  %v4990_v50 = vrot.slane %v4988_v4, 4  ;;  %v5941_v60 = vrot.slane %v4985_v11, 4  ;;  %3575 = vst.msk [vmem:[#allocation2 + $0x1b8] sm:$0xff] %vm3520_vm14, %v3458_v2  ;;  %16520 = vst [vmem:[#allocation47_spill] sm:$0xff] %v13940_v20 }
 0x26d   : > { %10885 = vmatmul.mubr.msk.bf16.gmra.mrb[28].mxu1 %vm334_vm11, %v3822_v3  ;;  %v5942_v11 = vrot.slane %v4988_v4, 5  ;;  %v1819_v9 = vmul.f32 %v13932_v12, %v1702_v48  ;;  %v1818_v3 = vmul.f32 %v13932_v12, %v1701_v28  ;;  %v13956_v4 = vmul.f32 %v13886_v63, %v13910_v30 }
 0x26e   : > { %v13943_v39 = vld [vmem:[#allocation2 + $0x1c0] sm:$0xff]  ;;  %v13947_v43 = vor.u32 %v4990_v50, %v4987_v57  ;;  %v13964_v48 = vadd.f32 %v13841_v38, %v16521_v16  ;;  %v13973_v50 = vmul.f32 %v13886_v63, %v13927_v61  ;;  %v3578_v16 = vld [vmem:[#allocation2 + $0x10] sm:$0xf8]  ;;  %v4528_v33 = vrot.slane %v16525_v58, 3 }
 0x26f   : > { %v5003_v2 = vshrl.u32 %v13943_v39, 16  ;;  %v5006_v26 = vshll.u32 %v13943_v39, 16  ;;  %v13952_v6 = vor.u32 %v5942_v11, %v5941_v60  ;;  %v3131_v57 = vpop.permute.xlu0 %3130  ;;  %v13978_v60 = vld [vmem:[%s16329_s2 + $0x3] ss:$0 sm:$0xff]  ;;  %v4518_v10 = vshrl.u32 %v3578_v16, 16 }
 0x270   : > { %v13969_v28 = vsel %vm4516_vm12, %v13861_v25, %v13947_v43  ;;  %v1932_v11 = vadd.f32 %v13978_v60, %v1815_v59  ;;  %3296 = vst.msk [vmem:[#allocation2 + $0x48] sm:$0xff] %vm3289_vm8, %v3131_v57  ;;  %v1931_v7 = vadd.f32 %v13978_v60, %v1814_v8  ;;  %v13989_v51 = vadd.f32 %v13978_v60, %v1817_v31 }
 0x271   : > { %16522 = vst [vmem:[#allocation48_spill] sm:$0xff] %v13969_v28  ;;  %v13985_v20 = vsel %vm5728_vm10, %v13863_v37, %v13952_v6  ;;  %v5949_v25 = vrot.slane %v5003_v2, 4  ;;  %v13992_v29 = vadd.f32 %v13978_v60, %v1816_v5  ;;  %v5950_v28 = vrot.slane %v5006_v26, 5 }
 0x272   : > { %16523 = vst [vmem:[#allocation49_spill] sm:$0xff] %v13985_v20  ;;  %v13995_v59 = vadd.f32 %v13978_v60, %v1819_v9  ;;  %v13998_v57 = vadd.f32 %v13978_v60, %v1818_v3  ;;  %v14004_v37 = vmul.f32 %v13932_v12, %v1703_v19  ;;  %v14006_v20 = vpop.f32.mrb[116].mxu0  ;;  %v4521_v5 = vshll.u32 %v3578_v16, 16  ;;  %v3634_v16 = vld [vmem:[#allocation2 + $0x1d0] sm:$0xf] }
 0x273   : > { %v3227_v8 = vpop.permute.xlu0 %3226  ;;  %16524 = vst [vmem:[#allocation50_spill] sm:$0xff] %v14006_v20  ;;  %v3631_v31 = vld [vmem:[#allocation2 + $0x1b8] sm:$0xff]  ;;  %v14010_v9 = vor.u32 %v5950_v28, %v5949_v25  ;;  %v14013_v3 = vpop.f32.mrb[117].mxu0  ;;  %v3825_v18 = vrot.slane %v13943_v39, 4  ;;  %v2716_v22 = vmul.f32 %v13900_v23, %v1932_v11  ;;  %v4531_v58 = vrot.slane %v16528_v55, 4 }
 0x274   : > { %3344 = vst.msk [vmem:[#allocation2 + $0x1c8] sm:$0xff] %vm3289_vm8, %v3227_v8  ;;  %16526 = vst [vmem:[#allocation51_spill] sm:$0xff] %v14013_v3  ;;  %v3823_v56 = vrot.slane %v3631_v31, 4  ;;  %v4994_v19 = vshrl.u32 %v3631_v31, 16  ;;  %v4997_v53 = vshll.u32 %v3631_v31, 16  ;;  %v14017_v27 = vpop.f32.mrb[118].mxu0 }
 0x275   : > { %16527 = vst [vmem:[#allocation52_spill] sm:$0xff] %v14017_v27  ;;  %v5005_v28 = vrot.slane %v5003_v2, 3  ;;  %v5008_v25 = vrot.slane %v5006_v26, 4  ;;  %v16529_v8 = vrot.slane %v13903_v0, 4  ;;  %v14024_v24 = vpop.f32.mrb[119].mxu0  ;;  %v4520_v11 = vrot.slane %v4518_v10, 3 }
 0x276   : > { %v2366_v20 = vpop.permute.xlu1 %2365  ;;  %16530 = vst [vmem:[#allocation53_spill] sm:$0xff] %v14024_v24  ;;  %v3826_v39 = vsel %vm928_vm0, %v3823_v56, %v3825_v18  ;;  %v4996_v31 = vrot.slane %v4994_v19, 3  ;;  %v4999_v27 = vrot.slane %v4997_v53, 4  ;;  %v5945_v15 = vrot.slane %v4994_v19, 4 }
 0x277   : > { %v2715_v34 = vmul.f32 %v2366_v20, %v1931_v7  ;;  %v3824_v3 = vsel %vm928_vm0, %v16529_v8, %v3823_v56  ;;  %v2381_v23 = vpop.permute.xlu0 %2380  ;;  %v5946_v17 = vrot.slane %v4997_v53, 5  ;;  %v4523_v7 = vrot.slane %v4521_v5, 4 }
 0x278   : > { %10888 = vmatprep.mubr.msk.bf16.mxu1 %vm334_vm11, %v3824_v3  ;;  %v16531_v0 = vshrl.u32 %v13113_v49, 16  ;;  %v5021_v20 = vshrl.u32 %v3634_v16, 16  ;;  %v5000_v8 = vor.u32 %v4999_v27, %v4996_v31  ;;  %v5009_v24 = vor.u32 %v5008_v25, %v5005_v28 }
 0x279   : > { %v2801_v55 = vpack.c.bf16 %v2716_v22, %v2715_v34  ;;  %10889 = vmatmul.mubr.msk.bf16.gmra.mrb[32].mxu1 %vm334_vm11, %v3826_v39  ;;  %v5024_v56 = vshll.u32 %v3634_v16, 16  ;;  %v5947_v44 = vor.u32 %v5946_v17, %v5945_v15  ;;  %v3829_v10 = vrot.slane %v3634_v16, 4 }
 0x27a   : > { %v4537_v26 = vrot.slane %v16531_v0, 3  ;;  %v3364_v2 = vpop.permute.xlu1 %3363  ;;  %v4532_v3 = vor.u32 %v4531_v58, %v4528_v33  ;;  %v16532_v53 = vshll.u32 %v13113_v49, 16  ;;  %v14036_v5 = vsel %vm4516_vm12, %v13947_v43, %v5000_v8  ;;  %v16533_v49 = vld [vmem:[#allocation58_spill] sm:$0xff] }
 0x27b   : > { %v2939_v41 = vrot.slane %v2801_v55, 4  ;;  %3528 = vst.msk [vmem:[#allocation2 + $0x40] sm:$0xff] %vm3520_vm14, %v3364_v2  ;;  %v3366_v22 = vpop.permute.xlu0 %3365  ;;  %v3633_v19 = vld [vmem:[#allocation2 + $0x1c8] sm:$0xff]  ;;  %v14039_v39 = vsel %vm4516_vm12, %v5000_v8, %v5009_v24  ;;  %v14043_v15 = vsel %vm5728_vm10, %v13952_v6, %v5947_v44  ;;  %v14047_v27 = vsel %vm5728_vm10, %v5947_v44, %v14010_v9 }
 0x27c   : > { %v4540_v34 = vrot.slane %v16532_v53, 4  ;;  %3529 = vst.msk [vmem:[#allocation2 + $0x48] sm:$0xff] %vm3520_vm14, %v3366_v22  ;;  %v3827_v16 = vrot.slane %v3633_v19, 4  ;;  %v5012_v58 = vshrl.u32 %v3633_v19, 16  ;;  %v5015_v43 = vshll.u32 %v3633_v19, 16 }
 0x27d   : > { %v2940_v33 = vsel %vm928_vm0, %v16533_v49, %v2939_v41  ;;  %v2718_v28 = vmul.f32 %v2381_v23, %v13989_v51  ;;  %v4524_v25 = vor.u32 %v4523_v7, %v4520_v11  ;;  %v5023_v31 = vrot.slane %v5021_v20, 3 }
 0x27e   : > { %3399 = vrot.lane.b32.xlu1 %v2940_v33, %s11728_s12  ;;  %3084 = vst.msk [vmem:[#allocation2 + $0xf0] sm:$0xff] %vm3058_vm2, %v2940_v33  ;;  %v2376_v6 = vpop.permute.xlu1 %2375  ;;  %v5026_v17 = vrot.slane %v5024_v56, 4  ;;  %vm1476_vm9 = vcmp.ge.f32.partialorder %v13914_v54, 0.0  ;;  %v3828_v55 = vsel %vm928_vm0, %v3825_v18, %v3827_v16  ;;  %v3830_v0 = vsel %vm928_vm0, %v3827_v16, %v3829_v10 }
 0x27f   : > { %v2717_v44 = vmul.f32 %v2376_v6, %v13992_v29  ;;  %v5014_v2 = vrot.slane %v5012_v58, 3  ;;  %v2391_v8 = vpop.permute.xlu0 %2390  ;;  %10892 = vmatprep.mubr.msk.bf16.mxu1 %vm334_vm11, %v3828_v55  ;;  %v4541_v51 = vor.u32 %v4540_v34, %v4537_v26  ;;  %v5017_v23 = vrot.slane %v5015_v43, 4 }
 0x280   : > { %v5953_v53 = vrot.slane %v5012_v58, 4  ;;  %v5954_v22 = vrot.slane %v5015_v43, 5  ;;  %v4533_v11 = vsel %vm4516_vm12, %v4524_v25, %v4532_v3  ;;  %v16534_v7 = vshrl.u32 %v13118_v32, 16 }
 0x281   : > { %v2802_v19 = vpack.c.bf16 %v2718_v28, %v2717_v44  ;;  %10893 = vmatmul.mubr.msk.bf16.gmra.mrb[36].mxu1 %vm334_vm11, %v3830_v0  ;;  %v16535_v18 = vshll.u32 %v13118_v32, 16  ;;  %vm1477_vm13 = vcmp.ge.f32.partialorder %v13927_v61, 0.0  ;;  %v5018_v10 = vor.u32 %v5017_v23, %v5014_v2 }
 0x282   : > { %v4546_v29 = vrot.slane %v16534_v7, 3  ;;  %3168 = vrot.lane.b32.xlu1 %v2940_v33, %s11727_s25  ;;  %v3133_v56 = vpop.permute.xlu1 %3132  ;;  %10908 = vmatprep.mubr.msk.bf16.mxu1 %vm334_vm11, %v4533_v11  ;;  %v14069_v26 = vld [vmem:[#allocation2 + $0x40] sm:$0xff]  ;;  %v5027_v34 = vor.u32 %v5026_v17, %v5023_v31  ;;  %v14071_v49 = vor.u32 %v5954_v22, %v5953_v53  ;;  %vm1478_vm15 = vcmp.ge.f32.partialorder %v13910_v30, 0.0 }
 0x283   : > { %v4549_v20 = vrot.slane %v16535_v18, 4  ;;  %v14073_v16 = vrot.slane %v2802_v19, 4  ;;  %3297 = vst.msk [vmem:[#allocation2 + $0x50] sm:$0xff] %vm3289_vm8, %v3133_v56  ;;  %v3729_v32 = vrot.slane %v14069_v26, 4  ;;  %v4571_v58 = vshrl.u32 %v14069_v26, 16  ;;  %v3135_v33 = vpop.permute.xlu0 %3134  ;;  %v14080_v28 = vld [vmem:[#allocation2 + $0x48] sm:$0xff] }
 0x284   : > { %v4574_v43 = vshll.u32 %v14069_v26, 16  ;;  %v4542_v6 = vsel %vm4516_vm12, %v4532_v3, %v4541_v51  ;;  %v14084_v25 = vsel %vm4516_vm12, %v5009_v24, %v5018_v10  ;;  %v14087_v31 = vsel %vm4516_vm12, %v5018_v10, %v5027_v34  ;;  %3298 = vst.msk [vmem:[#allocation2 + $0x58] sm:$0xff] %vm3289_vm8, %v3135_v33 }
 0x285   : > { %v14092_v17 = vsel %vm5728_vm10, %v14010_v9, %v14071_v49  ;;  %v2942_v44 = vsel %vm928_vm0, %v2939_v41, %v14073_v16  ;;  %v16536_v55 = vrot.slane %v13180_v14, 4  ;;  %v3731_v24 = vrot.slane %v14080_v28, 4 }
 0x286   : > { %v14101_v0 = vor.u32 %v4549_v20, %v4546_v29  ;;  %3401 = vrot.lane.b32.xlu0 %v2942_v44, %s11728_s12  ;;  %3085 = vst.msk [vmem:[#allocation2 + $0xf8] sm:$0xff] %vm3058_vm2, %v2942_v44  ;;  %v2386_v2 = vpop.permute.xlu1 %2385  ;;  %v16537_v9 = vshrl.u32 %v13171_v62, 16  ;;  %v4580_v41 = vshrl.u32 %v14080_v28, 16  ;;  %v4583_v53 = vshll.u32 %v14080_v28, 16 }
 0x287   : > { %v3730_v3 = vsel %vm928_vm0, %v16536_v55, %v3729_v32  ;;  %v5757_v22 = vrot.slane %v4571_v58, 4  ;;  %v2720_v19 = vmul.f32 %v2391_v8, %v13995_v59  ;;  %v2719_v11 = vmul.f32 %v2386_v2, %v13998_v57  ;;  %v2401_v18 = vpop.permute.xlu0 %2400  ;;  %v11642_v59 = vld [vmem:[%s16330_s3 + $0x68] sm:$0xff]  }
 0x288   : > { %10793 = vmatmul.mubr.msk.bf16.gmra.mrb[120].mxu0 %vm334_vm11, %v3730_v3  ;;  %v4555_v23 = vrot.slane %v16537_v9, 3  ;;  %v3732_v7 = vsel %vm928_vm0, %v3729_v32, %v3731_v24  ;;  %v5758_v29 = vrot.slane %v4574_v43, 5  ;;  %v16538_v20 = vshll.u32 %v13171_v62, 16  ;;  %v16541_v2 = vld [vmem:[#allocation59_spill] sm:$0xff] }
 0x289   : > { %10796 = vmatprep.mubr.msk.bf16.mxu0 %vm334_vm11, %v3732_v7  ;;  %v16539_v26 = vshrl.u32 %v13180_v14, 16  ;;  %v16540_v34 = vshll.u32 %v13180_v14, 16  ;;  %v5761_v57 = vrot.slane %v4580_v41, 4  ;;  %v2803_v8 = vpack.c.bf16 %v2720_v19, %v2719_v11  ;;  %10909 = vmatmul.mubr.msk.bf16.vlgmr.msra.gmra.mrb[40].mxu1 %vm334_vm11, %v4542_v6 }
 0x28a   : > { %v4558_v56 = vrot.slane %v16538_v20, 4  ;;  %v4551_v32 = vsel %vm4516_vm12, %v4541_v51, %v14101_v0  ;;  %v5759_v55 = vor.u32 %v5758_v29, %v5757_v22  ;;  %v5762_v62 = vrot.slane %v4583_v53, 5  ;;  %3170 = vrot.lane.b32.xlu0 %v2942_v44, %s11727_s25  ;;  %v3368_v51 = vpop.permute.xlu1 %3367  ;;  %11021 = vmatpush3.bf16.msra.mxu1 %v13733_v13  ;;  %v11643_v13 = vld [vmem:[%s16330_s3 + $0x70] sm:$0xff]  }
 0x28b   : > { %v4564_v10 = vrot.slane %v16539_v26, 3  ;;  %v4567_v33 = vrot.slane %v16540_v34, 4  ;;  %v1705_v3 = vsel %vm1476_vm9, %v13914_v54, %v13960_v36  ;;  %vm1479_vm1 = vcmp.ge.f32.partialorder %v13964_v48, 0.0  ;;  %10912 = vmatprep.mubr.msk.bf16.mxu1 %vm334_vm11, %v4551_v32  ;;  %3530 = vst.msk [vmem:[#allocation2 + $0x50] sm:$0xff] %vm3520_vm14, %v3368_v51  ;;  %11022 = vmatprep.subr.bf16.mxu1 %v11642_v59  ;;  %v16542_v20 = vld [vmem:[#allocation60_spill] sm:$0xff] }
 0x28c   : > { %v1596_v14 = vmul.f32 %v13886_v63, %v13964_v48  ;;  %v1706_v6 = vsel %vm1477_vm13, %v13927_v61, %v13973_v50  ;;  %v14143_v9 = vadd.f32 %v13841_v38, %v16541_v2  ;;  %v2943_v54 = vrot.slane %v2803_v8, 4  ;;  %v3370_v50 = vpop.permute.xlu0 %3369 }
 0x28d   : > { %v14149_v36 = vsel %vm5728_vm10, %v13524_v47, %v5759_v55  ;;  %v14151_v22 = vor.u32 %v5762_v62, %v5761_v57  ;;  %v1938_v61 = vadd.f32 %v13978_v60, %v14001_v21  ;;  %v1937_v44 = vadd.f32 %v13978_v60, %v14004_v37  ;;  %3531 = vst.msk [vmem:[#allocation2 + $0x58] sm:$0xff] %vm3520_vm14, %v3370_v50 }
 0x28e   : > { %v4559_v19 = vor.u32 %v4558_v56, %v4555_v23  ;;  %v4568_v11 = vor.u32 %v4567_v33, %v4564_v10  ;;  %v2944_v47 = vsel %vm928_vm0, %v14073_v16, %v2943_v54  ;;  %v4573_v7 = vrot.slane %v4571_v58, 3  ;;  %v2396_v23 = vpop.permute.xlu1 %2395  ;;  %11023 = vmatpush3.bf16.msra.mxu1 %v11642_v59 }
 0x28f   : > { %v4576_v29 = vrot.slane %v4574_v43, 4  ;;  %v14165_v21 = vsel %vm5728_vm10, %v5759_v55, %v14151_v22  ;;  %v14169_v37 = vadd.f32 %v13841_v38, %v16542_v20  ;;  %3403 = vrot.lane.b32.xlu1 %v2944_v47, %s11728_s12  ;;  %3086 = vst.msk [vmem:[#allocation2 + $0x100] sm:$0xff] %vm3058_vm2, %v2944_v47  ;;  %v4582_v56 = vrot.slane %v4580_v41, 3  ;;  %11024 = vmatprep.subr.bf16.mxu1 %v11643_v13 }
 0x290   : > { %v4585_v26 = vrot.slane %v4583_v53, 4  ;;  %v1707_v16 = vsel %vm1478_vm15, %v13910_v30, %v13956_v4  ;;  %v2722_v58 = vmul.f32 %v2401_v18, %v1938_v61  ;;  %v2721_v43 = vmul.f32 %v2396_v23, %v1937_v44  ;;  %v2411_v34 = vpop.permute.xlu0 %2410 }
 0x291   : > { %v1708_v38 = vsel %vm1479_vm1, %v13964_v48, %v1596_v14  ;;  %v1823_v10 = vmul.f32 %v13932_v12, %v1706_v6  ;;  %v4560_v33 = vsel %vm4516_vm12, %v14101_v0, %v4559_v19  ;;  %v1822_v41 = vmul.f32 %v13932_v12, %v1705_v3 }
 0x292   : > { %vm1480_vm4 = vcmp.ge.f32.partialorder %v14143_v9, 0.0  ;;  %v2804_v53 = vpack.c.bf16 %v2722_v58, %v2721_v43  ;;  %10913 = vmatmul.mubr.msk.bf16.gmra.mrb[44].mxu1 %vm334_vm11, %v4560_v33  ;;  %v4569_v30 = vsel %vm4516_vm12, %v4559_v19, %v4568_v11  ;;  %v4577_v4 = vor.u32 %v4576_v29, %v4573_v7  ;;  %v3137_v0 = vpop.permute.xlu1 %3136  ;;  %v3586_v59 = vld [vmem:[#allocation2 + $0x50] sm:$0xff] }
 0x293   : > { %v1597_v48 = vmul.f32 %v13886_v63, %v14143_v9  ;;  %vm1481_vm5 = vcmp.ge.f32.partialorder %v14169_v37, 0.0  ;;  %v1598_v18 = vmul.f32 %v13886_v63, %v14169_v37  ;;  %3172 = vrot.lane.b32.xlu1 %v2944_v47, %s11727_s25  ;;  %10916 = vmatprep.mubr.msk.bf16.mxu1 %vm334_vm11, %v4569_v30  ;;  %v14194_v57 = vor.u32 %v4585_v26, %v4582_v56 }
 0x294   : > { %v2945_v8 = vrot.slane %v2804_v53, 4  ;;  %3299 = vst.msk [vmem:[#allocation2 + $0x60] sm:$0xff] %vm3289_vm8, %v3137_v0  ;;  %v3733_v32 = vrot.slane %v3586_v59, 4  ;;  %v4589_v55 = vshrl.u32 %v3586_v59, 16  ;;  %v4592_v62 = vshll.u32 %v3586_v59, 16  ;;  %11025 = vmatpush3.bf16.msra.mxu1 %v11643_v13  ;;  %v3139_v14 = vpop.permute.xlu0 %3138  ;;  %v14200_v51 = vld [vmem:[#allocation2 + $0x58] sm:$0xff] }
 0x295   : > { %v1940_v3 = vadd.f32 %v13978_v60, %v1823_v10  ;;  %v1939_v63 = vadd.f32 %v13978_v60, %v1822_v41  ;;  %v1825_v6 = vmul.f32 %v13932_v12, %v1708_v38  ;;  %v1824_v2 = vmul.f32 %v13932_v12, %v1707_v16  ;;  %3300 = vst.msk [vmem:[#allocation2 + $0x68] sm:$0xff] %vm3289_vm8, %v3139_v14 }
 0x296   : > { %v2946_v61 = vsel %vm928_vm0, %v2943_v54, %v2945_v8  ;;  %v3734_v50 = vsel %vm928_vm0, %v3731_v24, %v3733_v32  ;;  %v3735_v44 = vrot.slane %v14200_v51, 4  ;;  %v4578_v19 = vsel %vm4516_vm12, %v4568_v11, %v4577_v4  ;;  %v2406_v13 = vpop.permute.xlu1 %2405 }
 0x297   : > { %3405 = vrot.lane.b32.xlu0 %v2946_v61, %s11728_s12  ;;  %3087 = vst.msk [vmem:[#allocation2 + $0x108] sm:$0xff] %vm3058_vm2, %v2946_v61  ;;  %10797 = vmatmul.mubr.msk.bf16.gmra.mrb[124].mxu0 %vm334_vm11, %v3734_v50  ;;  %v4587_v47 = vsel %vm4516_vm12, %v4577_v4, %v14194_v57  ;;  %v4598_v54 = vshrl.u32 %v14200_v51, 16  ;;  %v4601_v28 = vshll.u32 %v14200_v51, 16  ;;  %v5765_v7 = vrot.slane %v4589_v55, 4 }
 0x298   : > { %v2724_v24 = vmul.f32 %v2411_v34, %v1940_v3  ;;  %v2723_v29 = vmul.f32 %v2406_v13, %v1939_v63  ;;  %v3736_v11 = vsel %vm928_vm0, %v3733_v32, %v3735_v44  ;;  %v5766_v20 = vrot.slane %v4592_v62, 5  ;;  %v2421_v23 = vpop.permute.xlu0 %2420 }
 0x299   : > { %10800 = vmatprep.mubr.msk.bf16.mxu0 %vm334_vm11, %v3736_v11  ;;  %v4591_v56 = vrot.slane %v4589_v55, 3  ;;  %v4594_v26 = vrot.slane %v4592_v62, 4  ;;  %v4600_v16 = vrot.slane %v4598_v54, 3  ;;  %v5769_v58 = vrot.slane %v4598_v54, 4 }
 0x29a   : > { %v2805_v43 = vpack.c.bf16 %v2724_v24, %v2723_v29  ;;  %10917 = vmatmul.mubr.msk.bf16.gmra.mrb[48].mxu1 %vm334_vm11, %v4578_v19  ;;  %v4603_v38 = vrot.slane %v4601_v28, 4  ;;  %v5767_v10 = vor.u32 %v5766_v20, %v5765_v7  ;;  %v5770_v33 = vrot.slane %v4601_v28, 5  ;;  %v3372_v34 = vpop.permute.xlu1 %3371 }
 0x29b   : > { %3174 = vrot.lane.b32.xlu0 %v2946_v61, %s11727_s25  ;;  %10920 = vmatprep.mubr.msk.bf16.mxu1 %vm334_vm11, %v4587_v47  ;;  %3532 = vst.msk [vmem:[#allocation2 + $0x60] sm:$0xff] %vm3520_vm14, %v3372_v34  ;;  %v1709_v4 = vsel %vm1480_vm4, %v14143_v9, %v1597_v48  ;;  %v1710_v0 = vsel %vm1481_vm5, %v14169_v37, %v1598_v18 }
 0x29c   : > { %v2947_v41 = vrot.slane %v2805_v43, 4  ;;  %v14227_v53 = vsel %vm5728_vm10, %v14151_v22, %v5767_v10  ;;  %v14229_v30 = vor.u32 %v5770_v33, %v5769_v58  ;;  %v1942_v59 = vadd.f32 %v13978_v60, %v1825_v6  ;;  %v3374_v32 = vpop.permute.xlu0 %3373 }
 0x29d   : > { %v4595_v55 = vor.u32 %v4594_v26, %v4591_v56  ;;  %3533 = vst.msk [vmem:[#allocation2 + $0x68] sm:$0xff] %vm3520_vm14, %v3374_v32  ;;  %v1941_v22 = vadd.f32 %v13978_v60, %v1824_v2  ;;  %v4604_v3 = vor.u32 %v4603_v38, %v4600_v16  ;;  %v1827_v18 = vmul.f32 %v13932_v12, %v1710_v0 }
 0x29e   : > { %v2948_v62 = vsel %vm928_vm0, %v2945_v8, %v2947_v41  ;;  %v14243_v14 = vsel %vm5728_vm10, %v5767_v10, %v14229_v30  ;;  %v2416_v9 = vpop.permute.xlu1 %2415  ;;  %v2726_v37 = vmul.f32 %v2421_v23, %v1942_v59  ;;  %v1826_v6 = vmul.f32 %v13932_v12, %v1709_v4 }
 0x29f   : > { %3407 = vrot.lane.b32.xlu1 %v2948_v62, %s11728_s12  ;;  %3088 = vst.msk [vmem:[#allocation2 + $0x110] sm:$0xff] %vm3058_vm2, %v2948_v62  ;;  %v2725_v48 = vmul.f32 %v2416_v9, %v1941_v22  ;;  %v4596_v8 = vsel %vm4516_vm12, %v14194_v57, %v4595_v55  ;;  %v4605_v61 = vsel %vm4516_vm12, %v4595_v55, %v4604_v3 }
 0x2a0   : > { %v2431_v63 = vpop.permute.xlu0 %2430  ;;  %v1944_v57 = vadd.f32 %v13978_v60, %v1827_v18  ;;  %v1943_v7 = vadd.f32 %v13978_v60, %v1826_v6  ;;  %v11644_v6 = vld [vmem:[%s16330_s3 + $0x78] sm:$0xff]  }
 0x2a1   : > { %v2806_v2 = vpack.c.bf16 %v2726_v37, %v2725_v48  ;;  %11026 = vmatprep.subr.bf16.mxu1 %v11644_v6 }
 0x2a2   : > { %10921 = vmatmul.mubr.msk.bf16.gmra.mrb[52].mxu1 %vm334_vm11, %v4596_v8  ;;  %v3141_v50 = vpop.permute.xlu1 %3140  ;;  %v3588_v19 = vld [vmem:[#allocation2 + $0x60] sm:$0xff]  ;;  %v2728_v43 = vmul.f32 %v2431_v63, %v1944_v57 }
 0x2a3   : > { %3176 = vrot.lane.b32.xlu1 %v2948_v62, %s11727_s25  ;;  %10924 = vmatprep.mubr.msk.bf16.mxu1 %vm334_vm11, %v4605_v61  ;;  %v2949_v13 = vrot.slane %v2806_v2, 4  ;;  %3301 = vst.msk [vmem:[#allocation2 + $0x70] sm:$0xff] %vm3289_vm8, %v3141_v50  ;;  %v3737_v47 = vrot.slane %v3588_v19, 4  ;;  %v4607_v54 = vshrl.u32 %v3588_v19, 16  ;;  %v4610_v28 = vshll.u32 %v3588_v19, 16 }
 0x2a4   : > { %v3143_v12 = vpop.permute.xlu0 %3142  ;;  %v14258_v24 = vld [vmem:[#allocation2 + $0x68] sm:$0xff]  ;;  %11027 = vmatpush3.bf16.msra.mxu1 %v11644_v6 }
 0x2a5   : > { %3302 = vst.msk [vmem:[#allocation2 + $0x78] sm:$0xff] %vm3289_vm8, %v3143_v12  ;;  %v2950_v29 = vsel %vm928_vm0, %v2947_v41, %v2949_v13  ;;  %v3738_v11 = vsel %vm928_vm0, %v3735_v44, %v3737_v47  ;;  %v3739_v20 = vrot.slane %v14258_v24, 4  ;;  %v4609_v23 = vrot.slane %v4607_v54, 3 }
 0x2a6   : > { %3409 = vrot.lane.b32.xlu0 %v2950_v29, %s11728_s12  ;;  %3089 = vst.msk [vmem:[#allocation2 + $0x118] sm:$0xff] %vm3058_vm2, %v2950_v29  ;;  %v2426_v56 = vpop.permute.xlu1 %2425  ;;  %10801 = vmatmul.mubr.msk.bf16.gmra.mrb[128].mxu0 %vm334_vm11, %v3738_v11  ;;  %v4612_v60 = vrot.slane %v4610_v28, 4  ;;  %v4616_v26 = vshrl.u32 %v14258_v24, 16  ;;  %v4619_v16 = vshll.u32 %v14258_v24, 16  ;;  %v5773_v58 = vrot.slane %v4607_v54, 4 }
 0x2a7   : > { %v2727_v51 = vmul.f32 %v2426_v56, %v1943_v7  ;;  %v3740_v44 = vsel %vm928_vm0, %v3737_v47, %v3739_v20  ;;  %v5774_v38 = vrot.slane %v4610_v28, 5 }
 0x2a8   : > { %v3378_v10 = vpop.permute.xlu0 %3377  ;;  %10804 = vmatprep.mubr.msk.bf16.mxu0 %vm334_vm11, %v3740_v44  ;;  %v4613_v33 = vor.u32 %v4612_v60, %v4609_v23  ;;  %v4618_v34 = vrot.slane %v4616_v26, 3  ;;  %v4621_v41 = vrot.slane %v4619_v16, 4  ;;  %v5777_v4 = vrot.slane %v4616_v26, 4 }
 0x2a9   : > { %v2807_v0 = vpack.c.bf16 %v2728_v43, %v2727_v51  ;;  %3535 = vst.msk [vmem:[#allocation2 + $0x78] sm:$0xff] %vm3520_vm14, %v3378_v10  ;;  %v5775_v59 = vor.u32 %v5774_v38, %v5773_v58  ;;  %v5778_v32 = vrot.slane %v4619_v16, 5 }
 0x2aa   : > { %3178 = vrot.lane.b32.xlu0 %v2950_v29, %s11727_s25  ;;  %v3376_v55 = vpop.permute.xlu1 %3375  ;;  %v4614_v62 = vsel %vm4516_vm12, %v4604_v3, %v4613_v33  ;;  %v4622_v22 = vor.u32 %v4621_v41, %v4618_v34 }
 0x2ab   : > { %v2951_v9 = vrot.slane %v2807_v0, 4  ;;  %3534 = vst.msk [vmem:[#allocation2 + $0x70] sm:$0xff] %vm3520_vm14, %v3376_v55  ;;  %10925 = vmatmul.mubr.msk.bf16.gmra.mrb[56].mxu1 %vm334_vm11, %v4614_v62  ;;  %v14282_v37 = vsel %vm5728_vm10, %v14229_v30, %v5775_v59  ;;  %v14284_v48 = vor.u32 %v5778_v32, %v5777_v4 }
 0x2ac   : > { %v3147_v18 = vpop.permute.xlu0 %3146  ;;  %v4623_v63 = vsel %vm4516_vm12, %v4613_v33, %v4622_v22 }
 0x2ad   : > { %3304 = vst.msk [vmem:[#allocation2 + $0x88] sm:$0xff] %vm3289_vm8, %v3147_v18  ;;  %v2954_v3 = vsel %vm928_vm0, %v2951_v9, %v13162_v42  ;;  %v2952_v8 = vsel %vm928_vm0, %v2949_v13, %v2951_v9  ;;  %10928 = vmatprep.mubr.msk.bf16.mxu1 %vm334_vm11, %v4623_v63  ;;  %v14297_v30 = vsel %vm5728_vm10, %v5775_v59, %v14284_v48 }
 0x2ae   : > { %3413 = vrot.lane.b32.xlu0 %v2954_v3, %s11728_s12  ;;  %3091 = vst.msk [vmem:[#allocation2 + $0x128] sm:$0xff] %vm3058_vm2, %v2954_v3  ;;  %3411 = vrot.lane.b32.xlu1 %v2952_v8, %s11728_s12  ;;  %3090 = vst.msk [vmem:[#allocation2 + $0x120] sm:$0xff] %vm3058_vm2, %v2952_v8  ;;  %v3145_v42 = vpop.permute.xlu1 %3144 }
 0x2af   : > { %3303 = vst.msk [vmem:[#allocation2 + $0x80] sm:$0xff] %vm3289_vm8, %v3145_v42 }
 0x2b0   : > { %v3382_v2 = vpop.permute.xlu0 %3381  ;;  %v14304_v61 = vld [vmem:[#allocation2 + $0x78] sm:$0xff] }
 0x2b1   : > { %3537 = vst.msk [vmem:[#allocation2 + $0x88] sm:$0xff] %vm3520_vm14, %v3382_v2  ;;  %v3743_v50 = vrot.slane %v14304_v61, 4  ;;  %v4634_v19 = vshrl.u32 %v14304_v61, 16  ;;  %v4637_v13 = vshll.u32 %v14304_v61, 16 }
 0x2b2   : > { %3182 = vrot.lane.b32.xlu0 %v2954_v3, %s11727_s25  ;;  %3180 = vrot.lane.b32.xlu1 %v2952_v8, %s11727_s25  ;;  %v3380_v47 = vpop.permute.xlu1 %3379  ;;  %v3590_v54 = vld [vmem:[#allocation2 + $0x70] sm:$0xff] }
 0x2b3   : > { %3536 = vst.msk [vmem:[#allocation2 + $0x80] sm:$0xff] %vm3520_vm14, %v3380_v47  ;;  %v3741_v28 = vrot.slane %v3590_v54, 4  ;;  %v4625_v57 = vshrl.u32 %v3590_v54, 16  ;;  %v4628_v12 = vshll.u32 %v3590_v54, 16  ;;  %v4636_v7 = vrot.slane %v4634_v19, 3  ;;  %v16543_v47 = vld [vmem:[#allocation6_spill] sm:$0xff] }
 0x2b4   : > { %v3151_v29 = vpop.permute.xlu0 %3150  ;;  %v4639_v11 = vrot.slane %v4637_v13, 4  ;;  %v5785_v23 = vrot.slane %v4634_v19, 4  ;;  %v5786_v56 = vrot.slane %v4637_v13, 5 }
 0x2b5   : > { %3306 = vst.msk [vmem:[#allocation2 + $0x98] sm:$0xff] %vm3289_vm8, %v3151_v29  ;;  %v3742_v60 = vsel %vm928_vm0, %v3739_v20, %v3741_v28  ;;  %v3744_v26 = vsel %vm928_vm0, %v3741_v28, %v3743_v50  ;;  %v4627_v16 = vrot.slane %v4625_v57, 3  ;;  %v4630_v58 = vrot.slane %v4628_v12, 4 }
 0x2b6   : > { %3417 = vrot.lane.b32.xlu0 %v13455_v1, %s11728_s12  ;;  %3415 = vrot.lane.b32.xlu1 %v13450_v40, %s11728_s12  ;;  %v3149_v43 = vpop.permute.xlu1 %3148  ;;  %v4640_v51 = vor.u32 %v4639_v11, %v4636_v7  ;;  %v5781_v44 = vrot.slane %v4625_v57, 4  ;;  %v5782_v38 = vrot.slane %v4628_v12, 5  ;;  %v14322_v10 = vor.u32 %v5786_v56, %v5785_v23 }
 0x2b7   : > { %3305 = vst.msk [vmem:[#allocation2 + $0x90] sm:$0xff] %vm3289_vm8, %v3149_v43  ;;  %10805 = vmatmul.mubr.msk.bf16.gmra.mrb[132].mxu0 %vm334_vm11, %v3742_v60  ;;  %v4631_v24 = vor.u32 %v4630_v58, %v4627_v16  ;;  %v16544_v43 = vld [vmem:[#allocation8_spill] sm:$0xff] }
 0x2b8   : > { %10808 = vmatprep.mubr.msk.bf16.mxu0 %vm334_vm11, %v3744_v26  ;;  %v3386_v20 = vpop.permute.xlu0 %3385  ;;  %v14327_v33 = vld [vmem:[#allocation2 + $0x88] sm:$0xff]  ;;  %v5783_v34 = vor.u32 %v5782_v38, %v5781_v44 }
 0x2b9   : > { %3539 = vst.msk [vmem:[#allocation2 + $0x98] sm:$0xff] %vm3520_vm14, %v3386_v20  ;;  %v4632_v41 = vsel %vm4516_vm12, %v4622_v22, %v4631_v24  ;;  %v4641_v4 = vsel %vm4516_vm12, %v4631_v24, %v4640_v51  ;;  %v3747_v0 = vrot.slane %v14327_v33, 4  ;;  %v4652_v59 = vshrl.u32 %v14327_v33, 16 }
 0x2ba   : > { %3186 = vrot.lane.b32.xlu0 %v13455_v1, %s11727_s25  ;;  %3184 = vrot.lane.b32.xlu1 %v13450_v40, %s11727_s25  ;;  %v3384_v32 = vpop.permute.xlu1 %3383  ;;  %v3592_v55 = vld [vmem:[#allocation2 + $0x80] sm:$0xff]  ;;  %v4655_v62 = vshll.u32 %v14327_v33, 16  ;;  %v14341_v9 = vsel %vm5728_vm10, %v14284_v48, %v5783_v34  ;;  %v14345_v22 = vsel %vm5728_vm10, %v5783_v34, %v14322_v10  ;;  %v7712_v33 = vld [vmem:[%s16335_s8 + $0x30] sm:$0xff] }
 0x2bb   : > { %3538 = vst.msk [vmem:[#allocation2 + $0x90] sm:$0xff] %vm3520_vm14, %v3384_v32  ;;  %10929 = vmatmul.mubr.msk.bf16.gmra.mrb[60].mxu1 %vm334_vm11, %v4632_v41  ;;  %v7706_v40 = vld [vmem:[%s16335_s8] sm:$0xff]  ;;  %v3745_v1 = vrot.slane %v3592_v55, 4  ;;  %v4643_v18 = vshrl.u32 %v3592_v55, 16  ;;  %v4646_v63 = vshll.u32 %v3592_v55, 16  ;;  %v4654_v3 = vrot.slane %v4652_v59, 3 }
 0x2bc   : > { %10932 = vmatprep.mubr.msk.bf16.mxu1 %vm334_vm11, %v4641_v4  ;;  %v3155_v48 = vpop.permute.xlu0 %3154  ;;  %v4657_v8 = vrot.slane %v4655_v62, 4  ;;  %v5793_v6 = vrot.slane %v4652_v59, 4  ;;  %v5794_v42 = vrot.slane %v4655_v62, 5  ;;  %v7710_v34 = vld [vmem:[%s16335_s8 + $0x20] sm:$0xff]  ;;  %v7707_v41 = vld [vmem:[%s16335_s8 + $0x8] sm:$0xff] }
 0x2bd   : > { %3308 = vst.msk [vmem:[#allocation2 + $0xa8] sm:$0xff] %vm3289_vm8, %v3155_v48  ;;  %v3746_v2 = vsel %vm928_vm0, %v3743_v50, %v3745_v1  ;;  %v3748_v61 = vsel %vm928_vm0, %v3745_v1, %v3747_v0  ;;  %v4645_v19 = vrot.slane %v4643_v18, 3  ;;  %v4648_v13 = vrot.slane %v4646_v63, 4  ;;  %v7708_v50 = vld [vmem:[%s16335_s8 + $0x10] sm:$0xff] }
 0x2be   : > { %7736 = vperm.xlu0 %11570, %v7706_v40   ;;  %3419 = vrot.lane.b32.xlu1 %v16543_v47, %s11728_s12  ;;  %v3153_v54 = vpop.permute.xlu1 %3152  ;;  %v4658_v28 = vor.u32 %v4657_v8, %v4654_v3  ;;  %v5789_v57 = vrot.slane %v4643_v18, 4  ;;  %v5790_v12 = vrot.slane %v4646_v63, 5  ;;  %v14360_v7 = vor.u32 %v5794_v42, %v5793_v6 }
 0x2bf   : > { %3307 = vst.msk [vmem:[#allocation2 + $0xa0] sm:$0xff] %vm3289_vm8, %v3153_v54  ;;  %10809 = vmatmul.mubr.msk.bf16.gmra.mrb[136].mxu0 %vm334_vm11, %v3746_v2  ;;  %v4649_v29 = vor.u32 %v4648_v13, %v4645_v19 }
 0x2c0   : > { %10812 = vmatprep.mubr.msk.bf16.mxu0 %vm334_vm11, %v3748_v61  ;;  %v3390_v11 = vpop.permute.xlu0 %3389  ;;  %v14368_v23 = vld [vmem:[#allocation2 + $0x98] sm:$0xff]  ;;  %v5791_v56 = vor.u32 %v5790_v12, %v5789_v57 }
 0x2c1   : > { %3541 = vst.msk [vmem:[#allocation2 + $0xa8] sm:$0xff] %vm3520_vm14, %v3390_v11  ;;  %v4650_v60 = vsel %vm4516_vm12, %v4640_v51, %v4649_v29  ;;  %v4659_v26 = vsel %vm4516_vm12, %v4649_v29, %v4658_v28  ;;  %v3751_v16 = vrot.slane %v14368_v23, 4  ;;  %v4670_v58 = vshrl.u32 %v14368_v23, 16 }
 0x2c2   : > { %7746 = vperm.xlu0 %11570, %v7708_v50   ;;  %3421 = vrot.lane.b32.xlu1 %v16544_v43, %s11728_s12  ;;  %v3388_v44 = vpop.permute.xlu1 %3387  ;;  %v3594_v38 = vld [vmem:[#allocation2 + $0x90] sm:$0xff]  ;;  %v4673_v24 = vshll.u32 %v14368_v23, 16  ;;  %v14380_v20 = vsel %vm5728_vm10, %v14322_v10, %v5791_v56  ;;  %v14384_v51 = vsel %vm5728_vm10, %v5791_v56, %v14360_v7  ;;  %v7711_v43 = vld [vmem:[%s16335_s8 + $0x28] sm:$0xff] }
 0x2c3   : > { %3540 = vst.msk [vmem:[#allocation2 + $0xa0] sm:$0xff] %vm3520_vm14, %v3388_v44  ;;  %10933 = vmatmul.mubr.msk.bf16.gmra.mrb[64].mxu1 %vm334_vm11, %v4650_v60  ;;  %v3749_v4 = vrot.slane %v3594_v38, 4  ;;  %v4661_v59 = vshrl.u32 %v3594_v38, 16  ;;  %v4664_v10 = vshll.u32 %v3594_v38, 16  ;;  %v4672_v32 = vrot.slane %v4670_v58, 3  ;;  %v7716_v23 = vld [vmem:[%s16335_s8 + $0x50] sm:$0xff] }
 0x2c4   : > { %10936 = vmatprep.mubr.msk.bf16.mxu1 %vm334_vm11, %v4659_v26  ;;  %v3159_v55 = vpop.permute.xlu0 %3158  ;;  %v4675_v62 = vrot.slane %v4673_v24, 4  ;;  %v5801_v40 = vrot.slane %v4670_v58, 4  ;;  %v5802_v1 = vrot.slane %v4673_v24, 5 }
 0x2c5   : > { %3310 = vst.msk [vmem:[#allocation2 + $0xb8] sm:$0xff] %vm3289_vm8, %v3159_v55  ;;  %v3750_v18 = vsel %vm928_vm0, %v3747_v0, %v3749_v4  ;;  %v3752_v63 = vsel %vm928_vm0, %v3749_v4, %v3751_v16  ;;  %v4663_v3 = vrot.slane %v4661_v59, 3  ;;  %v4666_v48 = vrot.slane %v4664_v10, 4  ;;  %v7709_v0 = vld [vmem:[%s16335_s8 + $0x18] sm:$0xff] }
 0x2c6   : > { %7756 = vperm.xlu0 %11570, %v7710_v34   ;;  %7741 = vperm.xlu1 %11571, %v7707_v41   ;;  %v3157_v8 = vpop.permute.xlu1 %3156  ;;  %v4676_v6 = vor.u32 %v4675_v62, %v4672_v32  ;;  %v5797_v42 = vrot.slane %v4661_v59, 4  ;;  %v5798_v2 = vrot.slane %v4664_v10, 5  ;;  %v14402_v61 = vor.u32 %v5802_v1, %v5801_v40 }
 0x2c7   : > { %3309 = vst.msk [vmem:[#allocation2 + $0xb0] sm:$0xff] %vm3289_vm8, %v3157_v8  ;;  %10813 = vmatmul.mubr.msk.bf16.gmra.mrb[140].mxu0 %vm334_vm11, %v3750_v18  ;;  %v4667_v19 = vor.u32 %v4666_v48, %v4663_v3 }
 0x2c8   : > { %10816 = vmatprep.mubr.msk.bf16.mxu0 %vm334_vm11, %v3752_v63  ;;  %v3394_v13 = vpop.permute.xlu0 %3393  ;;  %v14413_v47 = vld [vmem:[#allocation2 + $0xa8] sm:$0xff]  ;;  %v5799_v54 = vor.u32 %v5798_v2, %v5797_v42 }
 0x2c9   : > { %3543 = vst.msk [vmem:[#allocation2 + $0xb8] sm:$0xff] %vm3520_vm14, %v3394_v13  ;;  %v4668_v57 = vsel %vm4516_vm12, %v4658_v28, %v4667_v19  ;;  %v4677_v12 = vsel %vm4516_vm12, %v4667_v19, %v4676_v6  ;;  %v3755_v50 = vrot.slane %v14413_v47, 4  ;;  %v4688_v29 = vshrl.u32 %v14413_v47, 16  ;;  %v7714_v28 = vld [vmem:[%s16335_s8 + $0x40] sm:$0xff] }
 0x2ca   : > { %7766 = vperm.xlu0 %11570, %v7712_v33   ;;  %7751 = vperm.xlu1 %11571, %v7709_v0   ;;  %v3392_v11 = vpop.permute.xlu1 %3391  ;;  %v3596_v56 = vld [vmem:[#allocation2 + $0xa0] sm:$0xff]  ;;  %v4691_v60 = vshll.u32 %v14413_v47, 16  ;;  %v14423_v26 = vsel %vm5728_vm10, %v14360_v7, %v5799_v54  ;;  %v14427_v58 = vsel %vm5728_vm10, %v5799_v54, %v14402_v61  ;;  %v7720_v47 = vld [vmem:[%s16335_s8 + $0x70] sm:$0xff] }
 0x2cb   : > { %3542 = vst.msk [vmem:[#allocation2 + $0xb0] sm:$0xff] %vm3520_vm14, %v3392_v11  ;;  %10937 = vmatmul.mubr.msk.bf16.gmra.mrb[68].mxu1 %vm334_vm11, %v4668_v57  ;;  %v3753_v44 = vrot.slane %v3596_v56, 4  ;;  %v4679_v38 = vshrl.u32 %v3596_v56, 16  ;;  %v4682_v7 = vshll.u32 %v3596_v56, 16  ;;  %v4690_v24 = vrot.slane %v4688_v29, 3  ;;  %v11645_v54 = vld [vmem:[%s16330_s3 + $0x80] sm:$0xff]  }
 0x2cc   : > { %10940 = vmatprep.mubr.msk.bf16.mxu1 %vm334_vm11, %v4677_v12  ;;  %v3163_v34 = vpop.permute.xlu0 %3162  ;;  %v4693_v41 = vrot.slane %v4691_v60, 4  ;;  %v5809_v4 = vrot.slane %v4688_v29, 4  ;;  %v5810_v59 = vrot.slane %v4691_v60, 5  ;;  %v7718_v56 = vld [vmem:[%s16335_s8 + $0x60] sm:$0xff]  ;;  %v7715_v60 = vld [vmem:[%s16335_s8 + $0x48] sm:$0xff]  ;;  %11028 = vmatprep.subr.bf16.mxu1 %v11645_v54 }
 0x2cd   : > { %3312 = vst.msk [vmem:[#allocation2 + $0xc8] sm:$0xff] %vm3289_vm8, %v3163_v34  ;;  %v3754_v10 = vsel %vm928_vm0, %v3751_v16, %v3753_v44  ;;  %v3756_v32 = vsel %vm928_vm0, %v3753_v44, %v3755_v50  ;;  %v4681_v55 = vrot.slane %v4679_v38, 3  ;;  %v4684_v62 = vrot.slane %v4682_v7, 4  ;;  %v7713_v16 = vld [vmem:[%s16335_s8 + $0x38] sm:$0xff]  ;;  %11029 = vmatpush3.bf16.msra.mxu1 %v11645_v54 }
 0x2ce   : > { %7776 = vperm.xlu0 %11570, %v7714_v28   ;;  %7761 = vperm.xlu1 %11571, %v7711_v43   ;;  %v3161_v40 = vpop.permute.xlu1 %3160  ;;  %v4694_v1 = vor.u32 %v4693_v41, %v4690_v24  ;;  %v5805_v18 = vrot.slane %v4679_v38, 4  ;;  %v5806_v63 = vrot.slane %v4682_v7, 5  ;;  %v14445_v3 = vor.u32 %v5810_v59, %v5809_v4 }
 0x2cf   : > { %3311 = vst.msk [vmem:[#allocation2 + $0xc0] sm:$0xff] %vm3289_vm8, %v3161_v40  ;;  %10817 = vmatmul.mubr.msk.bf16.gmra.mrb[144].mxu0 %vm334_vm11, %v3754_v10  ;;  %v4685_v48 = vor.u32 %v4684_v62, %v4681_v55 }
 0x2d0   : > { %10820 = vmatprep.mubr.msk.bf16.mxu0 %vm334_vm11, %v3756_v32  ;;  %v3398_v8 = vpop.permute.xlu0 %3397  ;;  %v14456_v42 = vld [vmem:[#allocation2 + $0xb8] sm:$0xff]  ;;  %v5807_v2 = vor.u32 %v5806_v63, %v5805_v18 }
 0x2d1   : > { %3545 = vst.msk [vmem:[#allocation2 + $0xc8] sm:$0xff] %vm3520_vm14, %v3398_v8  ;;  %v4686_v33 = vsel %vm4516_vm12, %v4676_v6, %v4685_v48  ;;  %v4695_v0 = vsel %vm4516_vm12, %v4685_v48, %v4694_v1  ;;  %v3759_v19 = vrot.slane %v14456_v42, 4  ;;  %v4706_v13 = vshrl.u32 %v14456_v42, 16 }
 0x2d2   : > { %7786 = vperm.xlu0 %11570, %v7716_v23   ;;  %7771 = vperm.xlu1 %11571, %v7713_v16   ;;  %v3396_v57 = vpop.permute.xlu1 %3395  ;;  %v3598_v12 = vld [vmem:[#allocation2 + $0xb0] sm:$0xff]  ;;  %v4709_v29 = vshll.u32 %v14456_v42, 16  ;;  %v14469_v11 = vsel %vm5728_vm10, %v14402_v61, %v5807_v2  ;;  %v14473_v6 = vsel %vm5728_vm10, %v5807_v2, %v14445_v3 }
 0x2d3   : > { %3544 = vst.msk [vmem:[#allocation2 + $0xc0] sm:$0xff] %vm3520_vm14, %v3396_v57  ;;  %10941 = vmatmul.mubr.msk.bf16.gmra.mrb[72].mxu1 %vm334_vm11, %v4686_v33  ;;  %v3757_v28 = vrot.slane %v3598_v12, 4  ;;  %v4697_v43 = vshrl.u32 %v3598_v12, 16  ;;  %v4700_v61 = vshll.u32 %v3598_v12, 16  ;;  %v4708_v44 = vrot.slane %v4706_v13, 3  ;;  %v7719_v12 = vld [vmem:[%s16335_s8 + $0x68] sm:$0xff] }
 0x2d4   : > { %10944 = vmatprep.mubr.msk.bf16.mxu1 %vm334_vm11, %v4695_v0  ;;  %v3167_v38 = vpop.permute.xlu0 %3166  ;;  %v4711_v7 = vrot.slane %v4709_v29, 4  ;;  %v5817_v24 = vrot.slane %v4706_v13, 4  ;;  %v5818_v34 = vrot.slane %v4709_v29, 5  ;;  %v7724_v42 = vld [vmem:[%s16335_s8 + $0x90] sm:$0xff] }
 0x2d5   : > { %3314 = vst.msk [vmem:[#allocation2 + $0xd8] sm:$0xff] %vm3289_vm8, %v3167_v38  ;;  %v3758_v41 = vsel %vm928_vm0, %v3755_v50, %v3757_v28  ;;  %v3760_v4 = vsel %vm928_vm0, %v3757_v28, %v3759_v19  ;;  %v4699_v59 = vrot.slane %v4697_v43, 3  ;;  %v4702_v10 = vrot.slane %v4700_v61, 4  ;;  %v7717_v50 = vld [vmem:[%s16335_s8 + $0x58] sm:$0xff] }
 0x2d6   : > { %7796 = vperm.xlu0 %11570, %v7718_v56   ;;  %7781 = vperm.xlu1 %11571, %v7715_v60   ;;  %v3165_v32 = vpop.permute.xlu1 %3164  ;;  %v4712_v55 = vor.u32 %v4711_v7, %v4708_v44  ;;  %v5813_v62 = vrot.slane %v4697_v43, 4  ;;  %v5814_v40 = vrot.slane %v4700_v61, 5  ;;  %v5819_v18 = vor.u32 %v5818_v34, %v5817_v24 }
 0x2d7   : > { %3313 = vst.msk [vmem:[#allocation2 + $0xd0] sm:$0xff] %vm3289_vm8, %v3165_v32  ;;  %10821 = vmatmul.mubr.msk.bf16.gmra.mrb[148].mxu0 %vm334_vm11, %v3758_v41  ;;  %v4703_v63 = vor.u32 %v4702_v10, %v4699_v59 }
 0x2d8   : > { %10824 = vmatprep.mubr.msk.bf16.mxu0 %vm334_vm11, %v3760_v4  ;;  %v14500_v23 = vld [vmem:[#allocation2 + $0xc8] sm:$0xff]  ;;  %v5815_v16 = vor.u32 %v5814_v40, %v5813_v62 }
 0x2d9   : > { %v4704_v48 = vsel %vm4516_vm12, %v4694_v1, %v4703_v63  ;;  %v4713_v8 = vsel %vm4516_vm12, %v4703_v63, %v4712_v55  ;;  %v3763_v2 = vrot.slane %v14500_v23, 4  ;;  %v4724_v33 = vshrl.u32 %v14500_v23, 16  ;;  %v7722_v1 = vld [vmem:[%s16335_s8 + $0x80] sm:$0xff] }
 0x2da   : > { %7806 = vperm.xlu0 %11570, %v7720_v47   ;;  %7791 = vperm.xlu1 %11571, %v7717_v50   ;;  %v3600_v0 = vld [vmem:[#allocation2 + $0xc0] sm:$0xff]  ;;  %v4727_v13 = vshll.u32 %v14500_v23, 16  ;;  %v14509_v54 = vsel %vm5728_vm10, %v14445_v3, %v5815_v16  ;;  %v14512_v57 = vsel %vm5728_vm10, %v5815_v16, %v5819_v18  ;;  %v7725_v16 = vld [vmem:[%s16335_s8 + $0x98] sm:$0xff] }
 0x2db   : > { %10945 = vmatmul.mubr.msk.bf16.gmra.mrb[76].mxu1 %vm334_vm11, %v4704_v48  ;;  %v3761_v29 = vrot.slane %v3600_v0, 4  ;;  %v4715_v56 = vshrl.u32 %v3600_v0, 16  ;;  %v4718_v60 = vshll.u32 %v3600_v0, 16  ;;  %v4726_v28 = vrot.slane %v4724_v33, 3  ;;  %v7726_v63 = vld [vmem:[%s16335_s8 + $0xa0] sm:$0xff]  ;;  %v7729_v0 = vld [vmem:[%s16335_s8 + $0xb8] sm:$0xff] }
 0x2dc   : > { %10948 = vmatprep.mubr.msk.bf16.mxu1 %vm334_vm11, %v4713_v8  ;;  %v4729_v3 = vrot.slane %v4727_v13, 4  ;;  %v5825_v43 = vrot.slane %v4724_v33, 4  ;;  %v5826_v61 = vrot.slane %v4727_v13, 5  ;;  %v7730_v48 = vld [vmem:[%s16335_s8 + $0xc0] sm:$0xff]  ;;  %v7727_v8 = vld [vmem:[%s16335_s8 + $0xa8] sm:$0xff]  ;;  %v7732_v33 = vld [vmem:[%s16335_s8 + $0xd0] sm:$0xff] }
 0x2dd   : > { %v3762_v44 = vsel %vm928_vm0, %v3759_v19, %v3761_v29  ;;  %v3764_v38 = vsel %vm928_vm0, %v3761_v29, %v3763_v2  ;;  %v4717_v7 = vrot.slane %v4715_v56, 3  ;;  %v4720_v24 = vrot.slane %v4718_v60, 4  ;;  %v7721_v19 = vld [vmem:[%s16335_s8 + $0x78] sm:$0xff] }
 0x2de   : > { %7816 = vperm.xlu0 %11570, %v7722_v1   ;;  %7801 = vperm.xlu1 %11571, %v7719_v12   ;;  %v4730_v34 = vor.u32 %v4729_v3, %v4726_v28  ;;  %v5821_v41 = vrot.slane %v4715_v56, 4  ;;  %v5822_v4 = vrot.slane %v4718_v60, 5  ;;  %v14528_v59 = vor.u32 %v5826_v61, %v5825_v43  ;;  %v7731_v1 = vld [vmem:[%s16335_s8 + $0xc8] sm:$0xff]  ;;  %v7733_v29 = vld [vmem:[%s16335_s8 + $0xd8] sm:$0xff] }
 0x2df   : > { %10825 = vmatmul.mubr.msk.bf16.gmra.mrb[152].mxu0 %vm334_vm11, %v3762_v44  ;;  %v4721_v10 = vor.u32 %v4720_v24, %v4717_v7  ;;  %v11646_v61 = vld [vmem:[%s16330_s3 + $0x88] sm:$0xff]  }
 0x2e0   : > { %10828 = vmatprep.mubr.msk.bf16.mxu0 %vm334_vm11, %v3764_v38  ;;  %v5823_v32 = vor.u32 %v5822_v4, %v5821_v41  ;;  %11030 = vmatprep.subr.bf16.mxu1 %v11646_v61 }
 0x2e1   : > { %v4722_v62 = vsel %vm4516_vm12, %v4712_v55, %v4721_v10  ;;  %v4731_v40 = vsel %vm4516_vm12, %v4721_v10, %v4730_v34  ;;  %v7723_v55 = vld [vmem:[%s16335_s8 + $0x88] sm:$0xff]  ;;  %11031 = vmatpush3.bf16.msra.mxu1 %v11646_v61 }
 0x2e2   : > { %7826 = vperm.xlu0 %11570, %v7724_v42   ;;  %7811 = vperm.xlu1 %11571, %v7721_v19   ;;  %v14541_v47 = vsel %vm5728_vm10, %v5819_v18, %v5823_v32  ;;  %v14545_v50 = vsel %vm5728_vm10, %v5823_v32, %v14528_v59  ;;  %v7728_v18 = vld [vmem:[%s16335_s8 + $0xb0] sm:$0xff] }
 0x2e3   : > { %10949 = vmatmul.mubr.msk.bf16.gmra.mrb[80].mxu1 %vm334_vm11, %v4722_v62 }
 0x2e4   : > { %10952 = vmatprep.mubr.msk.bf16.mxu1 %vm334_vm11, %v4731_v40 }
 0x2e6   : > { %7836 = vperm.xlu0 %11570, %v7726_v63   ;;  %7821 = vperm.xlu1 %11571, %v7723_v55  }
 0x2ea   : > { %7846 = vperm.xlu0 %11570, %v7728_v18   ;;  %7831 = vperm.xlu1 %11571, %v7725_v16  }
 0x2ee   : > { %7856 = vperm.xlu0 %11570, %v7730_v48   ;;  %7841 = vperm.xlu1 %11571, %v7727_v8  }
 0x2f0   : > { %v3400_v13 = vpop.permute.xlu1 %3399 }
 0x2f1   : > { %3546 = vst.msk [vmem:[#allocation2 + $0xd0] sm:$0xff] %vm3520_vm14, %v3400_v13 }
 0x2f2   : > { %7866 = vperm.xlu0 %11570, %v7732_v33   ;;  %7851 = vperm.xlu1 %11571, %v7729_v0  }
 0x2f4   : > { %v3169_v12 = vpop.permute.xlu1 %3168 }
 0x2f5   : > { %3315 = vst.msk [vmem:[#allocation2 + $0xe0] sm:$0xff] %vm3289_vm8, %v3169_v12 }
 0x2f6   : > { %7861 = vperm.xlu1 %11571, %v7731_v1  }
 0x2f8   : > { %v3402_v56 = vpop.permute.xlu0 %3401  ;;  %v3602_v60 = vld [vmem:[#allocation2 + $0xd0] sm:$0xff] }
 0x2f9   : > { %3547 = vst.msk [vmem:[#allocation2 + $0xd8] sm:$0xff] %vm3520_vm14, %v3402_v56  ;;  %v3765_v28 = vrot.slane %v3602_v60, 4  ;;  %v4733_v3 = vshrl.u32 %v3602_v60, 16  ;;  %v4736_v43 = vshll.u32 %v3602_v60, 16 }
 0x2fa   : > { %7871 = vperm.xlu1 %11571, %v7733_v29  }
 0x2fb   : > { %v3766_v44 = vsel %vm928_vm0, %v3763_v2, %v3765_v28  ;;  %v4735_v38 = vrot.slane %v4733_v3, 3  ;;  %v4738_v7 = vrot.slane %v4736_v43, 4  ;;  %v5829_v24 = vrot.slane %v4733_v3, 4 }
 0x2fc   : > { %v3171_v41 = vpop.permute.xlu0 %3170  ;;  %10829 = vmatmul.mubr.msk.bf16.gmra.mrb[156].mxu0 %vm334_vm11, %v3766_v44  ;;  %v5830_v4 = vrot.slane %v4736_v43, 5 }
 0x2fd   : > { %3316 = vst.msk [vmem:[#allocation2 + $0xe8] sm:$0xff] %vm3289_vm8, %v3171_v41  ;;  %v4739_v42 = vor.u32 %v4738_v7, %v4735_v38 }
 0x2fe   : > { %v5831_v19 = vor.u32 %v5830_v4, %v5829_v24 }
 0x2ff   : > { %v4740_v10 = vsel %vm4516_vm12, %v4730_v34, %v4739_v42 }
 0x300   : > { %10953 = vmatmul.mubr.msk.bf16.gmra.mrb[84].mxu1 %vm334_vm11, %v4740_v10  ;;  %v3603_v23 = vld [vmem:[#allocation2 + $0xd8] sm:$0xff]  ;;  %v14594_v2 = vsel %vm5728_vm10, %v14528_v59, %v5831_v19 }
 0x301   : > { %v3404_v32 = vpop.permute.xlu1 %3403  ;;  %v3767_v62 = vrot.slane %v3603_v23, 4  ;;  %v4742_v40 = vshrl.u32 %v3603_v23, 16  ;;  %v4745_v63 = vshll.u32 %v3603_v23, 16 }
 0x302   : > { %3548 = vst.msk [vmem:[#allocation2 + $0xe0] sm:$0xff] %vm3520_vm14, %v3404_v32 }
 0x303   : > { %v3768_v55 = vsel %vm928_vm0, %v3765_v28, %v3767_v62  ;;  %v4744_v18 = vrot.slane %v4742_v40, 3  ;;  %v4747_v16 = vrot.slane %v4745_v63, 4  ;;  %v5833_v48 = vrot.slane %v4742_v40, 4 }
 0x304   : > { %10832 = vmatprep.mubr.msk.bf16.mxu0 %vm334_vm11, %v3768_v55  ;;  %v5834_v34 = vrot.slane %v4745_v63, 5 }
 0x305   : > { %v3173_v8 = vpop.permute.xlu1 %3172  ;;  %v4748_v33 = vor.u32 %v4747_v16, %v4744_v18 }
 0x306   : > { %3317 = vst.msk [vmem:[#allocation2 + $0xf0] sm:$0xff] %vm3289_vm8, %v3173_v8  ;;  %v5835_v0 = vor.u32 %v5834_v34, %v5833_v48 }
 0x307   : > { %v4749_v59 = vsel %vm4516_vm12, %v4739_v42, %v4748_v33 }
 0x308   : > { %10956 = vmatprep.mubr.msk.bf16.mxu1 %vm334_vm11, %v4749_v59  ;;  %v14603_v12 = vsel %vm5728_vm10, %v5831_v19, %v5835_v0 }
 0x309   : > { %v3406_v13 = vpop.permute.xlu0 %3405  ;;  %v3604_v1 = vld [vmem:[#allocation2 + $0xe0] sm:$0xff] }
 0x30a   : > { %3549 = vst.msk [vmem:[#allocation2 + $0xe8] sm:$0xff] %vm3520_vm14, %v3406_v13  ;;  %v3769_v29 = vrot.slane %v3604_v1, 4  ;;  %v4751_v56 = vshrl.u32 %v3604_v1, 16  ;;  %v4754_v60 = vshll.u32 %v3604_v1, 16 }
 0x30c   : > { %v3770_v28 = vsel %vm928_vm0, %v3767_v62, %v3769_v29  ;;  %v4753_v3 = vrot.slane %v4751_v56, 3  ;;  %v4756_v43 = vrot.slane %v4754_v60, 4  ;;  %v5837_v61 = vrot.slane %v4751_v56, 4 }
 0x30d   : > { %v3175_v44 = vpop.permute.xlu0 %3174  ;;  %10833 = vmatmul.mubr.msk.bf16.gmra.mrb[160].mxu0 %vm334_vm11, %v3770_v28  ;;  %v5838_v38 = vrot.slane %v4754_v60, 5 }
 0x30e   : > { %3318 = vst.msk [vmem:[#allocation2 + $0xf8] sm:$0xff] %vm3289_vm8, %v3175_v44  ;;  %v4757_v7 = vor.u32 %v4756_v43, %v4753_v3 }
 0x30f   : > { %v5839_v24 = vor.u32 %v5838_v38, %v5837_v61 }
 0x310   : > { %v4758_v41 = vsel %vm4516_vm12, %v4748_v33, %v4757_v7 }
 0x311   : > { %v3408_v4 = vpop.permute.xlu1 %3407  ;;  %10957 = vmatmul.mubr.msk.bf16.gmra.mrb[88].mxu1 %vm334_vm11, %v4758_v41  ;;  %v3605_v42 = vld [vmem:[#allocation2 + $0xe8] sm:$0xff]  ;;  %v14612_v19 = vsel %vm5728_vm10, %v5835_v0, %v5839_v24 }
 0x312   : > { %3550 = vst.msk [vmem:[#allocation2 + $0xf0] sm:$0xff] %vm3520_vm14, %v3408_v4  ;;  %v3771_v10 = vrot.slane %v3605_v42, 4  ;;  %v4760_v32 = vshrl.u32 %v3605_v42, 16  ;;  %v4763_v23 = vshll.u32 %v3605_v42, 16 }
 0x314   : > { %v3772_v62 = vsel %vm928_vm0, %v3769_v29, %v3771_v10  ;;  %v4762_v40 = vrot.slane %v4760_v32, 3  ;;  %v4765_v63 = vrot.slane %v4763_v23, 4  ;;  %v5841_v55 = vrot.slane %v4760_v32, 4 }
 0x315   : > { %v3177_v18 = vpop.permute.xlu1 %3176  ;;  %10836 = vmatprep.mubr.msk.bf16.mxu0 %vm334_vm11, %v3772_v62  ;;  %v5842_v16 = vrot.slane %v4763_v23, 5 }
 0x316   : > { %3319 = vst.msk [vmem:[#allocation2 + $0x100] sm:$0xff] %vm3289_vm8, %v3177_v18  ;;  %v4766_v48 = vor.u32 %v4765_v63, %v4762_v40 }
 0x317   : > { %v5843_v8 = vor.u32 %v5842_v16, %v5841_v55 }
 0x318   : > { %v4767_v34 = vsel %vm4516_vm12, %v4757_v7, %v4766_v48  ;;  %v3410_v33 = vpop.permute.xlu0 %3409 }
 0x319   : > { %10960 = vmatprep.mubr.msk.bf16.mxu1 %vm334_vm11, %v4767_v34  ;;  %v3606_v0 = vld [vmem:[#allocation2 + $0xf0] sm:$0xff]  ;;  %v14621_v59 = vsel %vm5728_vm10, %v5839_v24, %v5843_v8  ;;  %3551 = vst.msk [vmem:[#allocation2 + $0xf8] sm:$0xff] %vm3520_vm14, %v3410_v33 }
 0x31a   : > { %v3773_v13 = vrot.slane %v3606_v0, 4  ;;  %v4769_v1 = vshrl.u32 %v3606_v0, 16  ;;  %v4772_v29 = vshll.u32 %v3606_v0, 16 }
 0x31c   : > { %v3774_v56 = vsel %vm928_vm0, %v3771_v10, %v3773_v13  ;;  %v4771_v60 = vrot.slane %v4769_v1, 3  ;;  %v4774_v28 = vrot.slane %v4772_v29, 4  ;;  %v5845_v3 = vrot.slane %v4769_v1, 4  ;;  %v3179_v43 = vpop.permute.xlu0 %3178 }
 0x31d   : > { %10837 = vmatmul.mubr.msk.bf16.gmra.mrb[164].mxu0 %vm334_vm11, %v3774_v56  ;;  %v5846_v61 = vrot.slane %v4772_v29, 5  ;;  %3320 = vst.msk [vmem:[#allocation2 + $0x108] sm:$0xff] %vm3289_vm8, %v3179_v43 }
 0x31e   : > { %v4775_v44 = vor.u32 %v4774_v28, %v4771_v60 }
 0x31f   : > { %v5847_v38 = vor.u32 %v5846_v61, %v5845_v3 }
 0x320   : > { %v4776_v7 = vsel %vm4516_vm12, %v4766_v48, %v4775_v44  ;;  %v3414_v24 = vpop.permute.xlu0 %3413  ;;  %v3412_v41 = vpop.permute.xlu1 %3411  ;;  %v3607_v4 = vld [vmem:[#allocation2 + $0xf8] sm:$0xff] }
 0x321   : > { %10961 = vmatmul.mubr.msk.bf16.gmra.mrb[92].mxu1 %vm334_vm11, %v4776_v7  ;;  %v14630_v42 = vsel %vm5728_vm10, %v5843_v8, %v5847_v38  ;;  %3553 = vst.msk [vmem:[#allocation2 + $0x108] sm:$0xff] %vm3520_vm14, %v3414_v24  ;;  %3552 = vst.msk [vmem:[#allocation2 + $0x100] sm:$0xff] %vm3520_vm14, %v3412_v41  ;;  %v3775_v10 = vrot.slane %v3607_v4, 4  ;;  %v4778_v32 = vshrl.u32 %v3607_v4, 16  ;;  %v4781_v23 = vshll.u32 %v3607_v4, 16 }
 0x323   : > { %v3776_v62 = vsel %vm928_vm0, %v3773_v13, %v3775_v10  ;;  %v4780_v40 = vrot.slane %v4778_v32, 3  ;;  %v4783_v63 = vrot.slane %v4781_v23, 4  ;;  %v5849_v55 = vrot.slane %v4778_v32, 4 }
 0x324   : > { %v3183_v18 = vpop.permute.xlu0 %3182  ;;  %v3181_v16 = vpop.permute.xlu1 %3180  ;;  %10840 = vmatprep.mubr.msk.bf16.mxu0 %vm334_vm11, %v3776_v62  ;;  %v5850_v48 = vrot.slane %v4781_v23, 5 }
 0x325   : > { %3322 = vst.msk [vmem:[#allocation2 + $0x118] sm:$0xff] %vm3289_vm8, %v3183_v18  ;;  %3321 = vst.msk [vmem:[#allocation2 + $0x110] sm:$0xff] %vm3289_vm8, %v3181_v16  ;;  %v4784_v8 = vor.u32 %v4783_v63, %v4780_v40 }
 0x326   : > { %v5851_v34 = vor.u32 %v5850_v48, %v5849_v55 }
 0x327   : > { %v4785_v33 = vsel %vm4516_vm12, %v4775_v44, %v4784_v8 }
 0x328   : > { %v3418_v0 = vpop.permute.xlu0 %3417  ;;  %v3416_v1 = vpop.permute.xlu1 %3415  ;;  %10964 = vmatprep.mubr.msk.bf16.mxu1 %vm334_vm11, %v4785_v33  ;;  %v3608_v13 = vld [vmem:[#allocation2 + $0x100] sm:$0xff]  ;;  %v3609_v29 = vld [vmem:[#allocation2 + $0x108] sm:$0xff]  ;;  %v14641_v56 = vsel %vm5728_vm10, %v5847_v38, %v5851_v34 }
 0x329   : > { %3555 = vst.msk [vmem:[#allocation2 + $0x118] sm:$0xff] %vm3520_vm14, %v3418_v0  ;;  %3554 = vst.msk [vmem:[#allocation2 + $0x110] sm:$0xff] %vm3520_vm14, %v3416_v1  ;;  %v3777_v60 = vrot.slane %v3608_v13, 4  ;;  %v3779_v28 = vrot.slane %v3609_v29, 4  ;;  %v4787_v3 = vshrl.u32 %v3608_v13, 16  ;;  %v4790_v43 = vshll.u32 %v3608_v13, 16 }
 0x32a   : > { %v4796_v61 = vshrl.u32 %v3609_v29, 16  ;;  %v4799_v7 = vshll.u32 %v3609_v29, 16 }
 0x32b   : > { %v3778_v44 = vsel %vm928_vm0, %v3775_v10, %v3777_v60  ;;  %v3780_v24 = vsel %vm928_vm0, %v3777_v60, %v3779_v28  ;;  %v4789_v41 = vrot.slane %v4787_v3, 3  ;;  %v4792_v4 = vrot.slane %v4790_v43, 4 }
 0x32c   : > { %v3187_v32 = vpop.permute.xlu0 %3186  ;;  %v3185_v23 = vpop.permute.xlu1 %3184  ;;  %10841 = vmatmul.mubr.msk.bf16.gmra.mrb[168].mxu0 %vm334_vm11, %v3778_v44  ;;  %v4798_v38 = vrot.slane %v4796_v61, 3  ;;  %v4801_v62 = vrot.slane %v4799_v7, 4  ;;  %v5853_v40 = vrot.slane %v4787_v3, 4  ;;  %v5854_v63 = vrot.slane %v4790_v43, 5 }
 0x32d   : > { %3324 = vst.msk [vmem:[#allocation2 + $0x128] sm:$0xff] %vm3289_vm8, %v3187_v32  ;;  %3323 = vst.msk [vmem:[#allocation2 + $0x120] sm:$0xff] %vm3289_vm8, %v3185_v23  ;;  %10844 = vmatprep.mubr.msk.bf16.mxu0 %vm334_vm11, %v3780_v24  ;;  %v4793_v55 = vor.u32 %v4792_v4, %v4789_v41  ;;  %v5857_v10 = vrot.slane %v4796_v61, 4  ;;  %v5858_v18 = vrot.slane %v4799_v7, 5 }
 0x32e   : > { %v4802_v16 = vor.u32 %v4801_v62, %v4798_v38  ;;  %v5855_v48 = vor.u32 %v5854_v63, %v5853_v40 }
 0x32f   : > { %v4794_v33 = vsel %vm4516_vm12, %v4784_v8, %v4793_v55  ;;  %v5859_v0 = vor.u32 %v5858_v18, %v5857_v10 }
 0x330   : > { %v3420_v1 = vpop.permute.xlu1 %3419  ;;  %10965 = vmatmul.mubr.msk.bf16.gmra.mrb[96].mxu1 %vm334_vm11, %v4794_v33  ;;  %v4803_v13 = vsel %vm4516_vm12, %v4793_v55, %v4802_v16  ;;  %v3610_v29 = vld [vmem:[#allocation2 + $0x110] sm:$0xff]  ;;  %v3611_v60 = vld [vmem:[#allocation2 + $0x118] sm:$0xff]  ;;  %v14655_v3 = vsel %vm5728_vm10, %v5851_v34, %v5855_v48 }
 0x331   : > { %3556 = vst.msk [vmem:[#allocation2 + $0x120] sm:$0xff] %vm3520_vm14, %v3420_v1  ;;  %10968 = vmatprep.mubr.msk.bf16.mxu1 %vm334_vm11, %v4803_v13  ;;  %v3781_v43 = vrot.slane %v3610_v29, 4  ;;  %v3783_v61 = vrot.slane %v3611_v60, 4  ;;  %v4805_v7 = vshrl.u32 %v3610_v29, 16  ;;  %v4808_v44 = vshll.u32 %v3610_v29, 16 }
 0x332   : > { %v4814_v8 = vshrl.u32 %v3611_v60, 16  ;;  %v4817_v24 = vshll.u32 %v3611_v60, 16  ;;  %v14660_v41 = vsel %vm5728_vm10, %v5855_v48, %v5859_v0 }
 0x333   : > { %v3782_v4 = vsel %vm928_vm0, %v3779_v28, %v3781_v43  ;;  %v3784_v32 = vsel %vm928_vm0, %v3781_v43, %v3783_v61  ;;  %v4807_v23 = vrot.slane %v4805_v7, 3  ;;  %v4810_v34 = vrot.slane %v4808_v44, 4 }
 0x334   : > { %v3422_v38 = vpop.permute.xlu1 %3421  ;;  %10845 = vmatmul.mubr.msk.bf16.gmra.mrb[172].mxu0 %vm334_vm11, %v3782_v4  ;;  %v4816_v62 = vrot.slane %v4814_v8, 3  ;;  %v4819_v40 = vrot.slane %v4817_v24, 4  ;;  %v5861_v63 = vrot.slane %v4805_v7, 4  ;;  %v5862_v55 = vrot.slane %v4808_v44, 5 }
 0x335   : > { %3557 = vst.msk [vmem:[#allocation2 + $0x128] sm:$0xff] %vm3520_vm14, %v3422_v38  ;;  %10848 = vmatprep.mubr.msk.bf16.mxu0 %vm334_vm11, %v3784_v32  ;;  %v4811_v10 = vor.u32 %v4810_v34, %v4807_v23  ;;  %v5865_v18 = vrot.slane %v4814_v8, 4  ;;  %v5866_v48 = vrot.slane %v4817_v24, 5 }
 0x336   : > { %v4820_v33 = vor.u32 %v4819_v40, %v4816_v62  ;;  %v5863_v28 = vor.u32 %v5862_v55, %v5861_v63 }
 0x337   : > { %v4812_v1 = vsel %vm4516_vm12, %v4802_v16, %v4811_v10  ;;  %v5867_v13 = vor.u32 %v5866_v48, %v5865_v18 }
 0x338   : > { %10969 = vmatmul.mubr.msk.bf16.gmra.mrb[100].mxu1 %vm334_vm11, %v4812_v1  ;;  %v4821_v29 = vsel %vm4516_vm12, %v4811_v10, %v4820_v33  ;;  %v3612_v60 = vld [vmem:[#allocation2 + $0x120] sm:$0xff]  ;;  %v14671_v43 = vsel %vm5728_vm10, %v5859_v0, %v5863_v28 }
 0x339   : > { %10972 = vmatprep.mubr.msk.bf16.mxu1 %vm334_vm11, %v4821_v29  ;;  %v3785_v7 = vrot.slane %v3612_v60, 4  ;;  %v4823_v44 = vshrl.u32 %v3612_v60, 16  ;;  %v4826_v4 = vshll.u32 %v3612_v60, 16  ;;  %v14675_v8 = vsel %vm5728_vm10, %v5863_v28, %v5867_v13 }
 0x33b   : > { %v3786_v24 = vsel %vm928_vm0, %v3783_v61, %v3785_v7  ;;  %v4825_v16 = vrot.slane %v4823_v44, 3  ;;  %v4828_v32 = vrot.slane %v4826_v4, 4  ;;  %v5869_v23 = vrot.slane %v4823_v44, 4 }
 0x33c   : > { %10849 = vmatmul.mubr.msk.bf16.gmra.mrb[176].mxu0 %vm334_vm11, %v3786_v24  ;;  %v3613_v34 = vld [vmem:[#allocation2 + $0x128] sm:$0xff]  ;;  %v5870_v38 = vrot.slane %v4826_v4, 5  ;;  %v16545_v4 = vrot.slane %v13606_v45, 4  ;;  %v16546_v45 = vld [vmem:[#allocation14_spill] sm:$0xff] }
 0x33d   : > { %v3787_v62 = vrot.slane %v3613_v34, 4  ;;  %v4829_v0 = vor.u32 %v4828_v32, %v4825_v16  ;;  %v4832_v40 = vshrl.u32 %v3613_v34, 16  ;;  %v4835_v63 = vshll.u32 %v3613_v34, 16  ;;  %v16547_v32 = vld [vmem:[#allocation13_spill] sm:$0xff] }
 0x33e   : > { %v5871_v55 = vor.u32 %v5870_v38, %v5869_v23  ;;  %v16548_v23 = vld [vmem:[#allocation18_spill] sm:$0xff] }
 0x33f   : > { %v3788_v10 = vsel %vm928_vm0, %v3785_v7, %v3787_v62  ;;  %v4830_v18 = vsel %vm4516_vm12, %v4820_v33, %v4829_v0  ;;  %v4834_v48 = vrot.slane %v4832_v40, 3  ;;  %v4837_v61 = vrot.slane %v4835_v63, 4 }
 0x340   : > { %10852 = vmatprep.mubr.msk.bf16.mxu0 %vm334_vm11, %v3788_v10  ;;  %10973 = vmatmul.mubr.msk.bf16.gmra.mrb[104].mxu1 %vm334_vm11, %v4830_v18  ;;  %v14684_v28 = vsel %vm5728_vm10, %v5867_v13, %v5871_v55  ;;  %v5873_v1 = vrot.slane %v4832_v40, 4  ;;  %v5874_v29 = vrot.slane %v4835_v63, 5  ;;  %v3790_v24 = vsel %vm928_vm0, %v3787_v62, %v16545_v4  ;;  %v16552_v40 = vld [vmem:[#allocation26_spill] sm:$0xff] }
 0x341   : > { %v4838_v60 = vor.u32 %v4837_v61, %v4834_v48  ;;  %v16554_v61 = vld [vmem:[#allocation30_spill] sm:$0xff] }
 0x342   : > { %v5875_v44 = vor.u32 %v5874_v29, %v5873_v1  ;;  %v16555_v1 = vld [vmem:[#allocation29_spill] sm:$0xff]  ;;  %v16556_v29 = vld [vmem:[#allocation34_spill] sm:$0xff] }
 0x343   : > { %v4839_v33 = vsel %vm4516_vm12, %v4829_v0, %v4838_v60  ;;  %v4848_v13 = vsel %vm4516_vm12, %v4838_v60, %v13632_v35  ;;  %v16551_v0 = vld [vmem:[#allocation21_spill] sm:$0xff] }
 0x344   : > { %10853 = vmatmul.mubr.msk.bf16.gmra.mrb[180].mxu0 %vm334_vm11, %v3790_v24  ;;  %v14692_v7 = vsel %vm5728_vm10, %v5871_v55, %v5875_v44  ;;  %v14696_v16 = vsel %vm5728_vm10, %v5875_v44, %v13616_v52  ;;  %10976 = vmatprep.mubr.msk.bf16.mxu1 %vm334_vm11, %v4839_v33  ;;  %v16549_v52 = vld [vmem:[#allocation17_spill] sm:$0xff] }
 0x345   : > { %v16553_v55 = vld [vmem:[#allocation25_spill] sm:$0xff] }
 0x346   : > { %v16557_v44 = vld [vmem:[#allocation33_spill] sm:$0xff] }
 0x348   : > { %10977 = vmatmul.mubr.msk.bf16.gmra.mrb[108].mxu1 %vm334_vm11, %v4848_v13  ;;  %v16558_v13 = vld [vmem:[#allocation39_spill] sm:$0xff] }
 0x349   : > { %10980 = vmatprep.mubr.msk.bf16.mxu1 %vm334_vm11, %v13641_v46  ;;  %v16550_v46 = vld [vmem:[#allocation22_spill] sm:$0xff] }
 0x350   : > { %10981 = vmatmul.mubr.msk.bf16.gmra.mrb[0].mxu1 %vm334_vm11, %v16546_v45  ;;  %v16559_v45 = vld [vmem:[#allocation37_spill] sm:$0xff] }
 0x351   : > { %10984 = vmatprep.mubr.msk.bf16.mxu1 %vm334_vm11, %v16547_v32  ;;  %v16560_v32 = vld [vmem:[#allocation48_spill] sm:$0xff] }
 0x358   : > { %10985 = vmatmul.mubr.msk.bf16.gmra.mrb[4].mxu1 %vm334_vm11, %v16548_v23 }
 0x359   : > { %10988 = vmatprep.mubr.msk.bf16.mxu1 %vm334_vm11, %v16549_v52 }
 0x35b   : > { %v14712_v34 = vpop.f32.mrb[120].mxu0 }
 0x35c   : > { %v14714_v35 = vpop.f32.mrb[121].mxu0 }
 0x35d   : > { %v14716_v38 = vpop.f32.mrb[122].mxu0 }
 0x35e   : > { %v14718_v62 = vpop.f32.mrb[123].mxu0 }
 0x360   : > { %10989 = vmatmul.mubr.msk.bf16.gmra.mrb[8].mxu1 %vm334_vm11, %v16550_v46 }
 0x361   : > { %10992 = vmatprep.mubr.msk.bf16.mxu1 %vm334_vm11, %v16551_v0 }
 0x368   : > { %10993 = vmatmul.mubr.msk.bf16.gmra.mrb[12].mxu1 %vm334_vm11, %v16552_v40  ;;  %v11707_v40 = vld [vmem:[#allocation2 + $0x10] sm:$0xf0] }
 0x369   : > { %10996 = vmatprep.mubr.msk.bf16.mxu1 %vm334_vm11, %v16553_v55  ;;  %v5730_v55 = vshrl.u32 %v11707_v40, 16 }
 0x36a   : > { %v14726_v63 = vpop.f32.mrb[124].mxu0 }
 0x36b   : > { %v14730_v10 = vpop.f32.mrb[125].mxu0 }
 0x36c   : > { %v14732_v18 = vpop.f32.mrb[126].mxu0 }
 0x36d   : > { %v14734_v48 = vpop.f32.mrb[127].mxu0 }
 0x370   : > { %10997 = vmatmul.mubr.msk.bf16.gmra.mrb[16].mxu1 %vm334_vm11, %v16554_v61  ;;  %v5733_v61 = vshll.u32 %v11707_v40, 16  ;;  %v16563_v40 = vld [vmem:[#allocation7_spill] sm:$0xff] }
 0x371   : > { %11000 = vmatprep.mubr.msk.bf16.mxu1 %vm334_vm11, %v16555_v1 }
 0x378   : > { %11001 = vmatmul.mubr.msk.bf16.gmra.mrb[20].mxu1 %vm334_vm11, %v16556_v29  ;;  %v5735_v29 = vrot.slane %v5733_v61, 5 }
 0x379   : > { %v14742_v60 = vpop.f32.mrb[128].mxu0  ;;  %11004 = vmatprep.mubr.msk.bf16.mxu1 %vm334_vm11, %v16557_v44 }
 0x37a   : > { %v14746_v4 = vpop.f32.mrb[129].mxu0 }
 0x37b   : > { %v14748_v24 = vpop.f32.mrb[130].mxu0 }
 0x37c   : > { %v14750_v33 = vpop.f32.mrb[131].mxu0 }
 0x380   : > { %11005 = vmatmul.mubr.msk.bf16.gmra.mrb[24].mxu1 %vm334_vm11, %v16558_v13 }
 0x381   : > { %11008 = vmatprep.mubr.msk.bf16.mxu1 %vm334_vm11, %v16559_v45 }
 0x388   : > { %11009 = vmatmul.mubr.msk.bf16.gmra.mrb[28].mxu1 %vm334_vm11, %v16560_v32 }
 0x389   : > { %11012 = vmatprep.mubr.msk.bf16.mxu1 %vm334_vm11, %v14036_v5  ;;  %v5732_v5 = vrot.slane %v5730_v55, 4 }
 0x38a   : > { %v14760_v23 = vpop.f32.mrb[132].mxu0 }
 0x38b   : > { %v14762_v52 = vpop.f32.mrb[133].mxu0  ;;  %v5736_v32 = vor.u32 %v5735_v29, %v5732_v5  ;;  %v16568_v5 = vld [vmem:[#allocation10_spill] sm:$0xff] }
 0x38c   : > { %v14764_v46 = vpop.f32.mrb[134].mxu0 }
 0x38d   : > { %v14766_v0 = vpop.f32.mrb[135].mxu0 }
 0x390   : > { %11013 = vmatmul.mubr.msk.bf16.gmra.mrb[32].mxu1 %vm334_vm11, %v14039_v39  ;;  %v5740_v39 = vsel %vm5728_vm10, %v5736_v32, %v16563_v40 }
 0x391   : > { %11016 = vmatprep.mubr.msk.bf16.mxu1 %vm334_vm11, %v14084_v25 }
 0x392   : > { %v14772_v1 = vpop.f32.mrb[136].mxu0 }
 0x393   : > { %16561 = vst [vmem:[#allocation54_spill] sm:$0xff] %v14772_v1  ;;  %v14774_v44 = vpop.f32.mrb[137].mxu0 }
 0x394   : > { %v14776_v13 = vpop.f32.mrb[138].mxu0 }
 0x395   : > { %16562 = vst [vmem:[#allocation55_spill] sm:$0xff] %v14776_v13  ;;  %v14778_v45 = vpop.f32.mrb[139].mxu0  ;;  %v16567_v13 = vld [vmem:[#allocation12_spill] sm:$0xff] }
 0x398   : > { %11017 = vmatmul.mubr.msk.bf16.gmra.mrb[36].mxu1 %vm334_vm11, %v14087_v31 }
 0x399   : > { %11032 = vmatprep.mubr.msk.bf16.mxu1 %vm334_vm11, %v5740_v39  ;;  %v16571_v39 = vld [vmem:[#allocation11_spill] sm:$0xff] }
 0x39a   : > { %v14785_v25 = vpop.f32.mrb[140].mxu0 }
 0x39b   : > { %v14787_v1 = vpop.f32.mrb[141].mxu0 }
 0x39c   : > { %16564 = vst [vmem:[#allocation57_spill] sm:$0xff] %v14787_v1  ;;  %v14789_v55 = vpop.f32.mrb[142].mxu0 }
 0x39d   : > { %16565 = vst [vmem:[#allocation56_spill] sm:$0xff] %v14789_v55  ;;  %v14791_v61 = vpop.f32.mrb[143].mxu0  ;;  %v16572_v55 = vld [vmem:[#allocation9_spill] sm:$0xff] }
 0x39e   : > { %16566 = vst [vmem:[#allocation58_spill] sm:$0xff] %v14791_v61 }
 0x3a0   : > { %11033 = vmatmul.mubr.msk.bf16.vlgmr.msra.gmra.mrb[40].mxu1 %vm334_vm11, %v16567_v13 }
 0x3a1   : > { %11036 = vmatprep.mubr.msk.bf16.mxu1 %vm334_vm11, %v16568_v5 }
 0x3a2   : > { %v14797_v31 = vpop.f32.mrb[144].mxu0 }
 0x3a3   : > { %v14799_v29 = vpop.f32.mrb[145].mxu0 }
 0x3a4   : > { %v14801_v32 = vpop.f32.mrb[146].mxu0 }
 0x3a5   : > { %16569 = vst [vmem:[#allocation59_spill] sm:$0xff] %v14801_v32  ;;  %v14803_v40 = vpop.f32.mrb[147].mxu0 }
 0x3a6   : > { %16570 = vst [vmem:[#allocation60_spill] sm:$0xff] %v14803_v40 }
 0x3a8   : > { %11037 = vmatmul.mubr.msk.bf16.gmra.mrb[44].mxu1 %vm334_vm11, %v16571_v39 }
 0x3a9   : > { %11040 = vmatprep.mubr.msk.bf16.mxu1 %vm334_vm11, %v16572_v55 }
 0x3aa   : > { %v14809_v61 = vpop.f32.mrb[148].mxu0 }
 0x3ab   : > { %v14811_v13 = vpop.f32.mrb[149].mxu0 }
 0x3ac   : > { %v14813_v1 = vpop.f32.mrb[150].mxu0 }
 0x3ad   : > { %v14815_v5 = vpop.f32.mrb[151].mxu0 }
 0x3b0   : > { %11041 = vmatmul.mubr.msk.bf16.gmra.mrb[48].mxu1 %vm334_vm11, %v14149_v36 }
 0x3b1   : > { %11044 = vmatprep.mubr.msk.bf16.mxu1 %vm334_vm11, %v14165_v21 }
 0x3b2   : > { %v14821_v40 = vpop.f32.mrb[152].mxu0 }
 0x3b3   : > { %v14823_v39 = vpop.f32.mrb[153].mxu0 }
 0x3b4   : > { %v14825_v32 = vpop.f32.mrb[154].mxu0 }
 0x3b5   : > { %v14827_v55 = vpop.f32.mrb[155].mxu0 }
 0x3b8   : > { %11045 = vmatmul.mubr.msk.bf16.gmra.mrb[52].mxu1 %vm334_vm11, %v14227_v53 }
 0x3b9   : > { %11048 = vmatprep.mubr.msk.bf16.mxu1 %vm334_vm11, %v14243_v14 }
 0x3c0   : > { %11049 = vmatmul.mubr.msk.bf16.gmra.mrb[56].mxu1 %vm334_vm11, %v14282_v37 }
 0x3c1   : > { %11052 = vmatprep.mubr.msk.bf16.mxu1 %vm334_vm11, %v14297_v30 }
 0x3c8   : > { %11053 = vmatmul.mubr.msk.bf16.gmra.mrb[60].mxu1 %vm334_vm11, %v14341_v9 }
 0x3c9   : > { %11056 = vmatprep.mubr.msk.bf16.mxu1 %vm334_vm11, %v14345_v22 }
 0x3cf   : > { %v14841_v36 = vpop.f32.mrb[156].mxu0 }
 0x3d0   : > { %v14843_v21 = vpop.f32.mrb[157].mxu0  ;;  %11057 = vmatmul.mubr.msk.bf16.gmra.mrb[64].mxu1 %vm334_vm11, %v14380_v20 }
 0x3d1   : > { %v14847_v53 = vpop.f32.mrb[158].mxu0  ;;  %11060 = vmatprep.mubr.msk.bf16.mxu1 %vm334_vm11, %v14384_v51 }
 0x3d2   : > { %v14851_v14 = vpop.f32.mrb[159].mxu0 }
 0x3d8   : > { %11061 = vmatmul.mubr.msk.bf16.gmra.mrb[68].mxu1 %vm334_vm11, %v14423_v26 }
 0x3d9   : > { %11064 = vmatprep.mubr.msk.bf16.mxu1 %vm334_vm11, %v14427_v58 }
 0x3e0   : > { %v14857_v37 = vpop.f32.mrb[160].mxu0  ;;  %11065 = vmatmul.mubr.msk.bf16.gmra.mrb[72].mxu1 %vm334_vm11, %v14469_v11 }
 0x3e1   : > { %v14859_v30 = vpop.f32.mrb[161].mxu0  ;;  %11068 = vmatprep.mubr.msk.bf16.mxu1 %vm334_vm11, %v14473_v6 }
 0x3e2   : > { %v14863_v9 = vpop.f32.mrb[162].mxu0 }
 0x3e3   : > { %v14867_v22 = vpop.f32.mrb[163].mxu0 }
 0x3e8   : > { %11069 = vmatmul.mubr.msk.bf16.gmra.mrb[76].mxu1 %vm334_vm11, %v14509_v54 }
 0x3e9   : > { %11072 = vmatprep.mubr.msk.bf16.mxu1 %vm334_vm11, %v14512_v57 }
 0x3f0   : > { %v14873_v20 = vpop.f32.mrb[164].mxu0  ;;  %11073 = vmatmul.mubr.msk.bf16.gmra.mrb[80].mxu1 %vm334_vm11, %v14541_v47 }
 0x3f1   : > { %16573 = vst [vmem:[#allocation6_spill] sm:$0xff] %v14873_v20  ;;  %v14875_v51 = vpop.f32.mrb[165].mxu0  ;;  %11076 = vmatprep.mubr.msk.bf16.mxu1 %vm334_vm11, %v14545_v50 }
 0x3f2   : > { %16574 = vst [vmem:[#allocation8_spill] sm:$0xff] %v14875_v51  ;;  %v14879_v26 = vpop.f32.mrb[166].mxu0 }
 0x3f3   : > { %16575 = vst [vmem:[#allocation14_spill] sm:$0xff] %v14879_v26  ;;  %v14883_v58 = vpop.f32.mrb[167].mxu0 }
 0x3f4   : > { %16576 = vst [vmem:[#allocation13_spill] sm:$0xff] %v14883_v58 }
 0x3f8   : > { %11077 = vmatmul.mubr.msk.bf16.gmra.mrb[84].mxu1 %vm334_vm11, %v14594_v2 }
 0x3f9   : > { %11080 = vmatprep.mubr.msk.bf16.mxu1 %vm334_vm11, %v14603_v12 }
 0x3ff   : > { %v14889_v11 = vpop.f32.mrb[168].mxu0 }
 0x400   : > { %16577 = vst [vmem:[#allocation18_spill] sm:$0xff] %v14889_v11  ;;  %v14891_v6 = vpop.f32.mrb[169].mxu0  ;;  %11081 = vmatmul.mubr.msk.bf16.gmra.mrb[88].mxu1 %vm334_vm11, %v14612_v19  ;;  %v16615_v11 = vld [vmem:[#allocation52_spill] sm:$0xff] }
 0x401   : > { %16578 = vst [vmem:[#allocation17_spill] sm:$0xff] %v14891_v6  ;;  %v14895_v54 = vpop.f32.mrb[170].mxu0  ;;  %11084 = vmatprep.mubr.msk.bf16.mxu1 %vm334_vm11, %v14621_v59 }
 0x402   : > { %16579 = vst [vmem:[#allocation22_spill] sm:$0xff] %v14895_v54  ;;  %v14899_v57 = vpop.f32.mrb[171].mxu0 }
 0x403   : > { %16580 = vst [vmem:[#allocation21_spill] sm:$0xff] %v14899_v57  ;;  %v16614_v57 = vld [vmem:[#allocation51_spill] sm:$0xff] }
 0x407   : > { %v14901_v47 = vpop.f32.mrb[172].mxu0 }
 0x408   : > { %16581 = vst [vmem:[#allocation26_spill] sm:$0xff] %v14901_v47  ;;  %v14903_v50 = vpop.f32.mrb[173].mxu0  ;;  %11085 = vmatmul.mubr.msk.bf16.gmra.mrb[92].mxu1 %vm334_vm11, %v14630_v42 }
 0x409   : > { %16582 = vst [vmem:[#allocation25_spill] sm:$0xff] %v14903_v50  ;;  %v14907_v2 = vpop.f32.mrb[174].mxu0  ;;  %11088 = vmatprep.mubr.msk.bf16.mxu1 %vm334_vm11, %v14641_v56 }
 0x40a   : > { %16583 = vst [vmem:[#allocation30_spill] sm:$0xff] %v14907_v2  ;;  %v14911_v12 = vpop.f32.mrb[175].mxu0 }
 0x40b   : > { %16584 = vst [vmem:[#allocation29_spill] sm:$0xff] %v14911_v12  ;;  %v16612_v12 = vld [vmem:[#allocation47_spill] sm:$0xff] }
 0x40f   : > { %v14913_v19 = vpop.f32.mrb[176].mxu0 }
 0x410   : > { %16585 = vst [vmem:[#allocation34_spill] sm:$0xff] %v14913_v19  ;;  %v14915_v54 = vpop.f32.mrb[177].mxu0  ;;  %11089 = vmatmul.mubr.msk.bf16.gmra.mrb[96].mxu1 %vm334_vm11, %v14655_v3 }
 0x411   : > { %16586 = vst [vmem:[#allocation33_spill] sm:$0xff] %v14915_v54  ;;  %v14919_v59 = vpop.f32.mrb[178].mxu0  ;;  %11092 = vmatprep.mubr.msk.bf16.mxu1 %vm334_vm11, %v14660_v41  ;;  %v16593_v41 = vld [vmem:[#allocation16_spill] sm:$0xff] }
 0x412   : > { %16587 = vst [vmem:[#allocation39_spill] sm:$0xff] %v14919_v59  ;;  %v14923_v42 = vpop.f32.mrb[179].mxu0 }
 0x413   : > { %16588 = vst [vmem:[#allocation37_spill] sm:$0xff] %v14923_v42 }
 0x417   : > { %v14925_v2 = vpop.f32.mrb[180].mxu0 }
 0x418   : > { %16589 = vst [vmem:[#allocation48_spill] sm:$0xff] %v14925_v2  ;;  %v14927_v50 = vpop.f32.mrb[181].mxu0  ;;  %11093 = vmatmul.mubr.msk.bf16.gmra.mrb[100].mxu1 %vm334_vm11, %v14671_v43  ;;  %v16594_v43 = vld [vmem:[#allocation15_spill] sm:$0xff] }
 0x419   : > { %16590 = vst [vmem:[#allocation7_spill] sm:$0xff] %v14927_v50  ;;  %v14931_v56 = vpop.f32.mrb[182].mxu0  ;;  %11096 = vmatprep.mubr.msk.bf16.mxu1 %vm334_vm11, %v14675_v8  ;;  %v16596_v8 = vld [vmem:[#allocation19_spill] sm:$0xff] }
 0x41a   : > { %16591 = vst [vmem:[#allocation12_spill] sm:$0xff] %v14931_v56  ;;  %v14935_v3 = vpop.f32.mrb[183].mxu0  ;;  %v16595_v56 = vld [vmem:[#allocation20_spill] sm:$0xff] }
 0x41b   : > { %16592 = vst [vmem:[#allocation10_spill] sm:$0xff] %v14935_v3  ;;  %v16597_v3 = vld [vmem:[#allocation24_spill] sm:$0xff] }
 0x420   : > { %11097 = vmatmul.mubr.msk.bf16.gmra.mrb[104].mxu1 %vm334_vm11, %v14684_v28  ;;  %v16598_v28 = vld [vmem:[#allocation23_spill] sm:$0xff] }
 0x421   : > { %11100 = vmatprep.mubr.msk.bf16.mxu1 %vm334_vm11, %v14692_v7  ;;  %v16599_v7 = vld [vmem:[#allocation28_spill] sm:$0xff] }
 0x428   : > { %11101 = vmatmul.mubr.msk.bf16.gmra.mrb[108].mxu1 %vm334_vm11, %v14696_v16  ;;  %v16600_v16 = vld [vmem:[#allocation27_spill] sm:$0xff] }
 0x429   : > { %11104 = vmatprep.mubr.msk.bf16.mxu1 %vm334_vm11, %v16593_v41  ;;  %v16601_v41 = vld [vmem:[#allocation32_spill] sm:$0xff] }
 0x430   : > { %11105 = vmatmul.mubr.msk.bf16.gmra.mrb[0].mxu1 %vm334_vm11, %v16594_v43  ;;  %v16602_v43 = vld [vmem:[#allocation31_spill] sm:$0xff] }
 0x431   : > { %11108 = vmatprep.mubr.msk.bf16.mxu1 %vm334_vm11, %v16595_v56  ;;  %v16603_v56 = vld [vmem:[#allocation36_spill] sm:$0xff] }
 0x438   : > { %11109 = vmatmul.mubr.msk.bf16.gmra.mrb[4].mxu1 %vm334_vm11, %v16596_v8  ;;  %v16604_v8 = vld [vmem:[#allocation35_spill] sm:$0xff] }
 0x439   : > { %11112 = vmatprep.mubr.msk.bf16.mxu1 %vm334_vm11, %v16597_v3  ;;  %v16605_v3 = vld [vmem:[#allocation40_spill] sm:$0xff] }
 0x440   : > { %11113 = vmatmul.mubr.msk.bf16.gmra.mrb[8].mxu1 %vm334_vm11, %v16598_v28  ;;  %v16606_v28 = vld [vmem:[#allocation38_spill] sm:$0xff] }
 0x441   : > { %11116 = vmatprep.mubr.msk.bf16.mxu1 %vm334_vm11, %v16599_v7  ;;  %v16607_v7 = vld [vmem:[#allocation44_spill] sm:$0xff] }
 0x448   : > { %11117 = vmatmul.mubr.msk.bf16.gmra.mrb[12].mxu1 %vm334_vm11, %v16600_v16  ;;  %v16608_v16 = vld [vmem:[#allocation49_spill] sm:$0xff] }
 0x449   : > { %11120 = vmatprep.mubr.msk.bf16.mxu1 %vm334_vm11, %v16601_v41  ;;  %v5714_v41 = vld [vmem:[#allocation2 + $0x1d0] sm:$0x1f] }
 0x450   : > { %11121 = vmatmul.mubr.msk.bf16.gmra.mrb[16].mxu1 %vm334_vm11, %v16602_v43  ;;  %v5958_v43 = vshrl.u32 %v5714_v41, 16 }
 0x451   : > { %11124 = vmatprep.mubr.msk.bf16.mxu1 %vm334_vm11, %v16603_v56  ;;  %v5961_v56 = vshll.u32 %v5714_v41, 16  ;;  %v14990_v41 = vld [vmem:[%s16331_s4 + $0x1] ss:$0 sm:$0xff] }
 0x458   : > { %11125 = vmatmul.mubr.msk.bf16.gmra.mrb[20].mxu1 %vm334_vm11, %v16604_v8  ;;  %v5960_v8 = vrot.slane %v5958_v43, 4 }
 0x459   : > { %11128 = vmatprep.mubr.msk.bf16.mxu1 %vm334_vm11, %v16605_v3  ;;  %v5963_v3 = vrot.slane %v5961_v56, 5  ;;  %v16611_v56 = vld [vmem:[#allocation41_spill] sm:$0xff] }
 0x460   : > { %11129 = vmatmul.mubr.msk.bf16.gmra.mrb[24].mxu1 %vm334_vm11, %v16606_v28 }
 0x461   : > { %11132 = vmatprep.mubr.msk.bf16.mxu1 %vm334_vm11, %v16607_v7  ;;  %v14984_v7 = vld [vmem:[%s16331_s4] ss:$0 sm:$0xff] }
 0x468   : > { %11133 = vmatmul.mubr.msk.bf16.gmra.mrb[28].mxu1 %vm334_vm11, %v16608_v16  ;;  %v16609_v16 = vld [vmem:[#allocation43_spill] sm:$0xff] }
 0x469   : > { %11136 = vmatprep.mubr.msk.bf16.mxu1 %vm334_vm11, %v14043_v15 }
 0x470   : > { %11137 = vmatmul.mubr.msk.bf16.gmra.mrb[32].mxu1 %vm334_vm11, %v14047_v27  ;;  %v16610_v27 = vld [vmem:[#allocation42_spill] sm:$0xff] }
 0x471   : > { %11140 = vmatprep.mubr.msk.bf16.mxu1 %vm334_vm11, %v14092_v17  ;;  %v5964_v17 = vor.u32 %v5963_v3, %v5960_v8 }
 0x473   : > { %v11034_v28 = vpop.f32.mrb[40].mxu1 }
 0x474   : > { %v11276_v50 = vadd.f32 %v11034_v28, %v16609_v16  ;;  %v6204_v15 = vpop.f32.mrb[41].mxu1  ;;  %v5965_v28 = vsel %vm5728_vm10, %v14071_v49, %v5964_v17 }
 0x475   : > { %v11277_v2 = vadd.f32 %v6204_v15, %v16610_v27  ;;  %v11035_v42 = vpop.f32.mrb[42].mxu1  ;;  %v15003_v15 = vld [vmem:[%s16331_s4 + $0x2] ss:$0 sm:$0xff] }
 0x476   : > { %v6770_v43 = vadd.f32 %v11276_v50, %v14984_v7  ;;  %v11278_v59 = vadd.f32 %v11035_v42, %v16611_v56  ;;  %v6207_v54 = vpop.f32.mrb[43].mxu1  ;;  %v16613_v56 = vld [vmem:[#allocation50_spill] sm:$0xff] }
 0x477   : > { %v6768_v19 = vadd.f32 %v11277_v2, %v14984_v7  ;;  %v11279_v47 = vadd.f32 %v6207_v54, %v16612_v12 }
 0x478   : > { %vm6882_vm0 = vcmp.ge.f32.partialorder %v6770_v43, 0.0  ;;  %v6999_v16 = vmul.f32 %v14990_v41, %v6770_v43  ;;  %v6771_v50 = vadd.f32 %v11278_v59, %v14984_v7  ;;  %11141 = vmatmul.mubr.msk.bf16.gmra.mrb[36].mxu1 %vm334_vm11, %v5965_v28  ;;  %v15015_v59 = vld [vmem:[%s16331_s4 + $0x3] ss:$0 sm:$0xff] }
 0x479   : > { %vm6880_vm8 = vcmp.ge.f32.partialorder %v6768_v19, 0.0  ;;  %v6997_v2 = vmul.f32 %v14990_v41, %v6768_v19  ;;  %v6769_v54 = vadd.f32 %v11279_v47, %v14984_v7 }
 0x47a   : > { %v7111_v12 = vsel %vm6882_vm0, %v6770_v43, %v6999_v16  ;;  %vm6883_vm14 = vcmp.ge.f32.partialorder %v6771_v50, 0.0  ;;  %v7000_v49 = vmul.f32 %v14990_v41, %v6771_v50 }
 0x47b   : > { %v7228_v42 = vmul.f32 %v15003_v15, %v7111_v12  ;;  %v7109_v8 = vsel %vm6880_vm8, %v6768_v19, %v6997_v2  ;;  %vm6881_vm10 = vcmp.ge.f32.partialorder %v6769_v54, 0.0  ;;  %v6998_v3 = vmul.f32 %v14990_v41, %v6769_v54  ;;  %v11038_v27 = vpop.f32.mrb[44].mxu1 }
 0x47c   : > { %v7112_v17 = vsel %vm6883_vm14, %v6771_v50, %v7000_v49  ;;  %v11280_v28 = vadd.f32 %v11038_v27, %v16613_v56  ;;  %v6220_v47 = vpop.f32.mrb[45].mxu1  ;;  %v7226_v43 = vmul.f32 %v15003_v15, %v7109_v8  ;;  %v16616_v49 = vld [vmem:[#allocation53_spill] sm:$0xff] }
 0x47d   : > { %v7110_v16 = vsel %vm6881_vm10, %v6769_v54, %v6998_v3  ;;  %v11281_v6 = vadd.f32 %v6220_v47, %v16614_v57  ;;  %v11039_v12 = vpop.f32.mrb[46].mxu1  ;;  %v7229_v19 = vmul.f32 %v15003_v15, %v7112_v17  ;;  %v7345_v51 = vadd.f32 %v15015_v59, %v7228_v42 }
 0x47e   : > { %v6774_v2 = vadd.f32 %v11280_v28, %v14984_v7  ;;  %v11282_v58 = vadd.f32 %v11039_v12, %v16615_v11  ;;  %v6223_v26 = vpop.f32.mrb[47].mxu1  ;;  %v7227_v56 = vmul.f32 %v15003_v15, %v7110_v16  ;;  %v7343_v8 = vadd.f32 %v15015_v59, %v7226_v43 }
 0x47f   : > { %v6772_v50 = vadd.f32 %v11281_v6, %v14984_v7  ;;  %v11283_v27 = vadd.f32 %v6223_v26, %v16616_v49  ;;  %v7346_v42 = vadd.f32 %v15015_v59, %v7229_v19 }
 0x480   : > { %vm6886_vm6 = vcmp.ge.f32.partialorder %v6774_v2, 0.0  ;;  %v7003_v54 = vmul.f32 %v14990_v41, %v6774_v2  ;;  %v6775_v57 = vadd.f32 %v11282_v58, %v14984_v7  ;;  %v7344_v43 = vadd.f32 %v15015_v59, %v7227_v56 }
 0x481   : > { %vm6884_vm7 = vcmp.ge.f32.partialorder %v6772_v50, 0.0  ;;  %v7001_v3 = vmul.f32 %v14990_v41, %v6772_v50  ;;  %v6773_v11 = vadd.f32 %v11283_v27, %v14984_v7 }
 0x482   : > { %v7115_v17 = vsel %vm6886_vm6, %v6774_v2, %v7003_v54  ;;  %vm6887_vm9 = vcmp.ge.f32.partialorder %v6775_v57, 0.0  ;;  %v7004_v26 = vmul.f32 %v14990_v41, %v6775_v57 }
 0x483   : > { %v7232_v6 = vmul.f32 %v15003_v15, %v7115_v17  ;;  %v7113_v28 = vsel %vm6884_vm7, %v6772_v50, %v7001_v3  ;;  %vm6885_vm13 = vcmp.ge.f32.partialorder %v6773_v11, 0.0  ;;  %v7002_v47 = vmul.f32 %v14990_v41, %v6773_v11  ;;  %v11042_v58 = vpop.f32.mrb[48].mxu1 }
 0x484   : > { %v7230_v16 = vmul.f32 %v15003_v15, %v7113_v28  ;;  %v7116_v12 = vsel %vm6887_vm9, %v6775_v57, %v7004_v26  ;;  %v11284_v49 = vadd.f32 %v11042_v58, %v14712_v34  ;;  %v6236_v27 = vpop.f32.mrb[49].mxu1 }
 0x485   : > { %v7349_v19 = vadd.f32 %v15015_v59, %v7232_v6  ;;  %v7233_v2 = vmul.f32 %v15003_v15, %v7116_v12  ;;  %v7114_v54 = vsel %vm6885_vm13, %v6773_v11, %v7002_v47  ;;  %v11285_v17 = vadd.f32 %v6236_v27, %v14714_v35  ;;  %v11043_v50 = vpop.f32.mrb[50].mxu1 }
 0x486   : > { %v7347_v3 = vadd.f32 %v15015_v59, %v7230_v16  ;;  %v7231_v20 = vmul.f32 %v15003_v15, %v7114_v54  ;;  %v6778_v56 = vadd.f32 %v11284_v49, %v14984_v7  ;;  %v11286_v28 = vadd.f32 %v11043_v50, %v14716_v38  ;;  %v6239_v57 = vpop.f32.mrb[51].mxu1 }
 0x487   : > { %v7457_v26 = vmax.f32 %v7345_v51, %v7349_v19  ;;  %v7350_v34 = vadd.f32 %v15015_v59, %v7233_v2  ;;  %v6776_v6 = vadd.f32 %v11285_v17, %v14984_v7  ;;  %v11287_v58 = vadd.f32 %v6239_v57, %v14718_v62 }
 0x488   : > { %v7455_v11 = vmax.f32 %v7343_v8, %v7347_v3  ;;  %v7348_v35 = vadd.f32 %v15015_v59, %v7231_v20  ;;  %vm6890_vm15 = vcmp.ge.f32.partialorder %v6778_v56, 0.0  ;;  %v7007_v47 = vmul.f32 %v14990_v41, %v6778_v56 }
 0x489   : > { %7513 = vst.msk [vmem:[#allocation4 + $0x10] sm:$0xff] %vm3058_vm2, %v7457_v26  ;;  %v7458_v16 = vmax.f32 %v7346_v42, %v7350_v34  ;;  %vm6888_vm1 = vcmp.ge.f32.partialorder %v6776_v6, 0.0  ;;  %v7005_v38 = vmul.f32 %v14990_v41, %v6776_v6  ;;  %v6779_v51 = vadd.f32 %v11286_v28, %v14984_v7 }
 0x48a   : > { %7511 = vst.msk [vmem:[#allocation4] sm:$0xff] %vm3058_vm2, %v7455_v11  ;;  %v7456_v12 = vmax.f32 %v7344_v43, %v7348_v35  ;;  %v7119_v49 = vsel %vm6890_vm15, %v6778_v56, %v7007_v47  ;;  %v6777_v62 = vadd.f32 %v11287_v58, %v14984_v7  ;;  %vm16617_vm15 = vcmask 257024  }
 0x48b   : > { %7514 = vst.msk [vmem:[#allocation4 + $0x18] sm:$0xff] %vm3058_vm2, %v7458_v16  ;;  %v7117_v20 = vsel %vm6888_vm1, %v6776_v6, %v7005_v38  ;;  %vm6891_vm4 = vcmp.ge.f32.partialorder %v6779_v51, 0.0  ;;  %v7008_v8 = vmul.f32 %v14990_v41, %v6779_v51  ;;  %v11046_v27 = vpop.f32.mrb[52].mxu1  ;;  %v7236_v42 = vmul.f32 %v15003_v15, %v7119_v49 }
 0x48c   : > { %7512 = vst.msk [vmem:[#allocation4 + $0x8] sm:$0xff] %vm3058_vm2, %v7456_v12  ;;  %vm6889_vm5 = vcmp.ge.f32.partialorder %v6777_v62, 0.0  ;;  %v7006_v19 = vmul.f32 %v14990_v41, %v6777_v62  ;;  %v11288_v2 = vadd.f32 %v11046_v27, %v14726_v63  ;;  %v6252_v43 = vpop.f32.mrb[53].mxu1  ;;  %v7234_v54 = vmul.f32 %v15003_v15, %v7117_v20 }
 0x48d   : > { %v7120_v17 = vsel %vm6891_vm4, %v6779_v51, %v7008_v8  ;;  %v11289_v50 = vadd.f32 %v6252_v43, %v14730_v10  ;;  %v11047_v3 = vpop.f32.mrb[54].mxu1  ;;  %v7353_v11 = vadd.f32 %v15015_v59, %v7236_v42 }
 0x48e   : > { %v7237_v56 = vmul.f32 %v15003_v15, %v7120_v17  ;;  %v7118_v28 = vsel %vm6889_vm5, %v6777_v62, %v7006_v19  ;;  %v6782_v57 = vadd.f32 %v11288_v2, %v14984_v7  ;;  %v6255_v26 = vpop.f32.mrb[55].mxu1  ;;  %v11290_v58 = vadd.f32 %v11047_v3, %v14732_v18  ;;  %vm16618_vm5 = vmmov %vm16617_vm15 }
 0x48f   : > { %v7235_v34 = vmul.f32 %v15003_v15, %v7118_v28  ;;  %v6780_v6 = vadd.f32 %v11289_v50, %v14984_v7  ;;  %v11291_v63 = vadd.f32 %v6255_v26, %v14734_v48  ;;  %v7351_v35 = vadd.f32 %v15015_v59, %v7234_v54 }
 0x490   : > { %vm6894_vm0 = vcmp.ge.f32.partialorder %v6782_v57, 0.0  ;;  %v7011_v10 = vmul.f32 %v14990_v41, %v6782_v57  ;;  %v6783_v16 = vadd.f32 %v11290_v58, %v14984_v7  ;;  %v7354_v38 = vadd.f32 %v15015_v59, %v7237_v56 }
 0x491   : > { %vm6892_vm8 = vcmp.ge.f32.partialorder %v6780_v6, 0.0  ;;  %v7009_v47 = vmul.f32 %v14990_v41, %v6780_v6  ;;  %v7352_v51 = vadd.f32 %v15015_v59, %v7235_v34  ;;  %v6781_v18 = vadd.f32 %v11291_v63, %v14984_v7 }
 0x492   : > { %v7123_v12 = vsel %vm6894_vm0, %v6782_v57, %v7011_v10  ;;  %v7569_v48 = vld [vmem:[#allocation4 + $0x10] ss:$2 sm:$0xff]  ;;  %v7625_v49 = vld [vmem:[#allocation4 + $0x11] ss:$2 sm:$0xff]  ;;  %vm6895_vm14 = vcmp.ge.f32.partialorder %v6783_v16, 0.0  ;;  %v7012_v8 = vmul.f32 %v14990_v41, %v6783_v16 }
 0x493   : > { %v7240_v62 = vmul.f32 %v15003_v15, %v7123_v12  ;;  %v7121_v20 = vsel %vm6892_vm8, %v6780_v6, %v7009_v47  ;;  %v11050_v27 = vpop.f32.mrb[56].mxu1  ;;  %vm6893_vm10 = vcmp.ge.f32.partialorder %v6781_v18, 0.0  ;;  %v7010_v19 = vmul.f32 %v14990_v41, %v6781_v18  ;;  %v7742_v12 = vpop.permute.xlu1 %7741 }
 0x494   : > { %v7238_v42 = vmul.f32 %v15003_v15, %v7121_v20  ;;  %v11292_v2 = vadd.f32 %v11050_v27, %v14742_v60  ;;  %v6268_v43 = vpop.f32.mrb[57].mxu1  ;;  %v7124_v17 = vsel %vm6895_vm14, %v6783_v16, %v7012_v8  ;;  %v7679_v56 = vmax.f32 %v7569_v48, %v7625_v49  ;;  %v7567_v20 = vld [vmem:[#allocation4] ss:$2 sm:$0xff]  ;;  %v7623_v8 = vld [vmem:[#allocation4 + $0x1] ss:$2 sm:$0xff] }
 0x495   : > { %v7357_v54 = vadd.f32 %v15015_v59, %v7240_v62  ;;  %v11293_v50 = vadd.f32 %v6268_v43, %v14746_v4  ;;  %v11051_v3 = vpop.f32.mrb[58].mxu1  ;;  %v7241_v57 = vmul.f32 %v15003_v15, %v7124_v17  ;;  %v7122_v26 = vsel %vm6893_vm10, %v6781_v18, %v7010_v19 }
 0x496   : > { %v7355_v28 = vadd.f32 %v15015_v59, %v7238_v42  ;;  %v6786_v34 = vadd.f32 %v11292_v2, %v14984_v7  ;;  %v6271_v6 = vpop.f32.mrb[59].mxu1  ;;  %v7239_v63 = vmul.f32 %v15003_v15, %v7122_v26  ;;  %v11294_v10 = vadd.f32 %v11051_v3, %v14748_v24 }
 0x497   : > { %v7461_v58 = vmax.f32 %v7353_v11, %v7357_v54  ;;  %v6784_v60 = vadd.f32 %v11293_v50, %v14984_v7  ;;  %v7358_v4 = vadd.f32 %v15015_v59, %v7241_v57  ;;  %v7875_v62 = vmul.f32 %v7742_v12, %v7679_v56  ;;  %v7737_v56 = vpop.permute.xlu0 %7736 }
 0x498   : > { %v7459_v47 = vmax.f32 %v7351_v35, %v7355_v28  ;;  %vm6898_vm6 = vcmp.ge.f32.partialorder %v6786_v34, 0.0  ;;  %v7015_v16 = vmul.f32 %v14990_v41, %v6786_v34  ;;  %v7356_v18 = vadd.f32 %v15015_v59, %v7239_v63 }
 0x499   : > { %7517 = vst.msk [vmem:[#allocation4 + $0x30] sm:$0xff] %vm3058_vm2, %v7461_v58  ;;  %vm6896_vm7 = vcmp.ge.f32.partialorder %v6784_v60, 0.0  ;;  %v7013_v11 = vmul.f32 %v14990_v41, %v6784_v60  ;;  %v6787_v48 = vadd.f32 %v11294_v10, %v14984_v7  ;;  %v7462_v49 = vmax.f32 %v7354_v38, %v7358_v4 }
 0x49a   : > { %7515 = vst.msk [vmem:[#allocation4 + $0x20] sm:$0xff] %vm3058_vm2, %v7459_v47  ;;  %v7127_v24 = vsel %vm6898_vm6, %v6786_v34, %v7015_v16  ;;  %v11295_v35 = vadd.f32 %v6271_v6, %v14750_v33  ;;  %v7460_v27 = vmax.f32 %v7352_v51, %v7356_v18  ;;  %v15102_v54 = vpack.c.bf16 %v7875_v62, %v7875_v62 }
 0x49b   : > { %v7125_v42 = vsel %vm6896_vm7, %v6784_v60, %v7013_v11  ;;  %vm6899_vm9 = vcmp.ge.f32.partialorder %v6787_v48, 0.0  ;;  %v11054_v19 = vpop.f32.mrb[60].mxu1  ;;  %7518 = vst.msk [vmem:[#allocation4 + $0x38] sm:$0xff] %vm3058_vm2, %v7462_v49  ;;  %v7016_v2 = vmul.f32 %v14990_v41, %v6787_v48  ;;  %v7244_v33 = vmul.f32 %v15003_v15, %v7127_v24 }
 0x49c   : > { %v6785_v43 = vadd.f32 %v11295_v35, %v14984_v7  ;;  %v6284_v17 = vpop.f32.mrb[61].mxu1  ;;  %7516 = vst.msk [vmem:[#allocation4 + $0x28] sm:$0xff] %vm3058_vm2, %v7460_v27  ;;  %v7678_v38 = vmax.f32 %v7567_v20, %v7623_v8  ;;  %v11296_v50 = vadd.f32 %v11054_v19, %v14760_v23  ;;  %v7242_v28 = vmul.f32 %v15003_v15, %v7125_v42 }
 0x49d   : > { %v11297_v51 = vadd.f32 %v6284_v17, %v14762_v52  ;;  %v11055_v3 = vpop.f32.mrb[62].mxu1  ;;  %v7128_v57 = vsel %vm6899_vm9, %v6787_v48, %v7016_v2  ;;  %8044 = vrot.lane.b32.xlu1 %v15102_v54, %s11727_s25  ;;  %8015 = vst.msk [vmem:[#allocation3 + $0x18] sm:$0xf] %vm16617_vm15, %v15102_v54  ;;  %v7361_v47 = vadd.f32 %v15015_v59, %v7244_v33  ;;  %v16619_v17 = vld [vmem:[#allocation54_spill] sm:$0xff]  ;;  %vm16624_vm9 = vmmov %vm16618_vm5 }
 0x49e   : > { %vm6897_vm13 = vcmp.ge.f32.partialorder %v6785_v43, 0.0  ;;  %v7014_v26 = vmul.f32 %v14990_v41, %v6785_v43  ;;  %v6287_v34 = vpop.f32.mrb[63].mxu1  ;;  %v7245_v6 = vmul.f32 %v15003_v15, %v7128_v57  ;;  %v7874_v23 = vmul.f32 %v7737_v56, %v7678_v38 }
 0x49f   : > { %v6790_v52 = vadd.f32 %v11296_v50, %v14984_v7  ;;  %v6788_v58 = vadd.f32 %v11297_v51, %v14984_v7  ;;  %v11298_v60 = vadd.f32 %v11055_v3, %v14764_v46  ;;  %v11299_v10 = vadd.f32 %v6287_v34, %v14766_v0  ;;  %v16620_v50 = vld [vmem:[#allocation55_spill] sm:$0xff] }
 0x4a0   : > { %v7126_v63 = vsel %vm6897_vm13, %v6785_v43, %v7014_v26  ;;  %v15121_v16 = vpack.c.bf16 %v7874_v23, %v7874_v23  ;;  %v7359_v48 = vadd.f32 %v15015_v59, %v7242_v28  ;;  %v7362_v46 = vadd.f32 %v15015_v59, %v7245_v6  ;;  %vm16625_vm13 = vmmov %vm16618_vm5 }
 0x4a1   : > { %v7243_v4 = vmul.f32 %v15003_v15, %v7126_v63  ;;  %vm6902_vm1 = vcmp.ge.f32.partialorder %v6790_v52, 0.0  ;;  %v7019_v12 = vmul.f32 %v14990_v41, %v6790_v52  ;;  %vm6900_vm4 = vcmp.ge.f32.partialorder %v6788_v58, 0.0 }
 0x4a2   : > { %v7017_v18 = vmul.f32 %v14990_v41, %v6788_v58  ;;  %v6791_v11 = vadd.f32 %v11298_v60, %v14984_v7  ;;  %8042 = vrot.lane.b32.xlu0 %v15121_v16, %s11727_s25  ;;  %8014 = vst.msk [vmem:[#allocation3 + $0x14] sm:$0xf] %vm16618_vm5, %v15121_v16  ;;  %v6789_v49 = vadd.f32 %v11299_v10, %v14984_v7  ;;  %v7573_v10 = vld [vmem:[#allocation4 + $0x30] ss:$2 sm:$0xff] }
 0x4a3   : > { %v7360_v0 = vadd.f32 %v15015_v59, %v7243_v4  ;;  %v11058_v24 = vpop.f32.mrb[64].mxu1  ;;  %v7131_v35 = vsel %vm6902_vm1, %v6790_v52, %v7019_v12  ;;  %v7629_v4 = vld [vmem:[#allocation4 + $0x31] ss:$2 sm:$0xff] }
 0x4a4   : > { %v7129_v62 = vsel %vm6900_vm4, %v6788_v58, %v7017_v18  ;;  %vm6903_vm0 = vcmp.ge.f32.partialorder %v6791_v11, 0.0  ;;  %v7020_v20 = vmul.f32 %v14990_v41, %v6791_v11  ;;  %v6300_v8 = vpop.f32.mrb[65].mxu1  ;;  %v7248_v27 = vmul.f32 %v15003_v15, %v7131_v35 }
 0x4a5   : > { %v7246_v42 = vmul.f32 %v15003_v15, %v7129_v62  ;;  %vm6901_vm8 = vcmp.ge.f32.partialorder %v6789_v49, 0.0  ;;  %v7018_v19 = vmul.f32 %v14990_v41, %v6789_v49  ;;  %v11059_v2 = vpop.f32.mrb[66].mxu1  ;;  %v11300_v33 = vadd.f32 %v11058_v24, %v16619_v17 }
 0x4a6   : > { %v7132_v43 = vsel %vm6903_vm0, %v6791_v11, %v7020_v20  ;;  %v11301_v38 = vadd.f32 %v6300_v8, %v14774_v44  ;;  %v11302_v51 = vadd.f32 %v11059_v2, %v16620_v50  ;;  %v6303_v3 = vpop.f32.mrb[67].mxu1  ;;  %v7365_v56 = vadd.f32 %v15015_v59, %v7248_v27  ;;  %v7571_v11 = vld [vmem:[#allocation4 + $0x20] ss:$2 sm:$0xff] }
 0x4a7   : > { %v7363_v28 = vadd.f32 %v15015_v59, %v7246_v42  ;;  %v7249_v57 = vmul.f32 %v15003_v15, %v7132_v43  ;;  %v7130_v26 = vsel %vm6901_vm8, %v6789_v49, %v7018_v19  ;;  %v6794_v6 = vadd.f32 %v11300_v33, %v14984_v7  ;;  %v7627_v49 = vld [vmem:[#allocation4 + $0x21] ss:$2 sm:$0xff]  ;;  %v7747_v42 = vpop.permute.xlu0 %7746  ;;  %v7752_v33 = vpop.permute.xlu1 %7751 }
 0x4a8   : > { %v7247_v34 = vmul.f32 %v15003_v15, %v7130_v26  ;;  %v6792_v23 = vadd.f32 %v11301_v38, %v14984_v7  ;;  %v6795_v52 = vadd.f32 %v11302_v51, %v14984_v7  ;;  %v7465_v58 = vmax.f32 %v7361_v47, %v7365_v56 }
 0x4a9   : > { %v7463_v44 = vmax.f32 %v7359_v48, %v7363_v28  ;;  %v7366_v63 = vadd.f32 %v15015_v59, %v7249_v57  ;;  %v11303_v60 = vadd.f32 %v6303_v3, %v14778_v45  ;;  %vm6906_vm14 = vcmp.ge.f32.partialorder %v6794_v6, 0.0 }
 0x4aa   : > { %v7364_v12 = vadd.f32 %v15015_v59, %v7247_v34  ;;  %v7023_v18 = vmul.f32 %v14990_v41, %v6794_v6  ;;  %vm6904_vm10 = vcmp.ge.f32.partialorder %v6792_v23, 0.0  ;;  %7521 = vst.msk [vmem:[#allocation4 + $0x50] sm:$0xff] %vm3058_vm2, %v7465_v58  ;;  %v7021_v48 = vmul.f32 %v14990_v41, %v6792_v23  ;;  %v16621_v34 = vld [vmem:[#allocation57_spill] sm:$0xff] }
 0x4ab   : > { %7519 = vst.msk [vmem:[#allocation4 + $0x40] sm:$0xff] %vm3058_vm2, %v7463_v44  ;;  %v7466_v47 = vmax.f32 %v7362_v46, %v7366_v63  ;;  %vm6907_vm6 = vcmp.ge.f32.partialorder %v6795_v52, 0.0  ;;  %v7024_v45 = vmul.f32 %v14990_v41, %v6795_v52  ;;  %v11062_v24 = vpop.f32.mrb[68].mxu1  ;;  %v6793_v20 = vadd.f32 %v11303_v60, %v14984_v7 }
 0x4ac   : > { %v7464_v35 = vmax.f32 %v7360_v0, %v7364_v12  ;;  %v7135_v62 = vsel %vm6906_vm14, %v6794_v6, %v7023_v18  ;;  %v7681_v8 = vmax.f32 %v7573_v10, %v7629_v4  ;;  %v6316_v27 = vpop.f32.mrb[69].mxu1  ;;  %v7133_v2 = vsel %vm6904_vm10, %v6792_v23, %v7021_v48  ;;  %v11647_v23 = vld [vmem:[%s16332_s5 + $0x30] sm:$0xff]   ;;  %v16623_v18 = vld [vmem:[#allocation58_spill] sm:$0xff] }
 0x4ad   : > { %7522 = vst.msk [vmem:[#allocation4 + $0x58] sm:$0xff] %vm3058_vm2, %v7466_v47  ;;  %v7252_v19 = vmul.f32 %v15003_v15, %v7135_v62  ;;  %v7136_v46 = vsel %vm6907_vm6, %v6795_v52, %v7024_v45  ;;  %v7680_v43 = vmax.f32 %v7571_v11, %v7627_v49  ;;  %v11063_v17 = vpop.f32.mrb[70].mxu1  ;;  %v7250_v0 = vmul.f32 %v15003_v15, %v7133_v2  ;;  %v16622_v4 = vld [vmem:[#allocation56_spill] sm:$0xff]  ;;  %vm16628_vm6 = vmmov %vm16624_vm9 }
 0x4ae   : > { %7520 = vst.msk [vmem:[#allocation4 + $0x48] sm:$0xff] %vm3058_vm2, %v7464_v35  ;;  %vm6905_vm7 = vcmp.ge.f32.partialorder %v6793_v20, 0.0  ;;  %v7022_v38 = vmul.f32 %v14990_v41, %v6793_v20  ;;  %v6319_v50 = vpop.f32.mrb[71].mxu1  ;;  %v7253_v51 = vmul.f32 %v15003_v15, %v7136_v46  ;;  %v7877_v3 = vmul.f32 %v7752_v33, %v7681_v8  ;;  %11144 = vmatprep.subr.bf16.mxu0 %v11647_v23 }
 0x4af   : > { %v7876_v56 = vmul.f32 %v7747_v42, %v7680_v43  ;;  %v11304_v28 = vadd.f32 %v11062_v24, %v14785_v25  ;;  %v15166_v57 = vadd.f32 %v15015_v59, %v7252_v19  ;;  %v11305_v6 = vadd.f32 %v6316_v27, %v16621_v34  ;;  %v11648_v25 = vld [vmem:[%s16332_s5 + $0x38] sm:$0xff]   ;;  %11145 = vmatpush3.bf16.msra.mxu0 %v11647_v23 }
 0x4b0   : > { %v7134_v26 = vsel %vm6905_vm7, %v6793_v20, %v7022_v38  ;;  %v10323_v58 = vpack.c.bf16 %v7877_v3, %v7877_v3  ;;  %v15178_v60 = vadd.f32 %v15015_v59, %v7250_v0  ;;  %v11306_v12 = vadd.f32 %v11063_v17, %v16622_v4  ;;  %11146 = vmatprep.subr.bf16.mxu0 %v11648_v25  ;;  %v11649_v17 = vld [vmem:[%s16332_s5 + $0x40] sm:$0xff]  }
 0x4b1   : > { %v7251_v52 = vmul.f32 %v15003_v15, %v7134_v26  ;;  %v10322_v44 = vpack.c.bf16 %v7876_v56, %v7876_v56  ;;  %v6798_v63 = vadd.f32 %v11304_v28, %v14984_v7  ;;  %v6796_v10 = vadd.f32 %v11305_v6, %v14984_v7  ;;  %v16626_v26 = vld [vmem:[#allocation59_spill] sm:$0xff] }
 0x4b2   : > { %v11307_v11 = vadd.f32 %v6319_v50, %v16623_v18  ;;  %v15184_v49 = vadd.f32 %v15015_v59, %v7253_v51  ;;  %8048 = vrot.lane.b32.xlu1 %v10323_v58, %s11727_s25  ;;  %8017 = vst.msk [vmem:[#allocation3 + $0x20] sm:$0xf] %vm16624_vm9, %v10323_v58  ;;  %v6799_v35 = vadd.f32 %v11306_v12, %v14984_v7  ;;  %vm16629_vm9 = vmmov %vm16628_vm6 }
 0x4b3   : > { %v15187_v47 = vadd.f32 %v15015_v59, %v7251_v52  ;;  %8046 = vrot.lane.b32.xlu0 %v10322_v44, %s11727_s25  ;;  %8016 = vst.msk [vmem:[#allocation3 + $0x1c] sm:$0xf] %vm16625_vm13, %v10322_v44  ;;  %vm6910_vm15 = vcmp.ge.f32.partialorder %v6798_v63, 0.0  ;;  %v7027_v48 = vmul.f32 %v14990_v41, %v6798_v63  ;;  %v11066_v45 = vpop.f32.mrb[72].mxu1  ;;  %vm6908_vm1 = vcmp.ge.f32.partialorder %v6796_v10, 0.0  ;;  %11147 = vmatpush3.bf16.msra.mxu0 %v11648_v25 }
 0x4b4   : > { %v7025_v24 = vmul.f32 %v14990_v41, %v6796_v10  ;;  %v6797_v62 = vadd.f32 %v11307_v11, %v14984_v7  ;;  %v6332_v20 = vpop.f32.mrb[73].mxu1  ;;  %v7577_v8 = vld [vmem:[#allocation4 + $0x50] ss:$2 sm:$0xff]  ;;  %v7633_v27 = vld [vmem:[#allocation4 + $0x51] ss:$2 sm:$0xff]  ;;  %v11308_v19 = vadd.f32 %v11066_v45, %v14797_v31  ;;  %vm6911_vm4 = vcmp.ge.f32.partialorder %v6799_v35, 0.0  ;;  %11148 = vmatprep.subr.bf16.mxu0 %v11649_v17 }
 0x4b5   : > { %v7139_v42 = vsel %vm6910_vm15, %v6798_v63, %v7027_v48  ;;  %v11309_v2 = vadd.f32 %v6332_v20, %v14799_v29  ;;  %v11067_v46 = vpop.f32.mrb[74].mxu1  ;;  %v7683_v43 = vmax.f32 %v7577_v8, %v7633_v27  ;;  %v7028_v38 = vmul.f32 %v14990_v41, %v6799_v35  ;;  %v11650_v48 = vld [vmem:[%s16332_s5 + $0x48] sm:$0xff]  }
 0x4b6   : > { %v7256_v33 = vmul.f32 %v15003_v15, %v7139_v42  ;;  %v7137_v0 = vsel %vm6908_vm1, %v6796_v10, %v7025_v24  ;;  %v6335_v50 = vpop.f32.mrb[75].mxu1  ;;  %8160 = vrot.lane.b32.xlu1 %v10323_v58, %s11728_s12  ;;  %vm6909_vm5 = vcmp.ge.f32.partialorder %v6797_v62, 0.0  ;;  %v7026_v31 = vmul.f32 %v14990_v41, %v6797_v62  ;;  %v7762_v10 = vpop.permute.xlu1 %7761  ;;  %v16627_v24 = vld [vmem:[#allocation60_spill] sm:$0xff] }
 0x4b7   : > { %v7254_v51 = vmul.f32 %v15003_v15, %v7137_v0  ;;  %8158 = vrot.lane.b32.xlu0 %v10322_v44, %s11728_s12  ;;  %v6802_v29 = vadd.f32 %v11308_v19, %v14984_v7  ;;  %v7140_v56 = vsel %vm6911_vm4, %v6799_v35, %v7028_v38  ;;  %v6800_v28 = vadd.f32 %v11309_v2, %v14984_v7  ;;  %v7631_v20 = vld [vmem:[#allocation4 + $0x41] ss:$2 sm:$0xff] }
 0x4b8   : > { %v7373_v3 = vadd.f32 %v15015_v59, %v7256_v33  ;;  %v11310_v34 = vadd.f32 %v11067_v46, %v16626_v26  ;;  %v7257_v23 = vmul.f32 %v15003_v15, %v7140_v56  ;;  %v7138_v52 = vsel %vm6909_vm5, %v6797_v62, %v7026_v31  ;;  %11149 = vmatpush3.bf16.msra.mxu0 %v11649_v17  ;;  %v7757_v31 = vpop.permute.xlu0 %7756 }
 0x4b9   : > { %v7371_v6 = vadd.f32 %v15015_v59, %v7254_v51  ;;  %vm6914_vm0 = vcmp.ge.f32.partialorder %v6802_v29, 0.0  ;;  %v7255_v44 = vmul.f32 %v15003_v15, %v7138_v52  ;;  %v7031_v63 = vmul.f32 %v14990_v41, %v6802_v29  ;;  %11150 = vmatprep.subr.bf16.mxu0 %v11650_v48  ;;  %v11652_v51 = vld [vmem:[%s16332_s5 + $0x50] sm:$0xff]  }
 0x4ba   : > { %v7469_v58 = vmax.f32 %v15166_v57, %v7373_v3  ;;  %vm6912_vm8 = vcmp.ge.f32.partialorder %v6800_v28, 0.0  ;;  %v7374_v12 = vadd.f32 %v15015_v59, %v7257_v23  ;;  %v7029_v25 = vmul.f32 %v14990_v41, %v6800_v28 }
 0x4bb   : > { %v7467_v4 = vmax.f32 %v15178_v60, %v7371_v6  ;;  %v6803_v18 = vadd.f32 %v11310_v34, %v14984_v7  ;;  %v11070_v11 = vpop.f32.mrb[76].mxu1  ;;  %v7372_v57 = vadd.f32 %v15015_v59, %v7255_v44  ;;  %v7143_v45 = vsel %vm6914_vm0, %v6802_v29, %v7031_v63  ;;  %v7575_v60 = vld [vmem:[#allocation4 + $0x40] ss:$2 sm:$0xff] }
 0x4bc   : > { %7525 = vst.msk [vmem:[#allocation4 + $0x70] sm:$0xff] %vm3058_vm2, %v7469_v58  ;;  %v11311_v35 = vadd.f32 %v6335_v50, %v16627_v24  ;;  %v7879_v62 = vmul.f32 %v7762_v10, %v7683_v43  ;;  %v6348_v8 = vpop.f32.mrb[77].mxu1  ;;  %v7470_v27 = vmax.f32 %v15184_v49, %v7374_v12  ;;  %v7260_v42 = vmul.f32 %v15003_v15, %v7143_v45  ;;  %v11653_v58 = vld [vmem:[%s16332_s5 + $0x58] sm:$0xff]  }
 0x4bd   : > { %7523 = vst.msk [vmem:[#allocation4 + $0x60] sm:$0xff] %vm3058_vm2, %v7467_v4  ;;  %v7141_v19 = vsel %vm6912_vm8, %v6800_v28, %v7029_v25  ;;  %vm6915_vm14 = vcmp.ge.f32.partialorder %v6803_v18, 0.0  ;;  %v11071_v2 = vpop.f32.mrb[78].mxu1  ;;  %v7468_v46 = vmax.f32 %v15187_v47, %v7372_v57  ;;  %v7032_v43 = vmul.f32 %v14990_v41, %v6803_v18  ;;  %11151 = vmatpush3.bf16.msra.mxu0 %v11650_v48 }
 0x4be   : > { %v7258_v33 = vmul.f32 %v15003_v15, %v7141_v19  ;;  %v6801_v0 = vadd.f32 %v11311_v35, %v14984_v7  ;;  %v6351_v17 = vpop.f32.mrb[79].mxu1  ;;  %7526 = vst.msk [vmem:[#allocation4 + $0x78] sm:$0xff] %vm3058_vm2, %v7470_v27  ;;  %v10325_v38 = vpack.c.bf16 %v7879_v62, %v7879_v62  ;;  %v7682_v49 = vmax.f32 %v7575_v60, %v7631_v20 }
 0x4bf   : > { %v11312_v50 = vadd.f32 %v11070_v11, %v14809_v61  ;;  %7524 = vst.msk [vmem:[#allocation4 + $0x68] sm:$0xff] %vm3058_vm2, %v7468_v46  ;;  %v15243_v47 = vadd.f32 %v15015_v59, %v7260_v42  ;;  %v7144_v29 = vsel %vm6915_vm14, %v6803_v18, %v7032_v43  ;;  %v11313_v26 = vadd.f32 %v6348_v8, %v14811_v13 }
 0x4c0   : > { %vm6913_vm10 = vcmp.ge.f32.partialorder %v6801_v0, 0.0  ;;  %v7030_v3 = vmul.f32 %v14990_v41, %v6801_v0  ;;  %v7261_v56 = vmul.f32 %v15003_v15, %v7144_v29  ;;  %8164 = vrot.lane.b32.xlu1 %v10325_v38, %s11728_s12  ;;  %8019 = vst.msk [vmem:[#allocation3 + $0x28] sm:$0xf] %vm16628_vm6, %v10325_v38  ;;  %v7878_v61 = vmul.f32 %v7757_v31, %v7682_v49 }
 0x4c1   : > { %v6806_v28 = vadd.f32 %v11312_v50, %v14984_v7  ;;  %v15253_v34 = vadd.f32 %v15015_v59, %v7258_v33  ;;  %v11314_v23 = vadd.f32 %v11071_v2, %v14813_v1  ;;  %v11315_v52 = vadd.f32 %v6351_v17, %v14815_v5  ;;  %11152 = vmatprep.subr.bf16.mxu0 %v11652_v51 }
 0x4c2   : > { %v7142_v6 = vsel %vm6913_vm10, %v6801_v0, %v7030_v3  ;;  %v15261_v44 = vadd.f32 %v15015_v59, %v7261_v56  ;;  %v10324_v10 = vpack.c.bf16 %v7878_v61, %v7878_v61  ;;  %v6804_v12 = vadd.f32 %v11313_v26, %v14984_v7  ;;  %11153 = vmatpush3.bf16.msra.mxu0 %v11652_v51  ;;  %vm16630_vm10 = vmmov %vm16628_vm6 }
 0x4c3   : > { %v7259_v63 = vmul.f32 %v15003_v15, %v7142_v6  ;;  %vm6918_vm7 = vcmp.ge.f32.partialorder %v6806_v28, 0.0  ;;  %v11074_v13 = vpop.f32.mrb[80].mxu1  ;;  %v7035_v4 = vmul.f32 %v14990_v41, %v6806_v28  ;;  %v6807_v1 = vadd.f32 %v11314_v23, %v14984_v7  ;;  %11154 = vmatprep.subr.bf16.mxu0 %v11653_v58 }
 0x4c4   : > { %v6805_v5 = vadd.f32 %v11315_v52, %v14984_v7  ;;  %v6364_v25 = vpop.f32.mrb[81].mxu1  ;;  %8162 = vrot.lane.b32.xlu0 %v10324_v10, %s11728_s12  ;;  %8018 = vst.msk [vmem:[#allocation3 + $0x24] sm:$0xf] %vm16629_vm9, %v10324_v10  ;;  %8052 = vrot.lane.b32.xlu1 %v10325_v38, %s11727_s25  ;;  %v11316_v11 = vadd.f32 %v11074_v13, %v14821_v40  ;;  %vm6916_vm13 = vcmp.ge.f32.partialorder %v6804_v12, 0.0 }
 0x4c5   : > { %v15269_v18 = vadd.f32 %v15015_v59, %v7259_v63  ;;  %v11317_v48 = vadd.f32 %v6364_v25, %v14823_v39  ;;  %v11075_v57 = vpop.f32.mrb[82].mxu1  ;;  %v7147_v45 = vsel %vm6918_vm7, %v6806_v28, %v7035_v4  ;;  %v7033_v24 = vmul.f32 %v14990_v41, %v6804_v12  ;;  %v7581_v3 = vld [vmem:[#allocation4 + $0x70] ss:$2 sm:$0xff]  ;;  %v7637_v56 = vld [vmem:[#allocation4 + $0x71] ss:$2 sm:$0xff]  ;;  %vm16631_vm7 = vmmov %vm16629_vm9 }
 0x4c6   : > { %vm6919_vm15 = vcmp.ge.f32.partialorder %v6807_v1, 0.0  ;;  %v6367_v35 = vpop.f32.mrb[83].mxu1  ;;  %v7264_v62 = vmul.f32 %v15003_v15, %v7147_v45  ;;  %v7036_v60 = vmul.f32 %v14990_v41, %v6807_v1  ;;  %vm6917_vm1 = vcmp.ge.f32.partialorder %v6805_v5, 0.0  ;;  %11155 = vmatpush3.bf16.msra.mxu0 %v11653_v58  ;;  %v7579_v23 = vld [vmem:[#allocation4 + $0x60] ss:$2 sm:$0xff] }
 0x4c7   : > { %v7034_v20 = vmul.f32 %v14990_v41, %v6805_v5  ;;  %v7145_v8 = vsel %vm6916_vm13, %v6804_v12, %v7033_v24  ;;  %v6810_v40 = vadd.f32 %v11316_v11, %v14984_v7  ;;  %v6808_v39 = vadd.f32 %v11317_v48, %v14984_v7  ;;  %v7635_v52 = vld [vmem:[#allocation4 + $0x61] ss:$2 sm:$0xff]  ;;  %v7767_v48 = vpop.permute.xlu0 %7766 }
 0x4c8   : > { %v11318_v27 = vadd.f32 %v11075_v57, %v14825_v32  ;;  %v7381_v42 = vadd.f32 %v15015_v59, %v7264_v62  ;;  %v7262_v19 = vmul.f32 %v15003_v15, %v7145_v8  ;;  %v7148_v2 = vsel %vm6919_vm15, %v6807_v1, %v7036_v60  ;;  %8050 = vrot.lane.b32.xlu0 %v10324_v10, %s11727_s25 }
 0x4c9   : > { %v7146_v46 = vsel %vm6917_vm1, %v6805_v5, %v7034_v20  ;;  %v7265_v33 = vmul.f32 %v15003_v15, %v7148_v2  ;;  %vm6922_vm4 = vcmp.ge.f32.partialorder %v6810_v40, 0.0  ;;  %v7039_v0 = vmul.f32 %v14990_v41, %v6810_v40  ;;  %v7772_v5 = vpop.permute.xlu1 %7771 }
 0x4ca   : > { %v7263_v43 = vmul.f32 %v15003_v15, %v7146_v46  ;;  %v7473_v17 = vmax.f32 %v15243_v47, %v7381_v42  ;;  %v7379_v32 = vadd.f32 %v15015_v59, %v7262_v19  ;;  %vm6920_vm5 = vcmp.ge.f32.partialorder %v6808_v39, 0.0 }
 0x4cb   : > { %v7037_v38 = vmul.f32 %v14990_v41, %v6808_v39  ;;  %v11078_v49 = vpop.f32.mrb[84].mxu1  ;;  %v7382_v50 = vadd.f32 %v15015_v59, %v7265_v33  ;;  %v7151_v31 = vsel %vm6922_vm4, %v6810_v40, %v7039_v0  ;;  %v6811_v29 = vadd.f32 %v11318_v27, %v14984_v7 }
 0x4cc   : > { %v7380_v51 = vadd.f32 %v15015_v59, %v7263_v43  ;;  %v6380_v61 = vpop.f32.mrb[85].mxu1  ;;  %7529 = vst.msk [vmem:[#allocation4 + $0x90] sm:$0xff] %vm3058_vm2, %v7473_v17  ;;  %v7471_v47 = vmax.f32 %v15253_v34, %v7379_v32  ;;  %v7268_v28 = vmul.f32 %v15003_v15, %v7151_v31  ;;  %v11319_v6 = vadd.f32 %v6367_v35, %v14827_v55 }
 0x4cd   : > { %v7149_v26 = vsel %vm6920_vm5, %v6808_v39, %v7037_v38  ;;  %v11079_v58 = vpop.f32.mrb[86].mxu1  ;;  %v7474_v63 = vmax.f32 %v15261_v44, %v7382_v50  ;;  %vm6923_vm0 = vcmp.ge.f32.partialorder %v6811_v29, 0.0  ;;  %v7040_v12 = vmul.f32 %v14990_v41, %v6811_v29  ;;  %v15330_v43 = vpop.permute.xlu1 %7781 }
 0x4ce   : > { %v7472_v10 = vmax.f32 %v15269_v18, %v7380_v51  ;;  %v7266_v13 = vmul.f32 %v15003_v15, %v7149_v26  ;;  %v6383_v4 = vpop.f32.mrb[87].mxu1  ;;  %7527 = vst.msk [vmem:[#allocation4 + $0x80] sm:$0xff] %vm3058_vm2, %v7471_v47  ;;  %v15304_v34 = vadd.f32 %v15015_v59, %v7268_v28  ;;  %v6809_v55 = vadd.f32 %v11319_v6, %v14984_v7 }
 0x4cf   : > { %v7685_v1 = vmax.f32 %v7581_v3, %v7637_v56  ;;  %7530 = vst.msk [vmem:[#allocation4 + $0x98] sm:$0xff] %vm3058_vm2, %v7474_v63  ;;  %v7684_v25 = vmax.f32 %v7579_v23, %v7635_v52  ;;  %v11320_v18 = vadd.f32 %v11078_v49, %v14841_v36  ;;  %v11321_v11 = vadd.f32 %v6380_v61, %v14843_v21  ;;  %v7777_v52 = vpop.permute.xlu0 %7776 }
 0x4d0   : > { %7528 = vst.msk [vmem:[#allocation4 + $0x88] sm:$0xff] %vm3058_vm2, %v7472_v10  ;;  %v15311_v44 = vadd.f32 %v15015_v59, %v7266_v13  ;;  %v7152_v57 = vsel %vm6923_vm0, %v6811_v29, %v7040_v12  ;;  %vm6921_vm8 = vcmp.ge.f32.partialorder %v6809_v55, 0.0  ;;  %v7038_v45 = vmul.f32 %v14990_v41, %v6809_v55  ;;  %vm16635_vm0 = vmmov %vm16631_vm7 }
 0x4d1   : > { %v7881_v24 = vmul.f32 %v7772_v5, %v7685_v1  ;;  %v7269_v35 = vmul.f32 %v15003_v15, %v7152_v57  ;;  %v7880_v62 = vmul.f32 %v7767_v48, %v7684_v25  ;;  %v6814_v60 = vadd.f32 %v11320_v18, %v14984_v7 }
 0x4d2   : > { %v6812_v20 = vadd.f32 %v11321_v11, %v14984_v7  ;;  %v7150_v8 = vsel %vm6921_vm8, %v6809_v55, %v7038_v45  ;;  %v11322_v39 = vadd.f32 %v11079_v58, %v14847_v53  ;;  %v11323_v36 = vadd.f32 %v6383_v4, %v14851_v14  ;;  %v15361_v58 = vld [vmem:[%s16331_s4 + $0x2] ss:$0 sm:$0xff]  ;;  %v15370_v4 = vpop.permute.xlu1 %7791 }
 0x4d3   : > { %v10327_v40 = vpack.c.bf16 %v7881_v24, %v7881_v24  ;;  %v11082_v21 = vpop.f32.mrb[88].mxu1  ;;  %v15322_v27 = vadd.f32 %v15015_v59, %v7269_v35  ;;  %v7267_v42 = vmul.f32 %v15003_v15, %v7150_v8  ;;  %v10326_v19 = vpack.c.bf16 %v7880_v62, %v7880_v62 }
 0x4d4   : > { %vm6926_vm14 = vcmp.ge.f32.partialorder %v6814_v60, 0.0  ;;  %v6396_v2 = vpop.f32.mrb[89].mxu1  ;;  %v7043_v46 = vmul.f32 %v14990_v41, %v6814_v60  ;;  %vm6924_vm6 = vcmp.ge.f32.partialorder %v6812_v20, 0.0  ;;  %v7041_v53 = vmul.f32 %v14990_v41, %v6812_v20 }
 0x4d5   : > { %8056 = vrot.lane.b32.xlu1 %v10327_v40, %s11727_s25  ;;  %8021 = vst.msk [vmem:[#allocation3 + $0x30] sm:$0xf] %vm16630_vm10, %v10327_v40  ;;  %v6815_v14 = vadd.f32 %v11322_v39, %v14984_v7  ;;  %v11083_v33 = vpop.f32.mrb[90].mxu1  ;;  %v15333_v0 = vadd.f32 %v15015_v59, %v7267_v42  ;;  %8054 = vrot.lane.b32.xlu0 %v10326_v19, %s11727_s25  ;;  %v15398_v42 = vpop.permute.xlu0 %7786  ;;  %vm16638_vm10 = vmmov %vm16635_vm0 }
 0x4d6   : > { %8020 = vst.msk [vmem:[#allocation3 + $0x2c] sm:$0xf] %vm16631_vm7, %v10326_v19  ;;  %v6813_v17 = vadd.f32 %v11323_v36, %v14984_v7  ;;  %v11324_v32 = vadd.f32 %v11082_v21, %v14857_v37  ;;  %v11325_v38 = vadd.f32 %v6396_v2, %v14859_v30  ;;  %v6399_v49 = vpop.f32.mrb[91].mxu1  ;;  %v7155_v50 = vsel %vm6926_vm14, %v6814_v60, %v7043_v46  ;;  %v15349_v37 = vld [vmem:[%s16331_s4] ss:$0 sm:$0xff] }
 0x4d7   : > { %v7153_v51 = vsel %vm6924_vm6, %v6812_v20, %v7041_v53  ;;  %vm6927_vm9 = vcmp.ge.f32.partialorder %v6815_v14, 0.0  ;;  %v7044_v31 = vmul.f32 %v14990_v41, %v6815_v14  ;;  %v7272_v29 = vmul.f32 %v15003_v15, %v7155_v50  ;;  %v7585_v23 = vld [vmem:[#allocation4 + $0x90] ss:$2 sm:$0xff]  ;;  %v7641_v10 = vld [vmem:[#allocation4 + $0x91] ss:$2 sm:$0xff] }
 0x4d8   : > { %v7270_v3 = vmul.f32 %v15003_v15, %v7153_v51  ;;  %vm6925_vm13 = vcmp.ge.f32.partialorder %v6813_v17, 0.0  ;;  %v7042_v56 = vmul.f32 %v14990_v41, %v6813_v17  ;;  %v6818_v30 = vadd.f32 %v15349_v37, %v11324_v32  ;;  %v7583_v45 = vld [vmem:[#allocation4 + $0x80] ss:$2 sm:$0xff]  ;;  %v7639_v24 = vld [vmem:[#allocation4 + $0x81] ss:$2 sm:$0xff]  ;;  %v16632_v46 = vld [vmem:[#allocation6_spill] sm:$0xff] }
 0x4d9   : > { %v7156_v61 = vsel %vm6927_vm9, %v6815_v14, %v7044_v31  ;;  %8168 = vrot.lane.b32.xlu1 %v10327_v40, %s11728_s12  ;;  %v6816_v7 = vadd.f32 %v15349_v37, %v11325_v38  ;;  %v11326_v47 = vadd.f32 %v11083_v33, %v14863_v9  ;;  %v7389_v28 = vadd.f32 %v15015_v59, %v7272_v29  ;;  %v15367_v9 = vld [vmem:[%s16331_s4 + $0x1] ss:$0 sm:$0xff]  ;;  %v15391_v40 = vld [vmem:[%s16331_s4 + $0x3] ss:$0 sm:$0xff]  ;;  %v16633_v14 = vld [vmem:[#allocation8_spill] sm:$0xff] }
 0x4da   : > { %v7387_v26 = vadd.f32 %v15015_v59, %v7270_v3  ;;  %v7273_v41 = vmul.f32 %v15003_v15, %v7156_v61  ;;  %v7154_v6 = vsel %vm6925_vm13, %v6813_v17, %v7042_v56  ;;  %8166 = vrot.lane.b32.xlu0 %v10326_v19, %s11728_s12  ;;  %vm6930_vm15 = vcmp.ge.f32.partialorder %v6818_v30, 0.0  ;;  %v16634_v51 = vld [vmem:[#allocation14_spill] sm:$0xff]  ;;  %v16636_v61 = vld [vmem:[#allocation13_spill] sm:$0xff] }
 0x4db   : > { %v7271_v63 = vmul.f32 %v15361_v58, %v7154_v6  ;;  %v7047_v15 = vmul.f32 %v15367_v9, %v6818_v30  ;;  %vm6928_vm1 = vcmp.ge.f32.partialorder %v6816_v7, 0.0  ;;  %v11086_v13 = vpop.f32.mrb[92].mxu1  ;;  %v7477_v12 = vmax.f32 %v15304_v34, %v7389_v28 }
 0x4dc   : > { %v7475_v55 = vmax.f32 %v15311_v44, %v7387_v26  ;;  %v7390_v1 = vadd.f32 %v15015_v59, %v7273_v41  ;;  %v7045_v5 = vmul.f32 %v15367_v9, %v6816_v7  ;;  %v6412_v25 = vpop.f32.mrb[93].mxu1  ;;  %v6819_v48 = vadd.f32 %v15349_v37, %v11326_v47 }
 0x4dd   : > { %v7388_v18 = vadd.f32 %v15015_v59, %v7271_v63  ;;  %v7159_v11 = vsel %vm6930_vm15, %v6818_v30, %v7047_v15  ;;  %v11327_v57 = vadd.f32 %v6399_v49, %v14867_v22  ;;  %v11087_v35 = vpop.f32.mrb[94].mxu1  ;;  %7533 = vst.msk [vmem:[#allocation4 + $0xb0] sm:$0xff] %vm3058_vm2, %v7477_v12  ;;  %v7687_v60 = vmax.f32 %v7585_v23, %v7641_v10 }
 0x4de   : > { %7531 = vst.msk [vmem:[#allocation4 + $0xa0] sm:$0xff] %vm3058_vm2, %v7475_v55  ;;  %v7478_v34 = vmax.f32 %v15322_v27, %v7390_v1  ;;  %v7276_v44 = vmul.f32 %v15361_v58, %v7159_v11  ;;  %v7157_v62 = vsel %vm6928_vm1, %v6816_v7, %v7045_v5  ;;  %v6415_v59 = vpop.f32.mrb[95].mxu1  ;;  %vm6931_vm4 = vcmp.ge.f32.partialorder %v6819_v48, 0.0  ;;  %v16637_v7 = vld [vmem:[#allocation18_spill] sm:$0xff]  ;;  %v16639_v5 = vld [vmem:[#allocation17_spill] sm:$0xff] }
 0x4df   : > { %v7476_v20 = vmax.f32 %v15333_v0, %v7388_v18  ;;  %v7274_v8 = vmul.f32 %v15361_v58, %v7157_v62  ;;  %v7048_v22 = vmul.f32 %v15367_v9, %v6819_v48  ;;  %v6817_v36 = vadd.f32 %v15349_v37, %v11327_v57  ;;  %v15406_v0 = vpop.permute.xlu1 %7801 }
 0x4e0   : > { %7534 = vst.msk [vmem:[#allocation4 + $0xb8] sm:$0xff] %vm3058_vm2, %v7478_v34  ;;  %v15394_v39 = vadd.f32 %v15391_v40, %v7276_v44  ;;  %v7883_v21 = vmul.f32 %v15330_v43, %v7687_v60  ;;  %v7686_v27 = vmax.f32 %v7583_v45, %v7639_v24  ;;  %v11328_v53 = vadd.f32 %v11086_v13, %v16632_v46  ;;  %v15425_v13 = vpop.permute.xlu0 %7796 }
 0x4e1   : > { %7532 = vst.msk [vmem:[#allocation4 + $0xa8] sm:$0xff] %vm3058_vm2, %v7476_v20  ;;  %v15402_v19 = vadd.f32 %v15391_v40, %v7274_v8  ;;  %v7160_v2 = vsel %vm6931_vm4, %v6819_v48, %v7048_v22  ;;  %v11329_v33 = vadd.f32 %v6412_v25, %v16633_v14  ;;  %vm6929_vm5 = vcmp.ge.f32.partialorder %v6817_v36, 0.0  ;;  %v16640_v8 = vld [vmem:[#allocation22_spill] sm:$0xff]  ;;  %vm16645_vm4 = vmmov %vm16635_vm0 }
 0x4e2   : > { %v7277_v17 = vmul.f32 %v15361_v58, %v7160_v2  ;;  %v7046_v43 = vmul.f32 %v15367_v9, %v6817_v36  ;;  %v10329_v32 = vpack.c.bf16 %v7883_v21, %v7883_v21  ;;  %v7882_v38 = vmul.f32 %v7777_v52, %v7686_v27 }
 0x4e3   : > { %v6822_v49 = vadd.f32 %v15349_v37, %v11328_v53  ;;  %v6820_v50 = vadd.f32 %v15349_v37, %v11329_v33  ;;  %v11330_v31 = vadd.f32 %v11087_v35, %v16634_v51  ;;  %v11090_v29 = vpop.f32.mrb[96].mxu1  ;;  %v11331_v30 = vadd.f32 %v6415_v59, %v16636_v61  ;;  %v15434_v18 = vpop.permute.xlu1 %7811 }
 0x4e4   : > { %v15414_v3 = vadd.f32 %v15391_v40, %v7277_v17  ;;  %v7158_v56 = vsel %vm6929_vm5, %v6817_v36, %v7046_v43  ;;  %8172 = vrot.lane.b32.xlu1 %v10329_v32, %s11728_s12  ;;  %8023 = vst.msk [vmem:[#allocation3 + $0x38] sm:$0xf] %vm16635_vm0, %v10329_v32  ;;  %v11332_v47 = vadd.f32 %v11090_v29, %v16637_v7  ;;  %v6428_v28 = vpop.f32.mrb[97].mxu1  ;;  %v15450_v43 = vpop.permute.xlu0 %7806  ;;  %vm16648_vm5 = vmmov %vm16635_vm0 }
 0x4e5   : > { %v7275_v26 = vmul.f32 %v15361_v58, %v7158_v56  ;;  %v10328_v41 = vpack.c.bf16 %v7882_v38, %v7882_v38  ;;  %vm6934_vm8 = vcmp.ge.f32.partialorder %v6822_v49, 0.0  ;;  %v7051_v6 = vmul.f32 %v15367_v9, %v6822_v49  ;;  %v11091_v23 = vpop.f32.mrb[98].mxu1  ;;  %v16641_v56 = vld [vmem:[#allocation21_spill] sm:$0xff] }
 0x4e6   : > { %vm6932_vm14 = vcmp.ge.f32.partialorder %v6820_v50, 0.0  ;;  %v7049_v52 = vmul.f32 %v15367_v9, %v6820_v50  ;;  %v6823_v63 = vadd.f32 %v15349_v37, %v11330_v31  ;;  %v6821_v15 = vadd.f32 %v15349_v37, %v11331_v30  ;;  %v6431_v10 = vpop.f32.mrb[99].mxu1 }
 0x4e7   : > { %v15428_v12 = vadd.f32 %v15391_v40, %v7275_v26  ;;  %8170 = vrot.lane.b32.xlu0 %v10328_v41, %s11728_s12  ;;  %8022 = vst.msk [vmem:[#allocation3 + $0x34] sm:$0xf] %vm16638_vm10, %v10328_v41  ;;  %v7163_v55 = vsel %vm6934_vm8, %v6822_v49, %v7051_v6  ;;  %v6826_v1 = vadd.f32 %v15349_v37, %v11332_v47  ;;  %v7589_v36 = vld [vmem:[#allocation4 + $0xb0] ss:$2 sm:$0xff]  ;;  %v7645_v21 = vld [vmem:[#allocation4 + $0xb1] ss:$2 sm:$0xff]  ;;  %v15456_v31 = vpop.permute.xlu1 %7821 }
 0x4e8   : > { %v11333_v25 = vadd.f32 %v6428_v28, %v16639_v5  ;;  %v7280_v11 = vmul.f32 %v15361_v58, %v7163_v55  ;;  %v7161_v48 = vsel %vm6932_vm14, %v6820_v50, %v7049_v52  ;;  %vm6935_vm6 = vcmp.ge.f32.partialorder %v6823_v63, 0.0  ;;  %8060 = vrot.lane.b32.xlu1 %v10329_v32, %s11727_s25  ;;  %v7587_v14 = vld [vmem:[#allocation4 + $0xa0] ss:$2 sm:$0xff]  ;;  %v7643_v33 = vld [vmem:[#allocation4 + $0xa1] ss:$2 sm:$0xff] }
 0x4e9   : > { %v7052_v57 = vmul.f32 %v15367_v9, %v6823_v63  ;;  %v7278_v45 = vmul.f32 %v15361_v58, %v7161_v48  ;;  %vm6933_vm7 = vcmp.ge.f32.partialorder %v6821_v15, 0.0  ;;  %v7050_v24 = vmul.f32 %v15367_v9, %v6821_v15  ;;  %v15482_v48 = vpop.permute.xlu0 %7816 }
 0x4ea   : > { %vm6938_vm9 = vcmp.ge.f32.partialorder %v6826_v1, 0.0  ;;  %v7397_v35 = vadd.f32 %v15391_v40, %v7280_v11  ;;  %v7055_v44 = vmul.f32 %v15367_v9, %v6826_v1  ;;  %v6824_v62 = vadd.f32 %v15349_v37, %v11333_v25  ;;  %v16644_v25 = vld [vmem:[#allocation30_spill] sm:$0xff] }
 0x4eb   : > { %v7164_v34 = vsel %vm6935_vm6, %v6823_v63, %v7052_v57  ;;  %v7395_v60 = vadd.f32 %v15391_v40, %v7278_v45  ;;  %v7162_v20 = vsel %vm6933_vm7, %v6821_v15, %v7050_v24  ;;  %8058 = vrot.lane.b32.xlu0 %v10328_v41, %s11727_s25  ;;  %v11334_v22 = vadd.f32 %v11091_v23, %v16640_v8  ;;  %v11094_v27 = vpop.f32.mrb[100].mxu1  ;;  %v16642_v15 = vld [vmem:[#allocation26_spill] sm:$0xff]  ;;  %v15486_v24 = vpop.permute.xlu1 %7831  ;;  %v16646_v8 = vld [vmem:[#allocation29_spill] sm:$0xff] }
 0x4ec   : > { %v7281_v59 = vmul.f32 %v15361_v58, %v7164_v34  ;;  %v7481_v2 = vmax.f32 %v15394_v39, %v7397_v35  ;;  %v7279_v46 = vmul.f32 %v15361_v58, %v7162_v20  ;;  %v7167_v53 = vsel %vm6938_vm9, %v6826_v1, %v7055_v44  ;;  %v6444_v17 = vpop.f32.mrb[101].mxu1  ;;  %v16643_v1 = vld [vmem:[#allocation25_spill] sm:$0xff] }
 0x4ed   : > { %vm6936_vm13 = vcmp.ge.f32.partialorder %v6824_v62, 0.0  ;;  %v7479_v32 = vmax.f32 %v15402_v19, %v7395_v60  ;;  %v7284_v49 = vmul.f32 %v15361_v58, %v7167_v53  ;;  %v7053_v50 = vmul.f32 %v15367_v9, %v6824_v62  ;;  %v11095_v51 = vpop.f32.mrb[102].mxu1 }
 0x4ee   : > { %v7398_v38 = vadd.f32 %v15391_v40, %v7281_v59  ;;  %7537 = vst.msk [vmem:[#allocation4 + $0xd0] sm:$0xff] %vm3058_vm2, %v7481_v2  ;;  %v7396_v39 = vadd.f32 %v15391_v40, %v7279_v46  ;;  %v6827_v29 = vadd.f32 %v15349_v37, %v11334_v22  ;;  %v11335_v61 = vadd.f32 %v6431_v10, %v16641_v56  ;;  %v6447_v7 = vpop.f32.mrb[103].mxu1 }
 0x4ef   : > { %v7689_v30 = vmax.f32 %v7589_v36, %v7645_v21  ;;  %7535 = vst.msk [vmem:[#allocation4 + $0xc0] sm:$0xff] %vm3058_vm2, %v7479_v32  ;;  %v15465_v47 = vadd.f32 %v15391_v40, %v7284_v49  ;;  %v7165_v28 = vsel %vm6936_vm13, %v6824_v62, %v7053_v50  ;;  %v7688_v26 = vmax.f32 %v7587_v14, %v7643_v33  ;;  %v16647_v36 = vld [vmem:[#allocation34_spill] sm:$0xff]  ;;  %v16649_v50 = vld [vmem:[#allocation33_spill] sm:$0xff] }
 0x4f0   : > { %v7482_v19 = vmax.f32 %v15414_v3, %v7398_v38  ;;  %v7480_v41 = vmax.f32 %v15428_v12, %v7396_v39  ;;  %v7282_v6 = vmul.f32 %v15361_v58, %v7165_v28  ;;  %vm6939_vm15 = vcmp.ge.f32.partialorder %v6827_v29, 0.0  ;;  %v15508_v39 = vpop.permute.xlu0 %7826 }
 0x4f1   : > { %v7056_v23 = vmul.f32 %v15367_v9, %v6827_v29  ;;  %v6825_v52 = vadd.f32 %v15349_v37, %v11335_v61  ;;  %v7885_v63 = vmul.f32 %v15370_v4, %v7689_v30  ;;  %v7884_v3 = vmul.f32 %v15398_v42, %v7688_v26  ;;  %v15512_v30 = vpop.permute.xlu1 %7841 }
 0x4f2   : > { %7538 = vst.msk [vmem:[#allocation4 + $0xd8] sm:$0xff] %vm3058_vm2, %v7482_v19  ;;  %v11336_v10 = vadd.f32 %v11094_v27, %v16642_v15  ;;  %7536 = vst.msk [vmem:[#allocation4 + $0xc8] sm:$0xff] %vm3058_vm2, %v7480_v41  ;;  %v15478_v55 = vadd.f32 %v15391_v40, %v7282_v6  ;;  %v11337_v5 = vadd.f32 %v6444_v17, %v16643_v1 }
 0x4f3   : > { %v7168_v12 = vsel %vm6939_vm15, %v6827_v29, %v7056_v23  ;;  %v11338_v11 = vadd.f32 %v11095_v51, %v16644_v25  ;;  %vm6937_vm1 = vcmp.ge.f32.partialorder %v6825_v52, 0.0  ;;  %v7054_v4 = vmul.f32 %v15367_v9, %v6825_v52  ;;  %v11098_v45 = vpop.f32.mrb[104].mxu1  ;;  %v16650_v23 = vld [vmem:[#allocation39_spill] sm:$0xff] }
 0x4f4   : > { %v7285_v57 = vmul.f32 %v15361_v58, %v7168_v12  ;;  %v10331_v42 = vpack.c.bf16 %v7885_v63, %v7885_v63  ;;  %v10330_v35 = vpack.c.bf16 %v7884_v3, %v7884_v3  ;;  %v6830_v34 = vadd.f32 %v15349_v37, %v11336_v10  ;;  %v6460_v60 = vpop.f32.mrb[105].mxu1  ;;  %v16651_v12 = vld [vmem:[#allocation37_spill] sm:$0xff] }
 0x4f5   : > { %v6828_v44 = vadd.f32 %v15349_v37, %v11337_v5  ;;  %v6831_v62 = vadd.f32 %v15349_v37, %v11338_v11  ;;  %v7166_v20 = vsel %vm6937_vm1, %v6825_v52, %v7054_v4  ;;  %v11339_v22 = vadd.f32 %v6447_v7, %v16646_v8  ;;  %v11099_v27 = vpop.f32.mrb[106].mxu1  ;;  %vm16654_vm1 = vmmov %vm16645_vm4 }
 0x4f6   : > { %v15492_v59 = vadd.f32 %v15391_v40, %v7285_v57  ;;  %8064 = vrot.lane.b32.xlu1 %v10331_v42, %s11727_s25  ;;  %8025 = vst.msk [vmem:[#allocation3 + $0x40] sm:$0xf] %vm16645_vm4, %v10331_v42  ;;  %v11340_v21 = vadd.f32 %v11098_v45, %v16647_v36  ;;  %v7283_v2 = vmul.f32 %v15361_v58, %v7166_v20  ;;  %vm6942_vm0 = vcmp.ge.f32.partialorder %v6830_v34, 0.0  ;;  %v6463_v53 = vpop.f32.mrb[107].mxu1  ;;  %vm16655_vm4 = vmmov %vm16654_vm1 }
 0x4f7   : > { %8062 = vrot.lane.b32.xlu0 %v10330_v35, %s11727_s25  ;;  %8024 = vst.msk [vmem:[#allocation3 + $0x3c] sm:$0xf] %vm16648_vm5, %v10330_v35  ;;  %v7059_v46 = vmul.f32 %v15367_v9, %v6830_v34  ;;  %vm6940_vm8 = vcmp.ge.f32.partialorder %v6828_v44, 0.0  ;;  %v7057_v14 = vmul.f32 %v15367_v9, %v6828_v44  ;;  %vm6943_vm14 = vcmp.ge.f32.partialorder %v6831_v62, 0.0 }
 0x4f8   : > { %v7060_v33 = vmul.f32 %v15367_v9, %v6831_v62  ;;  %v6829_v17 = vadd.f32 %v15349_v37, %v11339_v22  ;;  %v7400_v32 = vadd.f32 %v15391_v40, %v7283_v2  ;;  %v6834_v49 = vadd.f32 %v15349_v37, %v11340_v21  ;;  %v15531_v22 = vpop.permute.xlu0 %7836  ;;  %v15537_v2 = vpop.permute.xlu1 %7851 }
 0x4f9   : > { %v7171_v38 = vsel %vm6942_vm0, %v6830_v34, %v7059_v46  ;;  %v11341_v51 = vadd.f32 %v6460_v60, %v16649_v50  ;;  %v7169_v56 = vsel %vm6940_vm8, %v6828_v44, %v7057_v14  ;;  %v11342_v52 = vadd.f32 %v11099_v27, %v16650_v23  ;;  %v7593_v5 = vld [vmem:[#allocation4 + $0xd0] ss:$2 sm:$0xff]  ;;  %v7649_v25 = vld [vmem:[#allocation4 + $0xd1] ss:$2 sm:$0xff]  ;;  %v7591_v45 = vld [vmem:[#allocation4 + $0xc0] ss:$2 sm:$0xff] }
 0x4fa   : > { %v7288_v29 = vmul.f32 %v15361_v58, %v7171_v38  ;;  %v7172_v61 = vsel %vm6943_vm14, %v6831_v62, %v7060_v33  ;;  %8176 = vrot.lane.b32.xlu1 %v10331_v42, %s11728_s12  ;;  %vm6941_vm10 = vcmp.ge.f32.partialorder %v6829_v17, 0.0  ;;  %v7286_v7 = vmul.f32 %v15361_v58, %v7169_v56 }
 0x4fb   : > { %v7289_v19 = vmul.f32 %v15361_v58, %v7172_v61  ;;  %v7058_v28 = vmul.f32 %v15367_v9, %v6829_v17  ;;  %8174 = vrot.lane.b32.xlu0 %v10330_v35, %s11728_s12  ;;  %vm6946_vm6 = vcmp.ge.f32.partialorder %v6834_v49, 0.0  ;;  %v7063_v41 = vmul.f32 %v15367_v9, %v6834_v49  ;;  %v11102_v63 = vpop.f32.mrb[108].mxu1  ;;  %v7647_v35 = vld [vmem:[#allocation4 + $0xc1] ss:$2 sm:$0xff]  ;;  %v16653_v61 = vld [vmem:[#allocation7_spill] sm:$0xff] }
 0x4fc   : > { %v7405_v26 = vadd.f32 %v15391_v40, %v7288_v29  ;;  %v6832_v6 = vadd.f32 %v15349_v37, %v11341_v51  ;;  %v7403_v3 = vadd.f32 %v15391_v40, %v7286_v7  ;;  %v11343_v1 = vadd.f32 %v6463_v53, %v16651_v12  ;;  %v6476_v11 = vpop.f32.mrb[109].mxu1  ;;  %v16652_v53 = vld [vmem:[#allocation48_spill] sm:$0xff] }
 0x4fd   : > { %v7406_v15 = vadd.f32 %v15391_v40, %v7289_v19  ;;  %v7170_v10 = vsel %vm6941_vm10, %v6829_v17, %v7058_v28  ;;  %v7175_v42 = vsel %vm6946_vm6, %v6834_v49, %v7063_v41  ;;  %v11103_v34 = vpop.f32.mrb[110].mxu1  ;;  %v6835_v36 = vadd.f32 %v15349_v37, %v11342_v52  ;;  %v16656_v12 = vld [vmem:[#allocation12_spill] sm:$0xff] }
 0x4fe   : > { %v7485_v57 = vmax.f32 %v15465_v47, %v7405_v26  ;;  %v7287_v4 = vmul.f32 %v15361_v58, %v7170_v10  ;;  %vm6944_vm7 = vcmp.ge.f32.partialorder %v6832_v6, 0.0  ;;  %v7483_v44 = vmax.f32 %v15478_v55, %v7403_v3  ;;  %v6479_v8 = vpop.f32.mrb[111].mxu1 }
 0x4ff   : > { %v7486_v62 = vmax.f32 %v15492_v59, %v7406_v15  ;;  %v7292_v60 = vmul.f32 %v15361_v58, %v7175_v42  ;;  %v7061_v20 = vmul.f32 %v15367_v9, %v6832_v6  ;;  %v6833_v21 = vadd.f32 %v15349_v37, %v11343_v1  ;;  %v15563_v15 = vpop.permute.xlu1 %7861 }
 0x500   : > { %7541 = vst.msk [vmem:[#allocation4 + $0xf0] sm:$0xff] %vm3058_vm2, %v7485_v57  ;;  %v7404_v47 = vadd.f32 %v15391_v40, %v7287_v4  ;;  %v7691_v27 = vmax.f32 %v7593_v5, %v7649_v25  ;;  %7539 = vst.msk [vmem:[#allocation4 + $0xe0] sm:$0xff] %vm3058_vm2, %v7483_v44  ;;  %v7690_v46 = vmax.f32 %v7591_v45, %v7647_v35  ;;  %vm6947_vm9 = vcmp.ge.f32.partialorder %v6835_v36, 0.0  ;;  %v16657_v5 = vld [vmem:[#allocation10_spill] sm:$0xff] }
 0x501   : > { %7542 = vst.msk [vmem:[#allocation4 + $0xf8] sm:$0xff] %vm3058_vm2, %v7486_v62  ;;  %v15542_v55 = vadd.f32 %v15391_v40, %v7292_v60  ;;  %v7173_v59 = vsel %vm6944_vm7, %v6832_v6, %v7061_v20  ;;  %v11344_v14 = vadd.f32 %v11102_v63, %v16652_v53  ;;  %v7064_v38 = vmul.f32 %v15367_v9, %v6835_v36 }
 0x502   : > { %v7484_v33 = vmax.f32 %v7400_v32, %v7404_v47  ;;  %v7290_v17 = vmul.f32 %v15361_v58, %v7173_v59  ;;  %vm6945_vm13 = vcmp.ge.f32.partialorder %v6833_v21, 0.0  ;;  %v7062_v49 = vmul.f32 %v15367_v9, %v6833_v21 }
 0x503   : > { %v7887_v50 = vmul.f32 %v15406_v0, %v7691_v27  ;;  %v7886_v51 = vmul.f32 %v15425_v13, %v7690_v46  ;;  %v7176_v56 = vsel %vm6947_vm9, %v6835_v36, %v7064_v38  ;;  %v6838_v32 = vadd.f32 %v15349_v37, %v11344_v14  ;;  %v11106_v19 = vpop.f32.mrb[0].mxu1  ;;  %v15558_v0 = vpop.permute.xlu0 %7846 }
 0x504   : > { %7540 = vst.msk [vmem:[#allocation4 + $0xe8] sm:$0xff] %vm3058_vm2, %v7484_v33  ;;  %v15553_v29 = vadd.f32 %v15391_v40, %v7290_v17  ;;  %v11345_v7 = vadd.f32 %v6476_v11, %v16653_v61  ;;  %v7293_v28 = vmul.f32 %v15361_v58, %v7176_v56  ;;  %v7174_v26 = vsel %vm6945_vm13, %v6833_v21, %v7062_v49  ;;  %v6492_v23 = vpop.f32.mrb[1].mxu1  ;;  %v15594_v14 = vpop.permute.xlu1 %7871 }
 0x505   : > { %v10333_v41 = vpack.c.bf16 %v7887_v50, %v7887_v50  ;;  %v10332_v6 = vpack.c.bf16 %v7886_v51, %v7886_v51  ;;  %v7291_v13 = vmul.f32 %v15361_v58, %v7174_v26  ;;  %vm6950_vm15 = vcmp.ge.f32.partialorder %v6838_v32, 0.0  ;;  %v11107_v3 = vpop.f32.mrb[2].mxu1 }
 0x506   : > { %v7067_v52 = vmul.f32 %v15367_v9, %v6838_v32  ;;  %v6836_v63 = vadd.f32 %v15349_v37, %v11345_v7  ;;  %v15566_v10 = vadd.f32 %v15391_v40, %v7293_v28  ;;  %v11346_v1 = vadd.f32 %v11103_v34, %v16656_v12  ;;  %v6495_v11 = vpop.f32.mrb[3].mxu1 }
 0x507   : > { %8180 = vrot.lane.b32.xlu1 %v10333_v41, %s11728_s12  ;;  %8027 = vst.msk [vmem:[#allocation3 + $0x48] sm:$0xf] %vm16654_vm1, %v10333_v41  ;;  %8178 = vrot.lane.b32.xlu0 %v10332_v6, %s11728_s12  ;;  %v11347_v25 = vadd.f32 %v6479_v8, %v16657_v5  ;;  %v15575_v57 = vadd.f32 %v15391_v40, %v7291_v13  ;;  %v15590_v27 = vpop.permute.xlu0 %7856  ;;  %vm16658_vm9 = vcmask 519424  }
 0x508   : > { %8026 = vst.msk [vmem:[#allocation3 + $0x44] sm:$0xf] %vm16655_vm4, %v10332_v6  ;;  %v7179_v4 = vsel %vm6950_vm15, %v6838_v32, %v7067_v52  ;;  %vm6948_vm5 = vcmp.ge.f32.partialorder %v6836_v63, 0.0  ;;  %v7065_v42 = vmul.f32 %v15367_v9, %v6836_v63  ;;  %v6839_v35 = vadd.f32 %v15349_v37, %v11346_v1  ;;  %v7597_v61 = vld [vmem:[#allocation4 + $0xf0] ss:$2 sm:$0xff]  ;;  %vm16659_vm1 = vmmov %vm16658_vm9 }
 0x509   : > { %v7296_v45 = vmul.f32 %v15361_v58, %v7179_v4  ;;  %v6837_v44 = vadd.f32 %v15349_v37, %v11347_v25  ;;  %v6842_v62 = vadd.f32 %v15349_v37, %v11106_v19  ;;  %v6840_v34 = vadd.f32 %v15349_v37, %v6492_v23  ;;  %v7653_v7 = vld [vmem:[#allocation4 + $0xf1] ss:$2 sm:$0xff] }
 0x50a   : > { %v7177_v60 = vsel %vm6948_vm5, %v6836_v63, %v7065_v42  ;;  %v6843_v20 = vadd.f32 %v15349_v37, %v11107_v3  ;;  %v6841_v8 = vadd.f32 %v15349_v37, %v6495_v11  ;;  %vm6951_vm0 = vcmp.ge.f32.partialorder %v6839_v35, 0.0 }
 0x50b   : > { %v7413_v47 = vadd.f32 %v15391_v40, %v7296_v45  ;;  %v7294_v36 = vmul.f32 %v15361_v58, %v7177_v60  ;;  %v7068_v21 = vmul.f32 %v15367_v9, %v6839_v35  ;;  %8068 = vrot.lane.b32.xlu1 %v10333_v41, %s11727_s25  ;;  %8066 = vrot.lane.b32.xlu0 %v10332_v6, %s11727_s25  ;;  %vm6949_vm8 = vcmp.ge.f32.partialorder %v6837_v44, 0.0  ;;  %v11110_v53 = vpop.f32.mrb[4].mxu1  ;;  %v7595_v41 = vld [vmem:[#allocation4 + $0xe0] ss:$2 sm:$0xff]  ;;  %v7651_v6 = vld [vmem:[#allocation4 + $0xe1] ss:$2 sm:$0xff]  ;;  %v15614_v25 = vpop.permute.xlu0 %7866 }
 0x50c   : > { %v7066_v59 = vmul.f32 %v15367_v9, %v6837_v44  ;;  %vm6954_vm14 = vcmp.ge.f32.partialorder %v6842_v62, 0.0  ;;  %v7071_v46 = vmul.f32 %v15367_v9, %v6842_v62  ;;  %vm6952_vm10 = vcmp.ge.f32.partialorder %v6840_v34, 0.0  ;;  %v6508_v49 = vpop.f32.mrb[5].mxu1 }
 0x50d   : > { %v7489_v33 = vmax.f32 %v15542_v55, %v7413_v47  ;;  %v7411_v17 = vadd.f32 %v15391_v40, %v7294_v36  ;;  %v7180_v38 = vsel %vm6951_vm0, %v6839_v35, %v7068_v21  ;;  %v7069_v32 = vmul.f32 %v15367_v9, %v6840_v34  ;;  %v11111_v19 = vpop.f32.mrb[6].mxu1 }
 0x50e   : > { %v7297_v50 = vmul.f32 %v15361_v58, %v7180_v38  ;;  %v7178_v51 = vsel %vm6949_vm8, %v6837_v44, %v7066_v59  ;;  %v7183_v56 = vsel %vm6954_vm14, %v6842_v62, %v7071_v46  ;;  %vm6955_vm6 = vcmp.ge.f32.partialorder %v6843_v20, 0.0  ;;  %v6511_v23 = vpop.f32.mrb[7].mxu1 }
 0x50f   : > { %7545 = vst.msk [vmem:[#allocation4 + $0x110] sm:$0xff] %vm3058_vm2, %v7489_v33  ;;  %v7487_v28 = vmax.f32 %v15553_v29, %v7411_v17  ;;  %v7295_v55 = vmul.f32 %v15361_v58, %v7178_v51  ;;  %v7300_v26 = vmul.f32 %v15361_v58, %v7183_v56  ;;  %v7181_v52 = vsel %vm6952_vm10, %v6840_v34, %v7069_v32  ;;  %v8045_v5 = vpop.permute.xlu1 %8044 }
 0x510   : > { %v7414_v13 = vadd.f32 %v15391_v40, %v7297_v50  ;;  %v7072_v63 = vmul.f32 %v15367_v9, %v6843_v20  ;;  %vm6953_vm7 = vcmp.ge.f32.partialorder %v6841_v8, 0.0  ;;  %v7298_v12 = vmul.f32 %v15361_v58, %v7181_v52  ;;  %8127 = vst.msk [vmem:[#allocation3 + $0x10] sm:$0xf] %vm16658_vm9, %v8045_v5 }
 0x511   : > { %7543 = vst.msk [vmem:[#allocation4 + $0x100] sm:$0xff] %vm3058_vm2, %v7487_v28  ;;  %v7412_v3 = vadd.f32 %v15391_v40, %v7295_v55  ;;  %v15610_v29 = vadd.f32 %v15391_v40, %v7300_v26  ;;  %v7070_v1 = vmul.f32 %v15367_v9, %v6841_v8  ;;  %v7693_v42 = vmax.f32 %v7597_v61, %v7653_v7 }
 0x512   : > { %v7490_v11 = vmax.f32 %v15566_v10, %v7414_v13  ;;  %v7184_v4 = vsel %vm6955_vm6, %v6843_v20, %v7072_v63  ;;  %v7692_v45 = vmax.f32 %v7595_v41, %v7651_v6  ;;  %v15621_v44 = vadd.f32 %v15391_v40, %v7298_v12 }
 0x513   : > { %v7488_v35 = vmax.f32 %v15575_v57, %v7412_v3  ;;  %v7301_v62 = vmul.f32 %v15361_v58, %v7184_v4  ;;  %v7182_v60 = vsel %vm6953_vm7, %v6841_v8, %v7070_v1  ;;  %v7889_v10 = vmul.f32 %v15434_v18, %v7693_v42  ;;  %v11114_v36 = vpop.f32.mrb[8].mxu1 }
 0x514   : > { %7546 = vst.msk [vmem:[#allocation4 + $0x118] sm:$0xff] %vm3058_vm2, %v7490_v11  ;;  %v7299_v34 = vmul.f32 %v15361_v58, %v7182_v60  ;;  %v7888_v20 = vmul.f32 %v15450_v43, %v7692_v45  ;;  %v6846_v47 = vadd.f32 %v15349_v37, %v11110_v53  ;;  %v6844_v21 = vadd.f32 %v15349_v37, %v6508_v49  ;;  %v6524_v46 = vpop.f32.mrb[9].mxu1  ;;  %v8043_v53 = vpop.permute.xlu0 %8042 }
 0x515   : > { %7544 = vst.msk [vmem:[#allocation4 + $0x108] sm:$0xff] %vm3058_vm2, %v7488_v35  ;;  %v15632_v57 = vadd.f32 %v15391_v40, %v7301_v62  ;;  %v6847_v8 = vadd.f32 %v15349_v37, %v11111_v19  ;;  %v6845_v59 = vadd.f32 %v15349_v37, %v6511_v23  ;;  %v10335_v18 = vpack.c.bf16 %v7889_v10, %v7889_v10  ;;  %v11115_v17 = vpop.f32.mrb[10].mxu1 }
 0x516   : > { %v15638_v33 = vadd.f32 %v15391_v40, %v7299_v34  ;;  %v10334_v43 = vpack.c.bf16 %v7888_v20, %v7888_v20  ;;  %vm6958_vm13 = vcmp.ge.f32.partialorder %v6846_v47, 0.0  ;;  %v7075_v38 = vmul.f32 %v15367_v9, %v6846_v47  ;;  %8126 = vst.msk [vmem:[#allocation3 + $0xc] sm:$0xf] %vm16659_vm1, %v8043_v53  ;;  %v6527_v49 = vpop.f32.mrb[11].mxu1 }
 0x517   : > { %vm6956_vm15 = vcmp.ge.f32.partialorder %v6844_v21, 0.0  ;;  %v7073_v50 = vmul.f32 %v15367_v9, %v6844_v21  ;;  %vm6959_vm4 = vcmp.ge.f32.partialorder %v6847_v8, 0.0  ;;  %8072 = vrot.lane.b32.xlu1 %v10335_v18, %s11727_s25  ;;  %vm16660_vm5 = vcmask 257024  }
 0x518   : > { %8029 = vst.msk [vmem:[#allocation3 + $0x50] sm:$0xf] %vm16660_vm5, %v10335_v18  ;;  %8070 = vrot.lane.b32.xlu0 %v10334_v43, %s11727_s25  ;;  %vm16661_vm0 = vmmov %vm16660_vm5  ;;  %v7076_v51 = vmul.f32 %v15367_v9, %v6847_v8  ;;  %vm6957_vm8 = vcmp.ge.f32.partialorder %v6845_v59, 0.0  ;;  %v7074_v56 = vmul.f32 %v15367_v9, %v6845_v59  ;;  %v6850_v32 = vadd.f32 %v15349_v37, %v11114_v36 }
 0x519   : > { %8028 = vst.msk [vmem:[#allocation3 + $0x4c] sm:$0xf] %vm16661_vm0, %v10334_v43  ;;  %v7187_v61 = vsel %vm6958_vm13, %v6846_v47, %v7075_v38  ;;  %v7185_v7 = vsel %vm6956_vm15, %v6844_v21, %v7073_v50  ;;  %v6848_v19 = vadd.f32 %v15349_v37, %v6524_v46  ;;  %v6851_v28 = vadd.f32 %v15349_v37, %v11115_v17  ;;  %vm16662_vm15 = vmmov %vm16661_vm0 }
 0x51a   : > { %v7304_v55 = vmul.f32 %v15361_v58, %v7187_v61  ;;  %v7302_v26 = vmul.f32 %v15361_v58, %v7185_v7  ;;  %v7188_v41 = vsel %vm6959_vm4, %v6847_v8, %v7076_v51  ;;  %v7186_v6 = vsel %vm6957_vm8, %v6845_v59, %v7074_v56  ;;  %vm16663_vm1 = vmmov %vm16661_vm0 }
 0x51b   : > { %v7305_v23 = vmul.f32 %v15361_v58, %v7188_v41  ;;  %v7303_v13 = vmul.f32 %v15361_v58, %v7186_v6  ;;  %vm6962_vm14 = vcmp.ge.f32.partialorder %v6850_v32, 0.0  ;;  %v7079_v52 = vmul.f32 %v15367_v9, %v6850_v32  ;;  %8184 = vrot.lane.b32.xlu1 %v10335_v18, %s11728_s12  ;;  %v7601_v1 = vld [vmem:[#allocation4 + $0x110] ss:$2 sm:$0xff]  ;;  %v7657_v5 = vld [vmem:[#allocation4 + $0x111] ss:$2 sm:$0xff]  ;;  %v11118_v11 = vpop.f32.mrb[12].mxu1 }
 0x51c   : > { %v7421_v63 = vadd.f32 %v15391_v40, %v7304_v55  ;;  %v7419_v3 = vadd.f32 %v15391_v40, %v7302_v26  ;;  %8182 = vrot.lane.b32.xlu0 %v10334_v43, %s11728_s12  ;;  %vm6960_vm10 = vcmp.ge.f32.partialorder %v6848_v19, 0.0  ;;  %v7077_v12 = vmul.f32 %v15367_v9, %v6848_v19  ;;  %v7599_v35 = vld [vmem:[#allocation4 + $0x100] ss:$2 sm:$0xff]  ;;  %v7655_v62 = vld [vmem:[#allocation4 + $0x101] ss:$2 sm:$0xff]  ;;  %v6540_v60 = vpop.f32.mrb[13].mxu1 }
 0x51d   : > { %v7422_v4 = vadd.f32 %v15391_v40, %v7305_v23  ;;  %v7420_v42 = vadd.f32 %v15391_v40, %v7303_v13  ;;  %v7191_v45 = vsel %vm6962_vm14, %v6850_v32, %v7079_v52  ;;  %vm6963_vm6 = vcmp.ge.f32.partialorder %v6851_v28, 0.0  ;;  %v11119_v36 = vpop.f32.mrb[14].mxu1 }
 0x51e   : > { %v7493_v34 = vmax.f32 %v15610_v29, %v7421_v63  ;;  %v7491_v10 = vmax.f32 %v15621_v44, %v7419_v3  ;;  %v7308_v20 = vmul.f32 %v15361_v58, %v7191_v45  ;;  %v7189_v47 = vsel %vm6960_vm10, %v6848_v19, %v7077_v12  ;;  %v6543_v18 = vpop.f32.mrb[15].mxu1 }
 0x51f   : > { %v7494_v21 = vmax.f32 %v15632_v57, %v7422_v4  ;;  %v7492_v8 = vmax.f32 %v15638_v33, %v7420_v42  ;;  %v7306_v59 = vmul.f32 %v15361_v58, %v7189_v47  ;;  %v7080_v46 = vmul.f32 %v15367_v9, %v6851_v28 }
 0x520   : > { %7549 = vst.msk [vmem:[#allocation4 + $0x130] sm:$0xff] %vm3058_vm2, %v7493_v34  ;;  %7547 = vst.msk [vmem:[#allocation4 + $0x120] sm:$0xff] %vm3058_vm2, %v7491_v10  ;;  %v15676_v29 = vadd.f32 %v15391_v40, %v7308_v20  ;;  %v6849_v44 = vadd.f32 %v15349_v37, %v6527_v49  ;;  %v7695_v43 = vmax.f32 %v7601_v1, %v7657_v5  ;;  %vm16664_vm4 = vcmask 519424  }
 0x521   : > { %v7694_v53 = vmax.f32 %v7599_v35, %v7655_v62  ;;  %7550 = vst.msk [vmem:[#allocation4 + $0x138] sm:$0xff] %vm3058_vm2, %v7494_v21  ;;  %7548 = vst.msk [vmem:[#allocation4 + $0x128] sm:$0xff] %vm3058_vm2, %v7492_v8  ;;  %v15682_v57 = vadd.f32 %v15391_v40, %v7306_v59  ;;  %v7192_v33 = vsel %vm6963_vm6, %v6851_v28, %v7080_v46 }
 0x522   : > { %v6854_v17 = vadd.f32 %v15349_v37, %v11118_v11  ;;  %v6852_v38 = vadd.f32 %v15349_v37, %v6540_v60  ;;  %v7309_v50 = vmul.f32 %v15361_v58, %v7192_v33  ;;  %vm6961_vm7 = vcmp.ge.f32.partialorder %v6849_v44, 0.0  ;;  %vm16665_vm5 = vmmov %vm16664_vm4 }
 0x523   : > { %v7078_v49 = vmul.f32 %v15367_v9, %v6849_v44  ;;  %v7891_v51 = vmul.f32 %v15456_v31, %v7695_v43  ;;  %v7890_v56 = vmul.f32 %v15482_v48, %v7694_v53  ;;  %v11122_v55 = vpop.f32.mrb[16].mxu1  ;;  %v6855_v31 = vadd.f32 %v15349_v37, %v11119_v36 }
 0x524   : > { %vm6966_vm9 = vcmp.ge.f32.partialorder %v6854_v17, 0.0  ;;  %v7083_v32 = vmul.f32 %v15367_v9, %v6854_v17  ;;  %vm6964_vm13 = vcmp.ge.f32.partialorder %v6852_v38, 0.0  ;;  %v15693_v61 = vadd.f32 %v15391_v40, %v7309_v50  ;;  %v6556_v23 = vpop.f32.mrb[17].mxu1  ;;  %v8049_v13 = vpop.permute.xlu1 %8048 }
 0x525   : > { %v7190_v7 = vsel %vm6961_vm7, %v6849_v44, %v7078_v49  ;;  %v10337_v19 = vpack.c.bf16 %v7891_v51, %v7891_v51  ;;  %v7081_v28 = vmul.f32 %v15367_v9, %v6852_v38  ;;  %v10336_v41 = vpack.c.bf16 %v7890_v56, %v7890_v56  ;;  %v8047_v63 = vpop.permute.xlu0 %8046  ;;  %8129 = vst.msk [vmem:[#allocation3 + $0x18] sm:$0xf] %vm16664_vm4, %v8049_v13  ;;  %v11123_v4 = vpop.f32.mrb[18].mxu1 }
 0x526   : > { %v7307_v26 = vmul.f32 %v15361_v58, %v7190_v7  ;;  %v7195_v6 = vsel %vm6966_vm9, %v6854_v17, %v7083_v32  ;;  %v6853_v3 = vadd.f32 %v15349_v37, %v6543_v18  ;;  %v6858_v12 = vadd.f32 %v15349_v37, %v11122_v55  ;;  %8128 = vst.msk [vmem:[#allocation3 + $0x14] sm:$0xf] %vm16665_vm5, %v8047_v63  ;;  %v6559_v35 = vpop.f32.mrb[19].mxu1 }
 0x527   : > { %8188 = vrot.lane.b32.xlu1 %v10337_v19, %s11728_s12  ;;  %8031 = vst.msk [vmem:[#allocation3 + $0x58] sm:$0xf] %vm16662_vm15, %v10337_v19  ;;  %v7312_v48 = vmul.f32 %v15361_v58, %v7195_v6  ;;  %v7193_v52 = vsel %vm6964_vm13, %v6852_v38, %v7081_v28  ;;  %8186 = vrot.lane.b32.xlu0 %v10336_v41, %s11728_s12  ;;  %vm6967_vm0 = vcmp.ge.f32.partialorder %v6855_v31, 0.0  ;;  %vm16666_vm13 = vmmov %vm16663_vm1 }
 0x528   : > { %v15704_v1 = vadd.f32 %v15391_v40, %v7307_v26  ;;  %8030 = vst.msk [vmem:[#allocation3 + $0x54] sm:$0xf] %vm16663_vm1, %v10336_v41  ;;  %v7310_v5 = vmul.f32 %v15361_v58, %v7193_v52  ;;  %v7084_v11 = vmul.f32 %v15367_v9, %v6855_v31  ;;  %vm6965_vm8 = vcmp.ge.f32.partialorder %v6853_v3, 0.0  ;;  %v8161_v21 = vpop.permute.xlu1 %8160  ;;  %v7605_v46 = vld [vmem:[#allocation4 + $0x130] ss:$2 sm:$0xff]  ;;  %vm16667_vm15 = vmmov %vm16663_vm1 }
 0x529   : > { %v7429_v42 = vadd.f32 %v15391_v40, %v7312_v48  ;;  %v7082_v45 = vmul.f32 %v15367_v9, %v6853_v3  ;;  %vm6970_vm14 = vcmp.ge.f32.partialorder %v6858_v12, 0.0  ;;  %v7087_v34 = vmul.f32 %v15367_v9, %v6858_v12  ;;  %v8159_v8 = vpop.permute.xlu0 %8158  ;;  %v7661_v18 = vld [vmem:[#allocation4 + $0x131] ss:$2 sm:$0xff]  ;;  %8241 = vst.msk [vmem:[#allocation3 + $0x10] sm:$0xf] %vm3576_vm3, %v8161_v21 }
 0x52a   : > { %v7427_v62 = vadd.f32 %v15391_v40, %v7310_v5  ;;  %v7196_v60 = vsel %vm6967_vm0, %v6855_v31, %v7084_v11  ;;  %v6856_v10 = vadd.f32 %v15349_v37, %v6556_v23  ;;  %v6859_v59 = vadd.f32 %v15349_v37, %v11123_v4  ;;  %8240 = vst.msk [vmem:[#allocation3 + $0xc] sm:$0xf] %vm3576_vm3, %v8159_v8  ;;  %v7603_v53 = vld [vmem:[#allocation4 + $0x120] ss:$2 sm:$0xff]  ;;  %v7659_v33 = vld [vmem:[#allocation4 + $0x121] ss:$2 sm:$0xff] }
 0x52b   : > { %v7497_v20 = vmax.f32 %v15676_v29, %v7429_v42  ;;  %v7313_v47 = vmul.f32 %v15361_v58, %v7196_v60  ;;  %8076 = vrot.lane.b32.xlu1 %v10337_v19, %s11727_s25  ;;  %v7194_v36 = vsel %vm6965_vm8, %v6853_v3, %v7082_v45  ;;  %8074 = vrot.lane.b32.xlu0 %v10336_v41, %s11727_s25  ;;  %v11126_v50 = vpop.f32.mrb[20].mxu1 }
 0x52c   : > { %v7495_v44 = vmax.f32 %v15682_v57, %v7427_v62  ;;  %v7311_v43 = vmul.f32 %v15361_v58, %v7194_v36  ;;  %v7199_v29 = vsel %vm6970_vm14, %v6858_v12, %v7087_v34  ;;  %vm6968_vm10 = vcmp.ge.f32.partialorder %v6856_v10, 0.0  ;;  %v6572_v7 = vpop.f32.mrb[21].mxu1  ;;  %v15778_v36 = vld [vmem:[%s16331_s4] ss:$0 sm:$0xff] }
 0x52d   : > { %7553 = vst.msk [vmem:[#allocation4 + $0x150] sm:$0xff] %vm3058_vm2, %v7497_v20  ;;  %v7430_v17 = vadd.f32 %v15391_v40, %v7313_v47  ;;  %v7316_v38 = vmul.f32 %v15361_v58, %v7199_v29  ;;  %v7085_v57 = vmul.f32 %v15367_v9, %v6856_v10  ;;  %vm6971_vm6 = vcmp.ge.f32.partialorder %v6859_v59, 0.0  ;;  %v11127_v26 = vpop.f32.mrb[22].mxu1 }
 0x52e   : > { %7551 = vst.msk [vmem:[#allocation4 + $0x140] sm:$0xff] %vm3058_vm2, %v7495_v44  ;;  %v7428_v49 = vadd.f32 %v15391_v40, %v7311_v43  ;;  %v7088_v51 = vmul.f32 %v15367_v9, %v6859_v59  ;;  %v6857_v56 = vadd.f32 %v15349_v37, %v6559_v35  ;;  %v7697_v32 = vmax.f32 %v7605_v46, %v7661_v18  ;;  %v6575_v23 = vpop.f32.mrb[23].mxu1 }
 0x52f   : > { %v7498_v19 = vmax.f32 %v15693_v61, %v7430_v17  ;;  %v7197_v28 = vsel %vm6968_vm10, %v6856_v10, %v7085_v57  ;;  %v7696_v55 = vmax.f32 %v7603_v53, %v7659_v33  ;;  %v15746_v63 = vadd.f32 %v15391_v40, %v7316_v38  ;;  %v15770_v10 = vld [vmem:[%s16331_s4 + $0x2] ss:$0 sm:$0xff]  ;;  %v15789_v33 = vld [vmem:[%s16331_s4 + $0x1] ss:$0 sm:$0xff] }
 0x530   : > { %v7496_v41 = vmax.f32 %v15704_v1, %v7428_v49  ;;  %v7314_v6 = vmul.f32 %v15361_v58, %v7197_v28  ;;  %v7200_v31 = vsel %vm6971_vm6, %v6859_v59, %v7088_v51  ;;  %vm6969_vm7 = vcmp.ge.f32.partialorder %v6857_v56, 0.0  ;;  %v15754_v42 = vld [vmem:[#allocation3 + $0x10] sm:$0xf] }
 0x531   : > { %7554 = vst.msk [vmem:[#allocation4 + $0x158] sm:$0xff] %vm3058_vm2, %v7498_v19  ;;  %v7317_v48 = vmul.f32 %v15361_v58, %v7200_v31  ;;  %v7086_v13 = vmul.f32 %v15367_v9, %v6857_v56  ;;  %v7893_v52 = vmul.f32 %v15486_v24, %v7697_v32  ;;  %v7892_v61 = vmul.f32 %v15508_v39, %v7696_v55  ;;  %v8267_v24 = vld [vmem:[#allocation3 + $0xc] sm:$0xf] }
 0x532   : > { %7552 = vst.msk [vmem:[#allocation4 + $0x148] sm:$0xff] %vm3058_vm2, %v7496_v41  ;;  %v6862_v3 = vadd.f32 %v15349_v37, %v11126_v50  ;;  %v6860_v12 = vadd.f32 %v15349_v37, %v6572_v7  ;;  %v6863_v1 = vadd.f32 %v15349_v37, %v11127_v26  ;;  %v15752_v5 = vadd.f32 %v15391_v40, %v7314_v6  ;;  %v8165_v37 = vpop.permute.xlu1 %8164 }
 0x533   : > { %v7198_v58 = vsel %vm6969_vm7, %v6857_v56, %v7086_v13  ;;  %v10339_v11 = vpack.c.bf16 %v7893_v52, %v7893_v52  ;;  %v10338_v4 = vpack.c.bf16 %v7892_v61, %v7892_v61  ;;  %v15757_v39 = vadd.f32 %v15391_v40, %v7317_v48  ;;  %v11130_v34 = vpop.f32.mrb[24].mxu1  ;;  %8243 = vst.msk [vmem:[#allocation3 + $0x18] sm:$0xf] %vm3576_vm3, %v8165_v37 }
 0x534   : > { %vm6974_vm9 = vcmp.ge.f32.partialorder %v6862_v3, 0.0  ;;  %v7091_v45 = vmul.f32 %v15367_v9, %v6862_v3  ;;  %v10191_v35 = vcombine.low %v8267_v24, %v15754_v42  ;;  %vm6972_vm1 = vcmp.ge.f32.partialorder %v6860_v12, 0.0  ;;  %v6588_v8 = vpop.f32.mrb[25].mxu1 }
 0x535   : > { %8080 = vrot.lane.b32.xlu1 %v10339_v11, %s11727_s25  ;;  %8033 = vst.msk [vmem:[#allocation3 + $0x60] sm:$0xf] %vm16666_vm13, %v10339_v11  ;;  %8078 = vrot.lane.b32.xlu0 %v10338_v4, %s11727_s25  ;;  %v7089_v62 = vmul.f32 %v15367_v9, %v6860_v12  ;;  %vm6975_vm4 = vcmp.ge.f32.partialorder %v6863_v1, 0.0  ;;  %v7092_v60 = vmul.f32 %v15367_v9, %v6863_v1  ;;  %v11131_v43 = vpop.f32.mrb[26].mxu1  ;;  %vm16668_vm14 = vcmask 519424  }
 0x536   : > { %8032 = vst.msk [vmem:[#allocation3 + $0x5c] sm:$0xf] %vm16667_vm15, %v10338_v4  ;;  %v7315_v20 = vmul.f32 %v15770_v10, %v7198_v58  ;;  %v7203_v47 = vsel %vm6974_vm9, %v6862_v3, %v7091_v45  ;;  %11156 = vmatprep.mubr.msk.bf16.mxu0 %vm334_vm11, %v10191_v35  ;;  %v6861_v9 = vadd.f32 %v15778_v36, %v6575_v23  ;;  %v6591_v38 = vpop.f32.mrb[27].mxu1  ;;  %v8163_v50 = vpop.permute.xlu0 %8162  ;;  %vm16669_vm6 = vmmov %vm16668_vm14 }
 0x537   : > { %v6866_v21 = vadd.f32 %v15778_v36, %v11130_v34  ;;  %v7320_v59 = vmul.f32 %v15770_v10, %v7203_v47  ;;  %v7201_v46 = vsel %vm6972_vm1, %v6860_v12, %v7089_v62  ;;  %v7204_v18 = vsel %vm6975_vm4, %v6863_v1, %v7092_v60  ;;  %v8053_v49 = vpop.permute.xlu1 %8052  ;;  %8242 = vst.msk [vmem:[#allocation3 + $0x14] sm:$0xf] %vm3576_vm3, %v8163_v50  ;;  %vm16670_vm1 = vmmov %vm16667_vm15 }
 0x538   : > { %v6864_v44 = vadd.f32 %v15778_v36, %v6588_v8  ;;  %v7318_v29 = vmul.f32 %v15770_v10, %v7201_v46  ;;  %v7321_v53 = vmul.f32 %v15770_v10, %v7204_v18  ;;  %vm6973_vm5 = vcmp.ge.f32.partialorder %v6861_v9, 0.0  ;;  %8131 = vst.msk [vmem:[#allocation3 + $0x20] sm:$0xf] %vm16668_vm14, %v8053_v49  ;;  %v7609_v28 = vld [vmem:[#allocation4 + $0x150] ss:$2 sm:$0xff] }
 0x539   : > { %v7090_v17 = vmul.f32 %v15789_v33, %v6861_v9  ;;  %v7437_v57 = vadd.f32 %v15391_v40, %v7320_v59  ;;  %8192 = vrot.lane.b32.xlu1 %v10339_v11, %s11728_s12  ;;  %8190 = vrot.lane.b32.xlu0 %v10338_v4, %s11728_s12  ;;  %vm6978_vm0 = vcmp.ge.f32.partialorder %v6866_v21, 0.0  ;;  %v7095_v51 = vmul.f32 %v15789_v33, %v6866_v21  ;;  %v7665_v31 = vld [vmem:[#allocation4 + $0x151] ss:$2 sm:$0xff]  ;;  %v7607_v23 = vld [vmem:[#allocation4 + $0x140] ss:$2 sm:$0xff] }
 0x53a   : > { %vm6976_vm8 = vcmp.ge.f32.partialorder %v6864_v44, 0.0  ;;  %v7435_v56 = vadd.f32 %v15391_v40, %v7318_v29  ;;  %v7438_v32 = vadd.f32 %v15391_v40, %v7321_v53  ;;  %v7093_v19 = vmul.f32 %v15789_v33, %v6864_v44  ;;  %v7663_v48 = vld [vmem:[#allocation4 + $0x141] ss:$2 sm:$0xff]  ;;  %v8051_v1 = vpop.permute.xlu0 %8050  ;;  %v15823_v60 = vld [vmem:[#allocation3 + $0x18] sm:$0xf] }
 0x53b   : > { %v7202_v7 = vsel %vm6973_vm5, %v6861_v9, %v7090_v17  ;;  %v7501_v55 = vmax.f32 %v15746_v63, %v7437_v57  ;;  %v7207_v41 = vsel %vm6978_vm0, %v6866_v21, %v7095_v51  ;;  %v6867_v6 = vadd.f32 %v15778_v36, %v11131_v43  ;;  %v15811_v63 = vld [vmem:[%s16331_s4 + $0x3] ss:$0 sm:$0xff]  ;;  %v11134_v58 = vpop.f32.mrb[28].mxu1  ;;  %8130 = vst.msk [vmem:[#allocation3 + $0x1c] sm:$0xf] %vm16669_vm6, %v8051_v1 }
 0x53c   : > { %v7319_v26 = vmul.f32 %v15770_v10, %v7202_v7  ;;  %v7499_v13 = vmax.f32 %v15752_v5, %v7435_v56  ;;  %v7502_v40 = vmax.f32 %v15757_v39, %v7438_v32  ;;  %v7324_v52 = vmul.f32 %v15770_v10, %v7207_v41  ;;  %v6604_v45 = vpop.f32.mrb[29].mxu1 }
 0x53d   : > { %v7205_v61 = vsel %vm6976_vm8, %v6864_v44, %v7093_v19  ;;  %v7432_v3 = vadd.f32 %v15811_v63, %v7315_v20  ;;  %7557 = vst.msk [vmem:[#allocation4 + $0x170] sm:$0xff] %vm3058_vm2, %v7501_v55  ;;  %vm6979_vm10 = vcmp.ge.f32.partialorder %v6867_v6, 0.0  ;;  %v7096_v5 = vmul.f32 %v15789_v33, %v6867_v6  ;;  %v11135_v20 = vpop.f32.mrb[30].mxu1  ;;  %vm16671_vm8 = vmmov %vm16669_vm6 }
 0x53e   : > { %v7436_v12 = vadd.f32 %v15811_v63, %v7319_v26  ;;  %7555 = vst.msk [vmem:[#allocation4 + $0x160] sm:$0xff] %vm3058_vm2, %v7499_v13  ;;  %7558 = vst.msk [vmem:[#allocation4 + $0x178] sm:$0xff] %vm3058_vm2, %v7502_v40  ;;  %v7322_v11 = vmul.f32 %v15770_v10, %v7205_v61  ;;  %v6865_v4 = vadd.f32 %v15778_v36, %v6591_v38  ;;  %v6607_v8 = vpop.f32.mrb[31].mxu1  ;;  %v8269_v59 = vld [vmem:[#allocation3 + $0x14] sm:$0xf] }
 0x53f   : > { %v7699_v24 = vmax.f32 %v7609_v28, %v7665_v31  ;;  %v7698_v39 = vmax.f32 %v7607_v23, %v7663_v48  ;;  %v7441_v37 = vadd.f32 %v15811_v63, %v7324_v52  ;;  %v7208_v62 = vsel %vm6979_vm10, %v6867_v6, %v7096_v5  ;;  %vm16672_vm10 = vmmov %vm16669_vm6 }
 0x540   : > { %v7500_v35 = vmax.f32 %v7432_v3, %v7436_v12  ;;  %v6870_v34 = vadd.f32 %v15778_v36, %v11134_v58  ;;  %v7325_v47 = vmul.f32 %v15770_v10, %v7208_v62  ;;  %vm6977_vm7 = vcmp.ge.f32.partialorder %v6865_v4, 0.0  ;;  %v11663_v3 = vld [vmem:[%s16332_s5] sm:$0xff]  }
 0x541   : > { %v7094_v9 = vmul.f32 %v15789_v33, %v6865_v4  ;;  %v7895_v21 = vmul.f32 %v15512_v30, %v7699_v24  ;;  %v7894_v46 = vmul.f32 %v15531_v22, %v7698_v39  ;;  %v6868_v44 = vadd.f32 %v15778_v36, %v6604_v45  ;;  %11184 = vmatprep.subr.bf16.mxu0 %v11663_v3 }
 0x542   : > { %7556 = vst.msk [vmem:[#allocation4 + $0x168] sm:$0xff] %vm3058_vm2, %v7500_v35  ;;  %vm6982_vm9 = vcmp.ge.f32.partialorder %v6870_v34, 0.0  ;;  %v7099_v18 = vmul.f32 %v15789_v33, %v6870_v34  ;;  %v15834_v43 = vadd.f32 %v15811_v63, %v7322_v11  ;;  %v10192_v53 = vcombine.low %v8269_v59, %v15823_v60 }
 0x543   : > { %v7206_v29 = vsel %vm6977_vm7, %v6865_v4, %v7094_v9  ;;  %v10341_v17 = vpack.c.bf16 %v7895_v21, %v7895_v21  ;;  %v10340_v38 = vpack.c.bf16 %v7894_v46, %v7894_v46  ;;  %vm6980_vm13 = vcmp.ge.f32.partialorder %v6868_v44, 0.0  ;;  %v11138_v7 = vpop.f32.mrb[32].mxu1 }
 0x544   : > { %v7323_v30 = vmul.f32 %v15770_v10, %v7206_v29  ;;  %v7211_v57 = vsel %vm6982_vm9, %v6870_v34, %v7099_v18  ;;  %11157 = vmatmul.mubr.msk.bf16.vlgmr.msra.gmra.mrb[184].mxu0 %vm334_vm11, %v10192_v53  ;;  %v7097_v50 = vmul.f32 %v15789_v33, %v6868_v44  ;;  %v6871_v49 = vadd.f32 %v15778_v36, %v11135_v20  ;;  %v6620_v41 = vpop.f32.mrb[33].mxu1 }
 0x545   : > { %8196 = vrot.lane.b32.xlu1 %v10341_v17, %s11728_s12  ;;  %8035 = vst.msk [vmem:[#allocation3 + $0x68] sm:$0xf] %vm16667_vm15, %v10341_v17  ;;  %v7328_v22 = vmul.f32 %v15770_v10, %v7211_v57  ;;  %v15845_v51 = vadd.f32 %v15811_v63, %v7325_v47  ;;  %8194 = vrot.lane.b32.xlu0 %v10340_v38, %s11728_s12  ;;  %v11139_v48 = vpop.f32.mrb[34].mxu1  ;;  %v7613_v62 = vld [vmem:[#allocation4 + $0x170] ss:$2 sm:$0xff] }
 0x546   : > { %v15848_v56 = vadd.f32 %v15811_v63, %v7323_v30  ;;  %8034 = vst.msk [vmem:[#allocation3 + $0x64] sm:$0xf] %vm16670_vm1, %v10340_v38  ;;  %v6869_v32 = vadd.f32 %v15778_v36, %v6607_v8  ;;  %v15854_v19 = vcombine.low %v15754_v42, %v8269_v59  ;;  %v7209_v55 = vsel %vm6980_vm13, %v6868_v44, %v7097_v50  ;;  %v6623_v61 = vpop.f32.mrb[35].mxu1  ;;  %v7669_v21 = vld [vmem:[#allocation4 + $0x171] ss:$2 sm:$0xff] }
 0x547   : > { %v7445_v28 = vadd.f32 %v15811_v63, %v7328_v22  ;;  %vm6983_vm4 = vcmp.ge.f32.partialorder %v6871_v49, 0.0  ;;  %v7100_v26 = vmul.f32 %v15789_v33, %v6871_v49  ;;  %v7326_v6 = vmul.f32 %v15770_v10, %v7209_v55  ;;  %v8057_v12 = vpop.permute.xlu1 %8056  ;;  %v8055_v11 = vpop.permute.xlu0 %8054  ;;  %11185 = vmatpush3.bf16.msra.mxu0 %v11663_v3 }
 0x548   : > { %vm6981_vm5 = vcmp.ge.f32.partialorder %v6869_v32, 0.0  ;;  %v7098_v31 = vmul.f32 %v15789_v33, %v6869_v32  ;;  %v6874_v23 = vadd.f32 %v15778_v36, %v11138_v7  ;;  %v6872_v40 = vadd.f32 %v15778_v36, %v6620_v41  ;;  %8133 = vst.msk [vmem:[#allocation3 + $0x28] sm:$0xf] %vm16671_vm8, %v8057_v12 }
 0x549   : > { %v7505_v13 = vmax.f32 %v7441_v37, %v7445_v28  ;;  %8084 = vrot.lane.b32.xlu1 %v10341_v17, %s11727_s25  ;;  %v7212_v42 = vsel %vm6983_vm4, %v6871_v49, %v7100_v26  ;;  %v6875_v52 = vadd.f32 %v15778_v36, %v11139_v48  ;;  %v7443_v1 = vadd.f32 %v15811_v63, %v7326_v6  ;;  %v7611_v8 = vld [vmem:[#allocation4 + $0x160] ss:$2 sm:$0xff]  ;;  %v7667_v59 = vld [vmem:[#allocation4 + $0x161] ss:$2 sm:$0xff]  ;;  %vm16673_vm4 = vmmov %vm16670_vm1 }
 0x54a   : > { %8082 = vrot.lane.b32.xlu0 %v10340_v38, %s11727_s25  ;;  %v7329_v5 = vmul.f32 %v15770_v10, %v7212_v42  ;;  %v7210_v58 = vsel %vm6981_vm5, %v6869_v32, %v7098_v31  ;;  %vm6986_vm0 = vcmp.ge.f32.partialorder %v6874_v23, 0.0  ;;  %v7103_v24 = vmul.f32 %v15789_v33, %v6874_v23  ;;  %8132 = vst.msk [vmem:[#allocation3 + $0x24] sm:$0xf] %vm16672_vm10, %v8055_v11  ;;  %v11664_v17 = vld [vmem:[%s16332_s5 + $0x8] sm:$0xff]  }
 0x54b   : > { %7561 = vst.msk [vmem:[#allocation4 + $0x190] sm:$0xff] %vm3058_vm2, %v7505_v13  ;;  %v7327_v4 = vmul.f32 %v15770_v10, %v7210_v58  ;;  %vm6984_vm14 = vcmp.ge.f32.partialorder %v6872_v40, 0.0  ;;  %v7101_v39 = vmul.f32 %v15789_v33, %v6872_v40  ;;  %v7503_v45 = vmax.f32 %v15834_v43, %v7443_v1  ;;  %v8169_v18 = vpop.permute.xlu1 %8168  ;;  %v11142_v53 = vpop.f32.mrb[36].mxu1  ;;  %11186 = vmatprep.subr.bf16.mxu0 %v11664_v17 }
 0x54c   : > { %v7446_v35 = vadd.f32 %v15811_v63, %v7329_v5  ;;  %vm6987_vm6 = vcmp.ge.f32.partialorder %v6875_v52, 0.0  ;;  %v7104_v37 = vmul.f32 %v15789_v33, %v6875_v52  ;;  %v7215_v20 = vsel %vm6986_vm0, %v6874_v23, %v7103_v24  ;;  %8245 = vst.msk [vmem:[#allocation3 + $0x20] sm:$0xf] %vm3576_vm3, %v8169_v18  ;;  %v8167_v38 = vpop.permute.xlu0 %8166  ;;  %v6636_v22 = vpop.f32.mrb[37].mxu1  ;;  %11187 = vmatpush3.bf16.msra.mxu0 %v11664_v17  ;;  %vm16674_vm0 = vmmov %vm16671_vm8 }
 0x54d   : > { %v7444_v34 = vadd.f32 %v15811_v63, %v7327_v4  ;;  %v7213_v47 = vsel %vm6984_vm14, %v6872_v40, %v7101_v39  ;;  %v6873_v9 = vadd.f32 %v15778_v36, %v6623_v61  ;;  %7559 = vst.msk [vmem:[#allocation4 + $0x180] sm:$0xff] %vm3058_vm2, %v7503_v45  ;;  %v7332_v44 = vmul.f32 %v15770_v10, %v7215_v20  ;;  %v11143_v7 = vpop.f32.mrb[38].mxu1  ;;  %vm16675_vm8 = vmmov %vm16670_vm1 }
 0x54e   : > { %v7506_v46 = vmax.f32 %v15845_v51, %v7446_v35  ;;  %v7330_v43 = vmul.f32 %v15770_v10, %v7213_v47  ;;  %v7216_v29 = vsel %vm6987_vm6, %v6875_v52, %v7104_v37  ;;  %8244 = vst.msk [vmem:[#allocation3 + $0x1c] sm:$0xf] %vm3576_vm3, %v8167_v38  ;;  %v7701_v51 = vmax.f32 %v7613_v62, %v7669_v21  ;;  %v6639_v41 = vpop.f32.mrb[39].mxu1  ;;  %vm16676_vm14 = vmmov %vm16670_vm1 }
 0x54f   : > { %v7504_v30 = vmax.f32 %v15848_v56, %v7444_v34  ;;  %vm6985_vm7 = vcmp.ge.f32.partialorder %v6873_v9, 0.0  ;;  %v7102_v57 = vmul.f32 %v15789_v33, %v6873_v9  ;;  %v15896_v50 = vadd.f32 %v15811_v63, %v7332_v44  ;;  %vm16677_vm10 = vmmov %vm16674_vm0 }
 0x550   : > { %7562 = vst.msk [vmem:[#allocation4 + $0x198] sm:$0xff] %vm3058_vm2, %v7506_v46  ;;  %v7333_v49 = vmul.f32 %v15770_v10, %v7216_v29  ;;  %v7700_v32 = vmax.f32 %v7611_v8, %v7667_v59  ;;  %v15901_v56 = vadd.f32 %v15811_v63, %v7330_v43  ;;  %v6878_v55 = vadd.f32 %v15778_v36, %v11142_v53  ;;  %vm16679_vm6 = vmmov %vm16674_vm0 }
 0x551   : > { %7560 = vst.msk [vmem:[#allocation4 + $0x188] sm:$0xff] %vm3058_vm2, %v7504_v30  ;;  %v7214_v28 = vsel %vm6985_vm7, %v6873_v9, %v7102_v57  ;;  %v6876_v26 = vadd.f32 %v15778_v36, %v6636_v22  ;;  %v7897_v31 = vmul.f32 %v15537_v2, %v7701_v51  ;;  %v6879_v48 = vadd.f32 %v15778_v36, %v11143_v7  ;;  %vm16680_vm7 = vmmov %vm16670_vm1 }
 0x552   : > { %v7331_v6 = vmul.f32 %v15770_v10, %v7214_v28  ;;  %v7896_v23 = vmul.f32 %v15558_v0, %v7700_v32  ;;  %vm6990_vm9 = vcmp.ge.f32.partialorder %v6878_v55, 0.0  ;;  %v7107_v13 = vmul.f32 %v15789_v33, %v6878_v55 }
 0x553   : > { %vm6988_vm13 = vcmp.ge.f32.partialorder %v6876_v26, 0.0  ;;  %v7105_v42 = vmul.f32 %v15789_v33, %v6876_v26  ;;  %v15912_v40 = vadd.f32 %v15811_v63, %v7333_v49  ;;  %v10343_v52 = vpack.c.bf16 %v7897_v31, %v7897_v31  ;;  %v15924_v58 = vld [vmem:[#allocation3 + $0x20] sm:$0xf]  ;;  %v11668_v49 = vld [vmem:[%s16332_s5 + $0x18] sm:$0xff]  }
 0x554   : > { %v10342_v61 = vpack.c.bf16 %v7896_v23, %v7896_v23  ;;  %vm6991_vm15 = vcmp.ge.f32.partialorder %v6879_v48, 0.0  ;;  %v7219_v3 = vsel %vm6990_vm9, %v6878_v55, %v7107_v13  ;;  %v7108_v2 = vmul.f32 %v15789_v33, %v6879_v48  ;;  %vm16683_vm9 = vmmov %vm16674_vm0 }
 0x555   : > { %v7217_v12 = vsel %vm6988_vm13, %v6876_v26, %v7105_v42  ;;  %v6877_v0 = vadd.f32 %v15778_v36, %v6639_v41  ;;  %v15917_v1 = vadd.f32 %v15811_v63, %v7331_v6  ;;  %8088 = vrot.lane.b32.xlu1 %v10343_v52, %s11727_s25  ;;  %8037 = vst.msk [vmem:[#allocation3 + $0x70] sm:$0xf] %vm16670_vm1, %v10343_v52  ;;  %v8639_v4 = vshrl.u32 %v15854_v19, 16  ;;  %v8271_v36 = vld [vmem:[#allocation3 + $0x1c] sm:$0xf]  ;;  %vm16684_vm13 = vmmov %vm16674_vm0 }
 0x556   : > { %8086 = vrot.lane.b32.xlu0 %v10342_v61, %s11727_s25  ;;  %8036 = vst.msk [vmem:[#allocation3 + $0x6c] sm:$0xf] %vm16673_vm4, %v10342_v61  ;;  %v7336_v5 = vmul.f32 %v15770_v10, %v7219_v3  ;;  %v7334_v11 = vmul.f32 %v15770_v10, %v7217_v12  ;;  %v7220_v24 = vsel %vm6991_vm15, %v6879_v48, %v7108_v2  ;;  %v8642_v35 = vshll.u32 %v15854_v19, 16  ;;  %v8173_v8 = vpop.permute.xlu1 %8172  ;;  %v11666_v19 = vld [vmem:[%s16332_s5 + $0x10] sm:$0xff]   ;;  %v11669_v2 = vld [vmem:[%s16332_s5 + $0x20] sm:$0xff]   ;;  %vm16685_vm15 = vmmov %vm16674_vm0 }
 0x557   : > { %vm6989_vm5 = vcmp.ge.f32.partialorder %v6877_v0, 0.0  ;;  %v7106_v39 = vmul.f32 %v15789_v33, %v6877_v0  ;;  %v7617_v45 = vld [vmem:[#allocation4 + $0x190] ss:$2 sm:$0xff]  ;;  %v10193_v62 = vcombine.low %v8271_v36, %v15924_v58  ;;  %v10227_v34 = vcombine.low %v15823_v60, %v8271_v36  ;;  %v7673_v47 = vld [vmem:[#allocation4 + $0x191] ss:$2 sm:$0xff]  ;;  %11188 = vmatprep.subr.bf16.mxu0 %v11666_v19  ;;  %vm16686_vm1 = vmmov %vm16674_vm0 }
 0x558   : > { %v7453_v37 = vadd.f32 %v15811_v63, %v7336_v5  ;;  %v7451_v20 = vadd.f32 %v15811_v63, %v7334_v11  ;;  %v7615_v9 = vld [vmem:[#allocation4 + $0x180] ss:$2 sm:$0xff]  ;;  %v7671_v21 = vld [vmem:[#allocation4 + $0x181] ss:$2 sm:$0xff]  ;;  %v7337_v59 = vmul.f32 %v15770_v10, %v7220_v24  ;;  %v7703_v18 = vmax.f32 %v7617_v45, %v7673_v47  ;;  %8247 = vst.msk [vmem:[#allocation3 + $0x28] sm:$0xf] %vm3576_vm3, %v8173_v8  ;;  %vm16687_vm4 = vmmov %vm16674_vm0 }
 0x559   : > { %v7218_v46 = vsel %vm6989_vm5, %v6877_v0, %v7106_v39  ;;  %v7702_v33 = vmax.f32 %v7615_v9, %v7671_v21  ;;  %11160 = vmatprep.mubr.msk.bf16.mxu0 %vm334_vm11, %v10193_v62  ;;  %v8648_v60 = vshrl.u32 %v10227_v34, 16  ;;  %v8651_v43 = vshll.u32 %v10227_v34, 16  ;;  %8200 = vrot.lane.b32.xlu1 %v10343_v52, %s11728_s12  ;;  %v16681_v62 = vld [vmem:[#allocation45_spill] sm:$0xff]  ;;  %vm16688_vm5 = vmmov %vm16674_vm0 }
 0x55a   : > { %v7509_v44 = vmax.f32 %v15896_v50, %v7453_v37  ;;  %v7507_v29 = vmax.f32 %v15901_v56, %v7451_v20  ;;  %8198 = vrot.lane.b32.xlu0 %v10342_v61, %s11728_s12  ;;  %v7454_v53 = vadd.f32 %v15811_v63, %v7337_v59  ;;  %v7335_v17 = vmul.f32 %v15770_v10, %v7218_v46  ;;  %v8171_v50 = vpop.permute.xlu0 %8170  ;;  %v8061_v10 = vpop.permute.xlu1 %8060 }
 0x55b   : > { %v7899_v30 = vmul.f32 %v15563_v15, %v7703_v18  ;;  %v7898_v38 = vmul.f32 %v15590_v27, %v7702_v33  ;;  %v8650_v57 = vrot.slane %v8648_v60, 3  ;;  %v8653_v22 = vrot.slane %v8651_v43, 4  ;;  %8246 = vst.msk [vmem:[#allocation3 + $0x24] sm:$0xf] %vm3576_vm3, %v8171_v50  ;;  %11189 = vmatpush3.bf16.msra.mxu0 %v11666_v19  ;;  %v16682_v18 = vld [vmem:[#allocation46_spill] sm:$0xff] }
 0x55c   : > { %7565 = vst.msk [vmem:[#allocation4 + $0x1b0] sm:$0xff] %vm3058_vm2, %v7509_v44  ;;  %7563 = vst.msk [vmem:[#allocation4 + $0x1a0] sm:$0xff] %vm3058_vm2, %v7507_v29  ;;  %v8641_v51 = vrot.slane %v8639_v4, 3  ;;  %v8644_v32 = vrot.slane %v8642_v35, 4  ;;  %v7510_v15 = vmax.f32 %v15912_v40, %v7454_v53  ;;  %v7452_v27 = vadd.f32 %v15811_v63, %v7335_v17  ;;  %11190 = vmatprep.subr.bf16.mxu0 %v11668_v49  ;;  %v16007_v33 = vld [vmem:[%s16332_s5 + $0x60] sm:$0xff]  }
 0x55d   : > { %v10345_v7 = vpack.c.bf16 %v7899_v30, %v7899_v30  ;;  %v10344_v56 = vpack.c.bf16 %v7898_v38, %v7898_v38  ;;  %8135 = vst.msk [vmem:[#allocation3 + $0x30] sm:$0xf] %vm16674_vm0, %v8061_v10  ;;  %v8654_v55 = vor.u32 %v8653_v22, %v8650_v57 }
 0x55e   : > { %v15957_v28 = vor.u32 %v8644_v32, %v8641_v51  ;;  %7566 = vst.msk [vmem:[#allocation4 + $0x1b8] sm:$0xff] %vm3058_vm2, %v7510_v15  ;;  %v7508_v26 = vmax.f32 %v15917_v1, %v7452_v27  ;;  %v8059_v63 = vpop.permute.xlu0 %8058 }
 0x55f   : > { %8204 = vrot.lane.b32.xlu1 %v10345_v7, %s11728_s12  ;;  %8039 = vst.msk [vmem:[#allocation3 + $0x78] sm:$0xf] %vm16675_vm8, %v10345_v7  ;;  %8202 = vrot.lane.b32.xlu0 %v10344_v56, %s11728_s12  ;;  %v8274_v6 = vld [vmem:[#allocation3 + $0x28] sm:$0xf]  ;;  %vm16689_vm8 = vmmov %vm16674_vm0 }
 0x560   : > { %8038 = vst.msk [vmem:[#allocation3 + $0x74] sm:$0xf] %vm16676_vm14, %v10344_v56  ;;  %v15967_v41 = vsel %vm4516_vm12, %v15957_v28, %v8654_v55  ;;  %11191 = vmatpush3.bf16.msra.mxu0 %v11668_v49  ;;  %vm16690_vm14 = vmmov %vm16674_vm0 }
 0x561   : > { %7564 = vst.msk [vmem:[#allocation4 + $0x1a8] sm:$0xff] %vm3058_vm2, %v7508_v26  ;;  %11192 = vmatprep.subr.bf16.mxu0 %v11669_v2  ;;  %vm16678_vm2 = vmmov %vm16674_vm0 }
 0x562   : > { %8134 = vst.msk [vmem:[#allocation3 + $0x2c] sm:$0xf] %vm16677_vm10, %v8059_v63  ;;  %v8273_v31 = vld [vmem:[#allocation3 + $0x24] sm:$0xf]  ;;  %vm16691_vm10 = vmmov %vm16674_vm0 }
 0x563   : > { %8092 = vrot.lane.b32.xlu1 %v10345_v7, %s11727_s25  ;;  %8090 = vrot.lane.b32.xlu0 %v10344_v56, %s11727_s25  ;;  %v10194_v23 = vcombine.low %v8273_v31, %v8274_v6  ;;  %v10228_v48 = vcombine.low %v15924_v58, %v8273_v31 }
 0x564   : > { %11193 = vmatpush3.bf16.msra.mxu0 %v11669_v2 }
 0x565   : > { %v7621_v13 = vld [vmem:[#allocation4 + $0x1b0] ss:$2 sm:$0xff]  ;;  %v7677_v42 = vld [vmem:[#allocation4 + $0x1b1] ss:$2 sm:$0xff]  ;;  %11161 = vmatmul.mubr.msk.bf16.gmra.mrb[188].mxu0 %vm334_vm11, %v10194_v23  ;;  %v8657_v52 = vshrl.u32 %v10228_v48, 16  ;;  %v8660_v61 = vshll.u32 %v10228_v48, 16 }
 0x566   : > { %v7705_v40 = vmax.f32 %v7621_v13, %v7677_v42 }
 0x567   : > { %v8659_v5 = vrot.slane %v8657_v52, 3  ;;  %v8662_v11 = vrot.slane %v8660_v61, 4 }
 0x568   : > { %v7619_v3 = vld [vmem:[#allocation4 + $0x1a0] ss:$2 sm:$0xff]  ;;  %v7675_v12 = vld [vmem:[#allocation4 + $0x1a1] ss:$2 sm:$0xff]  ;;  %v7901_v0 = vmul.f32 %v15594_v14, %v7705_v40  ;;  %v8065_v4 = vpop.permute.xlu1 %8064 }
 0x569   : > { %v7704_v1 = vmax.f32 %v7619_v3, %v7675_v12  ;;  %8137 = vst.msk [vmem:[#allocation3 + $0x38] sm:$0xf] %vm16678_vm2, %v8065_v4  ;;  %v8063_v58 = vpop.permute.xlu0 %8062  ;;  %v8663_v39 = vor.u32 %v8662_v11, %v8659_v5  ;;  %vm16692_vm2 = vmmov %vm16674_vm0 }
 0x56a   : > { %v10347_v36 = vpack.c.bf16 %v7901_v0, %v7901_v0  ;;  %8136 = vst.msk [vmem:[#allocation3 + $0x34] sm:$0xf] %vm16679_vm6, %v8063_v58  ;;  %vm16693_vm6 = vmmov %vm16674_vm0 }
 0x56b   : > { %v7900_v24 = vmul.f32 %v15614_v25, %v7704_v1  ;;  %v15984_v14 = vsel %vm4516_vm12, %v8654_v55, %v8663_v39  ;;  %v11673_v25 = vld [vmem:[%s16332_s5 + $0x28] sm:$0xff]  }
 0x56c   : > { %8208 = vrot.lane.b32.xlu1 %v10347_v36, %s11728_s12  ;;  %v8177_v35 = vpop.permute.xlu1 %8176  ;;  %11194 = vmatprep.subr.bf16.mxu0 %v11673_v25 }
 0x56d   : > { %v10346_v45 = vpack.c.bf16 %v7900_v24, %v7900_v24  ;;  %8249 = vst.msk [vmem:[#allocation3 + $0x30] sm:$0xf] %vm3576_vm3, %v8177_v35  ;;  %v8175_v37 = vpop.permute.xlu0 %8174  ;;  %11195 = vmatpush3.bf16.msra.mxu0 %v11673_v25 }
 0x56e   : > { %8248 = vst.msk [vmem:[#allocation3 + $0x2c] sm:$0xf] %vm3576_vm3, %v8175_v37  ;;  %11224 = vmatprep.subr.bf16.mxu0 %v16007_v33 }
 0x56f   : > { %8040 = vst.msk [vmem:[#allocation3 + $0x7c] sm:$0xf] %vm16680_vm7, %v10346_v45  ;;  %8206 = vrot.lane.b32.xlu0 %v10346_v45, %s11728_s12  ;;  %vm16694_vm7 = vmmov %vm16674_vm0 }
 0x570   : > { %8096 = vrot.lane.b32.xlu1 %v10347_v36, %s11727_s25 }
 0x573   : > { %8094 = vrot.lane.b32.xlu0 %v10346_v45, %s11727_s25 }
 0x574   : > { %3347 = vrot.lane.b32.xlu1 %v16681_v62, %s11728_s12  ;;  %v8276_v34 = vld [vmem:[#allocation3 + $0x30] sm:$0xf] }
 0x575   : > { %v8275_v20 = vld [vmem:[#allocation3 + $0x2c] sm:$0xf] }
 0x576   : > { %v10195_v47 = vcombine.low %v8275_v20, %v8276_v34  ;;  %v10229_v9 = vcombine.low %v8274_v6, %v8275_v20 }
 0x577   : > { %8156 = vrot.lane.b32.xlu0 %v15102_v54, %s11728_s12 }
 0x578   : > { %8154 = vrot.lane.b32.xlu1 %v15121_v16, %s11728_s12  ;;  %11164 = vmatprep.mubr.msk.bf16.mxu0 %vm334_vm11, %v10195_v47  ;;  %v8666_v21 = vshrl.u32 %v10229_v9, 16  ;;  %v8669_v8 = vshll.u32 %v10229_v9, 16 }
 0x579   : > { %v8181_v59 = vpop.permute.xlu1 %8180  ;;  %v8179_v46 = vpop.permute.xlu0 %8178 }
 0x57a   : > { %8251 = vst.msk [vmem:[#allocation3 + $0x38] sm:$0xf] %vm3576_vm3, %v8181_v59  ;;  %8250 = vst.msk [vmem:[#allocation3 + $0x34] sm:$0xf] %vm3576_vm3, %v8179_v46  ;;  %v8668_v54 = vrot.slane %v8666_v21, 3  ;;  %v8671_v16 = vrot.slane %v8669_v8, 4 }
 0x57b   : > { %3349 = vrot.lane.b32.xlu0 %v16682_v18, %s11728_s12 }
 0x57c   : > { %v8672_v19 = vor.u32 %v8671_v16, %v8668_v54 }
 0x57d   : > { %v8069_v44 = vpop.permute.xlu1 %8068  ;;  %v8067_v60 = vpop.permute.xlu0 %8066 }
 0x57e   : > { %8139 = vst.msk [vmem:[#allocation3 + $0x40] sm:$0xf] %vm16683_vm9, %v8069_v44  ;;  %v16015_v43 = vsel %vm4516_vm12, %v8663_v39, %v8672_v19  ;;  %vm16695_vm9 = vmmov %vm16674_vm0 }
 0x57f   : > { %8138 = vst.msk [vmem:[#allocation3 + $0x3c] sm:$0xf] %vm16684_vm13, %v8067_v60  ;;  %vm16696_vm13 = vmmov %vm16674_vm0 }
 0x581   : > { %v8277_v29 = vld [vmem:[#allocation3 + $0x34] sm:$0xf]  ;;  %v8278_v53 = vld [vmem:[#allocation3 + $0x38] sm:$0xf] }
 0x582   : > { %v10196_v17 = vcombine.low %v8277_v29, %v8278_v53  ;;  %v10230_v30 = vcombine.low %v8276_v34, %v8277_v29 }
 0x584   : > { %11165 = vmatmul.mubr.msk.bf16.gmra.mrb[192].mxu0 %vm334_vm11, %v10196_v17  ;;  %v8675_v38 = vshrl.u32 %v10230_v30, 16  ;;  %v8678_v57 = vshll.u32 %v10230_v30, 16 }
 0x586   : > { %v8677_v22 = vrot.slane %v8675_v38, 3  ;;  %v8680_v50 = vrot.slane %v8678_v57, 4 }
 0x588   : > { %v8681_v49 = vor.u32 %v8680_v50, %v8677_v22 }
 0x589   : > { %v8073_v51 = vpop.permute.xlu1 %8072 }
 0x58a   : > { %v8071_v32 = vpop.permute.xlu0 %8070  ;;  %v16019_v15 = vsel %vm4516_vm12, %v8672_v19, %v8681_v49  ;;  %8141 = vst.msk [vmem:[#allocation3 + $0x48] sm:$0xf] %vm16685_vm15, %v8073_v51  ;;  %vm16697_vm15 = vmmov %vm16674_vm0 }
 0x58b   : > { %8140 = vst.msk [vmem:[#allocation3 + $0x44] sm:$0xf] %vm16686_vm1, %v8071_v32 }
 0x58d   : > { %v8185_v27 = vpop.permute.xlu1 %8184 }
 0x58e   : > { %v8183_v10 = vpop.permute.xlu0 %8182  ;;  %8253 = vst.msk [vmem:[#allocation3 + $0x40] sm:$0xf] %vm3576_vm3, %v8185_v27 }
 0x58f   : > { %8252 = vst.msk [vmem:[#allocation3 + $0x3c] sm:$0xf] %vm3576_vm3, %v8183_v10 }
 0x595   : > { %v8280_v56 = vld [vmem:[#allocation3 + $0x40] sm:$0xf] }
 0x596   : > { %v8279_v7 = vld [vmem:[#allocation3 + $0x3c] sm:$0xf] }
 0x597   : > { %v10197_v55 = vcombine.low %v8279_v7, %v8280_v56  ;;  %v10231_v26 = vcombine.low %v8278_v53, %v8279_v7 }
 0x599   : > { %v8189_v63 = vpop.permute.xlu1 %8188  ;;  %11168 = vmatprep.mubr.msk.bf16.mxu0 %vm334_vm11, %v10197_v55  ;;  %v8187_v6 = vpop.permute.xlu0 %8186  ;;  %v8684_v31 = vshrl.u32 %v10231_v26, 16  ;;  %v8687_v23 = vshll.u32 %v10231_v26, 16 }
 0x59a   : > { %8255 = vst.msk [vmem:[#allocation3 + $0x48] sm:$0xf] %vm3576_vm3, %v8189_v63  ;;  %8254 = vst.msk [vmem:[#allocation3 + $0x44] sm:$0xf] %vm3576_vm3, %v8187_v6 }
 0x59b   : > { %v8686_v48 = vrot.slane %v8684_v31, 3  ;;  %v8689_v13 = vrot.slane %v8687_v23, 4 }
 0x59d   : > { %v8077_v42 = vpop.permute.xlu1 %8076  ;;  %v8075_v40 = vpop.permute.xlu0 %8074  ;;  %v8690_v52 = vor.u32 %v8689_v13, %v8686_v48 }
 0x59e   : > { %8143 = vst.msk [vmem:[#allocation3 + $0x50] sm:$0xf] %vm16687_vm4, %v8077_v42 }
 0x59f   : > { %8142 = vst.msk [vmem:[#allocation3 + $0x4c] sm:$0xf] %vm16688_vm5, %v8075_v40  ;;  %v16031_v61 = vsel %vm4516_vm12, %v8681_v49, %v8690_v52  ;;  %vm9672_vm5 = vcmask 523264  }
 0x5a1   : > { %v8282_v3 = vld [vmem:[#allocation3 + $0x48] sm:$0xf]  ;;  %v8281_v12 = vld [vmem:[#allocation3 + $0x44] sm:$0xf] }
 0x5a2   : > { %v10198_v2 = vcombine.low %v8281_v12, %v8282_v3  ;;  %v10232_v0 = vcombine.low %v8280_v56, %v8281_v12 }
 0x5a4   : > { %11169 = vmatmul.mubr.msk.bf16.gmra.mrb[196].mxu0 %vm334_vm11, %v10198_v2  ;;  %v8693_v1 = vshrl.u32 %v10232_v0, 16  ;;  %v8696_v5 = vshll.u32 %v10232_v0, 16 }
 0x5a6   : > { %v8695_v58 = vrot.slane %v8693_v1, 3  ;;  %v8698_v36 = vrot.slane %v8696_v5, 4 }
 0x5a7   : > { %v8081_v11 = vpop.permute.xlu1 %8080  ;;  %v8079_v4 = vpop.permute.xlu0 %8078 }
 0x5a8   : > { %8145 = vst.msk [vmem:[#allocation3 + $0x58] sm:$0xf] %vm16674_vm0, %v8081_v11  ;;  %v8699_v24 = vor.u32 %v8698_v36, %v8695_v58 }
 0x5a9   : > { %8144 = vst.msk [vmem:[#allocation3 + $0x54] sm:$0xf] %vm16689_vm8, %v8079_v4 }
 0x5aa   : > { %v16037_v35 = vsel %vm4516_vm12, %v8690_v52, %v8699_v24 }
 0x5ab   : > { %v8193_v39 = vpop.permute.xlu1 %8192  ;;  %v8191_v45 = vpop.permute.xlu0 %8190 }
 0x5ac   : > { %8257 = vst.msk [vmem:[#allocation3 + $0x50] sm:$0xf] %vm3576_vm3, %v8193_v39  ;;  %8256 = vst.msk [vmem:[#allocation3 + $0x4c] sm:$0xf] %vm3576_vm3, %v8191_v45 }
 0x5b3   : > { %v8283_v37 = vld [vmem:[#allocation3 + $0x4c] sm:$0xf]  ;;  %v8284_v25 = vld [vmem:[#allocation3 + $0x50] sm:$0xf] }
 0x5b4   : > { %v10199_v62 = vcombine.low %v8283_v37, %v8284_v25  ;;  %v10233_v34 = vcombine.low %v8282_v3, %v8283_v37 }
 0x5b6   : > { %11172 = vmatprep.mubr.msk.bf16.mxu0 %vm334_vm11, %v10199_v62  ;;  %v8702_v47 = vshrl.u32 %v10233_v34, 16  ;;  %v8705_v9 = vshll.u32 %v10233_v34, 16 }
 0x5b7   : > { %v8197_v20 = vpop.permute.xlu1 %8196  ;;  %v8195_v21 = vpop.permute.xlu0 %8194 }
 0x5b8   : > { %8259 = vst.msk [vmem:[#allocation3 + $0x58] sm:$0xf] %vm3576_vm3, %v8197_v20  ;;  %8258 = vst.msk [vmem:[#allocation3 + $0x54] sm:$0xf] %vm3576_vm3, %v8195_v21  ;;  %v8704_v8 = vrot.slane %v8702_v47, 3  ;;  %v8707_v59 = vrot.slane %v8705_v9, 4 }
 0x5b9   : > { %v11716_v20 = vld [vmem:[#allocation3 + $0xc] sm:$0xf] }
 0x5ba   : > { %v8708_v18 = vor.u32 %v8707_v59, %v8704_v8 }
 0x5bb   : > { %v8085_v46 = vpop.permute.xlu1 %8084 }
 0x5bc   : > { %8147 = vst.msk [vmem:[#allocation3 + $0x60] sm:$0xf] %vm16690_vm14, %v8085_v46  ;;  %v8083_v54 = vpop.permute.xlu0 %8082  ;;  %v16047_v16 = vsel %vm4516_vm12, %v8699_v24, %v8708_v18 }
 0x5bd   : > { %8146 = vst.msk [vmem:[#allocation3 + $0x5c] sm:$0xf] %vm16691_vm10, %v8083_v54  ;;  %v11675_v54 = vld [vmem:[%s16332_s5 + $0x68] sm:$0xff]  }
 0x5bf   : > { %v8286_v19 = vld [vmem:[#allocation3 + $0x58] sm:$0xf]  ;;  %v8285_v44 = vld [vmem:[#allocation3 + $0x54] sm:$0xf] }
 0x5c0   : > { %v10200_v60 = vcombine.low %v8285_v44, %v8286_v19  ;;  %v10234_v29 = vcombine.low %v8284_v25, %v8285_v44 }
 0x5c2   : > { %11173 = vmatmul.mubr.msk.bf16.gmra.mrb[200].mxu0 %vm334_vm11, %v10200_v60  ;;  %v8711_v53 = vshrl.u32 %v10234_v29, 16  ;;  %v8714_v17 = vshll.u32 %v10234_v29, 16 }
 0x5c4   : > { %v8713_v30 = vrot.slane %v8711_v53, 3  ;;  %v8716_v38 = vrot.slane %v8714_v17, 4 }
 0x5c6   : > { %v8717_v57 = vor.u32 %v8716_v38, %v8713_v30 }
 0x5c7   : > { %v8089_v22 = vpop.permute.xlu1 %8088 }
 0x5c8   : > { %v8087_v50 = vpop.permute.xlu0 %8086  ;;  %8149 = vst.msk [vmem:[#allocation3 + $0x68] sm:$0xf] %vm16692_vm2, %v8089_v22  ;;  %v16053_v49 = vsel %vm4516_vm12, %v8708_v18, %v8717_v57 }
 0x5c9   : > { %8148 = vst.msk [vmem:[#allocation3 + $0x64] sm:$0xf] %vm16693_vm6, %v8087_v50 }
 0x5cb   : > { %v8201_v51 = vpop.permute.xlu1 %8200 }
 0x5cc   : > { %8261 = vst.msk [vmem:[#allocation3 + $0x60] sm:$0xf] %vm3576_vm3, %v8201_v51  ;;  %v8199_v32 = vpop.permute.xlu0 %8198 }
 0x5cd   : > { %8260 = vst.msk [vmem:[#allocation3 + $0x5c] sm:$0xf] %vm3576_vm3, %v8199_v32 }
 0x5d1   : > { %v8205_v27 = vpop.permute.xlu1 %8204  ;;  %v8203_v10 = vpop.permute.xlu0 %8202 }
 0x5d2   : > { %8263 = vst.msk [vmem:[#allocation3 + $0x68] sm:$0xf] %vm3576_vm3, %v8205_v27  ;;  %8262 = vst.msk [vmem:[#allocation3 + $0x64] sm:$0xf] %vm3576_vm3, %v8203_v10  ;;  %v11680_v27 = vld [vmem:[#allocation3 + $0xc] sm:$0xff]  }
 0x5d3   : > { %v16059_v7 = vld [vmem:[#allocation3 + $0x60] sm:$0xf] }
 0x5d4   : > { %v8287_v56 = vld [vmem:[#allocation3 + $0x5c] sm:$0xf] }
 0x5d5   : > { %v8093_v55 = vpop.permute.xlu1 %8092  ;;  %v8091_v26 = vpop.permute.xlu0 %8090  ;;  %v10201_v63 = vcombine.low %v8287_v56, %v16059_v7  ;;  %v10235_v6 = vcombine.low %v8286_v19, %v8287_v56  ;;  %v11676_v19 = vld [vmem:[%s16332_s5 + $0x70] sm:$0xff]  }
 0x5d6   : > { %8151 = vst.msk [vmem:[#allocation3 + $0x70] sm:$0xf] %vm16694_vm7, %v8093_v55  ;;  %v11681_v55 = vld [vmem:[#allocation3 + $0x14] sm:$0xff]  }
 0x5d7   : > { %8150 = vst.msk [vmem:[#allocation3 + $0x6c] sm:$0xf] %vm16695_vm9, %v8091_v26  ;;  %11176 = vmatprep.mubr.msk.bf16.mxu0 %vm334_vm11, %v10201_v63  ;;  %v8720_v31 = vshrl.u32 %v10235_v6, 16  ;;  %v8723_v23 = vshll.u32 %v10235_v6, 16  ;;  %v9106_v26 = vshll.u32 %v11680_v27, 16 }
 0x5d9   : > { %v8289_v48 = vld [vmem:[#allocation3 + $0x64] sm:$0xf]  ;;  %v16065_v13 = vld [vmem:[#allocation3 + $0x68] sm:$0xf]  ;;  %v8722_v40 = vrot.slane %v8720_v31, 3  ;;  %v8725_v52 = vrot.slane %v8723_v23, 4 }
 0x5da   : > { %v10202_v42 = vcombine.low %v8289_v48, %v16065_v13 }
 0x5db   : > { %v16069_v3 = vor.u32 %v8725_v52, %v8722_v40  ;;  %v9104_v52 = vshrl.u32 %v11680_v27, 16  ;;  %v11691_v27 = vld [vmem:[#allocation3 + $0x64] sm:$0xff]  }
 0x5dc   : > { %11177 = vmatmul.mubr.msk.bf16.gmra.mrb[204].mxu0 %vm334_vm11, %v10202_v42  ;;  %v11682_v42 = vld [vmem:[#allocation3 + $0x1c] sm:$0xff]  }
 0x5dd   : > { %v16073_v12 = vsel %vm4516_vm12, %v8717_v57, %v16069_v3 }
 0x5de   : > { %v8209_v2 = vpop.permute.xlu1 %8208 }
 0x5df   : > { %8265 = vst.msk [vmem:[#allocation3 + $0x70] sm:$0xf] %vm3576_vm3, %v8209_v2 }
 0x5e1   : > { %v8207_v0 = vpop.permute.xlu0 %8206 }
 0x5e2   : > { %8264 = vst.msk [vmem:[#allocation3 + $0x6c] sm:$0xf] %vm3576_vm3, %v8207_v0  ;;  %v8097_v1 = vpop.permute.xlu1 %8096  ;;  %v9119_v0 = vshll.u32 %v11682_v42, 16 }
 0x5e3   : > { %8153 = vst.msk [vmem:[#allocation3 + $0x78] sm:$0xf] %vm16696_vm13, %v8097_v1  ;;  %vm9750_vm13 = vcmask 519168  }
 0x5e5   : > { %v8095_v5 = vpop.permute.xlu0 %8094 }
 0x5e6   : > { %8152 = vst.msk [vmem:[#allocation3 + $0x74] sm:$0xf] %vm16697_vm15, %v8095_v5  ;;  %v3348_v11 = vpop.permute.xlu1 %3347  ;;  %v8292_v4 = vld [vmem:[#allocation3 + $0x70] sm:$0xf] }
 0x5e9   : > { %v8157_v58 = vpop.permute.xlu0 %8156  ;;  %v8291_v36 = vld [vmem:[#allocation3 + $0x6c] sm:$0xf] }
 0x5ea   : > { %8239 = vst.msk [vmem:[#allocation3 + $0x8] sm:$0xf] %vm3576_vm3, %v8157_v58  ;;  %v10203_v24 = vcombine.low %v8291_v36, %v8292_v4  ;;  %v8155_v39 = vpop.permute.xlu1 %8154  ;;  %v8294_v45 = vld [vmem:[#allocation3 + $0x78] sm:$0xf]  ;;  %v10237_v44 = vcombine.low %v16065_v13, %v8291_v36  ;;  %v9108_v13 = vrot.slane %v9106_v26, 1  ;;  %v11684_v58 = vld [vmem:[#allocation3 + $0x2c] sm:$0xff]  }
 0x5eb   : > { %v10239_v57 = vcombine.low %v8294_v45, %v8294_v45  ;;  %vm9102_vm3 = vsmask.f32 7424  ;;  %v9115_v36 = vshrl.u32 %v11681_v55, 16  ;;  %v9191_v26 = vshll.u32 %v11691_v27, 16 }
 0x5ec   : > { %11180 = vmatprep.mubr.msk.bf16.mxu0 %vm334_vm11, %v10203_v24  ;;  %v8741_v17 = vshll.u32 %v10237_v44, 16  ;;  %v9109_v2 = vor.u32 %v9108_v13, %v9104_v52  ;;  %v9123_v24 = vshrl.u32 %v11682_v42, 16 }
 0x5ed   : > { %v3350_v37 = vpop.permute.xlu0 %3349  ;;  %v8293_v25 = vld [vmem:[#allocation3 + $0x74] sm:$0xf]  ;;  %v8756_v10 = vshrl.u32 %v10239_v57, 16 }
 0x5ee   : > { %v10204_v62 = vcombine.low %v8293_v25, %v8294_v45  ;;  %v10238_v60 = vcombine.low %v8292_v4, %v8293_v25  ;;  %v8743_v50 = vrot.slane %v8741_v17, 4  ;;  %v9121_v4 = vrot.slane %v9119_v0, 1  ;;  %v11685_v45 = vld [vmem:[#allocation3 + $0x34] sm:$0xff]  }
 0x5ef   : > { %v8758_v6 = vrot.slane %v8756_v10, 3  ;;  %v11693_v13 = vld [vmem:[#allocation3 + $0x74] sm:$0xff]  }
 0x5f0   : > { %11181 = vmatmul.mubr.msk.bf16.gmra.mrb[208].mxu0 %vm334_vm11, %v10204_v62  ;;  %v8750_v38 = vshll.u32 %v10238_v60, 16  ;;  %v9125_v25 = vor.u32 %v9123_v24, %v9121_v4  ;;  %v9135_v62 = vshll.u32 %v11684_v58, 16 }
 0x5f1   : > { %v8266_v34 = vld [vmem:[#allocation3 + $0x8] sm:$0x8] }
 0x5f2   : > { %v10225_v47 = vcombine.low %v8266_v34, %v11716_v20  ;;  %v8752_v32 = vrot.slane %v8750_v38, 4 }
 0x5f4   : > { %v8631_v9 = vshrl.u32 %v10225_v47, 16  ;;  %v8634_v21 = vshll.u32 %v10225_v47, 16  ;;  %v9143_v47 = vshll.u32 %v11685_v45, 16 }
 0x5f6   : > { %v8633_v8 = vrot.slane %v8631_v9, 3  ;;  %v8636_v59 = vrot.slane %v8634_v21, 4  ;;  %v9137_v9 = vrot.slane %v9135_v62, 1  ;;  %v11686_v21 = vld [vmem:[#allocation3 + $0x3c] sm:$0xff]  }
 0x5f8   : > { %v8637_v46 = vor.u32 %v8636_v59, %v8633_v8  ;;  %v9139_v59 = vshrl.u32 %v11684_v58, 16  ;;  %v11694_v58 = vld [vmem:[#allocation3 + $0x7c] ss:$0 sps:$4 sm:$0x11]  }
 0x5fa   : > { %v8646_v18 = vsel %vm4516_vm12, %v8637_v46, %v15957_v28  ;;  %v11677_v28 = vld [vmem:[%s16332_s5 + $0x78] sm:$0xff]   ;;  %v9145_v46 = vrot.slane %v9143_v47, 1 }
 0x5fb   : > { %11196 = vmatprep.mubr.msk.bf16.mxu0 %vm334_vm11, %v8646_v18  ;;  %v11687_v18 = vld [vmem:[#allocation3 + $0x44] sm:$0xff]  }
 0x5fc   : > { %11197 = vmatmul.mubr.msk.bf16.vlgmr.msra.gmra.mrb[184].mxu0 %vm334_vm11, %v15967_v41  ;;  %v11678_v41 = vld [vmem:[%s16332_s5 + $0x80] sm:$0xff]  }
 0x5fd   : > { %11225 = vmatpush3.bf16.msra.mxu0 %v16007_v33  ;;  %11200 = vmatprep.mubr.msk.bf16.mxu0 %vm334_vm11, %v15984_v14  ;;  %v11679_v14 = vld [vmem:[%s16332_s5 + $0x88] sm:$0xff]   ;;  %v10236_v33 = vcombine.low %v16059_v7, %v8289_v48  ;;  %v8759_v7 = vshll.u32 %v10239_v57, 16  ;;  %v9111_v48 = vshll.u32 %v11681_v55, 16 }
 0x5fe   : > { %11226 = vmatprep.subr.bf16.mxu0 %v11675_v54 }
 0x5ff   : > { %v8761_v31 = vrot.slane %v8759_v7, 4 }
 0x601   : > { %11227 = vmatpush3.bf16.msra.mxu0 %v11675_v54  ;;  %v8762_v40 = vor.u32 %v8761_v31, %v8758_v6  ;;  %v11692_v6 = vld [vmem:[#allocation3 + $0x6c] sm:$0xff]  }
 0x602   : > { %11228 = vmatprep.subr.bf16.mxu0 %v11676_v19  ;;  %v9199_v52 = vshll.u32 %v11692_v6, 16 }
 0x604   : > { %11201 = vmatmul.mubr.msk.bf16.gmra.mrb[188].mxu0 %vm334_vm11, %v16015_v43  ;;  %v8729_v43 = vshrl.u32 %v10236_v33, 16  ;;  %v9201_v0 = vrot.slane %v9199_v52, 1 }
 0x605   : > { %11204 = vmatprep.mubr.msk.bf16.mxu0 %vm334_vm11, %v16019_v15  ;;  %11229 = vmatpush3.bf16.msra.mxu0 %v11676_v19  ;;  %v8732_v15 = vshll.u32 %v10236_v33, 16  ;;  %v9141_v19 = vor.u32 %v9139_v59, %v9137_v9  ;;  %v9159_v33 = vshll.u32 %v11687_v18, 16 }
 0x606   : > { %11230 = vmatprep.subr.bf16.mxu0 %v11677_v28  ;;  %v8731_v29 = vrot.slane %v8729_v43, 3 }
 0x607   : > { %v8734_v53 = vrot.slane %v8732_v15, 4  ;;  %v11688_v15 = vld [vmem:[#allocation3 + $0x4c] sm:$0xff]  }
 0x609   : > { %11231 = vmatpush3.bf16.msra.mxu0 %v11677_v28  ;;  %v8735_v30 = vor.u32 %v8734_v53, %v8731_v29  ;;  %v9151_v28 = vshll.u32 %v11686_v21, 16  ;;  %v9161_v29 = vrot.slane %v9159_v33, 1  ;;  %v11689_v53 = vld [vmem:[#allocation3 + $0x54] sm:$0xff]  }
 0x60a   : > { %11232 = vmatprep.subr.bf16.mxu0 %v11678_v41  ;;  %v9175_v57 = vshll.u32 %v11689_v53, 16  ;;  %v9179_v31 = vshrl.u32 %v11689_v53, 16 }
 0x60b   : > { %v8736_v51 = vsel %vm4516_vm12, %v16069_v3, %v8735_v30  ;;  %v9113_v3 = vrot.slane %v9111_v48, 1  ;;  %v9153_v43 = vrot.slane %v9151_v28, 1  ;;  %v9193_v48 = vrot.slane %v9191_v26, 1 }
 0x60c   : > { %11205 = vmatmul.mubr.msk.bf16.gmra.mrb[192].mxu0 %vm334_vm11, %v16031_v61  ;;  %v8738_v61 = vshrl.u32 %v10237_v44, 16  ;;  %v9147_v44 = vshrl.u32 %v11685_v45, 16  ;;  %v9211_v45 = vshrl.u32 %v11693_v13, 16 }
 0x60d   : > { %11208 = vmatprep.mubr.msk.bf16.mxu0 %vm334_vm11, %v16037_v35  ;;  %11233 = vmatpush3.bf16.msra.mxu0 %v11678_v41  ;;  %v8747_v35 = vshrl.u32 %v10238_v60, 16  ;;  %v9114_v5 = vsel %vm9102_vm3, %v9109_v2, %v9113_v3  ;;  %v9117_v37 = vor.u32 %v9115_v36, %v9113_v3  ;;  %v9155_v60 = vshrl.u32 %v11686_v21, 16 }
 0x60e   : > { %11234 = vmatprep.subr.bf16.mxu0 %v11679_v14  ;;  %v8740_v22 = vrot.slane %v8738_v61, 3  ;;  %v9149_v61 = vor.u32 %v9147_v44, %v9145_v46  ;;  %v9207_v2 = vshll.u32 %v11693_v13, 16 }
 0x60f   : > { %v9122_v34 = vsel %vm9102_vm3, %v9117_v37, %v9121_v4  ;;  %v9157_v17 = vor.u32 %v9155_v60, %v9153_v43  ;;  %v9215_v37 = vshll.u32 %v11694_v58, 16 }
 0x611   : > { %11235 = vmatpush3.bf16.msra.mxu0 %v11679_v14  ;;  %v9146_v14 = vsel %vm9102_vm3, %v9141_v19, %v9145_v46  ;;  %v9162_v38 = vsel %vm9102_vm3, %v9157_v17, %v9161_v29  ;;  %v9217_v62 = vrot.slane %v9215_v37, 1 }
 0x614   : > { %11209 = vmatmul.mubr.msk.bf16.gmra.mrb[196].mxu0 %vm334_vm11, %v16047_v16  ;;  %v8749_v16 = vrot.slane %v8747_v35, 3  ;;  %v9154_v35 = vsel %vm9102_vm3, %v9149_v61, %v9153_v43  ;;  %v16182_v43 = vld [vmem:[%s16333_s6 + $0x3] ss:$0 sm:$0xff] }
 0x615   : > { %11212 = vmatprep.mubr.msk.bf16.mxu0 %vm334_vm11, %v16053_v49  ;;  %v8744_v49 = vor.u32 %v8743_v50, %v8740_v22  ;;  %v11690_v50 = vld [vmem:[#allocation3 + $0x5c] sm:$0xff]  }
 0x616   : > { %v8753_v56 = vor.u32 %v8752_v32, %v8749_v16  ;;  %v9171_v16 = vshrl.u32 %v11688_v15, 16  ;;  %v9177_v32 = vrot.slane %v9175_v57, 1  ;;  %v9183_v7 = vshll.u32 %v11690_v50, 16 }
 0x617   : > { %v8745_v63 = vsel %vm4516_vm12, %v8735_v30, %v8744_v49  ;;  %v9167_v30 = vshll.u32 %v11688_v15, 16 }
 0x618   : > { %v8754_v23 = vsel %vm4516_vm12, %v8744_v49, %v8753_v56  ;;  %v8763_v1 = vsel %vm4516_vm12, %v8753_v56, %v8762_v40  ;;  %v9181_v42 = vor.u32 %v9179_v31, %v9177_v32 }
 0x619   : > { %v9169_v22 = vrot.slane %v9167_v30, 1 }
 0x61b   : > { %v9173_v10 = vor.u32 %v9171_v16, %v9169_v22 }
 0x61c   : > { %11213 = vmatmul.mubr.msk.bf16.gmra.mrb[200].mxu0 %vm334_vm11, %v16073_v12  ;;  %v11683_v12 = vld [vmem:[#allocation3 + $0x24] sm:$0xff]  }
 0x61d   : > { %11216 = vmatprep.mubr.msk.bf16.mxu0 %vm334_vm11, %v8736_v51  ;;  %v9127_v11 = vshll.u32 %v11683_v12, 16  ;;  %v9131_v8 = vshrl.u32 %v11683_v12, 16  ;;  %v9163_v51 = vshrl.u32 %v11687_v18, 16  ;;  %v9178_v55 = vsel %vm9102_vm3, %v9173_v10, %v9177_v32 }
 0x61f   : > { %v9129_v39 = vrot.slane %v9127_v11, 1  ;;  %v9165_v49 = vor.u32 %v9163_v51, %v9161_v29  ;;  %v9209_v11 = vrot.slane %v9207_v2, 1 }
 0x621   : > { %v9130_v20 = vsel %vm9102_vm3, %v9125_v25, %v9129_v39  ;;  %v9133_v54 = vor.u32 %v9131_v8, %v9129_v39  ;;  %v9170_v56 = vsel %vm9102_vm3, %v9165_v49, %v9169_v22  ;;  %v9213_v25 = vor.u32 %v9211_v45, %v9209_v11 }
 0x623   : > { %v9138_v41 = vsel %vm9102_vm3, %v9133_v54, %v9137_v9  ;;  %v16166_v9 = vld [vmem:[%s16333_s6 + $0x1] ss:$0 sm:$0xff]  ;;  %v16174_v54 = vld [vmem:[%s16333_s6 + $0x2] ss:$0 sm:$0xff] }
 0x624   : > { %11217 = vmatmul.mubr.msk.bf16.gmra.mrb[204].mxu0 %vm334_vm11, %v8745_v63  ;;  %v9185_v63 = vrot.slane %v9183_v7, 1 }
 0x625   : > { %11220 = vmatprep.mubr.msk.bf16.mxu0 %vm334_vm11, %v8754_v23  ;;  %v9187_v23 = vshrl.u32 %v11690_v50, 16 }
 0x626   : > { %v9186_v3 = vsel %vm9102_vm3, %v9181_v42, %v9185_v63 }
 0x627   : > { %v9189_v40 = vor.u32 %v9187_v23, %v9185_v63 }
 0x629   : > { %v9194_v12 = vsel %vm9102_vm3, %v9189_v40, %v9193_v48 }
 0x62c   : > { %11221 = vmatmul.mubr.msk.bf16.gmra.mrb[208].mxu0 %vm334_vm11, %v8763_v1  ;;  %v9195_v1 = vshrl.u32 %v11691_v27, 16 }
 0x62d   : > { %11236 = vmatprep.mubr.msk.bf16.mxu0 %vm334_vm11, %v9114_v5  ;;  %v9203_v5 = vshrl.u32 %v11692_v6, 16 }
 0x62e   : > { %v9197_v4 = vor.u32 %v9195_v1, %v9193_v48 }
 0x62f   : > { %v9205_v36 = vor.u32 %v9203_v5, %v9201_v0 }
 0x630   : > { %v9202_v24 = vsel %vm9102_vm3, %v9197_v4, %v9201_v0 }
 0x631   : > { %v9210_v39 = vsel %vm9102_vm3, %v9205_v36, %v9209_v11 }
 0x634   : > { %11237 = vmatmul.mubr.msk.bf16.vlgmr.msra.gmra.mrb[184].mxu0 %vm334_vm11, %v9122_v34  ;;  %v9218_v34 = vsel %vm9102_vm3, %v9213_v25, %v9217_v62 }
 0x635   : > { %11240 = vmatprep.mubr.msk.bf16.mxu0 %vm334_vm11, %v9130_v20  ;;  %v16161_v20 = vld [vmem:[%s16333_s6] ss:$0 sm:$0xff] }
 0x63c   : > { %11241 = vmatmul.mubr.msk.bf16.gmra.mrb[188].mxu0 %vm334_vm11, %v9138_v41 }
 0x63d   : > { %11244 = vmatprep.mubr.msk.bf16.mxu0 %vm334_vm11, %v9146_v14 }
 0x644   : > { %11245 = vmatmul.mubr.msk.bf16.gmra.mrb[192].mxu0 %vm334_vm11, %v9154_v35 }
 0x645   : > { %11248 = vmatprep.mubr.msk.bf16.mxu0 %vm334_vm11, %v9162_v38 }
 0x64c   : > { %11249 = vmatmul.mubr.msk.bf16.gmra.mrb[196].mxu0 %vm334_vm11, %v9170_v56 }
 0x64d   : > { %11252 = vmatprep.mubr.msk.bf16.mxu0 %vm334_vm11, %v9178_v55 }
 0x654   : > { %11253 = vmatmul.mubr.msk.bf16.gmra.mrb[200].mxu0 %vm334_vm11, %v9186_v3 }
 0x655   : > { %11256 = vmatprep.mubr.msk.bf16.mxu0 %vm334_vm11, %v9194_v12 }
 0x65c   : > { %11257 = vmatmul.mubr.msk.bf16.gmra.mrb[204].mxu0 %vm334_vm11, %v9202_v24 }
 0x65d   : > { %11260 = vmatprep.mubr.msk.bf16.mxu0 %vm334_vm11, %v9210_v39 }
 0x664   : > { %11261 = vmatmul.mubr.msk.bf16.gmra.mrb[208].mxu0 %vm334_vm11, %v9218_v34 }
 0x707   : > { %v11238_v47 = vpop.f32.mrb[184].mxu0 }
 0x708   : > { %v9477_v21 = vadd.f32 %v11238_v47, %v16161_v20  ;;  %v9331_v8 = vpop.f32.mrb[185].mxu0 }
 0x709   : > { %v9475_v59 = vadd.f32 %v16161_v20, %v9331_v8  ;;  %v11239_v46 = vpop.f32.mrb[186].mxu0 }
 0x70a   : > { %vm9505_vm12 = vcmp.ge.f32.partialorder %v9477_v21, 0.0  ;;  %v9538_v18 = vmul.f32 %v16166_v9, %v9477_v21  ;;  %v9478_v19 = vadd.f32 %v11239_v46, %v16161_v20  ;;  %v9334_v28 = vpop.f32.mrb[187].mxu0 }
 0x70b   : > { %vm9503_vm11 = vcmp.ge.f32.partialorder %v9475_v59, 0.0  ;;  %v9536_v41 = vmul.f32 %v16166_v9, %v9475_v59  ;;  %v9476_v14 = vadd.f32 %v16161_v20, %v9334_v28 }
 0x70c   : > { %v9566_v33 = vsel %vm9505_vm12, %v9477_v21, %v9538_v18  ;;  %vm9506_vm1 = vcmp.ge.f32.partialorder %v9478_v19, 0.0  ;;  %v9539_v15 = vmul.f32 %v16166_v9, %v9478_v19 }
 0x70d   : > { %v9599_v44 = vmul.f32 %v16174_v54, %v9566_v33  ;;  %v9564_v60 = vsel %vm9503_vm11, %v9475_v59, %v9536_v41  ;;  %vm9504_vm4 = vcmp.ge.f32.partialorder %v9476_v14, 0.0  ;;  %v9537_v29 = vmul.f32 %v16166_v9, %v9476_v14 }
 0x70e   : > { %v9597_v53 = vmul.f32 %v16174_v54, %v9564_v60  ;;  %v9567_v61 = vsel %vm9506_vm1, %v9478_v19, %v9539_v15 }
 0x70f   : > { %v9632_v17 = vadd.f32 %v16182_v43, %v9599_v44  ;;  %v9600_v30 = vmul.f32 %v16174_v54, %v9567_v61  ;;  %v9565_v35 = vsel %vm9504_vm4, %v9476_v14, %v9537_v29  ;;  %v11242_v38 = vpop.f32.mrb[188].mxu0 }
 0x710   : > { %v9630_v57 = vadd.f32 %v16182_v43, %v9597_v53  ;;  %v9598_v22 = vmul.f32 %v16174_v54, %v9565_v35  ;;  %v9481_v50 = vadd.f32 %v11242_v38, %v16161_v20  ;;  %v9347_v51 = vpop.f32.mrb[189].mxu0 }
 0x711   : > { %v9633_v16 = vadd.f32 %v16182_v43, %v9600_v30  ;;  %v9479_v32 = vadd.f32 %v16161_v20, %v9347_v51  ;;  %v11243_v27 = vpop.f32.mrb[190].mxu0 }
 0x712   : > { %v9658_v49 = vmax.f32 %v9630_v57, %v9632_v17  ;;  %v9631_v10 = vadd.f32 %v16182_v43, %v9598_v22  ;;  %vm9509_vm0 = vcmp.ge.f32.partialorder %v9481_v50, 0.0  ;;  %v9542_v7 = vmul.f32 %v16166_v9, %v9481_v50  ;;  %v9350_v56 = vpop.f32.mrb[191].mxu0 }
 0x713   : > { %vm9507_vm8 = vcmp.ge.f32.partialorder %v9479_v32, 0.0  ;;  %v9540_v55 = vmul.f32 %v16166_v9, %v9479_v32  ;;  %v9482_v26 = vadd.f32 %v11243_v27, %v16161_v20  ;;  %v9480_v63 = vadd.f32 %v16161_v20, %v9350_v56 }
 0x714   : > { %9673 = vst.msk [vmem:[#allocation5] sm:$0xff] %vm9672_vm5, %v9658_v49  ;;  %v9659_v6 = vmax.f32 %v9631_v10, %v9633_v16  ;;  %v9570_v31 = vsel %vm9509_vm0, %v9481_v50, %v9542_v7 }
 0x715   : > { %v9603_v23 = vmul.f32 %v16174_v54, %v9570_v31  ;;  %v9568_v48 = vsel %vm9507_vm8, %v9479_v32, %v9540_v55  ;;  %vm9510_vm14 = vcmp.ge.f32.partialorder %v9482_v26, 0.0  ;;  %v9543_v13 = vmul.f32 %v16166_v9, %v9482_v26 }
 0x716   : > { %9674 = vst.msk [vmem:[#allocation5 + $0x8] sm:$0xff] %vm9672_vm5, %v9659_v6  ;;  %v9601_v42 = vmul.f32 %v16174_v54, %v9568_v48  ;;  %vm9508_vm10 = vcmp.ge.f32.partialorder %v9480_v63, 0.0  ;;  %v9541_v40 = vmul.f32 %v16166_v9, %v9480_v63 }
 0x717   : > { %v9636_v52 = vadd.f32 %v16182_v43, %v9603_v23  ;;  %v9571_v3 = vsel %vm9510_vm14, %v9482_v26, %v9543_v13  ;;  %v11246_v12 = vpop.f32.mrb[192].mxu0 }
 0x718   : > { %v9634_v2 = vadd.f32 %v16182_v43, %v9601_v42  ;;  %v9604_v0 = vmul.f32 %v16174_v54, %v9571_v3  ;;  %v9569_v1 = vsel %vm9508_vm10, %v9480_v63, %v9541_v40  ;;  %v9485_v5 = vadd.f32 %v11246_v12, %v16161_v20  ;;  %v9363_v11 = vpop.f32.mrb[193].mxu0 }
 0x719   : > { %v9602_v4 = vmul.f32 %v16174_v54, %v9569_v1  ;;  %v9483_v58 = vadd.f32 %v16161_v20, %v9363_v11  ;;  %v11247_v36 = vpop.f32.mrb[194].mxu0 }
 0x71a   : > { %v9660_v24 = vmax.f32 %v9634_v2, %v9636_v52  ;;  %v9637_v39 = vadd.f32 %v16182_v43, %v9604_v0  ;;  %vm9513_vm2 = vcmp.ge.f32.partialorder %v9485_v5, 0.0  ;;  %v9546_v45 = vmul.f32 %v16166_v9, %v9485_v5  ;;  %v9366_v37 = vpop.f32.mrb[195].mxu0 }
 0x71b   : > { %v9635_v25 = vadd.f32 %v16182_v43, %v9602_v4  ;;  %vm9511_vm6 = vcmp.ge.f32.partialorder %v9483_v58, 0.0  ;;  %v9544_v62 = vmul.f32 %v16166_v9, %v9483_v58  ;;  %v9486_v34 = vadd.f32 %v11247_v36, %v16161_v20 }
 0x71c   : > { %9675 = vst.msk [vmem:[#allocation5 + $0x10] sm:$0xff] %vm9672_vm5, %v9660_v24  ;;  %v9574_v47 = vsel %vm9513_vm2, %v9485_v5, %v9546_v45  ;;  %v9484_v21 = vadd.f32 %v16161_v20, %v9366_v37 }
 0x71d   : > { %v9687_v8 = vld [vmem:[#allocation5] ss:$2 sm:$0xff]  ;;  %v9701_v59 = vld [vmem:[#allocation5 + $0x1] ss:$2 sm:$0xff]  ;;  %v9661_v46 = vmax.f32 %v9635_v25, %v9637_v39  ;;  %v9607_v18 = vmul.f32 %v16174_v54, %v9574_v47  ;;  %v9572_v19 = vsel %vm9511_vm6, %v9483_v58, %v9544_v62  ;;  %vm9514_vm7 = vcmp.ge.f32.partialorder %v9486_v34, 0.0 }
 0x71e   : > { %v9714_v28 = vmax.f32 %v9687_v8, %v9701_v59  ;;  %v9605_v41 = vmul.f32 %v16174_v54, %v9572_v19  ;;  %v9547_v14 = vmul.f32 %v16166_v9, %v9486_v34  ;;  %vm9512_vm9 = vcmp.ge.f32.partialorder %v9484_v21, 0.0 }
 0x71f   : > { %9676 = vst.msk [vmem:[#allocation5 + $0x18] sm:$0xff] %vm9672_vm5, %v9661_v46  ;;  %v9640_v33 = vadd.f32 %v16182_v43, %v9607_v18  ;;  %v9545_v15 = vmul.f32 %v16166_v9, %v9484_v21  ;;  %v11250_v44 = vpop.f32.mrb[196].mxu0 }
 0x720   : > { %v10348_v60 = vpack.c.bf16 %v9714_v28, %v9714_v28  ;;  %v9638_v29 = vadd.f32 %v16182_v43, %v9605_v41  ;;  %v9575_v53 = vsel %vm9514_vm7, %v9486_v34, %v9547_v14  ;;  %v9489_v61 = vadd.f32 %v11250_v44, %v16161_v20  ;;  %v9379_v17 = vpop.f32.mrb[197].mxu0 }
 0x721   : > { %v9608_v30 = vmul.f32 %v16174_v54, %v9575_v53  ;;  %v9573_v35 = vsel %vm9512_vm9, %v9484_v21, %v9545_v15  ;;  %v9487_v38 = vadd.f32 %v16161_v20, %v9379_v17  ;;  %v11251_v57 = vpop.f32.mrb[198].mxu0 }
 0x722   : > { %9751 = vst.msk [vmem:[%s16226_s29] sm:$0xf] %vm9750_vm13, %v10348_v60  ;;  %v9662_v22 = vmax.f32 %v9638_v29, %v9640_v33  ;;  %v9606_v50 = vmul.f32 %v16174_v54, %v9573_v35  ;;  %vm9517_vm15 = vcmp.ge.f32.partialorder %v9489_v61, 0.0  ;;  %v9550_v51 = vmul.f32 %v16166_v9, %v9489_v61  ;;  %v9382_v16 = vpop.f32.mrb[199].mxu0 }
 0x723   : > { %v9641_v32 = vadd.f32 %v16182_v43, %v9608_v30  ;;  %vm9515_vm3 = vcmp.ge.f32.partialorder %v9487_v38, 0.0  ;;  %v9548_v27 = vmul.f32 %v16166_v9, %v9487_v38  ;;  %v9490_v49 = vadd.f32 %v11251_v57, %v16161_v20 }
 0x724   : > { %9677 = vst.msk [vmem:[#allocation5 + $0x20] sm:$0xff] %vm9672_vm5, %v9662_v22  ;;  %v9639_v10 = vadd.f32 %v16182_v43, %v9606_v50  ;;  %v9578_v7 = vsel %vm9517_vm15, %v9489_v61, %v9550_v51  ;;  %v9488_v56 = vadd.f32 %v16161_v20, %v9382_v16 }
 0x725   : > { %v9611_v55 = vmul.f32 %v16174_v54, %v9578_v7  ;;  %v9576_v26 = vsel %vm9515_vm3, %v9487_v38, %v9548_v27  ;;  %vm9518_vm12 = vcmp.ge.f32.partialorder %v9490_v49, 0.0  ;;  %v9551_v63 = vmul.f32 %v16166_v9, %v9490_v49 }
 0x726   : > { %v9689_v6 = vld [vmem:[#allocation5 + $0x10] ss:$2 sm:$0xff]  ;;  %v9703_v31 = vld [vmem:[#allocation5 + $0x11] ss:$2 sm:$0xff]  ;;  %v9663_v23 = vmax.f32 %v9639_v10, %v9641_v32  ;;  %v9609_v48 = vmul.f32 %v16174_v54, %v9576_v26  ;;  %vm9516_vm11 = vcmp.ge.f32.partialorder %v9488_v56, 0.0  ;;  %v9549_v13 = vmul.f32 %v16166_v9, %v9488_v56 }
 0x727   : > { %v9715_v42 = vmax.f32 %v9689_v6, %v9703_v31  ;;  %v9644_v40 = vadd.f32 %v16182_v43, %v9611_v55  ;;  %v9579_v52 = vsel %vm9518_vm12, %v9490_v49, %v9551_v63  ;;  %v11254_v3 = vpop.f32.mrb[200].mxu0 }
 0x728   : > { %9678 = vst.msk [vmem:[#allocation5 + $0x28] sm:$0xff] %vm9672_vm5, %v9663_v23  ;;  %v9642_v12 = vadd.f32 %v16182_v43, %v9609_v48  ;;  %v9612_v2 = vmul.f32 %v16174_v54, %v9579_v52  ;;  %v9577_v0 = vsel %vm9516_vm11, %v9488_v56, %v9549_v13  ;;  %v9493_v1 = vadd.f32 %v11254_v3, %v16161_v20  ;;  %v9395_v5 = vpop.f32.mrb[201].mxu0 }
 0x729   : > { %v10349_v11 = vpack.c.bf16 %v9715_v42, %v9715_v42  ;;  %v9610_v4 = vmul.f32 %v16174_v54, %v9577_v0  ;;  %v9491_v58 = vadd.f32 %v16161_v20, %v9395_v5  ;;  %v11255_v36 = vpop.f32.mrb[202].mxu0 }
 0x72a   : > { %v9664_v24 = vmax.f32 %v9642_v12, %v9644_v40  ;;  %v9645_v39 = vadd.f32 %v16182_v43, %v9612_v2  ;;  %vm9521_vm1 = vcmp.ge.f32.partialorder %v9493_v1, 0.0  ;;  %v9554_v45 = vmul.f32 %v16166_v9, %v9493_v1  ;;  %v9398_v37 = vpop.f32.mrb[203].mxu0 }
 0x72b   : > { %9752 = vst.msk [vmem:[%s16226_s29 + $0x4] sm:$0xf] %vm9750_vm13, %v10349_v11  ;;  %v9643_v25 = vadd.f32 %v16182_v43, %v9610_v4  ;;  %vm9519_vm4 = vcmp.ge.f32.partialorder %v9491_v58, 0.0  ;;  %v9552_v62 = vmul.f32 %v16166_v9, %v9491_v58  ;;  %v9494_v34 = vadd.f32 %v11255_v36, %v16161_v20 }
 0x72c   : > { %9679 = vst.msk [vmem:[#allocation5 + $0x30] sm:$0xff] %vm9672_vm5, %v9664_v24  ;;  %v9582_v47 = vsel %vm9521_vm1, %v9493_v1, %v9554_v45  ;;  %v9492_v21 = vadd.f32 %v16161_v20, %v9398_v37 }
 0x72d   : > { %v9665_v8 = vmax.f32 %v9643_v25, %v9645_v39  ;;  %v9615_v59 = vmul.f32 %v16174_v54, %v9582_v47  ;;  %v9580_v46 = vsel %vm9519_vm4, %v9491_v58, %v9552_v62  ;;  %vm9522_vm0 = vcmp.ge.f32.partialorder %v9494_v34, 0.0 }
 0x72e   : > { %v9613_v18 = vmul.f32 %v16174_v54, %v9580_v46  ;;  %v9555_v19 = vmul.f32 %v16166_v9, %v9494_v34  ;;  %vm9520_vm8 = vcmp.ge.f32.partialorder %v9492_v21, 0.0  ;;  %v9553_v28 = vmul.f32 %v16166_v9, %v9492_v21 }
 0x72f   : > { %v9691_v41 = vld [vmem:[#allocation5 + $0x20] ss:$2 sm:$0xff]  ;;  %v9705_v14 = vld [vmem:[#allocation5 + $0x21] ss:$2 sm:$0xff]  ;;  %9680 = vst.msk [vmem:[#allocation5 + $0x38] sm:$0xff] %vm9672_vm5, %v9665_v8  ;;  %v9648_v33 = vadd.f32 %v16182_v43, %v9615_v59  ;;  %v11258_v15 = vpop.f32.mrb[204].mxu0 }
 0x730   : > { %v9716_v44 = vmax.f32 %v9691_v41, %v9705_v14  ;;  %v9646_v60 = vadd.f32 %v16182_v43, %v9613_v18  ;;  %v9583_v29 = vsel %vm9522_vm0, %v9494_v34, %v9555_v19  ;;  %v9581_v53 = vsel %vm9520_vm8, %v9492_v21, %v9553_v28  ;;  %v9411_v61 = vpop.f32.mrb[205].mxu0 }
 0x731   : > { %v9616_v17 = vmul.f32 %v16174_v54, %v9583_v29  ;;  %v9614_v30 = vmul.f32 %v16174_v54, %v9581_v53  ;;  %v9497_v35 = vadd.f32 %v11258_v15, %v16161_v20  ;;  %v9495_v38 = vadd.f32 %v16161_v20, %v9411_v61  ;;  %v11259_v57 = vpop.f32.mrb[206].mxu0 }
 0x732   : > { %v10350_v22 = vpack.c.bf16 %v9716_v44, %v9716_v44  ;;  %v9666_v50 = vmax.f32 %v9646_v60, %v9648_v33  ;;  %v9498_v51 = vadd.f32 %v11259_v57, %v16161_v20  ;;  %v9414_v16 = vpop.f32.mrb[207].mxu0 }
 0x733   : > { %v9649_v32 = vadd.f32 %v16182_v43, %v9616_v17  ;;  %v9647_v27 = vadd.f32 %v16182_v43, %v9614_v30  ;;  %vm9525_vm14 = vcmp.ge.f32.partialorder %v9497_v35, 0.0  ;;  %v9558_v49 = vmul.f32 %v16166_v9, %v9497_v35 }
 0x734   : > { %9753 = vst.msk [vmem:[%s16226_s29 + $0x8] sm:$0xf] %vm9750_vm13, %v10350_v22  ;;  %vm9523_vm10 = vcmp.ge.f32.partialorder %v9495_v38, 0.0  ;;  %v9556_v10 = vmul.f32 %v16166_v9, %v9495_v38  ;;  %vm9526_vm2 = vcmp.ge.f32.partialorder %v9498_v51, 0.0  ;;  %v9559_v7 = vmul.f32 %v16166_v9, %v9498_v51 }
 0x735   : > { %9681 = vst.msk [vmem:[#allocation5 + $0x40] sm:$0xff] %vm9672_vm5, %v9666_v50  ;;  %v9667_v56 = vmax.f32 %v9647_v27, %v9649_v32  ;;  %v9586_v55 = vsel %vm9525_vm14, %v9497_v35, %v9558_v49  ;;  %v9496_v26 = vadd.f32 %v16161_v20, %v9414_v16 }
 0x736   : > { %v9693_v63 = vld [vmem:[#allocation5 + $0x30] ss:$2 sm:$0xff]  ;;  %v9707_v6 = vld [vmem:[#allocation5 + $0x31] ss:$2 sm:$0xff]  ;;  %v9619_v31 = vmul.f32 %v16174_v54, %v9586_v55  ;;  %v9584_v23 = vsel %vm9523_vm10, %v9495_v38, %v9556_v10  ;;  %v9587_v48 = vsel %vm9526_vm2, %v9498_v51, %v9559_v7 }
 0x737   : > { %v9717_v13 = vmax.f32 %v9693_v63, %v9707_v6  ;;  %9682 = vst.msk [vmem:[#allocation5 + $0x48] sm:$0xff] %vm9672_vm5, %v9667_v56  ;;  %v9617_v42 = vmul.f32 %v16174_v54, %v9584_v23  ;;  %v9620_v40 = vmul.f32 %v16174_v54, %v9587_v48  ;;  %vm9524_vm6 = vcmp.ge.f32.partialorder %v9496_v26, 0.0  ;;  %v11262_v52 = vpop.f32.mrb[208].mxu0 }
 0x738   : > { %v9652_v3 = vadd.f32 %v16182_v43, %v9619_v31  ;;  %v9557_v12 = vmul.f32 %v16166_v9, %v9496_v26  ;;  %v9501_v2 = vadd.f32 %v11262_v52, %v16161_v20  ;;  %v9427_v0 = vpop.f32.mrb[209].mxu0 }
 0x739   : > { %v10351_v1 = vpack.c.bf16 %v9717_v13, %v9717_v13  ;;  %v9650_v5 = vadd.f32 %v16182_v43, %v9617_v42  ;;  %v9653_v11 = vadd.f32 %v16182_v43, %v9620_v40  ;;  %v9499_v4 = vadd.f32 %v16161_v20, %v9427_v0  ;;  %v11263_v58 = vpop.f32.mrb[210].mxu0 }
 0x73a   : > { %v9585_v36 = vsel %vm9524_vm6, %v9496_v26, %v9557_v12  ;;  %vm9529_vm7 = vcmp.ge.f32.partialorder %v9501_v2, 0.0  ;;  %v9562_v24 = vmul.f32 %v16166_v9, %v9501_v2  ;;  %v9502_v39 = vadd.f32 %v11263_v58, %v16161_v20  ;;  %v9430_v45 = vpop.f32.mrb[211].mxu0 }
 0x73b   : > { %9754 = vst.msk [vmem:[%s16226_s29 + $0xc] sm:$0xf] %vm9750_vm13, %v10351_v1  ;;  %v9668_v37 = vmax.f32 %v9650_v5, %v9652_v3  ;;  %v9618_v25 = vmul.f32 %v16174_v54, %v9585_v36  ;;  %vm9527_vm9 = vcmp.ge.f32.partialorder %v9499_v4, 0.0  ;;  %v9560_v62 = vmul.f32 %v16166_v9, %v9499_v4 }
 0x73c   : > { %v9590_v34 = vsel %vm9529_vm7, %v9501_v2, %v9562_v24  ;;  %vm9530_vm15 = vcmp.ge.f32.partialorder %v9502_v39, 0.0  ;;  %v9563_v47 = vmul.f32 %v16166_v9, %v9502_v39  ;;  %v9500_v21 = vadd.f32 %v16161_v20, %v9430_v45 }
 0x73d   : > { %9683 = vst.msk [vmem:[#allocation5 + $0x50] sm:$0xff] %vm9672_vm5, %v9668_v37  ;;  %v9651_v8 = vadd.f32 %v16182_v43, %v9618_v25  ;;  %v9623_v59 = vmul.f32 %v16174_v54, %v9590_v34  ;;  %v9588_v46 = vsel %vm9527_vm9, %v9499_v4, %v9560_v62 }
 0x73e   : > { %v9695_v18 = vld [vmem:[#allocation5 + $0x40] ss:$2 sm:$0xff]  ;;  %v9709_v19 = vld [vmem:[#allocation5 + $0x41] ss:$2 sm:$0xff]  ;;  %v9621_v28 = vmul.f32 %v16174_v54, %v9588_v46  ;;  %v9591_v41 = vsel %vm9530_vm15, %v9502_v39, %v9563_v47  ;;  %vm9528_vm3 = vcmp.ge.f32.partialorder %v9500_v21, 0.0  ;;  %v9561_v14 = vmul.f32 %v16166_v9, %v9500_v21 }
 0x73f   : > { %v9718_v33 = vmax.f32 %v9695_v18, %v9709_v19  ;;  %v9669_v15 = vmax.f32 %v9651_v8, %v9653_v11  ;;  %v9656_v20 = vadd.f32 %v16182_v43, %v9623_v59  ;;  %v9624_v44 = vmul.f32 %v16174_v54, %v9591_v41 }
 0x740   : > { %v9654_v60 = vadd.f32 %v16182_v43, %v9621_v28  ;;  %v9589_v29 = vsel %vm9528_vm3, %v9500_v21, %v9561_v14 }
 0x741   : > { %v10352_v53 = vpack.c.bf16 %v9718_v33, %v9718_v33  ;;  %9684 = vst.msk [vmem:[#allocation5 + $0x58] sm:$0xff] %vm9672_vm5, %v9669_v15  ;;  %v9657_v61 = vadd.f32 %v16182_v43, %v9624_v44  ;;  %v9622_v17 = vmul.f32 %v16174_v54, %v9589_v29 }
 0x742   : > { %v9670_v30 = vmax.f32 %v9654_v60, %v9656_v20 }
 0x743   : > { %9755 = vst.msk [vmem:[%s16226_s29 + $0x10] sm:$0xf] %vm9750_vm13, %v10352_v53  ;;  %v9655_v9 = vadd.f32 %v16182_v43, %v9622_v17 }
 0x744   : > { %9685 = vst.msk [vmem:[#allocation5 + $0x60] sm:$0xff] %vm9672_vm5, %v9670_v30 }
 0x745   : > { %v9671_v35 = vmax.f32 %v9655_v9, %v9657_v61 }
 0x747   : > { %9686 = vst.msk [vmem:[#allocation5 + $0x68] sm:$0xff] %vm9672_vm5, %v9671_v35 }
 0x748   : > { %v9697_v38 = vld [vmem:[#allocation5 + $0x50] ss:$2 sm:$0xff]  ;;  %v9711_v57 = vld [vmem:[#allocation5 + $0x51] ss:$2 sm:$0xff] }
 0x749   : > { %v9719_v22 = vmax.f32 %v9697_v38, %v9711_v57 }
 0x74b   : > { %v10353_v50 = vpack.c.bf16 %v9719_v22, %v9719_v22 }
 0x74d   : > { %9756 = vst.msk [vmem:[%s16226_s29 + $0x14] sm:$0xf] %vm9750_vm13, %v10353_v50 }
 0x74e   : > { %v9699_v51 = vld [vmem:[#allocation5 + $0x60] ss:$2 sm:$0xff]  ;;  %v9713_v16 = vld [vmem:[#allocation5 + $0x61] ss:$2 sm:$0xff] }
 0x74f   : > { %v9720_v54 = vmax.f32 %v9699_v51, %v9713_v16 }
 0x751   : > { %v10354_v32 = vpack.c.bf16 %v9720_v54, %v9720_v54 }
 0x753   : > { %9757 = vst.msk [vmem:[%s16226_s29 + $0x18] sm:$0xf] %vm9750_vm13, %v10354_v32 }
 0x754 PF: > { %s19_s30 = sadd.s32 1, %s11723_s30  }
 0x755   : > { %p16_p4 = scmp.ge.s32.totalorder %s19_s30, 4  }
 0x757   :  { %18 = sbr.rel (!%p16_p4) target bundleno = 1 (0x1), region = 158 }

</bundles_post_ra>
